<compile_context>
chip_gen: v7x
topology: tpu7x:2x2x1
jax: 0.10.0
libtpu: 0.0.40
codegen_flags: <defaults>
</compile_context>

<pallas_src>
import functools

import jax
import jax.numpy as jnp
from jax.experimental import pallas as pl
from jax.experimental.pallas import tpu as pltpu


# ---------------------------------------------------------------------------
# Kernel
# ---------------------------------------------------------------------------
def rtrl_qlstm_kernel(
    # inputs
    x_ref, h_ref, Z_ref, F_ref, wz_ref, wf_ref, bz_ref, bf_ref,
    wmT_ref, wv_z_ref, wv_f_ref, bias_z_ref, bias_f_ref,
    # outputs
    Z_out_ref, F_out_ref, small_out_ref,
    # scratch (persists across the inner I-tile grid axis)
    common3_s, zf3_s, fz3_s,
    *, tile_i,
):
    i_idx = pl.program_id(1)

    # Gate math and the small-state updates do not depend on the I tiling:
    # do them once per batch tile (first I tile), park the broadcast-ready
    # (bB, H, 1) coefficients in VMEM scratch, and write the packed small
    # output once (its block index is constant along the I axis).
    @pl.when(i_idx == 0)
    def _gates():
        x = x_ref[...]                                   # (bB, I) f32
        h = h_ref[...]                                   # (bB, H) f32
        wv_z = wv_z_ref[...]                             # (1, H)
        wv_f = wv_f_ref[...]
        H = h.shape[1]

        # Fused gate matmul, bf16 MXU operands (weights pre-stored in bf16).
        out_zf = jnp.dot(x.astype(jnp.bfloat16), wmT_ref[...],
                         preferred_element_type=jnp.float32)   # (bB, 2H)
        out_z = out_zf[:, :H]
        out_f = out_zf[:, H:]

        z_part = jnp.tanh(out_z + wv_z * h + bias_z_ref[...])
        f_part = jax.nn.sigmoid(out_f + wv_f * h + bias_f_ref[...])
        new_cell = h * f_part + (1.0 - f_part) * z_part

        # RTRL eligibility-trace coefficients (the torch.no_grad block).
        zf_tmp = (1.0 - f_part) * (1.0 - z_part * z_part)        # (bB, H)
        fz_tmp = (h - z_part) * (1.0 - f_part) * f_part           # (bB, H)
        common = f_part + zf_tmp * wv_z + fz_tmp * wv_f            # (bB, H)

        # Hoist the lane->sublane relayout out of the per-I-tile loop.
        common3_s[...] = common[:, :, None]
        zf3_s[...] = zf_tmp[:, :, None]
        fz3_s[...] = fz_tmp[:, :, None]

        # Packed lane-dense slab [new_cell | wz | wf | bz | bf].
        small_out_ref[...] = jnp.concatenate(
            [new_cell,
             h * zf_tmp + common * wz_ref[...],
             h * fz_tmp + common * wf_ref[...],
             zf_tmp + common * bz_ref[...],
             fz_tmp + common * bf_ref[...]],
            axis=-1,
        )

    # Rank-1 trace update for this (batch, I) tile.  Z/F may be stored in
    # bf16 (HBM-bandwidth-bound streams); all arithmetic stays in f32
    # (v5e's VPU has no bf16 ALU), casting only at load/store.
    off = pl.multiple_of(i_idx * tile_i, tile_i)
    x_row = x_ref[:, pl.ds(off, tile_i)][:, None, :]     # (bB, 1, tI)

    common3 = common3_s[...]                             # (bB, H, 1)
    zf3 = zf3_s[...]
    fz3 = fz3_s[...]

    Z_out_ref[...] = (common3 * Z_ref[...].astype(jnp.float32)
                      + zf3 * x_row).astype(Z_out_ref.dtype)
    F_out_ref[...] = (common3 * F_ref[...].astype(jnp.float32)
                      + fz3 * x_row).astype(F_out_ref.dtype)


# ---------------------------------------------------------------------------
# Generation-aware block / VMEM sizing
# ---------------------------------------------------------------------------
@functools.lru_cache(maxsize=1)
def _vmem_capacity_bytes():
    try:
        cap = int(pltpu.get_tpu_info().vmem_capacity_bytes)
        if cap > 0:
            return cap
    except Exception:
        pass
    return 64 * 1024 * 1024          # conservative default (v7x)


def _vmem_limit_bytes():
    cap = _vmem_capacity_bytes()
    # ~75% of physical VMEM, capped at 96 MiB: ~48 MiB on v7x (64 MiB VMEM),
    # ~96 MiB on v5e/v6e (128 MiB VMEM); leaves headroom for the compiler.
    return min((cap * 3) // 4, 96 * 1024 * 1024)


def _estimate_live_vmem(bB, H, I, tI, trace_itemsize):
    traces = 4 * 2 * bB * H * tI * trace_itemsize   # Z/F in+out, double-buffered
    x_blk = 2 * bB * I * 4
    small_in = 2 * 5 * bB * H * 4                   # h, wz, wf, bz, bf
    small_out = 2 * bB * 5 * H * 4
    weights = 2 * I * 2 * H * 2                     # bf16 wmT, double-buffered
    vecs = 2 * 4 * H * 4
    scratch = 3 * bB * H * 128 * 4                  # (bB,H,1) worst-case lane pad
    return traces + x_blk + small_in + small_out + weights + vecs + scratch


def _b_tile_candidates(B):
    return [b for b in range(B, 0, -1) if B % b == 0 and (b == B or b % 8 == 0)]


def _i_tile_candidates(I):
    mults = [m for m in range(128, I, 128) if I % m == 0]
    return [I] + sorted(mults, reverse=True)


def _choose_blocks(B, H, I, trace_itemsize, budget):
    b_cands = _b_tile_candidates(B)
    i_cands = _i_tile_candidates(I)
    fitting = [(bB, tI) for bB in b_cands for tI in i_cands
               if _estimate_live_vmem(bB, H, I, tI, trace_itemsize) <= budget]
    if not fitting:
        # Smallest legal tile (never "one giant block"); vmem_limit has margin.
        return b_cands[-1], i_cands[-1]

    def score(bt):
        bB, tI = bt
        # Prefer a few batch grid steps (pipelining / v7x megacore), then the
        # largest trace tile (amortize ~0.35us/step), then the widest lane dim.
        return (min(B // bB, 4), bB * tI, tI)

    return max(fitting, key=score)


# ---------------------------------------------------------------------------
# Wrapper
# ---------------------------------------------------------------------------
def prepare_params(params):
    """Fold the per-step transpose/concat of the gate weights into one
    kernel-ready (I, 2H) bf16 matrix, done ONCE outside the recurrent loop."""
    wm_z, wm_f, wv_z, wv_f, bias_z, bias_f = params
    wmT = jnp.concatenate([wm_z.T, wm_f.T], axis=1).astype(jnp.bfloat16)
    f32 = jnp.float32
    return (wmT, wv_z.astype(f32), wv_f.astype(f32),
            bias_z.astype(f32), bias_f.astype(f32))


def rtrl_qlstm_step(kernel_params, x, state, *, block_b=None, block_i=None):
    """One forward step. Returns (new_cell, (new_cell, rtrl_states)).

    The Z/F trace storage dtype follows the dtype of the state arrays (pass
    bf16 traces to halve HBM traffic).  Callers should donate `state`
    (jax.jit(..., donate_argnums=...)) so input_output_aliases on Z/F become
    true in-place updates.
    """
    wmT, wv_z, wv_f, bias_z, bias_f = kernel_params
    hidden_prev, (Z_s, F_s, wz_s, wf_s, bz_s, bf_s) = state

    B, I = x.shape
    H = hidden_prev.shape[1]
    f32 = jnp.float32
    trace_dtype = Z_s.dtype
    trace_itemsize = jnp.dtype(trace_dtype).itemsize

    vmem_limit = _vmem_limit_bytes()
    if block_b is None or block_i is None:
        auto_b, auto_i = _choose_blocks(B, H, I, trace_itemsize,
                                        budget=int(vmem_limit * 0.8))
    else:
        auto_b, auto_i = block_b, block_i
    bB = block_b if block_b is not None else auto_b
    tI = block_i if block_i is not None else auto_i

    assert B % bB == 0 and (bB == B or bB % 8 == 0), (B, bB)
    assert I % tI == 0 and (tI == I or tI % 128 == 0), (I, tI)
    grid = (B // bB, I // tI)

    def bmap2(b, i):
        return (b, 0)

    def bmap3(b, i):
        return (b, 0, i)

    def pmap(b, i):
        return (0, 0)

    in_specs = [
        pl.BlockSpec((bB, I), bmap2),          # x (full row, sliced per I tile)
        pl.BlockSpec((bB, H), bmap2),          # hidden_prev
        pl.BlockSpec((bB, H, tI), bmap3),      # Z_state
        pl.BlockSpec((bB, H, tI), bmap3),      # F_state
        pl.BlockSpec((bB, H), bmap2),          # wz_state
        pl.BlockSpec((bB, H), bmap2),          # wf_state
        pl.BlockSpec((bB, H), bmap2),          # bz_state
        pl.BlockSpec((bB, H), bmap2),          # bf_state
        pl.BlockSpec((I, 2 * H), pmap),        # fused bf16 gate weights
        pl.BlockSpec((1, H), pmap),            # wv_z
        pl.BlockSpec((1, H), pmap),            # wv_f
        pl.BlockSpec((1, H), pmap),            # bias_z
        pl.BlockSpec((1, H), pmap),            # bias_f
    ]
    out_specs = (
        pl.BlockSpec((bB, H, tI), bmap3),      # Z_state out
        pl.BlockSpec((bB, H, tI), bmap3),      # F_state out
        pl.BlockSpec((bB, 5 * H), bmap2),      # [new_cell | wz | wf | bz | bf]
    )
    out_shape = (
        jax.ShapeDtypeStruct((B, H, I), trace_dtype),
        jax.ShapeDtypeStruct((B, H, I), trace_dtype),
        jax.ShapeDtypeStruct((B, 5 * H), f32),
    )
    scratch_shapes = [
        pltpu.VMEM((bB, H, 1), f32),           # common_tmp
        pltpu.VMEM((bB, H, 1), f32),           # zf_tmp
        pltpu.VMEM((bB, H, 1), f32),           # fz_tmp
    ]

    # HBM-bandwidth bound: dominated by the 4 x B*H*I trace streams.
    flops = 2 * B * I * 2 * H + 6 * B * H * I + 30 * B * H
    bytes_accessed = (4 * B * H * I * trace_itemsize
                      + 4 * (B * I + 11 * B * H + 4 * H) + 2 * I * 2 * H)
    cost = pl.CostEstimate(flops=flops, transcendentals=2 * B * H,
                           bytes_accessed=bytes_accessed)

    Z_n, F_n, small = pl.pallas_call(
        functools.partial(rtrl_qlstm_kernel, tile_i=tI),
        grid=grid,
        in_specs=in_specs,
        out_specs=out_specs,
        out_shape=out_shape,
        scratch_shapes=scratch_shapes,
        input_output_aliases={2: 0, 3: 1},     # Z, F updated in place when donated
        compiler_params=pltpu.CompilerParams(
            dimension_semantics=("parallel", "arbitrary"),
            vmem_limit_bytes=vmem_limit,
        ),
        cost_estimate=cost,
    )(x, hidden_prev, Z_s, F_s, wz_s, wf_s, bz_s, bf_s,
      wmT, wv_z, wv_f, bias_z, bias_f)

    new_cell = small[:, 0 * H:1 * H]
    wz_n = small[:, 1 * H:2 * H]
    wf_n = small[:, 2 * H:3 * H]
    bz_n = small[:, 3 * H:4 * H]
    bf_n = small[:, 4 * H:5 * H]
    new_state = (new_cell, (Z_n, F_n, wz_n, wf_n, bz_n, bf_n))
    return new_cell, new_state


# ---------------------------------------------------------------------------
# Pure-JAX reference + init helpers (mirror the torch module exactly)
# ---------------------------------------------------------------------------
def rtrl_qlstm_ref(params, x, state):
    wm_z, wm_f, wv_z, wv_f, bias_z, bias_f = params
    h, (Z_s, F_s, wz_s, wf_s, bz_s, bf_s) = state
    out_z = x @ wm_z.T
    out_f = x @ wm_f.T
    z_part = jnp.tanh(out_z + wv_z * h + bias_z)
    f_part = jax.nn.sigmoid(out_f + wv_f * h + bias_f)
    new_cell = h * f_part + (1.0 - f_part) * z_part
    zf_tmp = (1.0 - f_part) * (1.0 - z_part ** 2)
    fz_tmp = (h - z_part) * (1.0 - f_part) * f_part
    common = f_part + zf_tmp * wv_z + fz_tmp * wv_f
    Z_n = common[:, :, None] * Z_s + zf_tmp[:, :, None] * x[:, None, :]
    F_n = common[:, :, None] * F_s + fz_tmp[:, :, None] * x[:, None, :]
    wz_n = h * zf_tmp + common * wz_s
    wf_n = h * fz_tmp + common * wf_s
    bz_n = zf_tmp + common * bz_s
    bf_n = fz_tmp + common * bf_s
    return new_cell, (new_cell, (Z_n, F_n, wz_n, wf_n, bz_n, bf_n))


def init_params(key, input_dim, hidden_dim, forget_bias=0.0):
    ks = jax.random.split(key, 6)
    std = 0.1
    wm_z = std * jax.random.normal(ks[0], (hidden_dim, input_dim), jnp.float32)
    wm_f = std * jax.random.normal(ks[1], (hidden_dim, input_dim), jnp.float32)
    wv_z = std * jax.random.normal(ks[2], (1, hidden_dim), jnp.float32)
    wv_f = std * jax.random.normal(ks[3], (1, hidden_dim), jnp.float32)
    bias_z = std * jax.random.normal(ks[4], (1, hidden_dim), jnp.float32)
    bias_f = std * jax.random.normal(ks[5], (1, hidden_dim), jnp.float32) + forget_bias
    return (wm_z, wm_f, wv_z, wv_f, bias_z, bias_f)


def get_init_states(batch_size, input_dim, hidden_dim):
    f32 = jnp.float32
    rnn_state = jnp.zeros((batch_size, hidden_dim), f32)
    Z_state = jnp.zeros((batch_size, hidden_dim, input_dim), f32)
    F_state = jnp.zeros((batch_size, hidden_dim, input_dim), f32)
    wz_state = jnp.zeros((batch_size, hidden_dim), f32)
    wf_state = jnp.zeros((batch_size, hidden_dim), f32)
    bz_state = jnp.zeros((batch_size, hidden_dim), f32)
    bf_state = jnp.zeros((batch_size, hidden_dim), f32)
    return rnn_state, (Z_state, F_state, wz_state, wf_state, bz_state, bf_state)


# ---------------------------------------------------------------------------
# Demo / self-check
# ---------------------------------------------------------------------------
if __name__ == "__main__":
    # Lane-dense shapes (I, H multiples of 128); B=32 gives >= 4 batch grid
    # steps so each TensorCore still pipelines on megacore parts.
    B, I, H = 32, 256, 128
    key = jax.random.PRNGKey(0)
    k_param, k_x1, k_x2 = jax.random.split(key, 3)

    params = init_params(k_param, I, H, forget_bias=0.0)

    # Round matmul operands to bf16-representable f32 so the bf16-operand MXU
    # matmul in the kernel matches the f32 reference to accumulation order.
    def _bf16_round(a):
        return a.astype(jnp.bfloat16).astype(jnp.float32)

    wm_z, wm_f, wv_z, wv_f, bias_z, bias_f = params
    params = (_bf16_round(wm_z), _bf16_round(wm_f), wv_z, wv_f, bias_z, bias_f)

    x1 = _bf16_round(jax.random.normal(k_x1, (B, I), jnp.float32))
    x2 = _bf16_round(jax.random.normal(k_x2, (B, I), jnp.float32))

    # Non-trivial state via one reference step from zeros so the common*state
    # paths of the RTRL update are exercised too.
    state0 = get_init_states(B, I, H)
    _, state1 = rtrl_qlstm_ref(params, x1, state0)

    # References for step 2, computed before the kernel consumes state1.
    out_ref, (_, rtrl_ref) = rtrl_qlstm_ref(params, x2, state1)
    out_ref = jax.block_until_ready(out_ref)
    jax.block_until_ready(rtrl_ref)

    kparams = prepare_params(params)

    # bf16-trace copy of the state (fresh buffers), built BEFORE the f32 state
    # is donated below.
    h1, (Z1, F1, wz1, wf1, bz1, bf1) = state1
    state1_bf16 = (
        jnp.copy(h1),
        (Z1.astype(jnp.bfloat16), F1.astype(jnp.bfloat16),
         jnp.copy(wz1), jnp.copy(wf1), jnp.copy(bz1), jnp.copy(bf1)),
    )
    jax.block_until_ready(state1_bf16)

    # ---- f32 traces, explicit 2-D (batch, I-tile) grid, donated state ------
    step_f32 = jax.jit(
        functools.partial(rtrl_qlstm_step, block_b=8, block_i=128),
        donate_argnums=(2,),
    )
    out_k, (h_k, rtrl_k) = step_f32(kparams, x2, state1)
    jax.block_until_ready((out_k, h_k, rtrl_k))

    assert jnp.allclose(out_k, out_ref, atol=1e-4, rtol=1e-4), (
        float(jnp.max(jnp.abs(out_k - out_ref))))
    assert jnp.allclose(h_k, out_ref, atol=1e-4, rtol=1e-4)
    assert len(rtrl_k) == len(rtrl_ref) == 6
    for a, b in zip(rtrl_k, rtrl_ref):
        assert a.shape == b.shape, (a.shape, b.shape)
        assert jnp.allclose(a, b, atol=1e-4, rtol=1e-4), (
            float(jnp.max(jnp.abs(a - b))))

    # ---- bf16 traces (halved HBM traffic), auto block chooser, donated -----
    step_bf16 = jax.jit(rtrl_qlstm_step, donate_argnums=(2,))
    out_b, (h_b, rtrl_b) = step_bf16(kparams, x2, state1_bf16)
    jax.block_until_ready((out_b, h_b, rtrl_b))

    assert jnp.allclose(out_b, out_ref, atol=1e-4, rtol=1e-4), (
        float(jnp.max(jnp.abs(out_b - out_ref))))
    for idx, (a, b) in enumerate(zip(rtrl_b, rtrl_ref)):
        assert a.shape == b.shape, (a.shape, b.shape)
        if idx < 2:   # Z/F stored in bf16 -> loose tolerance
            assert jnp.allclose(a.astype(jnp.float32), b, atol=5e-2, rtol=5e-2), (
                float(jnp.max(jnp.abs(a.astype(jnp.float32) - b))))
        else:         # small states stay f32 -> tight
            assert jnp.allclose(a, b, atol=1e-4, rtol=1e-4), (
                float(jnp.max(jnp.abs(a - b))))

    print("KERNEL_OK")
</pallas_src>

<mosaic_0001>
module attributes {stable_mosaic.version = 11 : i64} {
  func.func @rtrl_qlstm_kernel(%arg0: i32, %arg1: i32, %arg2: memref<8x256xf32, #tpu.memory_space<vmem>>, %arg3: memref<8x128xf32, #tpu.memory_space<vmem>>, %arg4: memref<8x128x128xf32, #tpu.memory_space<vmem>>, %arg5: memref<8x128x128xf32, #tpu.memory_space<vmem>>, %arg6: memref<8x128xf32, #tpu.memory_space<vmem>>, %arg7: memref<8x128xf32, #tpu.memory_space<vmem>>, %arg8: memref<8x128xf32, #tpu.memory_space<vmem>>, %arg9: memref<8x128xf32, #tpu.memory_space<vmem>>, %arg10: memref<256x256xbf16, #tpu.memory_space<vmem>>, %arg11: memref<1x128xf32, #tpu.memory_space<vmem>>, %arg12: memref<1x128xf32, #tpu.memory_space<vmem>>, %arg13: memref<1x128xf32, #tpu.memory_space<vmem>>, %arg14: memref<1x128xf32, #tpu.memory_space<vmem>>, %arg15: memref<8x128x128xf32, #tpu.memory_space<vmem>>, %arg16: memref<8x128x128xf32, #tpu.memory_space<vmem>>, %arg17: memref<8x640xf32, #tpu.memory_space<vmem>>, %arg18: memref<8x128x1xf32, #tpu.memory_space<vmem>>, %arg19: memref<8x128x1xf32, #tpu.memory_space<vmem>>, %arg20: memref<8x128x1xf32, #tpu.memory_space<vmem>>) attributes {dimension_semantics = [#tpu.dimension_semantics<parallel>, #tpu.dimension_semantics<arbitrary>], iteration_bounds = array<i64: 4, 2>, scalar_prefetch = 0 : i64, scratch_operands = 3 : i64, tpu.core_type = #tpu.core_type<tc>, window_params = [{transform_indices = @transform_0, window_bounds = array<i64: 8, 256>}, {transform_indices = @transform_1, window_bounds = array<i64: 8, 128>}, {transform_indices = @transform_2, window_bounds = array<i64: 8, 128, 128>}, {transform_indices = @transform_3, window_bounds = array<i64: 8, 128, 128>}, {transform_indices = @transform_4, window_bounds = array<i64: 8, 128>}, {transform_indices = @transform_5, window_bounds = array<i64: 8, 128>}, {transform_indices = @transform_6, window_bounds = array<i64: 8, 128>}, {transform_indices = @transform_7, window_bounds = array<i64: 8, 128>}, {pipeline_mode = #tpu.pipeline_mode<synchronous>, transform_indices = @transform_8, window_bounds = array<i64: 256, 256>}, {pipeline_mode = #tpu.pipeline_mode<synchronous>, transform_indices = @transform_9, window_bounds = array<i64: 1, 128>}, {pipeline_mode = #tpu.pipeline_mode<synchronous>, transform_indices = @transform_10, window_bounds = array<i64: 1, 128>}, {pipeline_mode = #tpu.pipeline_mode<synchronous>, transform_indices = @transform_11, window_bounds = array<i64: 1, 128>}, {pipeline_mode = #tpu.pipeline_mode<synchronous>, transform_indices = @transform_12, window_bounds = array<i64: 1, 128>}, {transform_indices = @transform_13, window_bounds = array<i64: 8, 128, 128>}, {transform_indices = @transform_14, window_bounds = array<i64: 8, 128, 128>}, {transform_indices = @transform_15, window_bounds = array<i64: 8, 640>}]} {
    %c0_i32 = arith.constant 0 : i32
    %0 = arith.cmpi eq, %arg1, %c0_i32 : i32
    %1 = arith.extui %0 : i1 to i32
    %c0_i32_0 = arith.constant 0 : i32
    %2 = arith.cmpi ne, %1, %c0_i32_0 : i32
    scf.if %2 {
      %c0_22 = arith.constant 0 : index
      %c0_23 = arith.constant 0 : index
      %27 = vector.load %arg2[%c0_22, %c0_23] : memref<8x256xf32, #tpu.memory_space<vmem>>, vector<8x256xf32>
      %c0_24 = arith.constant 0 : index
      %c0_25 = arith.constant 0 : index
      %28 = vector.load %arg3[%c0_24, %c0_25] : memref<8x128xf32, #tpu.memory_space<vmem>>, vector<8x128xf32>
      %c0_26 = arith.constant 0 : index
      %c0_27 = arith.constant 0 : index
      %29 = vector.load %arg11[%c0_26, %c0_27] : memref<1x128xf32, #tpu.memory_space<vmem>>, vector<1x128xf32>
      %c0_28 = arith.constant 0 : index
      %c0_29 = arith.constant 0 : index
      %30 = vector.load %arg12[%c0_28, %c0_29] : memref<1x128xf32, #tpu.memory_space<vmem>>, vector<1x128xf32>
      %31 = arith.truncf %27 : vector<8x256xf32> to vector<8x256xbf16>
      %c0_30 = arith.constant 0 : index
      %c0_31 = arith.constant 0 : index
      %32 = vector.load %arg10[%c0_30, %c0_31] : memref<256x256xbf16, #tpu.memory_space<vmem>>, vector<256x256xbf16>
      %cst = arith.constant dense<0.000000e+00> : vector<8x256xf32>
      %33 = tpu.matmul %31, %32, %cst {dimension_numbers = #tpu.dot_dimension_numbers<[1], [0], [0], [1], [0, 0, 1, 1], [], []>} : vector<8x256xbf16>, vector<256x256xbf16>, vector<8x256xf32> -> vector<8x256xf32>
      %34 = vector.extract_strided_slice %33 {offsets = [0, 0], sizes = [8, 128], strides = [1, 1]} : vector<8x256xf32> to vector<8x128xf32>
      %35 = vector.extract_strided_slice %33 {offsets = [0, 128], sizes = [8, 128], strides = [1, 1]} : vector<8x256xf32> to vector<8x128xf32>
      %36 = vector.broadcast %29 : vector<1x128xf32> to vector<8x128xf32>
      %37 = arith.mulf %36, %28 : vector<8x128xf32>
      %38 = arith.addf %34, %37 : vector<8x128xf32>
      %c0_32 = arith.constant 0 : index
      %c0_33 = arith.constant 0 : index
      %39 = vector.load %arg13[%c0_32, %c0_33] : memref<1x128xf32, #tpu.memory_space<vmem>>, vector<1x128xf32>
      %40 = vector.broadcast %39 : vector<1x128xf32> to vector<8x128xf32>
      %41 = arith.addf %38, %40 : vector<8x128xf32>
      %42 = math.tanh %41 : vector<8x128xf32>
      %43 = vector.broadcast %30 : vector<1x128xf32> to vector<8x128xf32>
      %44 = arith.mulf %43, %28 : vector<8x128xf32>
      %45 = arith.addf %35, %44 : vector<8x128xf32>
      %c0_34 = arith.constant 0 : index
      %c0_35 = arith.constant 0 : index
      %46 = vector.load %arg14[%c0_34, %c0_35] : memref<1x128xf32, #tpu.memory_space<vmem>>, vector<1x128xf32>
      %47 = vector.broadcast %46 : vector<1x128xf32> to vector<8x128xf32>
      %48 = arith.addf %45, %47 : vector<8x128xf32>
      %49 = arith.negf %48 : vector<8x128xf32>
      %50 = math.exp %49 : vector<8x128xf32>
      %cst_36 = arith.constant 1.000000e+00 : f32
      %51 = vector.broadcast %cst_36 : f32 to vector<8x128xf32>
      %52 = arith.addf %51, %50 : vector<8x128xf32>
      %53 = arith.divf %51, %52 : vector<8x128xf32>
      %54 = arith.mulf %28, %53 : vector<8x128xf32>
      %cst_37 = arith.constant 1.000000e+00 : f32
      %55 = vector.broadcast %cst_37 : f32 to vector<8x128xf32>
      %56 = arith.subf %55, %53 : vector<8x128xf32>
      %57 = arith.mulf %56, %42 : vector<8x128xf32>
      %58 = arith.addf %54, %57 : vector<8x128xf32>
      %cst_38 = arith.constant 1.000000e+00 : f32
      %59 = vector.broadcast %cst_38 : f32 to vector<8x128xf32>
      %60 = arith.subf %59, %53 : vector<8x128xf32>
      %61 = arith.mulf %42, %42 : vector<8x128xf32>
      %cst_39 = arith.constant 1.000000e+00 : f32
      %62 = vector.broadcast %cst_39 : f32 to vector<8x128xf32>
      %63 = arith.subf %62, %61 : vector<8x128xf32>
      %64 = arith.mulf %60, %63 : vector<8x128xf32>
      %65 = arith.subf %28, %42 : vector<8x128xf32>
      %cst_40 = arith.constant 1.000000e+00 : f32
      %66 = vector.broadcast %cst_40 : f32 to vector<8x128xf32>
      %67 = arith.subf %66, %53 : vector<8x128xf32>
      %68 = arith.mulf %65, %67 : vector<8x128xf32>
      %69 = arith.mulf %68, %53 : vector<8x128xf32>
      %70 = vector.broadcast %29 : vector<1x128xf32> to vector<8x128xf32>
      %71 = arith.mulf %64, %70 : vector<8x128xf32>
      %72 = arith.addf %53, %71 : vector<8x128xf32>
      %73 = vector.broadcast %30 : vector<1x128xf32> to vector<8x128xf32>
      %74 = arith.mulf %69, %73 : vector<8x128xf32>
      %75 = arith.addf %72, %74 : vector<8x128xf32>
      %76 = vector.shape_cast %75 : vector<8x128xf32> to vector<8x128x1xf32>
      %c0_41 = arith.constant 0 : index
      %c0_42 = arith.constant 0 : index
      %c0_43 = arith.constant 0 : index
      %77 = vector.load %arg18[%c0_41, %c0_42, %c0_43] : memref<8x128x1xf32, #tpu.memory_space<vmem>>, vector<8x128x1xf32>
      tpu.vector_store %arg18[%c0_41, %c0_42, %c0_43], %76 {strides = array<i32>} : memref<8x128x1xf32, #tpu.memory_space<vmem>>, vector<8x128x1xf32>,
      %78 = vector.shape_cast %64 : vector<8x128xf32> to vector<8x128x1xf32>
      %c0_44 = arith.constant 0 : index
      %c0_45 = arith.constant 0 : index
      %c0_46 = arith.constant 0 : index
      %79 = vector.load %arg19[%c0_44, %c0_45, %c0_46] : memref<8x128x1xf32, #tpu.memory_space<vmem>>, vector<8x128x1xf32>
      tpu.vector_store %arg19[%c0_44, %c0_45, %c0_46], %78 {strides = array<i32>} : memref<8x128x1xf32, #tpu.memory_space<vmem>>, vector<8x128x1xf32>,
      %80 = vector.shape_cast %69 : vector<8x128xf32> to vector<8x128x1xf32>
      %c0_47 = arith.constant 0 : index
      %c0_48 = arith.constant 0 : index
      %c0_49 = arith.constant 0 : index
      %81 = vector.load %arg20[%c0_47, %c0_48, %c0_49] : memref<8x128x1xf32, #tpu.memory_space<vmem>>, vector<8x128x1xf32>
      tpu.vector_store %arg20[%c0_47, %c0_48, %c0_49], %80 {strides = array<i32>} : memref<8x128x1xf32, #tpu.memory_space<vmem>>, vector<8x128x1xf32>,
      %82 = arith.mulf %28, %64 : vector<8x128xf32>
      %c0_50 = arith.constant 0 : index
      %c0_51 = arith.constant 0 : index
      %83 = vector.load %arg6[%c0_50, %c0_51] : memref<8x128xf32, #tpu.memory_space<vmem>>, vector<8x128xf32>
      %84 = arith.mulf %75, %83 : vector<8x128xf32>
      %85 = arith.addf %82, %84 : vector<8x128xf32>
      %86 = arith.mulf %28, %69 : vector<8x128xf32>
      %c0_52 = arith.constant 0 : index
      %c0_53 = arith.constant 0 : index
      %87 = vector.load %arg7[%c0_52, %c0_53] : memref<8x128xf32, #tpu.memory_space<vmem>>, vector<8x128xf32>
      %88 = arith.mulf %75, %87 : vector<8x128xf32>
      %89 = arith.addf %86, %88 : vector<8x128xf32>
      %c0_54 = arith.constant 0 : index
      %c0_55 = arith.constant 0 : index
      %90 = vector.load %arg8[%c0_54, %c0_55] : memref<8x128xf32, #tpu.memory_space<vmem>>, vector<8x128xf32>
      %91 = arith.mulf %75, %90 : vector<8x128xf32>
      %92 = arith.addf %64, %91 : vector<8x128xf32>
      %c0_56 = arith.constant 0 : index
      %c0_57 = arith.constant 0 : index
      %93 = vector.load %arg9[%c0_56, %c0_57] : memref<8x128xf32, #tpu.memory_space<vmem>>, vector<8x128xf32>
      %94 = arith.mulf %75, %93 : vector<8x128xf32>
      %95 = arith.addf %69, %94 : vector<8x128xf32>
      %96 = tpu.concatenate %58, %85, %89, %92, %95 in 1 : vector<8x128xf32>, vector<8x128xf32>, vector<8x128xf32>, vector<8x128xf32>, vector<8x128xf32> -> vector<8x640xf32>
      %c0_58 = arith.constant 0 : index
      %c0_59 = arith.constant 0 : index
      %97 = vector.load %arg17[%c0_58, %c0_59] : memref<8x640xf32, #tpu.memory_space<vmem>>, vector<8x640xf32>
      tpu.vector_store %arg17[%c0_58, %c0_59], %96 {strides = array<i32>} : memref<8x640xf32, #tpu.memory_space<vmem>>, vector<8x640xf32>,
    } else {
    }
    %c128_i32 = arith.constant 128 : i32
    %3 = arith.muli %arg1, %c128_i32 : i32
    %4 = tpu.assume_multiple %3, 128 : i32
    %c0 = arith.constant 0 : index
    %5 = arith.index_cast %4 : i32 to index
    %6 = vector.load %arg2[%c0, %5] : memref<8x256xf32, #tpu.memory_space<vmem>>, vector<8x128xf32>
    %7 = vector.shape_cast %6 : vector<8x128xf32> to vector<8x1x128xf32>
    %c0_1 = arith.constant 0 : index
    %c0_2 = arith.constant 0 : index
    %c0_3 = arith.constant 0 : index
    %8 = vector.load %arg18[%c0_1, %c0_2, %c0_3] : memref<8x128x1xf32, #tpu.memory_space<vmem>>, vector<8x128x1xf32>
    %c0_4 = arith.constant 0 : index
    %c0_5 = arith.constant 0 : index
    %c0_6 = arith.constant 0 : index
    %9 = vector.load %arg19[%c0_4, %c0_5, %c0_6] : memref<8x128x1xf32, #tpu.memory_space<vmem>>, vector<8x128x1xf32>
    %c0_7 = arith.constant 0 : index
    %c0_8 = arith.constant 0 : index
    %c0_9 = arith.constant 0 : index
    %10 = vector.load %arg20[%c0_7, %c0_8, %c0_9] : memref<8x128x1xf32, #tpu.memory_space<vmem>>, vector<8x128x1xf32>
    %c0_10 = arith.constant 0 : index
    %c0_11 = arith.constant 0 : index
    %c0_12 = arith.constant 0 : index
    %11 = vector.load %arg4[%c0_10, %c0_11, %c0_12] : memref<8x128x128xf32, #tpu.memory_space<vmem>>, vector<8x128x128xf32>
    %12 = vector.broadcast %8 : vector<8x128x1xf32> to vector<8x128x128xf32>
    %13 = arith.mulf %12, %11 : vector<8x128x128xf32>
    %14 = vector.broadcast %9 : vector<8x128x1xf32> to vector<8x128x128xf32>
    %15 = vector.broadcast %7 : vector<8x1x128xf32> to vector<8x128x128xf32>
    %16 = arith.mulf %14, %15 : vector<8x128x128xf32>
    %17 = arith.addf %13, %16 : vector<8x128x128xf32>
    %c0_13 = arith.constant 0 : index
    %c0_14 = arith.constant 0 : index
    %c0_15 = arith.constant 0 : index
    %18 = vector.load %arg15[%c0_13, %c0_14, %c0_15] : memref<8x128x128xf32, #tpu.memory_space<vmem>>, vector<8x128x128xf32>
    tpu.vector_store %arg15[%c0_13, %c0_14, %c0_15], %17 {strides = array<i32>} : memref<8x128x128xf32, #tpu.memory_space<vmem>>, vector<8x128x128xf32>,
    %c0_16 = arith.constant 0 : index
    %c0_17 = arith.constant 0 : index
    %c0_18 = arith.constant 0 : index
    %19 = vector.load %arg5[%c0_16, %c0_17, %c0_18] : memref<8x128x128xf32, #tpu.memory_space<vmem>>, vector<8x128x128xf32>
    %20 = vector.broadcast %8 : vector<8x128x1xf32> to vector<8x128x128xf32>
    %21 = arith.mulf %20, %19 : vector<8x128x128xf32>
    %22 = vector.broadcast %10 : vector<8x128x1xf32> to vector<8x128x128xf32>
    %23 = vector.broadcast %7 : vector<8x1x128xf32> to vector<8x128x128xf32>
    %24 = arith.mulf %22, %23 : vector<8x128x128xf32>
    %25 = arith.addf %21, %24 : vector<8x128x128xf32>
    %c0_19 = arith.constant 0 : index
    %c0_20 = arith.constant 0 : index
    %c0_21 = arith.constant 0 : index
    %26 = vector.load %arg16[%c0_19, %c0_20, %c0_21] : memref<8x128x128xf32, #tpu.memory_space<vmem>>, vector<8x128x128xf32>
    tpu.vector_store %arg16[%c0_19, %c0_20, %c0_21], %25 {strides = array<i32>} : memref<8x128x128xf32, #tpu.memory_space<vmem>>, vector<8x128x128xf32>,
    return
  }
  func.func @transform_0(%arg0: i32, %arg1: i32) -> (i32, i32) {
    %c0_i32 = arith.constant 0 : i32
    %c0_i32_0 = arith.constant 0 : i32
    return %arg0, %c0_i32 : i32, i32
  }
  func.func @transform_1(%arg0: i32, %arg1: i32) -> (i32, i32) {
    %c0_i32 = arith.constant 0 : i32
    %c0_i32_0 = arith.constant 0 : i32
    return %arg0, %c0_i32 : i32, i32
  }
  func.func @transform_2(%arg0: i32, %arg1: i32) -> (i32, i32, i32) {
    %c0_i32 = arith.constant 0 : i32
    %c0_i32_0 = arith.constant 0 : i32
    return %arg0, %c0_i32, %arg1 : i32, i32, i32
  }
  func.func @transform_3(%arg0: i32, %arg1: i32) -> (i32, i32, i32) {
    %c0_i32 = arith.constant 0 : i32
    %c0_i32_0 = arith.constant 0 : i32
    return %arg0, %c0_i32, %arg1 : i32, i32, i32
  }
  func.func @transform_4(%arg0: i32, %arg1: i32) -> (i32, i32) {
    %c0_i32 = arith.constant 0 : i32
    %c0_i32_0 = arith.constant 0 : i32
    return %arg0, %c0_i32 : i32, i32
  }
  func.func @transform_5(%arg0: i32, %arg1: i32) -> (i32, i32) {
    %c0_i32 = arith.constant 0 : i32
    %c0_i32_0 = arith.constant 0 : i32
    return %arg0, %c0_i32 : i32, i32
  }
  func.func @transform_6(%arg0: i32, %arg1: i32) -> (i32, i32) {
    %c0_i32 = arith.constant 0 : i32
    %c0_i32_0 = arith.constant 0 : i32
    return %arg0, %c0_i32 : i32, i32
  }
  func.func @transform_7(%arg0: i32, %arg1: i32) -> (i32, i32) {
    %c0_i32 = arith.constant 0 : i32
    %c0_i32_0 = arith.constant 0 : i32
    return %arg0, %c0_i32 : i32, i32
  }
  func.func @transform_8(%arg0: i32, %arg1: i32) -> (i32, i32) {
    %c0_i32 = arith.constant 0 : i32
    %c0_i32_0 = arith.constant 0 : i32
    %c0_i32_1 = arith.constant 0 : i32
    return %c0_i32, %c0_i32_0 : i32, i32
  }
  func.func @transform_9(%arg0: i32, %arg1: i32) -> (i32, i32) {
    %c0_i32 = arith.constant 0 : i32
    %c0_i32_0 = arith.constant 0 : i32
    %c0_i32_1 = arith.constant 0 : i32
    return %c0_i32, %c0_i32_0 : i32, i32
  }
  func.func @transform_10(%arg0: i32, %arg1: i32) -> (i32, i32) {
    %c0_i32 = arith.constant 0 : i32
    %c0_i32_0 = arith.constant 0 : i32
    %c0_i32_1 = arith.constant 0 : i32
    return %c0_i32, %c0_i32_0 : i32, i32
  }
  func.func @transform_11(%arg0: i32, %arg1: i32) -> (i32, i32) {
    %c0_i32 = arith.constant 0 : i32
    %c0_i32_0 = arith.constant 0 : i32
    %c0_i32_1 = arith.constant 0 : i32
    return %c0_i32, %c0_i32_0 : i32, i32
  }
  func.func @transform_12(%arg0: i32, %arg1: i32) -> (i32, i32) {
    %c0_i32 = arith.constant 0 : i32
    %c0_i32_0 = arith.constant 0 : i32
    %c0_i32_1 = arith.constant 0 : i32
    return %c0_i32, %c0_i32_0 : i32, i32
  }
  func.func @transform_13(%arg0: i32, %arg1: i32) -> (i32, i32, i32) {
    %c0_i32 = arith.constant 0 : i32
    %c0_i32_0 = arith.constant 0 : i32
    return %arg0, %c0_i32, %arg1 : i32, i32, i32
  }
  func.func @transform_14(%arg0: i32, %arg1: i32) -> (i32, i32, i32) {
    %c0_i32 = arith.constant 0 : i32
    %c0_i32_0 = arith.constant 0 : i32
    return %arg0, %c0_i32, %arg1 : i32, i32, i32
  }
  func.func @transform_15(%arg0: i32, %arg1: i32) -> (i32, i32) {
    %c0_i32 = arith.constant 0 : i32
    %c0_i32_0 = arith.constant 0 : i32
    return %arg0, %c0_i32 : i32, i32
  }
}

</mosaic_0001>

<bundles_post_ra>
// kernel: rtrl_qlstm_step.1
= control target key start
LH: loop header
LB: loop body
LE: loop exit
PB: predicated region body
PF: predicated region fallthrough
CT: control target
= control target key end

     0   :  { %s11209_s0 = inlined_call_operand.hbm [shape: f32[32,256], index: 0, kind: input, shape index: {}]   ;;  %s11210_s1 = inlined_call_operand.hbm [shape: f32[32,128], index: 1, kind: input, shape index: {}]   ;;  %s11211_s2 = inlined_call_operand.hbm [shape: f32[32,128,256], index: 2, kind: input, shape index: {}, may-alias: {2,13}]   ;;  %s11212_s3 = inlined_call_operand.hbm [shape: f32[32,128,256], index: 3, kind: input, shape index: {}, may-alias: {3,14}]   ;;  %s11213_s4 = inlined_call_operand.hbm [shape: f32[32,128], index: 4, kind: input, shape index: {}]   ;;  %s11214_s5 = inlined_call_operand.hbm [shape: f32[32,128], index: 5, kind: input, shape index: {}]   ;;  %s11215_s6 = inlined_call_operand.hbm [shape: f32[32,128], index: 6, kind: input, shape index: {}]   ;;  %s11216_s7 = inlined_call_operand.hbm [shape: f32[32,128], index: 7, kind: input, shape index: {}]   ;;  %s11217_s8 = inlined_call_operand.hbm [shape: bf16[256,256], index: 8, kind: input, shape index: {}]   ;;  %s11218_s9 = inlined_call_operand.hbm [shape: f32[1,128], index: 9, kind: input, shape index: {}]   ;;  %s11219_s10 = inlined_call_operand.hbm [shape: f32[1,128], index: 10, kind: input, shape index: {}]   ;;  %s11220_s11 = inlined_call_operand.hbm [shape: f32[1,128], index: 11, kind: input, shape index: {}]   ;;  %s11221_s12 = inlined_call_operand.hbm [shape: f32[1,128], index: 12, kind: input, shape index: {}]   ;;  %s11222_s13 = inlined_call_operand.hbm [shape: f32[32,128,256], index: 13, kind: output, shape index: {0}, may-alias: {2,13}]   ;;  %s11223_s14 = inlined_call_operand.hbm [shape: f32[32,128,256], index: 14, kind: output, shape index: {1}, may-alias: {3,14}]   ;;  %s11224_s15 = inlined_call_operand.vmem [shape: f32[32,640], index: 15, kind: output, shape index: {2}]  }
   0x1   :  { %11380 = sst [smem:[#allocation153_spill]] %s11209_s0 }
   0x2   :  { %11381 = sst [smem:[#allocation154_spill]] %s11210_s1 }
   0x3   :  { %11382 = sst [smem:[#allocation155_spill]] %s11212_s3 }
   0x4   :  { %11383 = sst [smem:[#allocation156_spill]] %s11213_s4 }
   0x5   :  { %11384 = sst [smem:[#allocation157_spill]] %s11214_s5 }
   0x6   :  { %11385 = sst [smem:[#allocation158_spill]] %s11215_s6 }
   0x7   :  { %11386 = sst [smem:[#allocation159_spill]] %s11216_s7 }
   0x8   :  { %11387 = sst [smem:[#allocation160_spill]] %s11217_s8 }
   0x9   :  { %11388 = sst [smem:[#allocation161_spill]] %s11218_s9 }
   0xa   :  { %11389 = sst [smem:[#allocation162_spill]] %s11219_s10 }
   0xb   :  { %11390 = sst [smem:[#allocation163_spill]] %s11220_s11 }
   0xc   :  { %11391 = sst [smem:[#allocation164_spill]] %s11221_s12 }
   0xd   :  { %11392 = sst [smem:[#allocation165_spill]] %s11222_s13 }
   0xe   :  { %11393 = sst [smem:[#allocation166_spill]] %s11223_s14 }
   0xf   :  { %11394 = sst [smem:[#allocation167_spill]] %s11224_s15 }
  0x10   :  { %21 = vsyncpa [#allocation6], 0 }
  0x11   :  { %23 = vsyncpa [#allocation6 + $0x1], 0 }
  0x12   :  { %24 = vsyncpa [#allocation9], 0 }
  0x13   :  { %26 = vsyncpa [#allocation9 + $0x1], 0 }
  0x14   :  { %27 = vsyncpa [#allocation12], 0 }
  0x15   :  { %29 = vsyncpa [#allocation12 + $0x1], 0 }
  0x16   :  { %30 = vsyncpa [#allocation15], 0 }
  0x17   :  { %32 = vsyncpa [#allocation15 + $0x1], 0 }
  0x18   :  { %33 = vsyncpa [#allocation18], 0 }
  0x19   :  { %35 = vsyncpa [#allocation18 + $0x1], 0 }
  0x1a   :  { %36 = vsyncpa [#allocation21], 0 }
  0x1b   :  { %37 = vsyncpa [#allocation24], 0 }
  0x1c   :  { %38 = vsyncpa [#allocation7], 0 }
  0x1d   :  { %40 = vsyncpa [#allocation7 + $0x1], 0 }
  0x1e   :  { %41 = vsyncpa [#allocation28], 0 }
  0x1f   :  { %43 = vsyncpa [#allocation28 + $0x1], 0  ;;  %s8304_s18 = smov 0   ;;  %s8306_s19 = smov 0  }
  0x20   :  { %s8308_s20 = smov 0   ;;  %s8310_s21 = smov 0  }
  0x21   :  { %s8312_s22 = smov 0   ;;  %s8314_s23 = smov 0  }
  0x22   :  { %s8316_s24 = smov 0   ;;  %s8318_s25 = smov 0  }
  0x23   :  { %s8320_s26 = smov 0   ;;  %s8322_s27 = smov 0  }
  0x24   :  { %s8324_s28 = smov 0  }
  0x25 LB: > { %11395 = sst [smem:[#allocation41_spill]] %s8159_s18  ;;  %s8360_s29 = sadd.s32 4294967295, %s8199_s28   ;;  %s8199_s28 = sphi %s8324_s28, %s49_s28   ;;  %s8195_s27 = sphi %s8322_s27, %s11775_s27   ;;  %s8191_s26 = sphi %s8320_s26, %s11770_s26   ;;  %s8187_s25 = sphi %s8318_s25, %s11774_s25   ;;  %s8183_s24 = sphi %s8316_s24, %s11769_s24   ;;  %s8179_s23 = sphi %s8314_s23, %s11768_s23   ;;  %s8175_s22 = sphi %s8312_s22, %s11767_s22   ;;  %s8171_s21 = sphi %s8310_s21, %s11766_s21   ;;  %s8167_s20 = sphi %s8308_s20, %s11773_s20   ;;  %s8163_s19 = sphi %s8306_s19, %s11772_s19   ;;  %s8159_s18 = sphi %s8304_s18, %s11764_s18  }
  0x26   : > { %11396 = sst [smem:[#allocation42_spill]] %s8163_s19  ;;  %p7270_p0 = scmp.ge.s32.totalorder %s8199_s28, 1 }
  0x27   : > { %11397 = sst [smem:[#allocation43_spill]] %s8175_s22  ;;  %p11238_p1 = scmp.eq.s32.totalorder %s8360_s29, 0 }
  0x28   : > { %11398 = sst [smem:[#allocation44_spill]] %s8179_s23  ;;  %p465_p2 = scmp.lt.s32.totalorder %s8199_s28, 9 }
  0x29   : > { %11399 = sst [smem:[#allocation45_spill]] %s8183_s24  ;;  %s8201_s16 = smov [#allocation19]  }
  0x2a   : > { %11400 = sst [smem:[#allocation46_spill]] %s8187_s25  ;;  %p8365_p3 = pnand %p7270_p0, %p465_p2 }
  0x2b   : > { %11401 = sst [smem:[#allocation47_spill]] %s8191_s26  ;;  %s477_s17 = sshll.u32 %s8201_s16, 4  ;;  %s8369_s17 = int_to_ptr.vmem [resolvable:$true] %s477_s17 }
  0x2c   : > { %11402 = sst [smem:[#allocation48_spill]] %s8360_s29  ;;  %p7411_p4 = pneg %p8365_p3 }
  0x2d   : > { %s11403_s30 = scalar_select %p8365_p3, 1, 0 }
  0x2e   : > { %p8375_p5 = pnand %p7411_p4, %p11238_p1  ;;  %s8202_s13 = smov [#allocation20]  }
  0x2f   : > { %11404 = sst [smem:[#allocation49_spill]] %s11403_s30  ;;  %s491_s24 = sshll.u32 %s8202_s13, 4  ;;  %s8379_s24 = int_to_ptr.vmem [resolvable:$true] %s491_s24 }
  0x30   : > { %s11405_s14 = scalar_select %p8375_p5, 1, 0 }
  0x31   : > { %s8203_s15 = smov [#allocation23]   ;;  %s11406_s8 = sld [smem:[#allocation160_spill]] }
  0x32   : > { %s8381_s25 = sshll.u32 %s8203_s15, 4  ;;  %p8391_p7 = pneg %p8375_p5  ;;  %s514_s25 = int_to_ptr.vmem [resolvable:$true] %s8381_s25 }
  0x34   : > { %s11407_s0 = scalar_select %p8391_p7, 1, 0 }
  0x37   : > { %s7629_s16 = scalar_lea.hbm %s11406_s8, 4096 }
  0x38   : > { %p7630_p6 = scmp.ne.s32.totalorder %s11406_s8, %s7629_s16  ;;  %p7636_p10 = scmp.lt.u32.totalorder %s7629_s16, %s11406_s8 }
  0x3a   : > { %p7632_p8 = pnand %p8391_p7, %p7630_p6 }
  0x3c   : > { %p7633_p9 = pneg %p7632_p8 }
  0x3e   : > { %p7638_p11 = pnand %p7636_p10, %p7633_p9 }
  0x40   : > { %7641 = shalt.err (!%p7638_p11)
}
  0x41   : > { %s7642_s4 = scalar_lea.vmem %s8369_s17, 4096  ;;  %p7650_p2 = scmp.lt.s32.totalorder %s8369_s17, %s8369_s17 }
  0x42   : > { %p7643_p12 = scmp.ne.s32.totalorder %s8369_s17, %s7642_s4  ;;  %p7651_p4 = scmp.lt.s32.totalorder %s7642_s4, %s7642_s4 }
  0x44   : > { %p7645_p13 = pnand %p7643_p12, %p8391_p7  ;;  %p7652_p6 = por %p7651_p4, %p7650_p2 }
  0x46   : > { %p7646_p0 = pneg %p7645_p13 }
  0x48   : > { %p7653_p8 = pnand %p7652_p6, %p7646_p0 }
  0x4a   : > { %7656 = shalt.err (!%p7653_p8)
}
  0x4b   : > { %s11240_s6 = smov 128   ;;  %s11242_s7 = smov 8  }
  0x4c   : > { %7414 = dma.hbm_to_vmem [thread:$0]  (!%p8375_p5), %s11406_s8, 4096, %s8369_s17, [#allocation18], %s11240_s6, %s11240_s6, %s11242_s7  }
  0x4d   : > { %s11408_s9 = sld [smem:[#allocation161_spill]] }
  0x53   : > { %s7657_s4 = scalar_lea.hbm %s11408_s9, 16 }
  0x54   : > { %p7658_p9 = scmp.ne.s32.totalorder %s11408_s9, %s7657_s4  ;;  %p7664_p12 = scmp.lt.u32.totalorder %s7657_s4, %s11408_s9 }
  0x56   : > { %p7660_p10 = pnand %p7658_p9, %p8391_p7 }
  0x58   : > { %p7661_p11 = pneg %p7660_p10 }
  0x5a   : > { %p7666_p13 = pnand %p7664_p12, %p7661_p11 }
  0x5c   : > { %7669 = shalt.err (!%p7666_p13)
}
  0x5d   : > { %s7670_s17 = scalar_lea.vmem %s8379_s24, 16  ;;  %s7677_s10 = scalar_lea.vmem %s8379_s24, 32 }
  0x5e   : > { %p7671_p0 = scmp.ne.s32.totalorder %s8379_s24, %s7670_s17  ;;  %p7678_p6 = scmp.lt.s32.totalorder %s8379_s24, %s8379_s24 }
  0x5f   : > { %p7679_p8 = scmp.lt.s32.totalorder %s7677_s10, %s7670_s17 }
  0x60   : > { %p7673_p2 = pnand %p7671_p0, %p8391_p7 }
  0x61   : > { %p7680_p9 = por %p7679_p8, %p7678_p6 }
  0x62   : > { %p7674_p4 = pneg %p7673_p2 }
  0x64   : > { %p7681_p10 = pnand %p7680_p9, %p7674_p4 }
  0x66   : > { %7684 = shalt.err (!%p7681_p10)
}
  0x67   : > { %7417 = dma.hbm_to_vmem [thread:$0]  (!%p8375_p5), %s11408_s9, 16, %s8379_s24, [#allocation21]  }
  0x68   : > { %s11409_s11 = sld [smem:[#allocation163_spill]] }
  0x6e   : > { %s7685_s16 = scalar_lea.hbm %s11409_s11, 16 }
  0x6f   : > { %p7686_p11 = scmp.ne.s32.totalorder %s11409_s11, %s7685_s16  ;;  %p7692_p0 = scmp.lt.u32.totalorder %s7685_s16, %s11409_s11 }
  0x71   : > { %p7688_p12 = pnand %p7686_p11, %p8391_p7 }
  0x73   : > { %p7689_p13 = pneg %p7688_p12 }
  0x75   : > { %p7694_p2 = pnand %p7692_p0, %p7689_p13 }
  0x77   : > { %7697 = shalt.err (!%p7694_p2)
}
  0x78   : > { %s7698_s10 = scalar_lea.vmem %s514_s25, 16  ;;  %s7705_s24 = scalar_lea.vmem %s514_s25, 32 }
  0x79   : > { %p7699_p4 = scmp.ne.s32.totalorder %s514_s25, %s7698_s10  ;;  %p7706_p9 = scmp.lt.s32.totalorder %s514_s25, %s514_s25 }
  0x7a   : > { %p7707_p10 = scmp.lt.s32.totalorder %s7705_s24, %s7698_s10 }
  0x7b   : > { %p7701_p6 = pnand %p7699_p4, %p8391_p7 }
  0x7c   : > { %p7708_p1 = por %p7707_p10, %p7706_p9 }
  0x7d   : > { %p7702_p8 = pneg %p7701_p6 }
  0x7f   : > { %p7709_p3 = pnand %p7708_p1, %p7702_p8 }
  0x81   : > { %7712 = shalt.err (!%p7709_p3)
}
  0x82   : > { %7423 = dma.hbm_to_vmem [thread:$0]  (!%p8375_p5), %s11409_s11, 16, %s514_s25, [#allocation24]  }
  0x83   : > { %p75_p1 = scmp.ne.s32.totalorder %s8179_s23, %s8175_s22  ;;  %p11245_p3 = scmp.eq.s32.totalorder %s8199_s28, 0 }
  0x84   : > { %p81_p11 = scmp.ne.s32.totalorder %s8175_s22, %s8171_s21  ;;  %p11244_p12 = scmp.lt.s32.totalorder %s8199_s28, 8 }
  0x85   : > { %s8467_s16 = sand.u32 1, %s8179_s23   ;;  %p77_p13 = por %p11245_p3, %p75_p1 }
  0x86   : > { %11410 = sst [smem:[#allocation50_spill]] %s8467_s16  ;;  %p11411_p0 = scmp.eq.s32.totalorder %s8360_s29, 0 }
  0x87   : > { %s8478_s15 = sand.u32 1, %s8199_s28   ;;  %s8481_s25 = sshll.u32 %s8467_s16, 3 }
  0x88   : > { %p8473_p2 = por %p11411_p0, %p81_p11  ;;  %p8485_p4 = pnand %p11244_p12, %p77_p13 }
  0x89   : > { %s8490_s4 = sshll.u32 %s8195_s27, 7  ;;  %s11415_s1 = sld [smem:[#allocation154_spill]] }
  0x8a   : > { %s11412_s13 = scalar_select %p8473_p2, 1, 0 }
  0x8b   : > { %s11414_s21 = scalar_select %p8485_p4, 1, 0 }
  0x8c   : > { %11413 = sst [smem:[#allocation51_spill]] %s11412_s13  ;;  %s558_s3 = scalar_lea.vmem [#allocation8], %s8481_s25 }
  0x8d   : > { %s565_s5 = sshll.u32 %s558_s3, 4  ;;  %p8506_p8 = pneg %p8485_p4  ;;  %s8499_s5 = int_to_ptr.vmem [resolvable:$true] %s565_s5 }
  0x8f   : > { %s8496_s24 = scalar_lea.hbm %s11415_s1, %s8490_s4  ;;  %s7718_s12 = scalar_lea.hbm %s11415_s1, 512 }
  0x90   : > { %s7713_s7 = scalar_lea.hbm %s8496_s24, 128  ;;  %p7719_p1 = scmp.lt.u32.totalorder %s8496_s24, %s11415_s1 }
  0x91   : > { %p7714_p6 = scmp.ne.s32.totalorder %s8496_s24, %s7713_s7  ;;  %p7720_p11 = scmp.lt.u32.totalorder %s7718_s12, %s7713_s7 }
  0x92   : > { %s11416_s30 = scalar_select %p8506_p8, 1, 0 }
  0x93   : > { %p7716_p9 = pnand %p8506_p8, %p7714_p6  ;;  %p7721_p13 = por %p7720_p11, %p7719_p1 }
  0x94   : > { %p7722_p0 = scmp.lt.u32.totalorder %s7713_s7, %s8496_s24 }
  0x95   : > { %p7717_p10 = pneg %p7716_p9 }
  0x96   : > { %p7723_p12 = por %p7722_p0, %p7721_p13 }
  0x98   : > { %p7724_p3 = pnand %p7723_p12, %p7717_p10 }
  0x9a   : > { %7727 = shalt.err (!%p7724_p3)
}
  0x9b   : > { %s7728_s6 = scalar_lea.vmem %s8499_s5, 128  ;;  %s8206_s17 = smov [#allocation8]  }
  0x9c   : > { %p7729_p6 = scmp.ne.s32.totalorder %s8499_s5, %s7728_s6  ;;  %s7733_s10 = sshll.u32 %s8206_s17, 4  ;;  %s7734_s10 = int_to_ptr.vmem [resolvable:$false] %s7733_s10 }
  0x9d   : > { %s7735_s8 = scalar_lea.vmem %s7734_s10, 256  ;;  %p7736_p5 = scmp.lt.s32.totalorder %s8499_s5, %s7734_s10 }
  0x9e   : > { %p7731_p9 = pnand %p7729_p6, %p8506_p8  ;;  %p7737_p7 = scmp.lt.s32.totalorder %s7735_s8, %s7728_s6 }
  0xa0   : > { %p7732_p2 = pneg %p7731_p9  ;;  %p7738_p1 = por %p7737_p7, %p7736_p5 }
  0xa2   : > { %p7739_p11 = pnand %p7738_p1, %p7732_p2 }
  0xa4   : > { %7742 = shalt.err (!%p7739_p11)
}
  0xa5   : > { %s11417_s7 = scalar_lea.sflag [#allocation9], %s8478_s15  ;;  %s7269_s6 = sadd.s32 4294967294, %s8199_s28  }
  0xa6   : > { %7433 = dma.hbm_to_vmem [thread:$0]  (!%p8485_p4), %s8496_s24, 128, %s8499_s5, %s11417_s7  }
  0xa7   : > { %s58_s12 = sadd.s32 1, %s8191_s26  ;;  %s122_s3 = sadd.s32 1, %s8167_s20 }
  0xa8   : > { %p59_p5 = scmp.ge.s32.totalorder %s58_s12, 2  ;;  %p129_p7 = scmp.ne.s32.totalorder %s8167_s20, %s8163_s19 }
  0xa9   : > { %p135_p3 = scmp.ne.s32.totalorder %s8163_s19, %s8159_s18  ;;  %p398_p12 = scmp.eq.s32.totalorder %s8360_s29, 7 }
  0xaa   : > { %s11777_s12 = smov (%p59_p5, %s58_s12), 0  ;;  %s11419_s17 = sadd.s32 1, %s8195_s27 }
  0xab   : > { %11418 = sst [smem:[#allocation52_spill]] %s11777_s12  ;;  %s11779_s17 = smov (!%p59_p5, %s11419_s17), %s8195_s27 }
  0xac   : > { %s118_s10 = ssub.s32 %s8191_s26, %s11777_s12  ;;  %p11420_p2 = scmp.eq.s32.totalorder %s8199_s28, 0 }
  0xad   : > { %p63_p13 = scmp.ge.s32.totalorder %s11779_s17, 4  ;;  %p11422_p0 = scmp.eq.s32.totalorder %s8360_s29, 0 }
  0xae   : > { %p8548_p10 = por %p129_p7, %p11420_p2  ;;  %p8558_p9 = por %p398_p12, %p129_p7 }
  0xaf   : > { %p8554_p6 = por %p135_p3, %p11422_p0  ;;  %p404_p1 = scmp.eq.s32.totalorder %s7269_s6, 7 }
  0xb0   : > { %s11425_s8 = scalar_select %p8558_p9, 1, 0 }
  0xb1   : > { %s11423_s5 = scalar_select %p8554_p6, 1, 0 }
  0xb2   : > { %11426 = sst [smem:[#allocation54_spill]] %s11425_s8  ;;  %s11781_s17 = smov (%p63_p13, %s11779_s17), 0 }
  0xb3   : > { %11424 = sst [smem:[#allocation53_spill]] %s11423_s5  ;;  %p8564_p11 = por %p404_p1, %p135_p3 }
  0xb4   : > { %11427 = sst [smem:[#allocation55_spill]] %s11781_s17  ;;  %s11271_s1 = sshll.u32 %s8195_s27, 8 }
  0xb5   : > { %s11428_s7 = scalar_select %p8564_p11, 1, 0 }
  0xb6   : > { %s65_s9 = ssub.s32 %s8195_s27, %s11781_s17  ;;  %s574_s11 = sand.u32 1, %s8167_s20  }
  0xb7   : > { %11429 = sst [smem:[#allocation56_spill]] %s11428_s7  ;;  %p66_p5 = scmp.eq.s32.totalorder %s65_s9, 0 }
  0xb8   : > { %s119_s12 = sor.u32 %s118_s10, %s65_s9  ;;  %s7282_s18 = sshll.u32 %s574_s11, 10 }
  0xb9   : > { %p120_p7 = scmp.eq.s32.totalorder %s119_s12, 0  ;;  %s11430_s5 = sadd.s32 1, %s8179_s23 }
  0xba   : > { %s8575_s8 = scalar_select %p66_p5, %s8179_s23, %s11430_s5  }
  0xbb   : > { %s8578_s6 = scalar_select %p120_p7, %s8167_s20, %s122_s3  }
  0xbc   : > { %11431 = sst [smem:[#allocation57_spill]] %s8575_s8  ;;  %s582_s19 = sadd.s32 %s8191_s26, %s11271_s1 }
  0xbd   : > { %11432 = sst [smem:[#allocation58_spill]] %s8578_s6  ;;  %s7285_s29 = sshll.u32 %s582_s19, 7 }
  0xbe   : > { %s576_s13 = scalar_lea.vmem [#allocation10], %s7282_s18  ;;  %s8586_s17 = scalar_lea.hbm %s11211_s2, %s7285_s29 }
  0xbf   : > { %s585_s7 = sshll.u32 %s576_s13, 4  ;;  %p11433_p3 = scmp.lt.s32.totalorder %s8199_s28, 8  ;;  %s8588_s7 = int_to_ptr.vmem [resolvable:$true] %s585_s7 }
  0xc0   : > { %s11435_s3 = sld [smem:[#allocation155_spill]]  ;;  %s599_s22 = scalar_lea.vmem [#allocation11], %s7282_s18 }
  0xc1   : > { %p8594_p12 = pnand %p11433_p3, %p8548_p10  ;;  %s608_s16 = sshll.u32 %s599_s22, 4  ;;  %s8603_s16 = int_to_ptr.vmem [resolvable:$true] %s608_s16 }
  0xc2   : > { %s11276_s13 = scalar_lea.sflag [#allocation12], %s8478_s15 }
  0xc3   : > { %s11434_s9 = scalar_select %p8594_p12, 1, 0 }
  0xc4   : > { %p11275_p10 = pneg %p8594_p12 }
  0xc6   : > { %s8601_s19 = scalar_lea.hbm %s11435_s3, %s7285_s29  ;;  %s7748_s5 = scalar_lea.hbm %s11435_s3, 131072 }
  0xc7   : > { %s7743_s10 = scalar_lea.hbm %s8601_s19, 16384  ;;  %p7749_p1 = scmp.lt.u32.totalorder %s8601_s19, %s11435_s3 }
  0xc8   : > { %p7744_p2 = scmp.ne.s32.totalorder %s8601_s19, %s7743_s10  ;;  %p7750_p5 = scmp.lt.u32.totalorder %s7748_s5, %s7743_s10 }
  0xc9   : > { %p7752_p3 = scmp.lt.u32.totalorder %s7743_s10, %s8601_s19 }
  0xca   : > { %p7746_p13 = pnand %p11275_p10, %p7744_p2  ;;  %p7751_p7 = por %p7750_p5, %p7749_p1 }
  0xcc   : > { %p7747_p0 = pneg %p7746_p13  ;;  %p7753_p11 = por %p7752_p3, %p7751_p7 }
  0xce   : > { %p7754_p9 = pnand %p7753_p11, %p7747_p0 }
  0xd0   : > { %7757 = shalt.err (!%p7754_p9)
}
  0xd1   : > { %s7758_s18 = scalar_lea.vmem %s8603_s16, 16384  ;;  %s8207_s22 = smov [#allocation11]  }
  0xd2   : > { %p7759_p2 = scmp.ne.s32.totalorder %s8603_s16, %s7758_s18  ;;  %s7763_s24 = sshll.u32 %s8207_s22, 4  ;;  %s7764_s24 = int_to_ptr.vmem [resolvable:$false] %s7763_s24 }
  0xd3   : > { %s7765_s29 = scalar_lea.vmem %s7764_s24, 32768  ;;  %p7766_p4 = scmp.lt.s32.totalorder %s8603_s16, %s7764_s24 }
  0xd4   : > { %p7761_p13 = pnand %p7759_p2, %p11275_p10  ;;  %p7767_p1 = scmp.lt.s32.totalorder %s7765_s29, %s7758_s18 }
  0xd6   : > { %p7762_p6 = pneg %p7761_p13  ;;  %p7768_p5 = por %p7767_p1, %p7766_p4 }
  0xd8   : > { %p7769_p7 = pnand %p7768_p5, %p7762_p6 }
  0xda   : > { %7772 = shalt.err (!%p7769_p7)
}
  0xdb   : > { %s11277_s10 = smov 256   ;;  %s11436_s5 = smov 8  }
  0xdc   : > { %s11437_s11 = smov 128   ;;  %s11438_s22 = sld [smem:[#allocation157_spill]] }
  0xdd   : > { %7439 = dma.hbm_to_vmem [thread:$0]  (!%p8594_p12), %s8601_s19, 16384, %s8603_s16, %s11276_s13, %s11277_s10, %s11437_s11, %s11436_s5  }
  0xde   : > { %s640_s1 = scalar_lea.vmem [#allocation14], %s8481_s25  ;;  %s8209_s26 = smov [#allocation22]  }
  0xdf   : > { %s647_s3 = sshll.u32 %s640_s1, 4  ;;  %s8645_s8 = sshll.u32 %s8209_s26, 4  ;;  %s8643_s3 = int_to_ptr.vmem [resolvable:$true] %s647_s3  ;;  %s503_s8 = int_to_ptr.vmem [resolvable:$true] %s8645_s8 }
  0xe0   : > { %s11280_s23 = scalar_lea.sflag [#allocation15], %s8478_s15 }
  0xe2   : > { %s11439_s29 = smov %s11438_s22  ;;  %s8640_s24 = scalar_lea.hbm %s11438_s22, %s8490_s4 }
  0xe3   : > { %s7773_s6 = scalar_lea.hbm %s8640_s24, 128  ;;  %s7778_s12 = scalar_lea.hbm %s11439_s29, 512 }
  0xe4   : > { %p7774_p4 = scmp.ne.s32.totalorder %s8640_s24, %s7773_s6  ;;  %p7779_p11 = scmp.lt.u32.totalorder %s8640_s24, %s11439_s29 }
  0xe5   : > { %p7780_p0 = scmp.lt.u32.totalorder %s7778_s12, %s7773_s6  ;;  %p7782_p2 = scmp.lt.u32.totalorder %s7773_s6, %s8640_s24 }
  0xe6   : > { %p7776_p6 = pnand %p7774_p4, %p8506_p8 }
  0xe7   : > { %p7781_p3 = por %p7780_p0, %p7779_p11 }
  0xe8   : > { %p7777_p9 = pneg %p7776_p6 }
  0xe9   : > { %p7783_p13 = por %p7782_p2, %p7781_p3 }
  0xeb   : > { %p7784_p1 = pnand %p7783_p13, %p7777_p9 }
  0xed   : > { %7787 = shalt.err (!%p7784_p1)
}
  0xee   : > { %s7788_s1 = scalar_lea.vmem %s8643_s3, 128  ;;  %s8210_s26 = smov [#allocation14]  }
  0xef   : > { %p7789_p5 = scmp.ne.s32.totalorder %s8643_s3, %s7788_s1  ;;  %s7793_s19 = sshll.u32 %s8210_s26, 4  ;;  %s7794_s19 = int_to_ptr.vmem [resolvable:$false] %s7793_s19 }
  0xf0   : > { %s7795_s16 = scalar_lea.vmem %s7794_s19, 256  ;;  %p7796_p6 = scmp.lt.s32.totalorder %s8643_s3, %s7794_s19 }
  0xf1   : > { %p7791_p7 = pnand %p7789_p5, %p8506_p8  ;;  %p7797_p10 = scmp.lt.s32.totalorder %s7795_s16, %s7788_s1 }
  0xf3   : > { %p7792_p4 = pneg %p7791_p7  ;;  %p7798_p11 = por %p7797_p10, %p7796_p6 }
  0xf5   : > { %p7799_p0 = pnand %p7798_p11, %p7792_p4 }
  0xf7   : > { %7802 = shalt.err (!%p7799_p0)
}
  0xf8   : > { %p11440_p9 = scmp.ne.s32.totalorder %s11414_s21, 0  ;;  %s11441_s18 = sld [smem:[#allocation162_spill]] }
  0xf9   : > { %p11443_p3 = scmp.ne.s32.totalorder %s11407_s0, 0 }
  0xfa   : > { %7445 = dma.hbm_to_vmem [thread:$0]  (!%p11440_p9), %s8640_s24, 128, %s8643_s3, %s11280_s23  }
  0xfe   : > { %s11442_s13 = smov %s11441_s18  ;;  %s7803_s22 = scalar_lea.hbm %s11441_s18, 16 }
  0xff   : > { %p7804_p10 = scmp.ne.s32.totalorder %s11442_s13, %s7803_s22  ;;  %p7810_p1 = scmp.lt.u32.totalorder %s7803_s22, %s11442_s13 }
 0x101   : > { %p7806_p2 = pnand %p7804_p10, %p11443_p3 }
 0x103   : > { %p7807_p13 = pneg %p7806_p2 }
 0x105   : > { %p7812_p5 = pnand %p7810_p1, %p7807_p13 }
 0x107   : > { %7815 = shalt.err (!%p7812_p5)
}
 0x108   : > { %s7816_s10 = scalar_lea.vmem %s503_s8, 16  ;;  %s7823_s3 = scalar_lea.vmem %s503_s8, 32 }
 0x109   : > { %p7817_p7 = scmp.ne.s32.totalorder %s503_s8, %s7816_s10  ;;  %p7824_p11 = scmp.lt.s32.totalorder %s503_s8, %s503_s8 }
 0x10a   : > { %p7825_p0 = scmp.lt.s32.totalorder %s7823_s3, %s7816_s10 }
 0x10b   : > { %p7819_p4 = pnand %p7817_p7, %p11443_p3 }
 0x10c   : > { %p7826_p12 = por %p7825_p0, %p7824_p11 }
 0x10d   : > { %p7820_p6 = pneg %p7819_p4 }
 0x10f   : > { %p7827_p9 = pnand %p7826_p12, %p7820_p6 }
 0x111   : > { %7830 = shalt.err (!%p7827_p9)
}
 0x112   : > { %p11444_p10 = scmp.ne.s32.totalorder %s11405_s14, 0  ;;  %s11445_s12 = sld [smem:[#allocation50_spill]] }
 0x113   : > { %s8211_s18 = smov [#allocation25]   ;;  %s11446_s16 = sld [smem:[#allocation164_spill]] }
 0x114   : > { %7420 = dma.hbm_to_vmem [thread:$0]  (!%p11444_p10), %s11442_s13, 16, %s503_s8, [#allocation21]  }
 0x115   : > { %s524_s22 = sshll.u32 %s8211_s18, 4  ;;  %s525_s22 = int_to_ptr.vmem [resolvable:$true] %s524_s22 }
 0x118   : > { %s7277_s26 = sshll.u32 %s11445_s12, 4 }
 0x119   : > { %s7831_s23 = scalar_lea.hbm %s11446_s16, 16 }
 0x11a   : > { %p7832_p12 = scmp.ne.s32.totalorder %s11446_s16, %s7831_s23  ;;  %p7838_p13 = scmp.lt.u32.totalorder %s7831_s23, %s11446_s16 }
 0x11c   : > { %p7834_p9 = pnand %p7832_p12, %p11443_p3 }
 0x11e   : > { %p7835_p2 = pneg %p7834_p9 }
 0x120   : > { %p7840_p1 = pnand %p7838_p13, %p7835_p2 }
 0x122   : > { %7843 = shalt.err (!%p7840_p1)
}
 0x123   : > { %s7844_s8 = scalar_lea.vmem %s525_s22, 16  ;;  %s7851_s6 = scalar_lea.vmem %s525_s22, 32 }
 0x124   : > { %p7845_p5 = scmp.ne.s32.totalorder %s525_s22, %s7844_s8  ;;  %p7852_p6 = scmp.lt.s32.totalorder %s525_s22, %s525_s22 }
 0x125   : > { %p7853_p11 = scmp.lt.s32.totalorder %s7851_s6, %s7844_s8 }
 0x126   : > { %p7847_p7 = pnand %p7845_p5, %p11443_p3 }
 0x127   : > { %p7854_p0 = por %p7853_p11, %p7852_p6 }
 0x128   : > { %p7848_p4 = pneg %p7847_p7 }
 0x12a   : > { %p7855_p8 = pnand %p7854_p0, %p7848_p4 }
 0x12c   : > { %7858 = shalt.err (!%p7855_p8)
}
 0x12d   : > { %7426 = dma.hbm_to_vmem [thread:$0]  (!%p11444_p10), %s11446_s16, 16, %s525_s22, [#allocation24]  }
 0x12e   : > { %s11447_s23 = sshll.u32 %s8195_s27, 8  ;;  %s11448_s1 = sld [smem:[#allocation153_spill]] }
 0x12f   : > { %s539_s3 = scalar_lea.vmem [#allocation5], %s7277_s26  ;;  %s11449_s6 = sld [smem:[#allocation156_spill]] }
 0x130   : > { %s547_s14 = sshll.u32 %s539_s3, 4  ;;  %s536_s22 = scalar_lea.sflag [#allocation6], %s11445_s12  ;;  %s8716_s14 = int_to_ptr.vmem [resolvable:$true] %s547_s14 }
 0x131   : > { %p11450_p3 = scmp.ne.s32.totalorder %s11416_s30, 0 }
 0x134   : > { %s8714_s10 = scalar_lea.hbm %s11448_s1, %s11447_s23  ;;  %s7864_s29 = scalar_lea.hbm %s11448_s1, 1024 }
 0x135   : > { %s8722_s18 = scalar_lea.hbm %s11449_s6, %s8490_s4  ;;  %s7859_s19 = scalar_lea.hbm %s8714_s10, 256 }
 0x136   : > { %p7860_p8 = scmp.ne.s32.totalorder %s8714_s10, %s7859_s19  ;;  %p7865_p9 = scmp.lt.u32.totalorder %s8714_s10, %s11448_s1 }
 0x137   : > { %p7866_p2 = scmp.lt.u32.totalorder %s7864_s29, %s7859_s19  ;;  %p7868_p1 = scmp.lt.u32.totalorder %s7859_s19, %s8714_s10 }
 0x138   : > { %p7862_p10 = pnand %p7860_p8, %p11450_p3 }
 0x139   : > { %p7867_p13 = por %p7866_p2, %p7865_p9 }
 0x13a   : > { %p7863_p12 = pneg %p7862_p10 }
 0x13b   : > { %p7869_p5 = por %p7868_p1, %p7867_p13 }
 0x13d   : > { %p7870_p7 = pnand %p7869_p5, %p7863_p12 }
 0x13f   : > { %7873 = shalt.err (!%p7870_p7)
}
 0x140   : > { %s7874_s12 = scalar_lea.vmem %s8716_s14, 256  ;;  %s8212_s3 = smov [#allocation5]  }
 0x141   : > { %p7875_p4 = scmp.ne.s32.totalorder %s8716_s14, %s7874_s12  ;;  %s7879_s24 = sshll.u32 %s8212_s3, 4  ;;  %s7880_s24 = int_to_ptr.vmem [resolvable:$false] %s7879_s24 }
 0x142   : > { %s7881_s13 = scalar_lea.vmem %s7880_s24, 512  ;;  %p7882_p0 = scmp.lt.s32.totalorder %s8716_s14, %s7880_s24 }
 0x143   : > { %p7877_p6 = pnand %p7875_p4, %p11450_p3  ;;  %p7883_p8 = scmp.lt.s32.totalorder %s7881_s13, %s7874_s12 }
 0x145   : > { %p7878_p11 = pneg %p7877_p6  ;;  %p7884_p10 = por %p7883_p8, %p7882_p0 }
 0x147   : > { %p7885_p9 = pnand %p7884_p10, %p7878_p11 }
 0x149   : > { %7888 = shalt.err (!%p7885_p9)
}
 0x14a   : > { %p11451_p12 = scmp.ne.s32.totalorder %s11414_s21, 0  ;;  %s7889_s8 = scalar_lea.hbm %s8586_s17, 16384 }
 0x14b   : > { %p7890_p2 = scmp.ne.s32.totalorder %s8586_s17, %s7889_s8  ;;  %p11452_p13 = scmp.ne.s32.totalorder %s11434_s9, 0 }
 0x14c   : > { %7430 = dma.hbm_to_vmem [thread:$0]  (!%p11451_p12), %s8714_s10, 256, %s8716_s14, %s536_s22  }
 0x14d   : > { %p11453_p1 = pneg %p11452_p13  ;;  %s7894_s0 = scalar_lea.hbm %s11211_s2, 131072 }
 0x14e   : > { %p7895_p4 = scmp.lt.u32.totalorder %s8586_s17, %s11211_s2  ;;  %p7896_p6 = scmp.lt.u32.totalorder %s7894_s0, %s7889_s8 }
 0x14f   : > { %p7892_p5 = pnand %p7890_p2, %p11453_p1  ;;  %p7898_p0 = scmp.lt.u32.totalorder %s7889_s8, %s8586_s17 }
 0x150   : > { %p7897_p11 = por %p7896_p6, %p7895_p4 }
 0x151   : > { %p7893_p7 = pneg %p7892_p5 }
 0x152   : > { %p7899_p8 = por %p7898_p0, %p7897_p11 }
 0x154   : > { %p7900_p10 = pnand %p7899_p8, %p7893_p7 }
 0x156   : > { %7903 = shalt.err (!%p7900_p10)
}
 0x157   : > { %s7904_s10 = scalar_lea.vmem %s8588_s7, 16384  ;;  %p11454_p2 = pmov %p11453_p1 }
 0x158   : > { %p7905_p9 = scmp.ne.s32.totalorder %s8588_s7, %s7904_s10  ;;  %s8213_s14 = smov [#allocation10]  }
 0x159   : > { %s7909_s22 = sshll.u32 %s8213_s14, 4  ;;  %s7910_s22 = int_to_ptr.vmem [resolvable:$false] %s7909_s22 }
 0x15a   : > { %p7907_p1 = pnand %p7905_p9, %p11454_p2  ;;  %s7911_s12 = scalar_lea.vmem %s7910_s22, 32768 }
 0x15b   : > { %p7912_p12 = scmp.lt.s32.totalorder %s8588_s7, %s7910_s22  ;;  %p7913_p4 = scmp.lt.s32.totalorder %s7911_s12, %s7904_s10 }
 0x15c   : > { %p7908_p5 = pneg %p7907_p1 }
 0x15d   : > { %p7914_p6 = por %p7913_p4, %p7912_p12 }
 0x15f   : > { %p7915_p11 = pnand %p7914_p6, %p7908_p5 }
 0x161   : > { %7918 = shalt.err (!%p7915_p11)
}
 0x162   : > { %s11455_s3 = smov 256   ;;  %s11456_s24 = scalar_lea.sflag [#allocation9], %s8478_s15 }
 0x163   : > { %7436 = dma.hbm_to_vmem [thread:$0]  (!%p11452_p13), %s8586_s17, 16384, %s8588_s7, %s11456_s24, %s11455_s3, %s11437_s11, %s11436_s5  }
 0x164   : > { %s622_s13 = scalar_lea.vmem [#allocation13], %s8481_s25  ;;  %s11457_s23 = sld [smem:[#allocation158_spill]] }
 0x165   : > { %s629_s8 = sshll.u32 %s622_s13, 4  ;;  %s7919_s26 = scalar_lea.hbm %s8722_s18, 128  ;;  %s630_s8 = int_to_ptr.vmem [resolvable:$true] %s629_s8 }
 0x166   : > { %p7920_p12 = scmp.ne.s32.totalorder %s8722_s18, %s7919_s26  ;;  %s7924_s22 = scalar_lea.hbm %s11449_s6, 512 }
 0x167   : > { %p7925_p13 = scmp.lt.u32.totalorder %s8722_s18, %s11449_s6  ;;  %p7926_p8 = scmp.lt.u32.totalorder %s7924_s22, %s7919_s26 }
 0x168   : > { %p7922_p7 = pnand %p7920_p12, %p11450_p3  ;;  %p7928_p9 = scmp.lt.u32.totalorder %s7919_s26, %s8722_s18 }
 0x169   : > { %p7927_p10 = por %p7926_p8, %p7925_p13 }
 0x16a   : > { %s11458_s0 = smov %s11457_s23  ;;  %s8779_s29 = scalar_lea.hbm %s11457_s23, %s8490_s4 }
 0x16b   : > { %p7923_p0 = pneg %p7922_p7  ;;  %p7929_p2 = por %p7928_p9, %p7927_p10 }
 0x16d   : > { %p7930_p1 = pnand %p7929_p2, %p7923_p0 }
 0x16f   : > { %7933 = shalt.err (!%p7930_p1)
}
 0x170   : > { %s7934_s17 = scalar_lea.vmem %s630_s8, 128  ;;  %s8214_s7 = smov [#allocation13]  }
 0x171   : > { %p7935_p5 = scmp.ne.s32.totalorder %s630_s8, %s7934_s17  ;;  %s7939_s5 = sshll.u32 %s8214_s7, 4  ;;  %s7940_s5 = int_to_ptr.vmem [resolvable:$false] %s7939_s5 }
 0x172   : > { %s7941_s11 = scalar_lea.vmem %s7940_s5, 256  ;;  %p7942_p11 = scmp.lt.s32.totalorder %s630_s8, %s7940_s5 }
 0x173   : > { %p7937_p4 = pnand %p7935_p5, %p11450_p3  ;;  %p7943_p12 = scmp.lt.s32.totalorder %s7941_s11, %s7934_s17 }
 0x175   : > { %p7938_p6 = pneg %p7937_p4  ;;  %p7944_p7 = por %p7943_p12, %p7942_p11 }
 0x177   : > { %p7945_p8 = pnand %p7944_p7, %p7938_p6 }
 0x179   : > { %7948 = shalt.err (!%p7945_p8)
}
 0x17a   : > { %p11459_p13 = scmp.ne.s32.totalorder %s11414_s21, 0  ;;  %s11460_s1 = scalar_lea.sflag [#allocation12], %s8478_s15 }
 0x17b   : > { %s658_s3 = scalar_lea.vmem [#allocation16], %s8481_s25  ;;  %s7949_s13 = scalar_lea.hbm %s8779_s29, 128 }
 0x17c   : > { %7442 = dma.hbm_to_vmem [thread:$0]  (!%p11459_p13), %s8722_s18, 128, %s630_s8, %s11460_s1  }
 0x17d   : > { %s665_s24 = sshll.u32 %s658_s3, 4  ;;  %p7950_p0 = scmp.ne.s32.totalorder %s8779_s29, %s7949_s13  ;;  %s666_s24 = int_to_ptr.vmem [resolvable:$true] %s665_s24 }
 0x17e   : > { %s7954_s23 = scalar_lea.hbm %s11458_s0, 512  ;;  %p7955_p2 = scmp.lt.u32.totalorder %s8779_s29, %s11458_s0 }
 0x17f   : > { %p7952_p10 = pnand %p7950_p0, %p11450_p3  ;;  %p7956_p1 = scmp.lt.u32.totalorder %s7954_s23, %s7949_s13 }
 0x180   : > { %p7958_p4 = scmp.lt.u32.totalorder %s7949_s13, %s8779_s29 }
 0x181   : > { %p7953_p9 = pneg %p7952_p10  ;;  %p7957_p5 = por %p7956_p1, %p7955_p2 }
 0x183   : > { %p7959_p6 = por %p7958_p4, %p7957_p5 }
 0x185   : > { %p7960_p11 = pnand %p7959_p6, %p7953_p9 }
 0x187   : > { %7963 = shalt.err (!%p7960_p11)
}
 0x188   : > { %s7964_s18 = scalar_lea.vmem %s666_s24, 128  ;;  %s8215_s8 = smov [#allocation16]  }
 0x189   : > { %p7965_p12 = scmp.ne.s32.totalorder %s666_s24, %s7964_s18  ;;  %s7969_s14 = sshll.u32 %s8215_s8, 4  ;;  %s7970_s14 = int_to_ptr.vmem [resolvable:$false] %s7969_s14 }
 0x18a   : > { %s7971_s22 = scalar_lea.vmem %s7970_s14, 256  ;;  %p7972_p0 = scmp.lt.s32.totalorder %s666_s24, %s7970_s14 }
 0x18b   : > { %p7967_p7 = pnand %p7965_p12, %p11450_p3  ;;  %p7973_p10 = scmp.lt.s32.totalorder %s7971_s22, %s7964_s18 }
 0x18d   : > { %p7968_p8 = pneg %p7967_p7  ;;  %p7974_p13 = por %p7973_p10, %p7972_p0 }
 0x18f   : > { %p7975_p1 = pnand %p7974_p13, %p7968_p8 }
 0x191   : > { %7978 = shalt.err (!%p7975_p1)
}
 0x192   : > { %p11461_p2 = scmp.ne.s32.totalorder %s11414_s21, 0  ;;  %s11462_s12 = scalar_lea.sflag [#allocation15], %s8478_s15 }
 0x193   : > { %s11463_s5 = sld [smem:[#allocation159_spill]]  ;;  %s676_s1 = scalar_lea.vmem [#allocation17], %s8481_s25 }
 0x194   : > { %7448 = dma.hbm_to_vmem [thread:$0]  (!%p11461_p2), %s8779_s29, 128, %s666_s24, %s11462_s12  }
 0x195   : > { %s683_s3 = sshll.u32 %s676_s1, 4  ;;  %s673_s13 = scalar_lea.sflag [#allocation18], %s8478_s15  ;;  %s684_s3 = int_to_ptr.vmem [resolvable:$true] %s683_s3 }
 0x199   : > { %s8824_s11 = scalar_lea.hbm %s11463_s5, %s8490_s4  ;;  %s7984_s24 = scalar_lea.hbm %s11463_s5, 512 }
 0x19a   : > { %s7979_s19 = scalar_lea.hbm %s8824_s11, 128  ;;  %p7985_p4 = scmp.lt.u32.totalorder %s8824_s11, %s11463_s5 }
 0x19b   : > { %p7980_p13 = scmp.ne.s32.totalorder %s8824_s11, %s7979_s19  ;;  %p7986_p6 = scmp.lt.u32.totalorder %s7984_s24, %s7979_s19 }
 0x19c   : > { %p7988_p12 = scmp.lt.u32.totalorder %s7979_s19, %s8824_s11 }
 0x19d   : > { %p7982_p9 = pnand %p7980_p13, %p11450_p3  ;;  %p7987_p11 = por %p7986_p6, %p7985_p4 }
 0x19f   : > { %p7983_p5 = pneg %p7982_p9  ;;  %p7989_p7 = por %p7988_p12, %p7987_p11 }
 0x1a1   : > { %p7990_p8 = pnand %p7989_p7, %p7983_p5 }
 0x1a3   : > { %7993 = shalt.err (!%p7990_p8)
}
 0x1a4   : > { %s7994_s15 = scalar_lea.vmem %s684_s3, 128  ;;  %s8216_s25 = smov [#allocation17]  }
 0x1a5   : > { %p7995_p0 = scmp.ne.s32.totalorder %s684_s3, %s7994_s15  ;;  %s7999_s26 = sshll.u32 %s8216_s25, 4  ;;  %s8000_s26 = int_to_ptr.vmem [resolvable:$false] %s7999_s26 }
 0x1a6   : > { %s8001_s10 = scalar_lea.vmem %s8000_s26, 256  ;;  %p8002_p13 = scmp.lt.s32.totalorder %s684_s3, %s8000_s26 }
 0x1a7   : > { %p7997_p10 = pnand %p7995_p0, %p11450_p3  ;;  %p8003_p9 = scmp.lt.s32.totalorder %s8001_s10, %s7994_s15 }
 0x1a9   : > { %p7998_p1 = pneg %p7997_p10  ;;  %p8004_p2 = por %p8003_p9, %p8002_p13 }
 0x1ab   : > { %p8005_p4 = pnand %p8004_p2, %p7998_p1 }
 0x1ad   : > { %8008 = shalt.err (!%p8005_p4)
}
 0x1ae   : > { %p11464_p6 = scmp.ne.s32.totalorder %s11414_s21, 0  ;;  %s11465_s18 = sld [smem:[#allocation49_spill]] }
 0x1b0   : > { %7451 = dma.hbm_to_vmem [thread:$0]  (!%p11464_p6), %s8824_s11, 128, %s684_s3, %s673_s13  }
 0x1b4   : > { %p11466_p5 = scmp.ne.s32.totalorder %s11465_s18, 0 }
 0x1b6   : > { %692 = sbr.rel (%p11466_p5) target bundleno = 2618 (0xa3a), region = 72 }
 0x1bd   : > { %s11467_s8 = sld [smem:[#allocation43_spill]]  ;;  %s11468_s30 = sld [smem:[#allocation51_spill]] }
 0x1c3   : > { %s694_s14 = sand.u32 1, %s11467_s8   ;;  %p11469_p3 = scmp.ne.s32.totalorder %s11468_s30, 0 }
 0x1c4   : > { %s7299_s22 = sshll.u32 %s694_s14, 4  ;;  %s695_s12 = scalar_lea.sflag [#allocation6], %s694_s14 }
 0x1c5   : > { %s8848_s17 = scalar_lea.vmem [#allocation5], %s7299_s22 }
 0x1c6   : > { %8110 = dma.done.wait (%p11469_p3), %s695_s12, 256  }
 0x1c7   : > { %8112 = vsyncadd (%p11469_p3), %s695_s12, 4294967040  ;;  %s11470_s7 = sld [smem:[#allocation48_spill]]  ;;  %s8855_s1 = sshll.u32 %s694_s14, 3 }
 0x1c8   : > { %s707_s3 = scalar_lea.vmem [#allocation8], %s8855_s1 }
 0x1cd   : > { %s703_s21 = sand.u32 1, %s11470_s7  }
 0x1ce   : > { %s704_s11 = scalar_lea.sflag [#allocation9], %s703_s21 }
 0x1cf   : > { %8114 = dma.done.wait (%p11469_p3), %s704_s11, 128  }
 0x1d0   : > { %8116 = vsyncadd (%p11469_p3), %s704_s11, 4294967168  ;;  %s11471_s13 = sld [smem:[#allocation42_spill]]  ;;  %s11472_s19 = sld [smem:[#allocation53_spill]] }
 0x1d6   : > { %s8863_s9 = sand.u32 1, %s11471_s13   ;;  %p11473_p2 = scmp.ne.s32.totalorder %s11472_s19, 0 }
 0x1d7   : > { %s8866_s29 = sshll.u32 %s8863_s9, 10 }
 0x1d8   : > { %s8869_s24 = scalar_lea.vmem [#allocation10], %s8866_s29 }
 0x1d9   : > { %8118 = dma.done.wait (%p11473_p2), %s704_s11, 16384  }
 0x1da   : > { %8120 = vsyncadd (%p11473_p2), %s704_s11, 4294950912  ;;  %s722_s23 = scalar_lea.sflag [#allocation12], %s703_s21  ;;  %s8876_s4 = scalar_lea.vmem [#allocation11], %s8866_s29 }
 0x1db   : > { %8122 = dma.done.wait (%p11473_p2), %s722_s23, 16384  }
 0x1dc   : > { %8124 = vsyncadd (%p11473_p2), %s722_s23, 4294950912  ;;  %s734_s15 = scalar_lea.vmem [#allocation13], %s8855_s1 }
 0x1dd   : > { %8126 = dma.done.wait (%p11469_p3), %s722_s23, 128  }
 0x1de   : > { %8128 = vsyncadd (%p11469_p3), %s722_s23, 4294967168  ;;  %s740_s25 = scalar_lea.sflag [#allocation15], %s703_s21  ;;  %s743_s26 = scalar_lea.vmem [#allocation14], %s8855_s1 }
 0x1df   : > { %8130 = dma.done.wait (%p11469_p3), %s740_s25, 256  }
 0x1e0   : > { %8132 = vsyncadd (%p11469_p3), %s740_s25, 4294967040  ;;  %s752_s10 = scalar_lea.vmem [#allocation16], %s8855_s1  ;;  %s758_s18 = scalar_lea.sflag [#allocation18], %s703_s21 }
 0x1e1   : > { %s761_s8 = scalar_lea.vmem [#allocation17], %s8855_s1 }
 0x1e2   : > { %8134 = dma.done.wait (%p11469_p3), %s758_s18, 128  }
 0x1e3   : > { %8136 = vsyncadd (%p11469_p3), %s758_s18, 4294967168  ;;  %p11474_p11 = scmp.eq.s32.totalorder %s11470_s7, 0 }
 0x1e5   : > { %8138 = dma.done.wait (%p11474_p11), [#allocation18], 4096   ;;  %p11475_p12 = pmov %p11474_p11 }
 0x1e6   : > { %p11476_p7 = pmov %p11474_p11 }
 0x1e7   : > { %8140 = vsyncadd (%p11475_p12), [#allocation18], 4294963200 }
 0x1e8   : > { %8142 = dma.done.wait (%p11476_p7), [#allocation21], 32   ;;  %p11477_p8 = pmov %p11476_p7 }
 0x1e9   : > { %p11478_p0 = pmov %p11476_p7 }
 0x1ea   : > { %8144 = vsyncadd (%p11477_p8), [#allocation21], 4294967264 }
 0x1eb   : > { %8146 = dma.done.wait (%p11478_p0), [#allocation24], 32   ;;  %p11479_p10 = pmov %p11478_p0 }
 0x1ec   : > { %s11480_s30 = sld [smem:[#allocation46_spill]]  ;;  %s11481_s21 = sld [smem:[#allocation167_spill]] }
 0x1ed   : > { %8148 = vsyncadd (%p11479_p10), [#allocation24], 4294967264  ;;  %s8918_s13 = scalar_lea.vmem [#allocation26], %s8866_s29  ;;  %s8921_s19 = scalar_lea.vmem [#allocation27], %s8866_s29 }
 0x1ee   : > { %s11482_s23 = sld [smem:[#allocation45_spill]] }
 0x1f2   : > { %p877_p1 = scmp.lt.s32.totalorder %s11480_s30, 3 }
 0x1f4   : > { %s11783_s30 = smov (!%p877_p1, %s11480_s30), 3  ;;  %p7315_p13 = scmp.ne.s32.totalorder %s11482_s23, 0 }
 0x1f5   : > { %s7370_s14 = smul.u32 40, %s11783_s30  ;;  %v7572_v0 = vld [vmem:[#allocation19 + $0x4] ss:$8 sps:$4 sm:$0xff] (!%p7315_p13)   ;;  %v7574_v1 = vld [vmem:[#allocation19] ss:$8 sps:$4 sm:$0xff] (!%p7315_p13)   ;;  %v8928_v36 = vld [vmem:[%s707_s3] sm:$0xff] (!%p7315_p13)  ;;  %v1179_v54 = vlaneseq (!%p7315_p13) }
 0x1f6   : > { %885 = sbr.rel (%p7315_p13) target bundleno = 1696 (0x6a0), region = 128  ;;  %1085 = vmatprep.subr.bf16.mxu0 (!%p7315_p13), %v7572_v0  ;;  %v7575_v2 = vld [vmem:[#allocation19 + $0x14] ss:$8 sps:$4 sm:$0xff] (!%p7315_p13)   ;;  %v7577_v3 = vld [vmem:[#allocation19 + $0x10] ss:$8 sps:$4 sm:$0xff] (!%p7315_p13)   ;;  %vm1715_vm0 = vcmask (!%p7315_p13), 7168  }
 0x1f7   : > { %s8915_s11 = scalar_lea.vmem %s11481_s21, %s7370_s14  ;;  %1086 = vmatpush1.bf16.msra.mxu0 (!%p7315_p13), %v7574_v1  ;;  %v7578_v4 = vld [vmem:[#allocation19 + $0x24] ss:$8 sps:$4 sm:$0xff] (!%p7315_p13)   ;;  %v7580_v5 = vld [vmem:[#allocation19 + $0x20] ss:$8 sps:$4 sm:$0xff] (!%p7315_p13)   ;;  %v7581_v6 = vld [vmem:[#allocation19 + $0x34] ss:$8 sps:$4 sm:$0xff] (!%p7315_p13)  }
 0x1f8   : > { %1087 = vmatprep.subr.bf16.mxu0 (!%p7315_p13), %v7575_v2  ;;  %v7583_v7 = vld [vmem:[#allocation19 + $0x30] ss:$8 sps:$4 sm:$0xff] (!%p7315_p13)   ;;  %v7584_v8 = vld [vmem:[#allocation19 + $0x44] ss:$8 sps:$4 sm:$0xff] (!%p7315_p13)   ;;  %v7586_v9 = vld [vmem:[#allocation19 + $0x40] ss:$8 sps:$4 sm:$0xff] (!%p7315_p13)  }
 0x1f9   : > { %v7587_v10 = vld [vmem:[#allocation19 + $0x54] ss:$8 sps:$4 sm:$0xff] (!%p7315_p13)   ;;  %v7589_v11 = vld [vmem:[#allocation19 + $0x50] ss:$8 sps:$4 sm:$0xff] (!%p7315_p13)   ;;  %v7590_v12 = vld [vmem:[#allocation19 + $0x64] ss:$8 sps:$4 sm:$0xff] (!%p7315_p13)  }
 0x1fa   : > { %v887_v13 = vld [vmem:[%s8848_s17 + $0x8] sm:$0xff] (!%p7315_p13)  ;;  %v886_v34 = vld [vmem:[%s8848_s17] sm:$0xff] (!%p7315_p13)  ;;  %v1180_v56 = vshrl.u32 (!%p7315_p13), %v1179_v54, 7 }
 0x1fb   : > { %1088 = vmatpush1.bf16.msra.mxu0 (!%p7315_p13), %v7577_v3  ;;  %v892_v14 = vpack.c.bf16 (!%p7315_p13), %v887_v13, %v887_v13  ;;  %v7592_v15 = vld [vmem:[#allocation19 + $0x60] ss:$8 sps:$4 sm:$0xff] (!%p7315_p13)   ;;  %v7593_v16 = vld [vmem:[#allocation19 + $0x74] ss:$8 sps:$4 sm:$0xff] (!%p7315_p13)   ;;  %v7595_v17 = vld [vmem:[#allocation19 + $0x70] ss:$8 sps:$4 sm:$0xff] (!%p7315_p13)   ;;  %v891_v35 = vpack.c.bf16 (!%p7315_p13), %v886_v34, %v886_v34 }
 0x1fc   : > { %1089 = vmatprep.subr.bf16.mxu0 (!%p7315_p13), %v7578_v4  ;;  %v7596_v18 = vld [vmem:[#allocation19 + $0x84] ss:$8 sps:$4 sm:$0xff] (!%p7315_p13)   ;;  %v7598_v19 = vld [vmem:[#allocation19 + $0x80] ss:$8 sps:$4 sm:$0xff] (!%p7315_p13)   ;;  %v7599_v20 = vld [vmem:[#allocation19 + $0x94] ss:$8 sps:$4 sm:$0xff] (!%p7315_p13)  }
 0x1fd   : > { %1117 = vmatprep.mubr.bf16.mxu0 %v892_v14  ;;  %v7601_v21 = vld [vmem:[#allocation19 + $0x90] ss:$8 sps:$4 sm:$0xff]   ;;  %v7602_v22 = vld [vmem:[#allocation19 + $0xa4] ss:$8 sps:$4 sm:$0xff]   ;;  %v7604_v23 = vld [vmem:[#allocation19 + $0xa0] ss:$8 sps:$4 sm:$0xff]  }
 0x1fe   : > { %v7605_v24 = vld [vmem:[#allocation19 + $0xb4] ss:$8 sps:$4 sm:$0xff]   ;;  %v7607_v25 = vld [vmem:[#allocation19 + $0xb0] ss:$8 sps:$4 sm:$0xff]   ;;  %v7608_v26 = vld [vmem:[#allocation19 + $0xc4] ss:$8 sps:$4 sm:$0xff]  }
 0x1ff   : > { %1090 = vmatpush1.bf16.msra.mxu0 %v7580_v5  ;;  %v7610_v27 = vld [vmem:[#allocation19 + $0xc0] ss:$8 sps:$4 sm:$0xff]   ;;  %v7611_v28 = vld [vmem:[#allocation19 + $0xd4] ss:$8 sps:$4 sm:$0xff]   ;;  %v7613_v29 = vld [vmem:[#allocation19 + $0xd0] ss:$8 sps:$4 sm:$0xff]  }
 0x200   : > { %1091 = vmatprep.subr.bf16.mxu0 %v7581_v6  ;;  %v7614_v30 = vld [vmem:[#allocation19 + $0xe4] ss:$8 sps:$4 sm:$0xff]   ;;  %v7616_v31 = vld [vmem:[#allocation19 + $0xe0] ss:$8 sps:$4 sm:$0xff]   ;;  %v7617_v32 = vld [vmem:[#allocation19 + $0xf4] ss:$8 sps:$4 sm:$0xff]  }
 0x201   : > { %v7619_v33 = vld [vmem:[#allocation19 + $0xf0] ss:$8 sps:$4 sm:$0xff]   ;;  %v7350_v37 = vld [vmem:[#allocation22] ss:$0 sm:$0xff]  ;;  %v7348_v39 = vld [vmem:[#allocation20] ss:$0 sm:$0xff] }
 0x202   : > { %v1149_v38 = vmul.f32 %v7350_v37, %v8928_v36  ;;  %v7351_v42 = vld [vmem:[#allocation25] ss:$0 sm:$0xff]  ;;  %v1132_v45 = vmul.f32 %v7348_v39, %v8928_v36  ;;  %v7349_v50 = vld [vmem:[#allocation23] ss:$0 sm:$0xff]  ;;  %v1181_v59 = vsub.s32 0, %v1180_v56  ;;  %v1315_v63 = vsub.s32 2, %v1180_v56 }
 0x203   : > { %1092 = vmatpush1.bf16.msra.mxu0 %v7583_v7  ;;  %v1382_v0 = vsub.s32 3, %v1180_v56  ;;  %v1449_v1 = vsub.s32 4, %v1180_v56  ;;  %v1516_v2 = vsub.s32 5, %v1180_v56  ;;  %v1583_v3 = vsub.s32 6, %v1180_v56  ;;  %v3177_v34 = vld [vmem:[%s743_s26] sm:$0xff] }
 0x204   : > { %1093 = vmatprep.subr.bf16.mxu0 %v7584_v8  ;;  %v1650_v8 = vsub.s32 7, %v1180_v56  ;;  %v1248_v13 = vsub.s32 1, %v1180_v56 }
 0x207   : > { %1094 = vmatpush1.bf16.msra.mxu0 %v7586_v9 }
 0x208   : > { %1095 = vmatprep.subr.bf16.mxu0 %v7587_v10 }
 0x20b   : > { %1096 = vmatpush1.bf16.msra.mxu0 %v7589_v11 }
 0x20c   : > { %1097 = vmatprep.subr.bf16.mxu0 %v7590_v12 }
 0x20f   : > { %1098 = vmatpush1.bf16.msra.mxu0 %v7592_v15 }
 0x210   : > { %1099 = vmatprep.subr.bf16.mxu0 %v7593_v16 }
 0x213   : > { %1100 = vmatpush1.bf16.msra.mxu0 %v7595_v17 }
 0x214   : > { %1101 = vmatprep.subr.bf16.mxu0 %v7596_v18 }
 0x217   : > { %1102 = vmatpush1.bf16.msra.mxu0 %v7598_v19 }
 0x218   : > { %1103 = vmatprep.subr.bf16.mxu0 %v7599_v20 }
 0x21b   : > { %1104 = vmatpush1.bf16.msra.mxu0 %v7601_v21 }
 0x21c   : > { %1105 = vmatprep.subr.bf16.mxu0 %v7602_v22 }
 0x21f   : > { %1106 = vmatpush1.bf16.msra.mxu0 %v7604_v23 }
 0x220   : > { %1107 = vmatprep.subr.bf16.mxu0 %v7605_v24 }
 0x223   : > { %1108 = vmatpush1.bf16.msra.mxu0 %v7607_v25 }
 0x224   : > { %1109 = vmatprep.subr.bf16.mxu0 %v7608_v26 }
 0x227   : > { %1110 = vmatpush1.bf16.msra.mxu0 %v7610_v27 }
 0x228   : > { %1111 = vmatprep.subr.bf16.mxu0 %v7611_v28 }
 0x22b   : > { %1112 = vmatpush1.bf16.msra.mxu0 %v7613_v29  ;;  %v3173_v29 = vld [vmem:[%s734_s15] sm:$0xff] }
 0x22c   : > { %1113 = vmatprep.subr.bf16.mxu0 %v7614_v30 }
 0x22f   : > { %1114 = vmatpush1.bf16.msra.mxu0 %v7616_v31 }
 0x230   : > { %1115 = vmatprep.subr.bf16.mxu0 %v7617_v32 }
 0x233   : > { %1116 = vmatpush1.bf16.msra.mxu0 %v7619_v33 }
 0x236   : > { %1118 = vmatmul.mubr.bf16.vlgmr.msra.gmra.mrb[0].mxu0 %v891_v35  ;;  %v3180_v35 = vld [vmem:[%s752_s10] sm:$0xff] }
 0x309   : > { %v1119_v40 = vpop.f32.mrb[0].mxu0 }
 0x30a   : > { %v1121_v41 = vpop.f32.mrb[1].mxu0  ;;  %v1133_v49 = vadd.f32 %v1132_v45, %v1119_v40 }
 0x30b   : > { %v1150_v43 = vadd.f32 %v1149_v38, %v1121_v41  ;;  %v1123_v44 = vpop.f32.mrb[2].mxu0 }
 0x30c   : > { %v1124_v46 = vpop.f32.mrb[3].mxu0  ;;  %v1141_v51 = vadd.f32 %v7349_v50, %v1133_v49 }
 0x30d   : > { %v1158_v47 = vadd.f32 %v7351_v42, %v1150_v43 }
 0x30f   : > { %v7352_v48 = vmul.f32 -1.442695, %v1158_v47 }
 0x311   : > { %7620 = vpow2.f32 %v7352_v48 }
 0x312   : > { %7622 = vtanh.f32 %v1141_v51 }
 0x31b   : > { %v7621_v52 = vpop.eup %7620 }
 0x31c   : > { %v1162_v53 = vadd.f32 1.0, %v7621_v52  ;;  %v7623_v55 = vpop.eup %7622 }
 0x31d   : > { %v1169_v57 = vmul.f32 %v7623_v55, %v7623_v55  ;;  %v1172_v61 = vsub.f32 %v8928_v36, %v7623_v55 }
 0x31e   : > { %7624 = vrcp.f32 %v1162_v53 }
 0x31f   : > { %v1170_v60 = vsub.f32 1.0, %v1169_v57 }
 0x328   : > { %v7625_v58 = vpop.eup %7624 }
 0x329   : > { %v1166_v62 = vsub.f32 1.0, %v7625_v58  ;;  %v1165_v4 = vmul.f32 %v7625_v58, %v8928_v36 }
 0x32b   : > { %v1167_v5 = vmul.f32 %v7623_v55, %v1166_v62  ;;  %v8934_v6 = vmul.f32 %v1170_v60, %v1166_v62  ;;  %v1173_v7 = vmul.f32 %v1172_v61, %v1166_v62 }
 0x32d   : > { %v1168_v9 = vadd.f32 %v1167_v5, %v1165_v4  ;;  %v1174_v10 = vmul.f32 %v7625_v58, %v1173_v7  ;;  %v1175_v11 = vmul.f32 %v7348_v39, %v8934_v6  ;;  %v1847_v12 = vrot.slane %v8934_v6, %v1181_v59 }
 0x32e   : > { %v8939_v14 = vrot.slane %v8934_v6, %v1315_v63  ;;  %v8942_v15 = vrot.slane %v8934_v6, %v1382_v0  ;;  %v8945_v16 = vrot.slane %v8934_v6, %v1449_v1  ;;  %v8948_v19 = vrot.slane %v8934_v6, %v1516_v2 }
 0x32f   : > { %v1176_v17 = vadd.f32 %v7625_v58, %v1175_v11  ;;  %v1177_v18 = vmul.f32 %v7350_v37, %v1174_v10  ;;  %v8951_v20 = vrot.slane %v8934_v6, %v1583_v3  ;;  %3186 = vst [vmem:[%s8915_s11] sm:$0xff] %v1168_v9  ;;  %1853 = vbcast.lane.b32.xlu1 %v1847_v12, 264  ;;  %v3183_v37 = vld [vmem:[%s761_s8] sm:$0xff] }
 0x330   : > { %v8955_v21 = vrot.slane %v8934_v6, %v1650_v8  ;;  %v8957_v22 = vrot.slane %v1174_v10, %v1181_v59  ;;  %v8959_v23 = vrot.slane %v1174_v10, %v1248_v13  ;;  %v8961_v24 = vrot.slane %v1174_v10, %v1315_v63  ;;  %1849 = vbcast.lane.b32.xlu0 %v1847_v12, 256 }
 0x331   : > { %v1178_v25 = vadd.f32 %v1177_v18, %v1176_v17  ;;  %v8963_v26 = vrot.slane %v1174_v10, %v1382_v0  ;;  %v8965_v27 = vrot.slane %v1174_v10, %v1449_v1  ;;  %v8967_v28 = vrot.slane %v1174_v10, %v1516_v2 }
 0x332   : > { %v8971_v30 = vrot.slane %v1174_v10, %v1583_v3  ;;  %v8973_v31 = vrot.slane %v1174_v10, %v1650_v8  ;;  %v3172_v32 = vmul.f32 %v8934_v6, %v8928_v36  ;;  %v3176_v33 = vmul.f32 %v1174_v10, %v8928_v36 }
 0x333   : > { %v8984_v38 = vrot.slane %v1178_v25, %v1181_v59  ;;  %v8986_v39 = vrot.slane %v1178_v25, %v1248_v13  ;;  %v8988_v40 = vrot.slane %v1178_v25, %v1315_v63  ;;  %v8990_v41 = vrot.slane %v1178_v25, %v1382_v0  ;;  %1861 = vbcast.lane.b32.xlu1 %v1847_v12, 280 }
 0x334   : > { %v8992_v42 = vrot.slane %v1178_v25, %v1449_v1  ;;  %v8994_v36 = vrot.slane %v1178_v25, %v1516_v2  ;;  %v8996_v43 = vrot.slane %v1178_v25, %v1583_v3  ;;  %v8998_v44 = vrot.slane %v1178_v25, %v1650_v8  ;;  %1857 = vbcast.lane.b32.xlu0 %v1847_v12, 272 }
 0x335   : > { %v3174_v45 = vmul.f32 %v3173_v29, %v1178_v25  ;;  %v3178_v46 = vmul.f32 %v3177_v34, %v1178_v25  ;;  %v3181_v47 = vmul.f32 %v3180_v35, %v1178_v25  ;;  %v3184_v48 = vmul.f32 %v3183_v37, %v1178_v25 }
 0x336   : > { %v1914_v53 = vrot.slane %v8934_v6, %v1248_v13 }
 0x337   : > { %v3175_v49 = vadd.f32 %v3174_v45, %v3172_v32  ;;  %v3179_v50 = vadd.f32 %v3178_v46, %v3176_v33  ;;  %v3182_v51 = vadd.f32 %v3181_v47, %v8934_v6  ;;  %v3185_v52 = vadd.f32 %v3184_v48, %v1174_v10  ;;  %1869 = vbcast.lane.b32.xlu1 %v1847_v12, 296 }
 0x338   : > { %1865 = vbcast.lane.b32.xlu0 %v1847_v12, 288 }
 0x339   : > { %3187 = vst [vmem:[%s8915_s11 + $0x8] sm:$0xff] %v3175_v49  ;;  %3188 = vst [vmem:[%s8915_s11 + $0x10] sm:$0xff] %v3179_v50 }
 0x33a   : > { %3189 = vst [vmem:[%s8915_s11 + $0x18] sm:$0xff] %v3182_v51  ;;  %3190 = vst [vmem:[%s8915_s11 + $0x20] sm:$0xff] %v3185_v52 }
 0x33b   : > { %1877 = vbcast.lane.b32.xlu1 %v1847_v12, 312 }
 0x33c   : > { %1873 = vbcast.lane.b32.xlu0 %v1847_v12, 304 }
 0x33f   : > { %1885 = vbcast.lane.b32.xlu1 %v1847_v12, 328 }
 0x340   : > { %1881 = vbcast.lane.b32.xlu0 %v1847_v12, 320 }
 0x343   : > { %1893 = vbcast.lane.b32.xlu1 %v1847_v12, 344 }
 0x344   : > { %1889 = vbcast.lane.b32.xlu0 %v1847_v12, 336 }
 0x347   : > { %1901 = vbcast.lane.b32.xlu1 %v1847_v12, 360 }
 0x348   : > { %1897 = vbcast.lane.b32.xlu0 %v1847_v12, 352 }
 0x34b   : > { %1909 = vbcast.lane.b32.xlu1 %v1847_v12, 376 }
 0x34c   : > { %1905 = vbcast.lane.b32.xlu0 %v1847_v12, 368 }
 0x34f   : > { %1920 = vbcast.lane.b32.xlu1 %v1914_v53, 264 }
 0x350   : > { %1916 = vbcast.lane.b32.xlu0 %v1914_v53, 256 }
 0x353   : > { %1928 = vbcast.lane.b32.xlu1 %v1914_v53, 280 }
 0x354   : > { %1924 = vbcast.lane.b32.xlu0 %v1914_v53, 272 }
 0x357   : > { %1936 = vbcast.lane.b32.xlu1 %v1914_v53, 296 }
 0x358   : > { %1932 = vbcast.lane.b32.xlu0 %v1914_v53, 288 }
 0x35b   : > { %1944 = vbcast.lane.b32.xlu1 %v1914_v53, 312 }
 0x35c   : > { %1940 = vbcast.lane.b32.xlu0 %v1914_v53, 304 }
 0x35f   : > { %1952 = vbcast.lane.b32.xlu1 %v1914_v53, 328 }
 0x360   : > { %1948 = vbcast.lane.b32.xlu0 %v1914_v53, 320 }
 0x363   : > { %1960 = vbcast.lane.b32.xlu1 %v1914_v53, 344 }
 0x364   : > { %1956 = vbcast.lane.b32.xlu0 %v1914_v53, 336 }
 0x367   : > { %1968 = vbcast.lane.b32.xlu1 %v1914_v53, 360 }
 0x368   : > { %1964 = vbcast.lane.b32.xlu0 %v1914_v53, 352 }
 0x36b   : > { %1976 = vbcast.lane.b32.xlu1 %v1914_v53, 376 }
 0x36c   : > { %1972 = vbcast.lane.b32.xlu0 %v1914_v53, 368 }
 0x36f   : > { %1987 = vbcast.lane.b32.xlu1 %v8939_v14, 264 }
 0x370   : > { %1983 = vbcast.lane.b32.xlu0 %v8939_v14, 256 }
 0x373   : > { %1192 = vbcast.lane.b32.xlu1 %v8984_v38, 272 }
 0x374   : > { %1184 = vbcast.lane.b32.xlu0 %v8984_v38, 256 }
 0x377   : > { %1196 = vbcast.lane.b32.xlu1 %v8984_v38, 280 }
 0x378   : > { %1188 = vbcast.lane.b32.xlu0 %v8984_v38, 264 }
 0x37b   : > { %1204 = vbcast.lane.b32.xlu1 %v8984_v38, 296 }
 0x37c   : > { %1200 = vbcast.lane.b32.xlu0 %v8984_v38, 288 }
 0x37f   : > { %1212 = vbcast.lane.b32.xlu1 %v8984_v38, 312 }
 0x380   : > { %1208 = vbcast.lane.b32.xlu0 %v8984_v38, 304 }
 0x383   : > { %1220 = vbcast.lane.b32.xlu1 %v8984_v38, 328 }
 0x384   : > { %1216 = vbcast.lane.b32.xlu0 %v8984_v38, 320 }
 0x387   : > { %1228 = vbcast.lane.b32.xlu1 %v8984_v38, 344 }
 0x388   : > { %1224 = vbcast.lane.b32.xlu0 %v8984_v38, 336 }
 0x38b   : > { %1236 = vbcast.lane.b32.xlu1 %v8984_v38, 360 }
 0x38c   : > { %1232 = vbcast.lane.b32.xlu0 %v8984_v38, 352 }
 0x38f   : > { %1244 = vbcast.lane.b32.xlu1 %v8984_v38, 376 }
 0x390   : > { %1240 = vbcast.lane.b32.xlu0 %v8984_v38, 368 }
 0x393   : > { %1255 = vbcast.lane.b32.xlu1 %v8986_v39, 264 }
 0x394   : > { %1251 = vbcast.lane.b32.xlu0 %v8986_v39, 256 }
 0x397   : > { %1263 = vbcast.lane.b32.xlu1 %v8986_v39, 280 }
 0x398   : > { %1259 = vbcast.lane.b32.xlu0 %v8986_v39, 272 }
 0x39b   : > { %1271 = vbcast.lane.b32.xlu1 %v8986_v39, 296 }
 0x39c   : > { %1267 = vbcast.lane.b32.xlu0 %v8986_v39, 288 }
 0x39f   : > { %1279 = vbcast.lane.b32.xlu1 %v8986_v39, 312 }
 0x3a0   : > { %1275 = vbcast.lane.b32.xlu0 %v8986_v39, 304 }
 0x3a1   : > { %v1854_v54 = vpop.permute.xlu1 %1853 }
 0x3a2   : > { %2381 = vst.msk [vmem:[#allocation3 + $0x8] sm:$0xff] %vm1715_vm0, %v1854_v54  ;;  %v1850_v55 = vpop.permute.xlu0 %1849 }
 0x3a3   : > { %2380 = vst.msk [vmem:[#allocation3] sm:$0xff] %vm1715_vm0, %v1850_v55  ;;  %1287 = vbcast.lane.b32.xlu1 %v8986_v39, 328 }
 0x3a4   : > { %1283 = vbcast.lane.b32.xlu0 %v8986_v39, 320 }
 0x3a5   : > { %v1862_v56 = vpop.permute.xlu1 %1861 }
 0x3a6   : > { %2383 = vst.msk [vmem:[#allocation3 + $0x18] sm:$0xff] %vm1715_vm0, %v1862_v56  ;;  %v1858_v57 = vpop.permute.xlu0 %1857 }
 0x3a7   : > { %2382 = vst.msk [vmem:[#allocation3 + $0x10] sm:$0xff] %vm1715_vm0, %v1858_v57  ;;  %1295 = vbcast.lane.b32.xlu1 %v8986_v39, 344 }
 0x3a8   : > { %1291 = vbcast.lane.b32.xlu0 %v8986_v39, 336 }
 0x3a9   : > { %v1870_v58 = vpop.permute.xlu1 %1869 }
 0x3aa   : > { %2385 = vst.msk [vmem:[#allocation3 + $0x28] sm:$0xff] %vm1715_vm0, %v1870_v58  ;;  %v1866_v59 = vpop.permute.xlu0 %1865 }
 0x3ab   : > { %2384 = vst.msk [vmem:[#allocation3 + $0x20] sm:$0xff] %vm1715_vm0, %v1866_v59  ;;  %1303 = vbcast.lane.b32.xlu1 %v8986_v39, 360 }
 0x3ac   : > { %1299 = vbcast.lane.b32.xlu0 %v8986_v39, 352 }
 0x3ad   : > { %v1878_v60 = vpop.permute.xlu1 %1877 }
 0x3ae   : > { %2387 = vst.msk [vmem:[#allocation3 + $0x38] sm:$0xff] %vm1715_vm0, %v1878_v60  ;;  %v1874_v61 = vpop.permute.xlu0 %1873 }
 0x3af   : > { %2386 = vst.msk [vmem:[#allocation3 + $0x30] sm:$0xff] %vm1715_vm0, %v1874_v61  ;;  %1311 = vbcast.lane.b32.xlu1 %v8986_v39, 376 }
 0x3b0   : > { %1307 = vbcast.lane.b32.xlu0 %v8986_v39, 368 }
 0x3b1   : > { %v1886_v62 = vpop.permute.xlu1 %1885 }
 0x3b2   : > { %2389 = vst.msk [vmem:[#allocation3 + $0x48] sm:$0xff] %vm1715_vm0, %v1886_v62  ;;  %v1882_v63 = vpop.permute.xlu0 %1881 }
 0x3b3   : > { %2388 = vst.msk [vmem:[#allocation3 + $0x40] sm:$0xff] %vm1715_vm0, %v1882_v63  ;;  %1322 = vbcast.lane.b32.xlu1 %v8988_v40, 264 }
 0x3b4   : > { %1318 = vbcast.lane.b32.xlu0 %v8988_v40, 256 }
 0x3b5   : > { %v1894_v0 = vpop.permute.xlu1 %1893 }
 0x3b6   : > { %2391 = vst.msk [vmem:[#allocation3 + $0x58] sm:$0xff] %vm1715_vm0, %v1894_v0  ;;  %v1890_v1 = vpop.permute.xlu0 %1889 }
 0x3b7   : > { %2390 = vst.msk [vmem:[#allocation3 + $0x50] sm:$0xff] %vm1715_vm0, %v1890_v1  ;;  %1330 = vbcast.lane.b32.xlu1 %v8988_v40, 280 }
 0x3b8   : > { %1326 = vbcast.lane.b32.xlu0 %v8988_v40, 272 }
 0x3b9   : > { %v1902_v2 = vpop.permute.xlu1 %1901 }
 0x3ba   : > { %2393 = vst.msk [vmem:[#allocation3 + $0x68] sm:$0xff] %vm1715_vm0, %v1902_v2  ;;  %v1898_v3 = vpop.permute.xlu0 %1897 }
 0x3bb   : > { %2392 = vst.msk [vmem:[#allocation3 + $0x60] sm:$0xff] %vm1715_vm0, %v1898_v3  ;;  %1338 = vbcast.lane.b32.xlu1 %v8988_v40, 296 }
 0x3bc   : > { %1334 = vbcast.lane.b32.xlu0 %v8988_v40, 288 }
 0x3bd   : > { %v1910_v4 = vpop.permute.xlu1 %1909 }
 0x3be   : > { %2395 = vst.msk [vmem:[#allocation3 + $0x78] sm:$0xff] %vm1715_vm0, %v1910_v4  ;;  %v1906_v5 = vpop.permute.xlu0 %1905 }
 0x3bf   : > { %2394 = vst.msk [vmem:[#allocation3 + $0x70] sm:$0xff] %vm1715_vm0, %v1906_v5  ;;  %1346 = vbcast.lane.b32.xlu1 %v8988_v40, 312 }
 0x3c0   : > { %1342 = vbcast.lane.b32.xlu0 %v8988_v40, 304 }
 0x3c1   : > { %v1921_v6 = vpop.permute.xlu1 %1920 }
 0x3c2   : > { %2397 = vst.msk [vmem:[#allocation3 + $0x88] sm:$0xff] %vm1715_vm0, %v1921_v6  ;;  %v1917_v7 = vpop.permute.xlu0 %1916 }
 0x3c3   : > { %2396 = vst.msk [vmem:[#allocation3 + $0x80] sm:$0xff] %vm1715_vm0, %v1917_v7  ;;  %1354 = vbcast.lane.b32.xlu1 %v8988_v40, 328 }
 0x3c4   : > { %1350 = vbcast.lane.b32.xlu0 %v8988_v40, 320 }
 0x3c5   : > { %v1929_v8 = vpop.permute.xlu1 %1928 }
 0x3c6   : > { %2399 = vst.msk [vmem:[#allocation3 + $0x98] sm:$0xff] %vm1715_vm0, %v1929_v8  ;;  %v1925_v9 = vpop.permute.xlu0 %1924 }
 0x3c7   : > { %2398 = vst.msk [vmem:[#allocation3 + $0x90] sm:$0xff] %vm1715_vm0, %v1925_v9  ;;  %1362 = vbcast.lane.b32.xlu1 %v8988_v40, 344 }
 0x3c8   : > { %1358 = vbcast.lane.b32.xlu0 %v8988_v40, 336 }
 0x3c9   : > { %v1937_v10 = vpop.permute.xlu1 %1936 }
 0x3ca   : > { %2401 = vst.msk [vmem:[#allocation3 + $0xa8] sm:$0xff] %vm1715_vm0, %v1937_v10  ;;  %v1933_v11 = vpop.permute.xlu0 %1932 }
 0x3cb   : > { %2400 = vst.msk [vmem:[#allocation3 + $0xa0] sm:$0xff] %vm1715_vm0, %v1933_v11  ;;  %1370 = vbcast.lane.b32.xlu1 %v8988_v40, 360 }
 0x3cc   : > { %1366 = vbcast.lane.b32.xlu0 %v8988_v40, 352 }
 0x3cd   : > { %v1945_v12 = vpop.permute.xlu1 %1944 }
 0x3ce   : > { %2403 = vst.msk [vmem:[#allocation3 + $0xb8] sm:$0xff] %vm1715_vm0, %v1945_v12  ;;  %v1941_v13 = vpop.permute.xlu0 %1940 }
 0x3cf   : > { %2402 = vst.msk [vmem:[#allocation3 + $0xb0] sm:$0xff] %vm1715_vm0, %v1941_v13  ;;  %1378 = vbcast.lane.b32.xlu1 %v8988_v40, 376 }
 0x3d0   : > { %1374 = vbcast.lane.b32.xlu0 %v8988_v40, 368 }
 0x3d1   : > { %v1953_v17 = vpop.permute.xlu1 %1952 }
 0x3d2   : > { %2405 = vst.msk [vmem:[#allocation3 + $0xc8] sm:$0xff] %vm1715_vm0, %v1953_v17  ;;  %v1949_v18 = vpop.permute.xlu0 %1948 }
 0x3d3   : > { %2404 = vst.msk [vmem:[#allocation3 + $0xc0] sm:$0xff] %vm1715_vm0, %v1949_v18  ;;  %1389 = vbcast.lane.b32.xlu1 %v8990_v41, 264 }
 0x3d4   : > { %1385 = vbcast.lane.b32.xlu0 %v8990_v41, 256 }
 0x3d5   : > { %v1961_v25 = vpop.permute.xlu1 %1960 }
 0x3d6   : > { %2407 = vst.msk [vmem:[#allocation3 + $0xd8] sm:$0xff] %vm1715_vm0, %v1961_v25  ;;  %v1957_v29 = vpop.permute.xlu0 %1956 }
 0x3d7   : > { %2406 = vst.msk [vmem:[#allocation3 + $0xd0] sm:$0xff] %vm1715_vm0, %v1957_v29  ;;  %1397 = vbcast.lane.b32.xlu1 %v8990_v41, 280 }
 0x3d8   : > { %1393 = vbcast.lane.b32.xlu0 %v8990_v41, 272 }
 0x3d9   : > { %v1969_v32 = vpop.permute.xlu1 %1968 }
 0x3da   : > { %2409 = vst.msk [vmem:[#allocation3 + $0xe8] sm:$0xff] %vm1715_vm0, %v1969_v32  ;;  %v1965_v33 = vpop.permute.xlu0 %1964 }
 0x3db   : > { %2408 = vst.msk [vmem:[#allocation3 + $0xe0] sm:$0xff] %vm1715_vm0, %v1965_v33  ;;  %1405 = vbcast.lane.b32.xlu1 %v8990_v41, 296 }
 0x3dc   : > { %1401 = vbcast.lane.b32.xlu0 %v8990_v41, 288 }
 0x3dd   : > { %v1977_v34 = vpop.permute.xlu1 %1976 }
 0x3de   : > { %2411 = vst.msk [vmem:[#allocation3 + $0xf8] sm:$0xff] %vm1715_vm0, %v1977_v34  ;;  %v1973_v35 = vpop.permute.xlu0 %1972 }
 0x3df   : > { %2410 = vst.msk [vmem:[#allocation3 + $0xf0] sm:$0xff] %vm1715_vm0, %v1973_v35  ;;  %1413 = vbcast.lane.b32.xlu1 %v8990_v41, 312 }
 0x3e0   : > { %1409 = vbcast.lane.b32.xlu0 %v8990_v41, 304 }
 0x3e1   : > { %v1988_v37 = vpop.permute.xlu1 %1987 }
 0x3e2   : > { %2413 = vst.msk [vmem:[#allocation3 + $0x108] sm:$0xff] %vm1715_vm0, %v1988_v37  ;;  %v1984_v38 = vpop.permute.xlu0 %1983 }
 0x3e3   : > { %2412 = vst.msk [vmem:[#allocation3 + $0x100] sm:$0xff] %vm1715_vm0, %v1984_v38  ;;  %1421 = vbcast.lane.b32.xlu1 %v8990_v41, 328 }
 0x3e4   : > { %1417 = vbcast.lane.b32.xlu0 %v8990_v41, 320 }
 0x3e5   : > { %v1193_v39 = vpop.permute.xlu1 %1192 }
 0x3e6   : > { %1718 = vst.msk [vmem:[#allocation2 + $0x10] sm:$0xff] %vm1715_vm0, %v1193_v39  ;;  %v1185_v40 = vpop.permute.xlu0 %1184 }
 0x3e7   : > { %1716 = vst.msk [vmem:[#allocation2] sm:$0xff] %vm1715_vm0, %v1185_v40  ;;  %1429 = vbcast.lane.b32.xlu1 %v8990_v41, 344 }
 0x3e8   : > { %1425 = vbcast.lane.b32.xlu0 %v8990_v41, 336 }
 0x3e9   : > { %v1197_v45 = vpop.permute.xlu1 %1196 }
 0x3ea   : > { %1719 = vst.msk [vmem:[#allocation2 + $0x18] sm:$0xff] %vm1715_vm0, %v1197_v45  ;;  %v1189_v46 = vpop.permute.xlu0 %1188 }
 0x3eb   : > { %1717 = vst.msk [vmem:[#allocation2 + $0x8] sm:$0xff] %vm1715_vm0, %v1189_v46  ;;  %1437 = vbcast.lane.b32.xlu1 %v8990_v41, 360 }
 0x3ec   : > { %1433 = vbcast.lane.b32.xlu0 %v8990_v41, 352 }
 0x3ed   : > { %v1205_v47 = vpop.permute.xlu1 %1204 }
 0x3ee   : > { %1721 = vst.msk [vmem:[#allocation2 + $0x28] sm:$0xff] %vm1715_vm0, %v1205_v47  ;;  %v1201_v48 = vpop.permute.xlu0 %1200 }
 0x3ef   : > { %1720 = vst.msk [vmem:[#allocation2 + $0x20] sm:$0xff] %vm1715_vm0, %v1201_v48  ;;  %1445 = vbcast.lane.b32.xlu1 %v8990_v41, 376 }
 0x3f0   : > { %1441 = vbcast.lane.b32.xlu0 %v8990_v41, 368 }
 0x3f1   : > { %v1213_v49 = vpop.permute.xlu1 %1212 }
 0x3f2   : > { %1723 = vst.msk [vmem:[#allocation2 + $0x38] sm:$0xff] %vm1715_vm0, %v1213_v49  ;;  %v1209_v50 = vpop.permute.xlu0 %1208 }
 0x3f3   : > { %1722 = vst.msk [vmem:[#allocation2 + $0x30] sm:$0xff] %vm1715_vm0, %v1209_v50  ;;  %1456 = vbcast.lane.b32.xlu1 %v8992_v42, 264 }
 0x3f4   : > { %1452 = vbcast.lane.b32.xlu0 %v8992_v42, 256 }
 0x3f5   : > { %v1221_v51 = vpop.permute.xlu1 %1220 }
 0x3f6   : > { %1725 = vst.msk [vmem:[#allocation2 + $0x48] sm:$0xff] %vm1715_vm0, %v1221_v51  ;;  %v1217_v52 = vpop.permute.xlu0 %1216 }
 0x3f7   : > { %1724 = vst.msk [vmem:[#allocation2 + $0x40] sm:$0xff] %vm1715_vm0, %v1217_v52  ;;  %1464 = vbcast.lane.b32.xlu1 %v8992_v42, 280 }
 0x3f8   : > { %1460 = vbcast.lane.b32.xlu0 %v8992_v42, 272 }
 0x3f9   : > { %v1229_v41 = vpop.permute.xlu1 %1228 }
 0x3fa   : > { %1727 = vst.msk [vmem:[#allocation2 + $0x58] sm:$0xff] %vm1715_vm0, %v1229_v41  ;;  %v1225_v53 = vpop.permute.xlu0 %1224 }
 0x3fb   : > { %1726 = vst.msk [vmem:[#allocation2 + $0x50] sm:$0xff] %vm1715_vm0, %v1225_v53  ;;  %1472 = vbcast.lane.b32.xlu1 %v8992_v42, 296 }
 0x3fc   : > { %1468 = vbcast.lane.b32.xlu0 %v8992_v42, 288 }
 0x3fd   : > { %v1237_v54 = vpop.permute.xlu1 %1236 }
 0x3fe   : > { %1729 = vst.msk [vmem:[#allocation2 + $0x68] sm:$0xff] %vm1715_vm0, %v1237_v54  ;;  %v1233_v55 = vpop.permute.xlu0 %1232 }
 0x3ff   : > { %1728 = vst.msk [vmem:[#allocation2 + $0x60] sm:$0xff] %vm1715_vm0, %v1233_v55  ;;  %1480 = vbcast.lane.b32.xlu1 %v8992_v42, 312 }
 0x400   : > { %1476 = vbcast.lane.b32.xlu0 %v8992_v42, 304 }
 0x401   : > { %v1245_v56 = vpop.permute.xlu1 %1244 }
 0x402   : > { %1731 = vst.msk [vmem:[#allocation2 + $0x78] sm:$0xff] %vm1715_vm0, %v1245_v56  ;;  %v1241_v57 = vpop.permute.xlu0 %1240 }
 0x403   : > { %1730 = vst.msk [vmem:[#allocation2 + $0x70] sm:$0xff] %vm1715_vm0, %v1241_v57  ;;  %1488 = vbcast.lane.b32.xlu1 %v8992_v42, 328 }
 0x404   : > { %1484 = vbcast.lane.b32.xlu0 %v8992_v42, 320 }
 0x405   : > { %v1256_v58 = vpop.permute.xlu1 %1255 }
 0x406   : > { %1733 = vst.msk [vmem:[#allocation2 + $0x88] sm:$0xff] %vm1715_vm0, %v1256_v58  ;;  %v1252_v59 = vpop.permute.xlu0 %1251 }
 0x407   : > { %1732 = vst.msk [vmem:[#allocation2 + $0x80] sm:$0xff] %vm1715_vm0, %v1252_v59  ;;  %1496 = vbcast.lane.b32.xlu1 %v8992_v42, 344 }
 0x408   : > { %1492 = vbcast.lane.b32.xlu0 %v8992_v42, 336 }
 0x409   : > { %v1264_v60 = vpop.permute.xlu1 %1263 }
 0x40a   : > { %1735 = vst.msk [vmem:[#allocation2 + $0x98] sm:$0xff] %vm1715_vm0, %v1264_v60  ;;  %v1260_v61 = vpop.permute.xlu0 %1259 }
 0x40b   : > { %1734 = vst.msk [vmem:[#allocation2 + $0x90] sm:$0xff] %vm1715_vm0, %v1260_v61  ;;  %1504 = vbcast.lane.b32.xlu1 %v8992_v42, 360 }
 0x40c   : > { %1500 = vbcast.lane.b32.xlu0 %v8992_v42, 352 }
 0x40d   : > { %v1272_v62 = vpop.permute.xlu1 %1271 }
 0x40e   : > { %1737 = vst.msk [vmem:[#allocation2 + $0xa8] sm:$0xff] %vm1715_vm0, %v1272_v62  ;;  %v1268_v63 = vpop.permute.xlu0 %1267 }
 0x40f   : > { %1736 = vst.msk [vmem:[#allocation2 + $0xa0] sm:$0xff] %vm1715_vm0, %v1268_v63  ;;  %1512 = vbcast.lane.b32.xlu1 %v8992_v42, 376 }
 0x410   : > { %1508 = vbcast.lane.b32.xlu0 %v8992_v42, 368 }
 0x411   : > { %v1280_v0 = vpop.permute.xlu1 %1279 }
 0x412   : > { %1739 = vst.msk [vmem:[#allocation2 + $0xb8] sm:$0xff] %vm1715_vm0, %v1280_v0  ;;  %v1276_v1 = vpop.permute.xlu0 %1275 }
 0x413   : > { %1738 = vst.msk [vmem:[#allocation2 + $0xb0] sm:$0xff] %vm1715_vm0, %v1276_v1  ;;  %1523 = vbcast.lane.b32.xlu1 %v8994_v36, 264 }
 0x414   : > { %1519 = vbcast.lane.b32.xlu0 %v8994_v36, 256 }
 0x415   : > { %v1288_v2 = vpop.permute.xlu1 %1287 }
 0x416   : > { %1741 = vst.msk [vmem:[#allocation2 + $0xc8] sm:$0xff] %vm1715_vm0, %v1288_v2  ;;  %v1284_v3 = vpop.permute.xlu0 %1283 }
 0x417   : > { %1740 = vst.msk [vmem:[#allocation2 + $0xc0] sm:$0xff] %vm1715_vm0, %v1284_v3  ;;  %1531 = vbcast.lane.b32.xlu1 %v8994_v36, 280 }
 0x418   : > { %1527 = vbcast.lane.b32.xlu0 %v8994_v36, 272 }
 0x419   : > { %v1296_v42 = vpop.permute.xlu1 %1295 }
 0x41a   : > { %1743 = vst.msk [vmem:[#allocation2 + $0xd8] sm:$0xff] %vm1715_vm0, %v1296_v42  ;;  %v1292_v4 = vpop.permute.xlu0 %1291 }
 0x41b   : > { %1742 = vst.msk [vmem:[#allocation2 + $0xd0] sm:$0xff] %vm1715_vm0, %v1292_v4  ;;  %1539 = vbcast.lane.b32.xlu1 %v8994_v36, 296 }
 0x41c   : > { %1535 = vbcast.lane.b32.xlu0 %v8994_v36, 288 }
 0x41d   : > { %v1304_v5 = vpop.permute.xlu1 %1303 }
 0x41e   : > { %1745 = vst.msk [vmem:[#allocation2 + $0xe8] sm:$0xff] %vm1715_vm0, %v1304_v5  ;;  %v1300_v6 = vpop.permute.xlu0 %1299 }
 0x41f   : > { %1744 = vst.msk [vmem:[#allocation2 + $0xe0] sm:$0xff] %vm1715_vm0, %v1300_v6  ;;  %1547 = vbcast.lane.b32.xlu1 %v8994_v36, 312 }
 0x420   : > { %1543 = vbcast.lane.b32.xlu0 %v8994_v36, 304 }
 0x421   : > { %v1312_v7 = vpop.permute.xlu1 %1311 }
 0x422   : > { %1747 = vst.msk [vmem:[#allocation2 + $0xf8] sm:$0xff] %vm1715_vm0, %v1312_v7  ;;  %v1308_v8 = vpop.permute.xlu0 %1307 }
 0x423   : > { %1746 = vst.msk [vmem:[#allocation2 + $0xf0] sm:$0xff] %vm1715_vm0, %v1308_v8  ;;  %1555 = vbcast.lane.b32.xlu1 %v8994_v36, 328 }
 0x424   : > { %1551 = vbcast.lane.b32.xlu0 %v8994_v36, 320 }
 0x425   : > { %v1323_v9 = vpop.permute.xlu1 %1322 }
 0x426   : > { %1749 = vst.msk [vmem:[#allocation2 + $0x108] sm:$0xff] %vm1715_vm0, %v1323_v9  ;;  %v1319_v10 = vpop.permute.xlu0 %1318 }
 0x427   : > { %1748 = vst.msk [vmem:[#allocation2 + $0x100] sm:$0xff] %vm1715_vm0, %v1319_v10  ;;  %1563 = vbcast.lane.b32.xlu1 %v8994_v36, 344 }
 0x428   : > { %1559 = vbcast.lane.b32.xlu0 %v8994_v36, 336 }
 0x429   : > { %v1331_v11 = vpop.permute.xlu1 %1330 }
 0x42a   : > { %1751 = vst.msk [vmem:[#allocation2 + $0x118] sm:$0xff] %vm1715_vm0, %v1331_v11  ;;  %v1327_v12 = vpop.permute.xlu0 %1326 }
 0x42b   : > { %1750 = vst.msk [vmem:[#allocation2 + $0x110] sm:$0xff] %vm1715_vm0, %v1327_v12  ;;  %1571 = vbcast.lane.b32.xlu1 %v8994_v36, 360 }
 0x42c   : > { %1567 = vbcast.lane.b32.xlu0 %v8994_v36, 352 }
 0x42d   : > { %v1339_v13 = vpop.permute.xlu1 %1338 }
 0x42e   : > { %1753 = vst.msk [vmem:[#allocation2 + $0x128] sm:$0xff] %vm1715_vm0, %v1339_v13  ;;  %v1335_v17 = vpop.permute.xlu0 %1334 }
 0x42f   : > { %1752 = vst.msk [vmem:[#allocation2 + $0x120] sm:$0xff] %vm1715_vm0, %v1335_v17  ;;  %1579 = vbcast.lane.b32.xlu1 %v8994_v36, 376 }
 0x430   : > { %1575 = vbcast.lane.b32.xlu0 %v8994_v36, 368 }
 0x431   : > { %v1347_v18 = vpop.permute.xlu1 %1346 }
 0x432   : > { %1755 = vst.msk [vmem:[#allocation2 + $0x138] sm:$0xff] %vm1715_vm0, %v1347_v18  ;;  %v1343_v25 = vpop.permute.xlu0 %1342 }
 0x433   : > { %1754 = vst.msk [vmem:[#allocation2 + $0x130] sm:$0xff] %vm1715_vm0, %v1343_v25  ;;  %1590 = vbcast.lane.b32.xlu1 %v8996_v43, 264 }
 0x434   : > { %1586 = vbcast.lane.b32.xlu0 %v8996_v43, 256 }
 0x435   : > { %v1355_v29 = vpop.permute.xlu1 %1354 }
 0x436   : > { %1757 = vst.msk [vmem:[#allocation2 + $0x148] sm:$0xff] %vm1715_vm0, %v1355_v29  ;;  %v1351_v32 = vpop.permute.xlu0 %1350 }
 0x437   : > { %1756 = vst.msk [vmem:[#allocation2 + $0x140] sm:$0xff] %vm1715_vm0, %v1351_v32  ;;  %1598 = vbcast.lane.b32.xlu1 %v8996_v43, 280 }
 0x438   : > { %1594 = vbcast.lane.b32.xlu0 %v8996_v43, 272 }
 0x439   : > { %v1363_v36 = vpop.permute.xlu1 %1362 }
 0x43a   : > { %1759 = vst.msk [vmem:[#allocation2 + $0x158] sm:$0xff] %vm1715_vm0, %v1363_v36  ;;  %v1359_v33 = vpop.permute.xlu0 %1358 }
 0x43b   : > { %1758 = vst.msk [vmem:[#allocation2 + $0x150] sm:$0xff] %vm1715_vm0, %v1359_v33  ;;  %1606 = vbcast.lane.b32.xlu1 %v8996_v43, 296 }
 0x43c   : > { %1602 = vbcast.lane.b32.xlu0 %v8996_v43, 288 }
 0x43d   : > { %v1371_v34 = vpop.permute.xlu1 %1370 }
 0x43e   : > { %1761 = vst.msk [vmem:[#allocation2 + $0x168] sm:$0xff] %vm1715_vm0, %v1371_v34  ;;  %v1367_v35 = vpop.permute.xlu0 %1366 }
 0x43f   : > { %1760 = vst.msk [vmem:[#allocation2 + $0x160] sm:$0xff] %vm1715_vm0, %v1367_v35  ;;  %1614 = vbcast.lane.b32.xlu1 %v8996_v43, 312 }
 0x440   : > { %1610 = vbcast.lane.b32.xlu0 %v8996_v43, 304 }
 0x441   : > { %v1379_v37 = vpop.permute.xlu1 %1378 }
 0x442   : > { %1763 = vst.msk [vmem:[#allocation2 + $0x178] sm:$0xff] %vm1715_vm0, %v1379_v37  ;;  %v1375_v38 = vpop.permute.xlu0 %1374 }
 0x443   : > { %1762 = vst.msk [vmem:[#allocation2 + $0x170] sm:$0xff] %vm1715_vm0, %v1375_v38  ;;  %1622 = vbcast.lane.b32.xlu1 %v8996_v43, 328 }
 0x444   : > { %1618 = vbcast.lane.b32.xlu0 %v8996_v43, 320 }
 0x445   : > { %v1390_v39 = vpop.permute.xlu1 %1389 }
 0x446   : > { %1765 = vst.msk [vmem:[#allocation2 + $0x188] sm:$0xff] %vm1715_vm0, %v1390_v39  ;;  %v1386_v40 = vpop.permute.xlu0 %1385 }
 0x447   : > { %1764 = vst.msk [vmem:[#allocation2 + $0x180] sm:$0xff] %vm1715_vm0, %v1386_v40  ;;  %1630 = vbcast.lane.b32.xlu1 %v8996_v43, 344 }
 0x448   : > { %1626 = vbcast.lane.b32.xlu0 %v8996_v43, 336 }
 0x449   : > { %v1398_v45 = vpop.permute.xlu1 %1397 }
 0x44a   : > { %1767 = vst.msk [vmem:[#allocation2 + $0x198] sm:$0xff] %vm1715_vm0, %v1398_v45  ;;  %v1394_v46 = vpop.permute.xlu0 %1393 }
 0x44b   : > { %1766 = vst.msk [vmem:[#allocation2 + $0x190] sm:$0xff] %vm1715_vm0, %v1394_v46  ;;  %1638 = vbcast.lane.b32.xlu1 %v8996_v43, 360 }
 0x44c   : > { %1634 = vbcast.lane.b32.xlu0 %v8996_v43, 352 }
 0x44d   : > { %v1406_v47 = vpop.permute.xlu1 %1405 }
 0x44e   : > { %1769 = vst.msk [vmem:[#allocation2 + $0x1a8] sm:$0xff] %vm1715_vm0, %v1406_v47  ;;  %v1402_v48 = vpop.permute.xlu0 %1401 }
 0x44f   : > { %1768 = vst.msk [vmem:[#allocation2 + $0x1a0] sm:$0xff] %vm1715_vm0, %v1402_v48  ;;  %1646 = vbcast.lane.b32.xlu1 %v8996_v43, 376 }
 0x450   : > { %1642 = vbcast.lane.b32.xlu0 %v8996_v43, 368 }
 0x451   : > { %v1414_v49 = vpop.permute.xlu1 %1413 }
 0x452   : > { %1771 = vst.msk [vmem:[#allocation2 + $0x1b8] sm:$0xff] %vm1715_vm0, %v1414_v49  ;;  %v1410_v50 = vpop.permute.xlu0 %1409 }
 0x453   : > { %1770 = vst.msk [vmem:[#allocation2 + $0x1b0] sm:$0xff] %vm1715_vm0, %v1410_v50  ;;  %1657 = vbcast.lane.b32.xlu1 %v8998_v44, 264 }
 0x454   : > { %1653 = vbcast.lane.b32.xlu0 %v8998_v44, 256 }
 0x455   : > { %v1422_v51 = vpop.permute.xlu1 %1421 }
 0x456   : > { %1773 = vst.msk [vmem:[#allocation2 + $0x1c8] sm:$0xff] %vm1715_vm0, %v1422_v51  ;;  %v1418_v52 = vpop.permute.xlu0 %1417 }
 0x457   : > { %1772 = vst.msk [vmem:[#allocation2 + $0x1c0] sm:$0xff] %vm1715_vm0, %v1418_v52  ;;  %1665 = vbcast.lane.b32.xlu1 %v8998_v44, 280 }
 0x458   : > { %1661 = vbcast.lane.b32.xlu0 %v8998_v44, 272 }
 0x459   : > { %v1430_v43 = vpop.permute.xlu1 %1429 }
 0x45a   : > { %1775 = vst.msk [vmem:[#allocation2 + $0x1d8] sm:$0xff] %vm1715_vm0, %v1430_v43  ;;  %v1426_v41 = vpop.permute.xlu0 %1425 }
 0x45b   : > { %1774 = vst.msk [vmem:[#allocation2 + $0x1d0] sm:$0xff] %vm1715_vm0, %v1426_v41  ;;  %1673 = vbcast.lane.b32.xlu1 %v8998_v44, 296 }
 0x45c   : > { %1669 = vbcast.lane.b32.xlu0 %v8998_v44, 288 }
 0x45d   : > { %v1438_v53 = vpop.permute.xlu1 %1437 }
 0x45e   : > { %1777 = vst.msk [vmem:[#allocation2 + $0x1e8] sm:$0xff] %vm1715_vm0, %v1438_v53  ;;  %v1434_v54 = vpop.permute.xlu0 %1433 }
 0x45f   : > { %1776 = vst.msk [vmem:[#allocation2 + $0x1e0] sm:$0xff] %vm1715_vm0, %v1434_v54  ;;  %1681 = vbcast.lane.b32.xlu1 %v8998_v44, 312 }
 0x460   : > { %1677 = vbcast.lane.b32.xlu0 %v8998_v44, 304 }
 0x461   : > { %v1446_v55 = vpop.permute.xlu1 %1445 }
 0x462   : > { %1779 = vst.msk [vmem:[#allocation2 + $0x1f8] sm:$0xff] %vm1715_vm0, %v1446_v55  ;;  %v1442_v56 = vpop.permute.xlu0 %1441 }
 0x463   : > { %1778 = vst.msk [vmem:[#allocation2 + $0x1f0] sm:$0xff] %vm1715_vm0, %v1442_v56  ;;  %1689 = vbcast.lane.b32.xlu1 %v8998_v44, 328 }
 0x464   : > { %1685 = vbcast.lane.b32.xlu0 %v8998_v44, 320 }
 0x465   : > { %v1457_v57 = vpop.permute.xlu1 %1456 }
 0x466   : > { %1781 = vst.msk [vmem:[#allocation2 + $0x208] sm:$0xff] %vm1715_vm0, %v1457_v57  ;;  %v1453_v58 = vpop.permute.xlu0 %1452 }
 0x467   : > { %1780 = vst.msk [vmem:[#allocation2 + $0x200] sm:$0xff] %vm1715_vm0, %v1453_v58  ;;  %1697 = vbcast.lane.b32.xlu1 %v8998_v44, 344 }
 0x468   : > { %1693 = vbcast.lane.b32.xlu0 %v8998_v44, 336 }
 0x469   : > { %v1465_v59 = vpop.permute.xlu1 %1464 }
 0x46a   : > { %1783 = vst.msk [vmem:[#allocation2 + $0x218] sm:$0xff] %vm1715_vm0, %v1465_v59  ;;  %v1461_v60 = vpop.permute.xlu0 %1460 }
 0x46b   : > { %1782 = vst.msk [vmem:[#allocation2 + $0x210] sm:$0xff] %vm1715_vm0, %v1461_v60  ;;  %1705 = vbcast.lane.b32.xlu1 %v8998_v44, 360 }
 0x46c   : > { %1701 = vbcast.lane.b32.xlu0 %v8998_v44, 352 }
 0x46d   : > { %v1473_v61 = vpop.permute.xlu1 %1472 }
 0x46e   : > { %1785 = vst.msk [vmem:[#allocation2 + $0x228] sm:$0xff] %vm1715_vm0, %v1473_v61  ;;  %v1469_v62 = vpop.permute.xlu0 %1468 }
 0x46f   : > { %1784 = vst.msk [vmem:[#allocation2 + $0x220] sm:$0xff] %vm1715_vm0, %v1469_v62  ;;  %1713 = vbcast.lane.b32.xlu1 %v8998_v44, 376 }
 0x470   : > { %1709 = vbcast.lane.b32.xlu0 %v8998_v44, 368 }
 0x471   : > { %v1481_v63 = vpop.permute.xlu1 %1480 }
 0x472   : > { %1787 = vst.msk [vmem:[#allocation2 + $0x238] sm:$0xff] %vm1715_vm0, %v1481_v63  ;;  %v1477_v0 = vpop.permute.xlu0 %1476 }
 0x473   : > { %1786 = vst.msk [vmem:[#allocation2 + $0x230] sm:$0xff] %vm1715_vm0, %v1477_v0  ;;  %1995 = vbcast.lane.b32.xlu1 %v8939_v14, 280 }
 0x474   : > { %1991 = vbcast.lane.b32.xlu0 %v8939_v14, 272 }
 0x475   : > { %v1489_v1 = vpop.permute.xlu1 %1488 }
 0x476   : > { %1789 = vst.msk [vmem:[#allocation2 + $0x248] sm:$0xff] %vm1715_vm0, %v1489_v1  ;;  %v1485_v2 = vpop.permute.xlu0 %1484 }
 0x477   : > { %1788 = vst.msk [vmem:[#allocation2 + $0x240] sm:$0xff] %vm1715_vm0, %v1485_v2  ;;  %2003 = vbcast.lane.b32.xlu1 %v8939_v14, 296 }
 0x478   : > { %1999 = vbcast.lane.b32.xlu0 %v8939_v14, 288 }
 0x479   : > { %v1497_v44 = vpop.permute.xlu1 %1496 }
 0x47a   : > { %1791 = vst.msk [vmem:[#allocation2 + $0x258] sm:$0xff] %vm1715_vm0, %v1497_v44  ;;  %v1493_v3 = vpop.permute.xlu0 %1492 }
 0x47b   : > { %1790 = vst.msk [vmem:[#allocation2 + $0x250] sm:$0xff] %vm1715_vm0, %v1493_v3  ;;  %2011 = vbcast.lane.b32.xlu1 %v8939_v14, 312 }
 0x47c   : > { %2007 = vbcast.lane.b32.xlu0 %v8939_v14, 304 }
 0x47d   : > { %v1505_v42 = vpop.permute.xlu1 %1504 }
 0x47e   : > { %1793 = vst.msk [vmem:[#allocation2 + $0x268] sm:$0xff] %vm1715_vm0, %v1505_v42  ;;  %v1501_v4 = vpop.permute.xlu0 %1500 }
 0x47f   : > { %1792 = vst.msk [vmem:[#allocation2 + $0x260] sm:$0xff] %vm1715_vm0, %v1501_v4  ;;  %2019 = vbcast.lane.b32.xlu1 %v8939_v14, 328 }
 0x480   : > { %2015 = vbcast.lane.b32.xlu0 %v8939_v14, 320 }
 0x481   : > { %v1513_v5 = vpop.permute.xlu1 %1512 }
 0x482   : > { %1795 = vst.msk [vmem:[#allocation2 + $0x278] sm:$0xff] %vm1715_vm0, %v1513_v5  ;;  %v1509_v6 = vpop.permute.xlu0 %1508 }
 0x483   : > { %1794 = vst.msk [vmem:[#allocation2 + $0x270] sm:$0xff] %vm1715_vm0, %v1509_v6  ;;  %2027 = vbcast.lane.b32.xlu1 %v8939_v14, 344 }
 0x484   : > { %2023 = vbcast.lane.b32.xlu0 %v8939_v14, 336 }
 0x485   : > { %v1524_v7 = vpop.permute.xlu1 %1523 }
 0x486   : > { %1797 = vst.msk [vmem:[#allocation2 + $0x288] sm:$0xff] %vm1715_vm0, %v1524_v7  ;;  %v1520_v8 = vpop.permute.xlu0 %1519 }
 0x487   : > { %1796 = vst.msk [vmem:[#allocation2 + $0x280] sm:$0xff] %vm1715_vm0, %v1520_v8  ;;  %2035 = vbcast.lane.b32.xlu1 %v8939_v14, 360 }
 0x488   : > { %2031 = vbcast.lane.b32.xlu0 %v8939_v14, 352 }
 0x489   : > { %v1532_v9 = vpop.permute.xlu1 %1531 }
 0x48a   : > { %1799 = vst.msk [vmem:[#allocation2 + $0x298] sm:$0xff] %vm1715_vm0, %v1532_v9  ;;  %v1528_v10 = vpop.permute.xlu0 %1527 }
 0x48b   : > { %1798 = vst.msk [vmem:[#allocation2 + $0x290] sm:$0xff] %vm1715_vm0, %v1528_v10  ;;  %2043 = vbcast.lane.b32.xlu1 %v8939_v14, 376 }
 0x48c   : > { %2039 = vbcast.lane.b32.xlu0 %v8939_v14, 368 }
 0x48d   : > { %v1540_v11 = vpop.permute.xlu1 %1539 }
 0x48e   : > { %1801 = vst.msk [vmem:[#allocation2 + $0x2a8] sm:$0xff] %vm1715_vm0, %v1540_v11  ;;  %v1536_v12 = vpop.permute.xlu0 %1535 }
 0x48f   : > { %1800 = vst.msk [vmem:[#allocation2 + $0x2a0] sm:$0xff] %vm1715_vm0, %v1536_v12  ;;  %2054 = vbcast.lane.b32.xlu1 %v8942_v15, 264 }
 0x490   : > { %2050 = vbcast.lane.b32.xlu0 %v8942_v15, 256 }
 0x491   : > { %v1548_v13 = vpop.permute.xlu1 %1547 }
 0x492   : > { %1803 = vst.msk [vmem:[#allocation2 + $0x2b8] sm:$0xff] %vm1715_vm0, %v1548_v13  ;;  %v1544_v17 = vpop.permute.xlu0 %1543 }
 0x493   : > { %1802 = vst.msk [vmem:[#allocation2 + $0x2b0] sm:$0xff] %vm1715_vm0, %v1544_v17  ;;  %2062 = vbcast.lane.b32.xlu1 %v8942_v15, 280 }
 0x494   : > { %2058 = vbcast.lane.b32.xlu0 %v8942_v15, 272 }
 0x495   : > { %v1556_v14 = vpop.permute.xlu1 %1555 }
 0x496   : > { %1805 = vst.msk [vmem:[#allocation2 + $0x2c8] sm:$0xff] %vm1715_vm0, %v1556_v14  ;;  %v1552_v18 = vpop.permute.xlu0 %1551 }
 0x497   : > { %1804 = vst.msk [vmem:[#allocation2 + $0x2c0] sm:$0xff] %vm1715_vm0, %v1552_v18  ;;  %2070 = vbcast.lane.b32.xlu1 %v8942_v15, 296 }
 0x498   : > { %2066 = vbcast.lane.b32.xlu0 %v8942_v15, 288 }
 0x499   : > { %v1564_v25 = vpop.permute.xlu1 %1563 }
 0x49a   : > { %1807 = vst.msk [vmem:[#allocation2 + $0x2d8] sm:$0xff] %vm1715_vm0, %v1564_v25  ;;  %v1560_v29 = vpop.permute.xlu0 %1559 }
 0x49b   : > { %1806 = vst.msk [vmem:[#allocation2 + $0x2d0] sm:$0xff] %vm1715_vm0, %v1560_v29  ;;  %2078 = vbcast.lane.b32.xlu1 %v8942_v15, 312 }
 0x49c   : > { %2074 = vbcast.lane.b32.xlu0 %v8942_v15, 304 }
 0x49d   : > { %v1572_v32 = vpop.permute.xlu1 %1571 }
 0x49e   : > { %1809 = vst.msk [vmem:[#allocation2 + $0x2e8] sm:$0xff] %vm1715_vm0, %v1572_v32  ;;  %v1568_v36 = vpop.permute.xlu0 %1567 }
 0x49f   : > { %1808 = vst.msk [vmem:[#allocation2 + $0x2e0] sm:$0xff] %vm1715_vm0, %v1568_v36  ;;  %2086 = vbcast.lane.b32.xlu1 %v8942_v15, 328 }
 0x4a0   : > { %2082 = vbcast.lane.b32.xlu0 %v8942_v15, 320 }
 0x4a1   : > { %v1580_v33 = vpop.permute.xlu1 %1579 }
 0x4a2   : > { %1811 = vst.msk [vmem:[#allocation2 + $0x2f8] sm:$0xff] %vm1715_vm0, %v1580_v33  ;;  %v1576_v34 = vpop.permute.xlu0 %1575 }
 0x4a3   : > { %1810 = vst.msk [vmem:[#allocation2 + $0x2f0] sm:$0xff] %vm1715_vm0, %v1576_v34  ;;  %2094 = vbcast.lane.b32.xlu1 %v8942_v15, 344 }
 0x4a4   : > { %2090 = vbcast.lane.b32.xlu0 %v8942_v15, 336 }
 0x4a5   : > { %v1591_v35 = vpop.permute.xlu1 %1590 }
 0x4a6   : > { %1813 = vst.msk [vmem:[#allocation2 + $0x308] sm:$0xff] %vm1715_vm0, %v1591_v35  ;;  %v1587_v37 = vpop.permute.xlu0 %1586 }
 0x4a7   : > { %1812 = vst.msk [vmem:[#allocation2 + $0x300] sm:$0xff] %vm1715_vm0, %v1587_v37  ;;  %2102 = vbcast.lane.b32.xlu1 %v8942_v15, 360 }
 0x4a8   : > { %2098 = vbcast.lane.b32.xlu0 %v8942_v15, 352 }
 0x4a9   : > { %v1599_v38 = vpop.permute.xlu1 %1598 }
 0x4aa   : > { %1815 = vst.msk [vmem:[#allocation2 + $0x318] sm:$0xff] %vm1715_vm0, %v1599_v38  ;;  %v1595_v39 = vpop.permute.xlu0 %1594 }
 0x4ab   : > { %1814 = vst.msk [vmem:[#allocation2 + $0x310] sm:$0xff] %vm1715_vm0, %v1595_v39  ;;  %2110 = vbcast.lane.b32.xlu1 %v8942_v15, 376 }
 0x4ac   : > { %2106 = vbcast.lane.b32.xlu0 %v8942_v15, 368 }
 0x4ad   : > { %v1607_v40 = vpop.permute.xlu1 %1606 }
 0x4ae   : > { %1817 = vst.msk [vmem:[#allocation2 + $0x328] sm:$0xff] %vm1715_vm0, %v1607_v40  ;;  %v1603_v45 = vpop.permute.xlu0 %1602 }
 0x4af   : > { %1816 = vst.msk [vmem:[#allocation2 + $0x320] sm:$0xff] %vm1715_vm0, %v1603_v45  ;;  %2121 = vbcast.lane.b32.xlu1 %v8945_v16, 264 }
 0x4b0   : > { %2117 = vbcast.lane.b32.xlu0 %v8945_v16, 256 }
 0x4b1   : > { %v1615_v46 = vpop.permute.xlu1 %1614 }
 0x4b2   : > { %1819 = vst.msk [vmem:[#allocation2 + $0x338] sm:$0xff] %vm1715_vm0, %v1615_v46  ;;  %v1611_v47 = vpop.permute.xlu0 %1610 }
 0x4b3   : > { %1818 = vst.msk [vmem:[#allocation2 + $0x330] sm:$0xff] %vm1715_vm0, %v1611_v47  ;;  %2129 = vbcast.lane.b32.xlu1 %v8945_v16, 280 }
 0x4b4   : > { %2125 = vbcast.lane.b32.xlu0 %v8945_v16, 272 }
 0x4b5   : > { %v1623_v15 = vpop.permute.xlu1 %1622 }
 0x4b6   : > { %1821 = vst.msk [vmem:[#allocation2 + $0x348] sm:$0xff] %vm1715_vm0, %v1623_v15  ;;  %v1619_v48 = vpop.permute.xlu0 %1618 }
 0x4b7   : > { %1820 = vst.msk [vmem:[#allocation2 + $0x340] sm:$0xff] %vm1715_vm0, %v1619_v48  ;;  %2137 = vbcast.lane.b32.xlu1 %v8945_v16, 296 }
 0x4b8   : > { %2133 = vbcast.lane.b32.xlu0 %v8945_v16, 288 }
 0x4b9   : > { %v1631_v49 = vpop.permute.xlu1 %1630 }
 0x4ba   : > { %1823 = vst.msk [vmem:[#allocation2 + $0x358] sm:$0xff] %vm1715_vm0, %v1631_v49  ;;  %v1627_v50 = vpop.permute.xlu0 %1626 }
 0x4bb   : > { %1822 = vst.msk [vmem:[#allocation2 + $0x350] sm:$0xff] %vm1715_vm0, %v1627_v50  ;;  %2145 = vbcast.lane.b32.xlu1 %v8945_v16, 312 }
 0x4bc   : > { %2141 = vbcast.lane.b32.xlu0 %v8945_v16, 304 }
 0x4bd   : > { %v1639_v51 = vpop.permute.xlu1 %1638 }
 0x4be   : > { %1825 = vst.msk [vmem:[#allocation2 + $0x368] sm:$0xff] %vm1715_vm0, %v1639_v51  ;;  %v1635_v52 = vpop.permute.xlu0 %1634 }
 0x4bf   : > { %1824 = vst.msk [vmem:[#allocation2 + $0x360] sm:$0xff] %vm1715_vm0, %v1635_v52  ;;  %2153 = vbcast.lane.b32.xlu1 %v8945_v16, 328 }
 0x4c0   : > { %2149 = vbcast.lane.b32.xlu0 %v8945_v16, 320 }
 0x4c1   : > { %v1647_v43 = vpop.permute.xlu1 %1646 }
 0x4c2   : > { %1827 = vst.msk [vmem:[#allocation2 + $0x378] sm:$0xff] %vm1715_vm0, %v1647_v43  ;;  %v1643_v41 = vpop.permute.xlu0 %1642 }
 0x4c3   : > { %1826 = vst.msk [vmem:[#allocation2 + $0x370] sm:$0xff] %vm1715_vm0, %v1643_v41  ;;  %2161 = vbcast.lane.b32.xlu1 %v8945_v16, 344 }
 0x4c4   : > { %2157 = vbcast.lane.b32.xlu0 %v8945_v16, 336 }
 0x4c5   : > { %v1658_v53 = vpop.permute.xlu1 %1657 }
 0x4c6   : > { %1829 = vst.msk [vmem:[#allocation2 + $0x388] sm:$0xff] %vm1715_vm0, %v1658_v53  ;;  %v1654_v54 = vpop.permute.xlu0 %1653 }
 0x4c7   : > { %1828 = vst.msk [vmem:[#allocation2 + $0x380] sm:$0xff] %vm1715_vm0, %v1654_v54  ;;  %2169 = vbcast.lane.b32.xlu1 %v8945_v16, 360 }
 0x4c8   : > { %2165 = vbcast.lane.b32.xlu0 %v8945_v16, 352 }
 0x4c9   : > { %v1666_v55 = vpop.permute.xlu1 %1665 }
 0x4ca   : > { %1831 = vst.msk [vmem:[#allocation2 + $0x398] sm:$0xff] %vm1715_vm0, %v1666_v55  ;;  %v1662_v56 = vpop.permute.xlu0 %1661 }
 0x4cb   : > { %1830 = vst.msk [vmem:[#allocation2 + $0x390] sm:$0xff] %vm1715_vm0, %v1662_v56  ;;  %2177 = vbcast.lane.b32.xlu1 %v8945_v16, 376 }
 0x4cc   : > { %2173 = vbcast.lane.b32.xlu0 %v8945_v16, 368 }
 0x4cd   : > { %v1674_v57 = vpop.permute.xlu1 %1673 }
 0x4ce   : > { %1833 = vst.msk [vmem:[#allocation2 + $0x3a8] sm:$0xff] %vm1715_vm0, %v1674_v57  ;;  %v1670_v58 = vpop.permute.xlu0 %1669 }
 0x4cf   : > { %1832 = vst.msk [vmem:[#allocation2 + $0x3a0] sm:$0xff] %vm1715_vm0, %v1670_v58  ;;  %2188 = vbcast.lane.b32.xlu1 %v8948_v19, 264 }
 0x4d0   : > { %2184 = vbcast.lane.b32.xlu0 %v8948_v19, 256 }
 0x4d1   : > { %v1682_v59 = vpop.permute.xlu1 %1681 }
 0x4d2   : > { %1835 = vst.msk [vmem:[#allocation2 + $0x3b8] sm:$0xff] %vm1715_vm0, %v1682_v59  ;;  %v1678_v60 = vpop.permute.xlu0 %1677 }
 0x4d3   : > { %1834 = vst.msk [vmem:[#allocation2 + $0x3b0] sm:$0xff] %vm1715_vm0, %v1678_v60  ;;  %2196 = vbcast.lane.b32.xlu1 %v8948_v19, 280 }
 0x4d4   : > { %2192 = vbcast.lane.b32.xlu0 %v8948_v19, 272 }
 0x4d5   : > { %v1690_v16 = vpop.permute.xlu1 %1689 }
 0x4d6   : > { %1837 = vst.msk [vmem:[#allocation2 + $0x3c8] sm:$0xff] %vm1715_vm0, %v1690_v16  ;;  %v1686_v61 = vpop.permute.xlu0 %1685 }
 0x4d7   : > { %1836 = vst.msk [vmem:[#allocation2 + $0x3c0] sm:$0xff] %vm1715_vm0, %v1686_v61  ;;  %2204 = vbcast.lane.b32.xlu1 %v8948_v19, 296 }
 0x4d8   : > { %2200 = vbcast.lane.b32.xlu0 %v8948_v19, 288 }
 0x4d9   : > { %v1698_v62 = vpop.permute.xlu1 %1697 }
 0x4da   : > { %1839 = vst.msk [vmem:[#allocation2 + $0x3d8] sm:$0xff] %vm1715_vm0, %v1698_v62  ;;  %v1694_v63 = vpop.permute.xlu0 %1693 }
 0x4db   : > { %1838 = vst.msk [vmem:[#allocation2 + $0x3d0] sm:$0xff] %vm1715_vm0, %v1694_v63  ;;  %2212 = vbcast.lane.b32.xlu1 %v8948_v19, 312 }
 0x4dc   : > { %2208 = vbcast.lane.b32.xlu0 %v8948_v19, 304 }
 0x4dd   : > { %v1706_v0 = vpop.permute.xlu1 %1705 }
 0x4de   : > { %1841 = vst.msk [vmem:[#allocation2 + $0x3e8] sm:$0xff] %vm1715_vm0, %v1706_v0  ;;  %v1702_v1 = vpop.permute.xlu0 %1701 }
 0x4df   : > { %1840 = vst.msk [vmem:[#allocation2 + $0x3e0] sm:$0xff] %vm1715_vm0, %v1702_v1  ;;  %2220 = vbcast.lane.b32.xlu1 %v8948_v19, 328 }
 0x4e0   : > { %2216 = vbcast.lane.b32.xlu0 %v8948_v19, 320 }
 0x4e1   : > { %v1714_v2 = vpop.permute.xlu1 %1713 }
 0x4e2   : > { %1843 = vst.msk [vmem:[#allocation2 + $0x3f8] sm:$0xff] %vm1715_vm0, %v1714_v2  ;;  %v1710_v44 = vpop.permute.xlu0 %1709 }
 0x4e3   : > { %1842 = vst.msk [vmem:[#allocation2 + $0x3f0] sm:$0xff] %vm1715_vm0, %v1710_v44  ;;  %2228 = vbcast.lane.b32.xlu1 %v8948_v19, 344 }
 0x4e4   : > { %2224 = vbcast.lane.b32.xlu0 %v8948_v19, 336 }
 0x4e5   : > { %v1996_v3 = vpop.permute.xlu1 %1995 }
 0x4e6   : > { %2415 = vst.msk [vmem:[#allocation3 + $0x118] sm:$0xff] %vm1715_vm0, %v1996_v3  ;;  %v1992_v42 = vpop.permute.xlu0 %1991 }
 0x4e7   : > { %2414 = vst.msk [vmem:[#allocation3 + $0x110] sm:$0xff] %vm1715_vm0, %v1992_v42  ;;  %2236 = vbcast.lane.b32.xlu1 %v8948_v19, 360 }
 0x4e8   : > { %2232 = vbcast.lane.b32.xlu0 %v8948_v19, 352 }
 0x4e9   : > { %v2004_v4 = vpop.permute.xlu1 %2003 }
 0x4ea   : > { %2417 = vst.msk [vmem:[#allocation3 + $0x128] sm:$0xff] %vm1715_vm0, %v2004_v4  ;;  %v2000_v5 = vpop.permute.xlu0 %1999 }
 0x4eb   : > { %2416 = vst.msk [vmem:[#allocation3 + $0x120] sm:$0xff] %vm1715_vm0, %v2000_v5  ;;  %2244 = vbcast.lane.b32.xlu1 %v8948_v19, 376 }
 0x4ec   : > { %2240 = vbcast.lane.b32.xlu0 %v8948_v19, 368 }
 0x4ed   : > { %v2012_v6 = vpop.permute.xlu1 %2011 }
 0x4ee   : > { %2419 = vst.msk [vmem:[#allocation3 + $0x138] sm:$0xff] %vm1715_vm0, %v2012_v6  ;;  %v2008_v7 = vpop.permute.xlu0 %2007 }
 0x4ef   : > { %2418 = vst.msk [vmem:[#allocation3 + $0x130] sm:$0xff] %vm1715_vm0, %v2008_v7  ;;  %2255 = vbcast.lane.b32.xlu1 %v8951_v20, 264 }
 0x4f0   : > { %2251 = vbcast.lane.b32.xlu0 %v8951_v20, 256 }
 0x4f1   : > { %v2020_v8 = vpop.permute.xlu1 %2019 }
 0x4f2   : > { %2421 = vst.msk [vmem:[#allocation3 + $0x148] sm:$0xff] %vm1715_vm0, %v2020_v8  ;;  %v2016_v9 = vpop.permute.xlu0 %2015 }
 0x4f3   : > { %2420 = vst.msk [vmem:[#allocation3 + $0x140] sm:$0xff] %vm1715_vm0, %v2016_v9  ;;  %2263 = vbcast.lane.b32.xlu1 %v8951_v20, 280 }
 0x4f4   : > { %2259 = vbcast.lane.b32.xlu0 %v8951_v20, 272 }
 0x4f5   : > { %v2028_v19 = vpop.permute.xlu1 %2027 }
 0x4f6   : > { %2423 = vst.msk [vmem:[#allocation3 + $0x158] sm:$0xff] %vm1715_vm0, %v2028_v19  ;;  %v2024_v10 = vpop.permute.xlu0 %2023 }
 0x4f7   : > { %2422 = vst.msk [vmem:[#allocation3 + $0x150] sm:$0xff] %vm1715_vm0, %v2024_v10  ;;  %2271 = vbcast.lane.b32.xlu1 %v8951_v20, 296 }
 0x4f8   : > { %2267 = vbcast.lane.b32.xlu0 %v8951_v20, 288 }
 0x4f9   : > { %v2036_v11 = vpop.permute.xlu1 %2035 }
 0x4fa   : > { %2425 = vst.msk [vmem:[#allocation3 + $0x168] sm:$0xff] %vm1715_vm0, %v2036_v11  ;;  %v2032_v12 = vpop.permute.xlu0 %2031 }
 0x4fb   : > { %2424 = vst.msk [vmem:[#allocation3 + $0x160] sm:$0xff] %vm1715_vm0, %v2032_v12  ;;  %2279 = vbcast.lane.b32.xlu1 %v8951_v20, 312 }
 0x4fc   : > { %2275 = vbcast.lane.b32.xlu0 %v8951_v20, 304 }
 0x4fd   : > { %v2044_v13 = vpop.permute.xlu1 %2043 }
 0x4fe   : > { %2427 = vst.msk [vmem:[#allocation3 + $0x178] sm:$0xff] %vm1715_vm0, %v2044_v13  ;;  %v2040_v17 = vpop.permute.xlu0 %2039 }
 0x4ff   : > { %2426 = vst.msk [vmem:[#allocation3 + $0x170] sm:$0xff] %vm1715_vm0, %v2040_v17  ;;  %2287 = vbcast.lane.b32.xlu1 %v8951_v20, 328 }
 0x500   : > { %2283 = vbcast.lane.b32.xlu0 %v8951_v20, 320 }
 0x501   : > { %v2055_v14 = vpop.permute.xlu1 %2054 }
 0x502   : > { %2429 = vst.msk [vmem:[#allocation3 + $0x188] sm:$0xff] %vm1715_vm0, %v2055_v14  ;;  %v2051_v18 = vpop.permute.xlu0 %2050 }
 0x503   : > { %2428 = vst.msk [vmem:[#allocation3 + $0x180] sm:$0xff] %vm1715_vm0, %v2051_v18  ;;  %2295 = vbcast.lane.b32.xlu1 %v8951_v20, 344 }
 0x504   : > { %2291 = vbcast.lane.b32.xlu0 %v8951_v20, 336 }
 0x505   : > { %v2063_v25 = vpop.permute.xlu1 %2062 }
 0x506   : > { %2431 = vst.msk [vmem:[#allocation3 + $0x198] sm:$0xff] %vm1715_vm0, %v2063_v25  ;;  %v2059_v29 = vpop.permute.xlu0 %2058 }
 0x507   : > { %2430 = vst.msk [vmem:[#allocation3 + $0x190] sm:$0xff] %vm1715_vm0, %v2059_v29  ;;  %2303 = vbcast.lane.b32.xlu1 %v8951_v20, 360 }
 0x508   : > { %2299 = vbcast.lane.b32.xlu0 %v8951_v20, 352 }
 0x509   : > { %v2071_v32 = vpop.permute.xlu1 %2070 }
 0x50a   : > { %2433 = vst.msk [vmem:[#allocation3 + $0x1a8] sm:$0xff] %vm1715_vm0, %v2071_v32  ;;  %v2067_v36 = vpop.permute.xlu0 %2066 }
 0x50b   : > { %2432 = vst.msk [vmem:[#allocation3 + $0x1a0] sm:$0xff] %vm1715_vm0, %v2067_v36  ;;  %2311 = vbcast.lane.b32.xlu1 %v8951_v20, 376 }
 0x50c   : > { %2307 = vbcast.lane.b32.xlu0 %v8951_v20, 368 }
 0x50d   : > { %v2079_v33 = vpop.permute.xlu1 %2078 }
 0x50e   : > { %2435 = vst.msk [vmem:[#allocation3 + $0x1b8] sm:$0xff] %vm1715_vm0, %v2079_v33  ;;  %v2075_v34 = vpop.permute.xlu0 %2074 }
 0x50f   : > { %2434 = vst.msk [vmem:[#allocation3 + $0x1b0] sm:$0xff] %vm1715_vm0, %v2075_v34  ;;  %2322 = vbcast.lane.b32.xlu1 %v8955_v21, 264 }
 0x510   : > { %2318 = vbcast.lane.b32.xlu0 %v8955_v21, 256 }
 0x511   : > { %v2087_v35 = vpop.permute.xlu1 %2086 }
 0x512   : > { %2437 = vst.msk [vmem:[#allocation3 + $0x1c8] sm:$0xff] %vm1715_vm0, %v2087_v35  ;;  %v2083_v37 = vpop.permute.xlu0 %2082 }
 0x513   : > { %2436 = vst.msk [vmem:[#allocation3 + $0x1c0] sm:$0xff] %vm1715_vm0, %v2083_v37  ;;  %2330 = vbcast.lane.b32.xlu1 %v8955_v21, 280 }
 0x514   : > { %2326 = vbcast.lane.b32.xlu0 %v8955_v21, 272 }
 0x515   : > { %v2095_v20 = vpop.permute.xlu1 %2094 }
 0x516   : > { %2439 = vst.msk [vmem:[#allocation3 + $0x1d8] sm:$0xff] %vm1715_vm0, %v2095_v20  ;;  %v2091_v38 = vpop.permute.xlu0 %2090 }
 0x517   : > { %2438 = vst.msk [vmem:[#allocation3 + $0x1d0] sm:$0xff] %vm1715_vm0, %v2091_v38  ;;  %2338 = vbcast.lane.b32.xlu1 %v8955_v21, 296 }
 0x518   : > { %2334 = vbcast.lane.b32.xlu0 %v8955_v21, 288 }
 0x519   : > { %v2103_v39 = vpop.permute.xlu1 %2102 }
 0x51a   : > { %2441 = vst.msk [vmem:[#allocation3 + $0x1e8] sm:$0xff] %vm1715_vm0, %v2103_v39  ;;  %v2099_v40 = vpop.permute.xlu0 %2098 }
 0x51b   : > { %2440 = vst.msk [vmem:[#allocation3 + $0x1e0] sm:$0xff] %vm1715_vm0, %v2099_v40  ;;  %2346 = vbcast.lane.b32.xlu1 %v8955_v21, 312 }
 0x51c   : > { %2342 = vbcast.lane.b32.xlu0 %v8955_v21, 304 }
 0x51d   : > { %v2111_v45 = vpop.permute.xlu1 %2110 }
 0x51e   : > { %2443 = vst.msk [vmem:[#allocation3 + $0x1f8] sm:$0xff] %vm1715_vm0, %v2111_v45  ;;  %v2107_v46 = vpop.permute.xlu0 %2106 }
 0x51f   : > { %2442 = vst.msk [vmem:[#allocation3 + $0x1f0] sm:$0xff] %vm1715_vm0, %v2107_v46  ;;  %2354 = vbcast.lane.b32.xlu1 %v8955_v21, 328 }
 0x520   : > { %2350 = vbcast.lane.b32.xlu0 %v8955_v21, 320 }
 0x521   : > { %v2122_v47 = vpop.permute.xlu1 %2121 }
 0x522   : > { %2445 = vst.msk [vmem:[#allocation3 + $0x208] sm:$0xff] %vm1715_vm0, %v2122_v47  ;;  %v2118_v15 = vpop.permute.xlu0 %2117 }
 0x523   : > { %2444 = vst.msk [vmem:[#allocation3 + $0x200] sm:$0xff] %vm1715_vm0, %v2118_v15  ;;  %2362 = vbcast.lane.b32.xlu1 %v8955_v21, 344 }
 0x524   : > { %2358 = vbcast.lane.b32.xlu0 %v8955_v21, 336 }
 0x525   : > { %v2130_v48 = vpop.permute.xlu1 %2129 }
 0x526   : > { %2447 = vst.msk [vmem:[#allocation3 + $0x218] sm:$0xff] %vm1715_vm0, %v2130_v48  ;;  %v2126_v49 = vpop.permute.xlu0 %2125 }
 0x527   : > { %2446 = vst.msk [vmem:[#allocation3 + $0x210] sm:$0xff] %vm1715_vm0, %v2126_v49  ;;  %2370 = vbcast.lane.b32.xlu1 %v8955_v21, 360 }
 0x528   : > { %2366 = vbcast.lane.b32.xlu0 %v8955_v21, 352 }
 0x529   : > { %v2138_v50 = vpop.permute.xlu1 %2137 }
 0x52a   : > { %2449 = vst.msk [vmem:[#allocation3 + $0x228] sm:$0xff] %vm1715_vm0, %v2138_v50  ;;  %v2134_v51 = vpop.permute.xlu0 %2133 }
 0x52b   : > { %2448 = vst.msk [vmem:[#allocation3 + $0x220] sm:$0xff] %vm1715_vm0, %v2134_v51  ;;  %2378 = vbcast.lane.b32.xlu1 %v8955_v21, 376 }
 0x52c   : > { %2374 = vbcast.lane.b32.xlu0 %v8955_v21, 368 }
 0x52d   : > { %v2146_v52 = vpop.permute.xlu1 %2145 }
 0x52e   : > { %2451 = vst.msk [vmem:[#allocation3 + $0x238] sm:$0xff] %vm1715_vm0, %v2146_v52  ;;  %v2142_v43 = vpop.permute.xlu0 %2141 }
 0x52f   : > { %2450 = vst.msk [vmem:[#allocation3 + $0x230] sm:$0xff] %vm1715_vm0, %v2142_v43  ;;  %2517 = vbcast.lane.b32.xlu1 %v8957_v22, 264 }
 0x530   : > { %2513 = vbcast.lane.b32.xlu0 %v8957_v22, 256 }
 0x531   : > { %v2154_v41 = vpop.permute.xlu1 %2153 }
 0x532   : > { %2453 = vst.msk [vmem:[#allocation3 + $0x248] sm:$0xff] %vm1715_vm0, %v2154_v41  ;;  %v2150_v53 = vpop.permute.xlu0 %2149 }
 0x533   : > { %2452 = vst.msk [vmem:[#allocation3 + $0x240] sm:$0xff] %vm1715_vm0, %v2150_v53  ;;  %2525 = vbcast.lane.b32.xlu1 %v8957_v22, 280 }
 0x534   : > { %2521 = vbcast.lane.b32.xlu0 %v8957_v22, 272 }
 0x535   : > { %v2162_v21 = vpop.permute.xlu1 %2161 }
 0x536   : > { %2455 = vst.msk [vmem:[#allocation3 + $0x258] sm:$0xff] %vm1715_vm0, %v2162_v21  ;;  %v2158_v54 = vpop.permute.xlu0 %2157 }
 0x537   : > { %2454 = vst.msk [vmem:[#allocation3 + $0x250] sm:$0xff] %vm1715_vm0, %v2158_v54  ;;  %2533 = vbcast.lane.b32.xlu1 %v8957_v22, 296 }
 0x538   : > { %2529 = vbcast.lane.b32.xlu0 %v8957_v22, 288 }
 0x539   : > { %v2170_v55 = vpop.permute.xlu1 %2169 }
 0x53a   : > { %2457 = vst.msk [vmem:[#allocation3 + $0x268] sm:$0xff] %vm1715_vm0, %v2170_v55  ;;  %v2166_v56 = vpop.permute.xlu0 %2165 }
 0x53b   : > { %2456 = vst.msk [vmem:[#allocation3 + $0x260] sm:$0xff] %vm1715_vm0, %v2166_v56  ;;  %2541 = vbcast.lane.b32.xlu1 %v8957_v22, 312 }
 0x53c   : > { %2537 = vbcast.lane.b32.xlu0 %v8957_v22, 304 }
 0x53d   : > { %v2178_v57 = vpop.permute.xlu1 %2177 }
 0x53e   : > { %2459 = vst.msk [vmem:[#allocation3 + $0x278] sm:$0xff] %vm1715_vm0, %v2178_v57  ;;  %v2174_v58 = vpop.permute.xlu0 %2173 }
 0x53f   : > { %2458 = vst.msk [vmem:[#allocation3 + $0x270] sm:$0xff] %vm1715_vm0, %v2174_v58  ;;  %2549 = vbcast.lane.b32.xlu1 %v8957_v22, 328 }
 0x540   : > { %2545 = vbcast.lane.b32.xlu0 %v8957_v22, 320 }
 0x541   : > { %v2189_v59 = vpop.permute.xlu1 %2188 }
 0x542   : > { %2461 = vst.msk [vmem:[#allocation3 + $0x288] sm:$0xff] %vm1715_vm0, %v2189_v59  ;;  %v2185_v60 = vpop.permute.xlu0 %2184 }
 0x543   : > { %2460 = vst.msk [vmem:[#allocation3 + $0x280] sm:$0xff] %vm1715_vm0, %v2185_v60  ;;  %2557 = vbcast.lane.b32.xlu1 %v8957_v22, 344 }
 0x544   : > { %2553 = vbcast.lane.b32.xlu0 %v8957_v22, 336 }
 0x545   : > { %v2197_v16 = vpop.permute.xlu1 %2196 }
 0x546   : > { %2463 = vst.msk [vmem:[#allocation3 + $0x298] sm:$0xff] %vm1715_vm0, %v2197_v16  ;;  %v2193_v61 = vpop.permute.xlu0 %2192 }
 0x547   : > { %2462 = vst.msk [vmem:[#allocation3 + $0x290] sm:$0xff] %vm1715_vm0, %v2193_v61  ;;  %2565 = vbcast.lane.b32.xlu1 %v8957_v22, 360 }
 0x548   : > { %2561 = vbcast.lane.b32.xlu0 %v8957_v22, 352 }
 0x549   : > { %v2205_v62 = vpop.permute.xlu1 %2204 }
 0x54a   : > { %2465 = vst.msk [vmem:[#allocation3 + $0x2a8] sm:$0xff] %vm1715_vm0, %v2205_v62  ;;  %v2201_v63 = vpop.permute.xlu0 %2200 }
 0x54b   : > { %2464 = vst.msk [vmem:[#allocation3 + $0x2a0] sm:$0xff] %vm1715_vm0, %v2201_v63  ;;  %2573 = vbcast.lane.b32.xlu1 %v8957_v22, 376 }
 0x54c   : > { %2569 = vbcast.lane.b32.xlu0 %v8957_v22, 368 }
 0x54d   : > { %v2213_v0 = vpop.permute.xlu1 %2212 }
 0x54e   : > { %2467 = vst.msk [vmem:[#allocation3 + $0x2b8] sm:$0xff] %vm1715_vm0, %v2213_v0  ;;  %v2209_v1 = vpop.permute.xlu0 %2208 }
 0x54f   : > { %2466 = vst.msk [vmem:[#allocation3 + $0x2b0] sm:$0xff] %vm1715_vm0, %v2209_v1  ;;  %2584 = vbcast.lane.b32.xlu1 %v8959_v23, 264 }
 0x550   : > { %2580 = vbcast.lane.b32.xlu0 %v8959_v23, 256 }
 0x551   : > { %v2221_v2 = vpop.permute.xlu1 %2220 }
 0x552   : > { %2469 = vst.msk [vmem:[#allocation3 + $0x2c8] sm:$0xff] %vm1715_vm0, %v2221_v2  ;;  %v2217_v44 = vpop.permute.xlu0 %2216 }
 0x553   : > { %2468 = vst.msk [vmem:[#allocation3 + $0x2c0] sm:$0xff] %vm1715_vm0, %v2217_v44  ;;  %2592 = vbcast.lane.b32.xlu1 %v8959_v23, 280 }
 0x554   : > { %2588 = vbcast.lane.b32.xlu0 %v8959_v23, 272 }
 0x555   : > { %v2229_v22 = vpop.permute.xlu1 %2228 }
 0x556   : > { %2471 = vst.msk [vmem:[#allocation3 + $0x2d8] sm:$0xff] %vm1715_vm0, %v2229_v22  ;;  %v2225_v3 = vpop.permute.xlu0 %2224 }
 0x557   : > { %2470 = vst.msk [vmem:[#allocation3 + $0x2d0] sm:$0xff] %vm1715_vm0, %v2225_v3  ;;  %2600 = vbcast.lane.b32.xlu1 %v8959_v23, 296 }
 0x558   : > { %2596 = vbcast.lane.b32.xlu0 %v8959_v23, 288 }
 0x559   : > { %v2237_v42 = vpop.permute.xlu1 %2236 }
 0x55a   : > { %2473 = vst.msk [vmem:[#allocation3 + $0x2e8] sm:$0xff] %vm1715_vm0, %v2237_v42  ;;  %v2233_v4 = vpop.permute.xlu0 %2232 }
 0x55b   : > { %2472 = vst.msk [vmem:[#allocation3 + $0x2e0] sm:$0xff] %vm1715_vm0, %v2233_v4  ;;  %2608 = vbcast.lane.b32.xlu1 %v8959_v23, 312 }
 0x55c   : > { %2604 = vbcast.lane.b32.xlu0 %v8959_v23, 304 }
 0x55d   : > { %v2245_v5 = vpop.permute.xlu1 %2244 }
 0x55e   : > { %2475 = vst.msk [vmem:[#allocation3 + $0x2f8] sm:$0xff] %vm1715_vm0, %v2245_v5  ;;  %v2241_v6 = vpop.permute.xlu0 %2240 }
 0x55f   : > { %2474 = vst.msk [vmem:[#allocation3 + $0x2f0] sm:$0xff] %vm1715_vm0, %v2241_v6  ;;  %2616 = vbcast.lane.b32.xlu1 %v8959_v23, 328 }
 0x560   : > { %2612 = vbcast.lane.b32.xlu0 %v8959_v23, 320 }
 0x561   : > { %v2256_v7 = vpop.permute.xlu1 %2255 }
 0x562   : > { %2477 = vst.msk [vmem:[#allocation3 + $0x308] sm:$0xff] %vm1715_vm0, %v2256_v7  ;;  %v2252_v8 = vpop.permute.xlu0 %2251 }
 0x563   : > { %2476 = vst.msk [vmem:[#allocation3 + $0x300] sm:$0xff] %vm1715_vm0, %v2252_v8  ;;  %2624 = vbcast.lane.b32.xlu1 %v8959_v23, 344 }
 0x564   : > { %2620 = vbcast.lane.b32.xlu0 %v8959_v23, 336 }
 0x565   : > { %v2264_v9 = vpop.permute.xlu1 %2263 }
 0x566   : > { %2479 = vst.msk [vmem:[#allocation3 + $0x318] sm:$0xff] %vm1715_vm0, %v2264_v9  ;;  %v2260_v19 = vpop.permute.xlu0 %2259 }
 0x567   : > { %2478 = vst.msk [vmem:[#allocation3 + $0x310] sm:$0xff] %vm1715_vm0, %v2260_v19  ;;  %2632 = vbcast.lane.b32.xlu1 %v8959_v23, 360 }
 0x568   : > { %2628 = vbcast.lane.b32.xlu0 %v8959_v23, 352 }
 0x569   : > { %v2272_v10 = vpop.permute.xlu1 %2271 }
 0x56a   : > { %2481 = vst.msk [vmem:[#allocation3 + $0x328] sm:$0xff] %vm1715_vm0, %v2272_v10  ;;  %v2268_v11 = vpop.permute.xlu0 %2267 }
 0x56b   : > { %2480 = vst.msk [vmem:[#allocation3 + $0x320] sm:$0xff] %vm1715_vm0, %v2268_v11  ;;  %2640 = vbcast.lane.b32.xlu1 %v8959_v23, 376 }
 0x56c   : > { %2636 = vbcast.lane.b32.xlu0 %v8959_v23, 368 }
 0x56d   : > { %v2280_v12 = vpop.permute.xlu1 %2279 }
 0x56e   : > { %2483 = vst.msk [vmem:[#allocation3 + $0x338] sm:$0xff] %vm1715_vm0, %v2280_v12  ;;  %v2276_v13 = vpop.permute.xlu0 %2275 }
 0x56f   : > { %2482 = vst.msk [vmem:[#allocation3 + $0x330] sm:$0xff] %vm1715_vm0, %v2276_v13  ;;  %2651 = vbcast.lane.b32.xlu1 %v8961_v24, 264 }
 0x570   : > { %2647 = vbcast.lane.b32.xlu0 %v8961_v24, 256 }
 0x571   : > { %v2288_v17 = vpop.permute.xlu1 %2287 }
 0x572   : > { %2485 = vst.msk [vmem:[#allocation3 + $0x348] sm:$0xff] %vm1715_vm0, %v2288_v17  ;;  %v2284_v14 = vpop.permute.xlu0 %2283 }
 0x573   : > { %2484 = vst.msk [vmem:[#allocation3 + $0x340] sm:$0xff] %vm1715_vm0, %v2284_v14  ;;  %2659 = vbcast.lane.b32.xlu1 %v8961_v24, 280 }
 0x574   : > { %2655 = vbcast.lane.b32.xlu0 %v8961_v24, 272 }
 0x575   : > { %v2296_v23 = vpop.permute.xlu1 %2295 }
 0x576   : > { %2487 = vst.msk [vmem:[#allocation3 + $0x358] sm:$0xff] %vm1715_vm0, %v2296_v23  ;;  %v2292_v18 = vpop.permute.xlu0 %2291 }
 0x577   : > { %2486 = vst.msk [vmem:[#allocation3 + $0x350] sm:$0xff] %vm1715_vm0, %v2292_v18  ;;  %2667 = vbcast.lane.b32.xlu1 %v8961_v24, 296 }
 0x578   : > { %2663 = vbcast.lane.b32.xlu0 %v8961_v24, 288 }
 0x579   : > { %v2304_v25 = vpop.permute.xlu1 %2303 }
 0x57a   : > { %2489 = vst.msk [vmem:[#allocation3 + $0x368] sm:$0xff] %vm1715_vm0, %v2304_v25  ;;  %v2300_v29 = vpop.permute.xlu0 %2299 }
 0x57b   : > { %2488 = vst.msk [vmem:[#allocation3 + $0x360] sm:$0xff] %vm1715_vm0, %v2300_v29  ;;  %2675 = vbcast.lane.b32.xlu1 %v8961_v24, 312 }
 0x57c   : > { %2671 = vbcast.lane.b32.xlu0 %v8961_v24, 304 }
 0x57d   : > { %v2312_v32 = vpop.permute.xlu1 %2311 }
 0x57e   : > { %2491 = vst.msk [vmem:[#allocation3 + $0x378] sm:$0xff] %vm1715_vm0, %v2312_v32  ;;  %v2308_v36 = vpop.permute.xlu0 %2307 }
 0x57f   : > { %2490 = vst.msk [vmem:[#allocation3 + $0x370] sm:$0xff] %vm1715_vm0, %v2308_v36  ;;  %2683 = vbcast.lane.b32.xlu1 %v8961_v24, 328 }
 0x580   : > { %2679 = vbcast.lane.b32.xlu0 %v8961_v24, 320 }
 0x581   : > { %v2323_v33 = vpop.permute.xlu1 %2322 }
 0x582   : > { %2493 = vst.msk [vmem:[#allocation3 + $0x388] sm:$0xff] %vm1715_vm0, %v2323_v33  ;;  %v2319_v34 = vpop.permute.xlu0 %2318 }
 0x583   : > { %2492 = vst.msk [vmem:[#allocation3 + $0x380] sm:$0xff] %vm1715_vm0, %v2319_v34  ;;  %2691 = vbcast.lane.b32.xlu1 %v8961_v24, 344 }
 0x584   : > { %2687 = vbcast.lane.b32.xlu0 %v8961_v24, 336 }
 0x585   : > { %v2331_v35 = vpop.permute.xlu1 %2330 }
 0x586   : > { %2495 = vst.msk [vmem:[#allocation3 + $0x398] sm:$0xff] %vm1715_vm0, %v2331_v35  ;;  %v2327_v37 = vpop.permute.xlu0 %2326 }
 0x587   : > { %2494 = vst.msk [vmem:[#allocation3 + $0x390] sm:$0xff] %vm1715_vm0, %v2327_v37  ;;  %2699 = vbcast.lane.b32.xlu1 %v8961_v24, 360 }
 0x588   : > { %2695 = vbcast.lane.b32.xlu0 %v8961_v24, 352 }
 0x589   : > { %v2339_v20 = vpop.permute.xlu1 %2338 }
 0x58a   : > { %2497 = vst.msk [vmem:[#allocation3 + $0x3a8] sm:$0xff] %vm1715_vm0, %v2339_v20  ;;  %v2335_v38 = vpop.permute.xlu0 %2334 }
 0x58b   : > { %2496 = vst.msk [vmem:[#allocation3 + $0x3a0] sm:$0xff] %vm1715_vm0, %v2335_v38  ;;  %2707 = vbcast.lane.b32.xlu1 %v8961_v24, 376 }
 0x58c   : > { %2703 = vbcast.lane.b32.xlu0 %v8961_v24, 368 }
 0x58d   : > { %v2347_v39 = vpop.permute.xlu1 %2346 }
 0x58e   : > { %2499 = vst.msk [vmem:[#allocation3 + $0x3b8] sm:$0xff] %vm1715_vm0, %v2347_v39  ;;  %v2343_v40 = vpop.permute.xlu0 %2342 }
 0x58f   : > { %2498 = vst.msk [vmem:[#allocation3 + $0x3b0] sm:$0xff] %vm1715_vm0, %v2343_v40  ;;  %2718 = vbcast.lane.b32.xlu1 %v8963_v26, 264 }
 0x590   : > { %2714 = vbcast.lane.b32.xlu0 %v8963_v26, 256 }
 0x591   : > { %v2355_v45 = vpop.permute.xlu1 %2354 }
 0x592   : > { %2501 = vst.msk [vmem:[#allocation3 + $0x3c8] sm:$0xff] %vm1715_vm0, %v2355_v45  ;;  %v2351_v46 = vpop.permute.xlu0 %2350 }
 0x593   : > { %2500 = vst.msk [vmem:[#allocation3 + $0x3c0] sm:$0xff] %vm1715_vm0, %v2351_v46  ;;  %2726 = vbcast.lane.b32.xlu1 %v8963_v26, 280 }
 0x594   : > { %2722 = vbcast.lane.b32.xlu0 %v8963_v26, 272 }
 0x595   : > { %v2363_v24 = vpop.permute.xlu1 %2362 }
 0x596   : > { %2503 = vst.msk [vmem:[#allocation3 + $0x3d8] sm:$0xff] %vm1715_vm0, %v2363_v24  ;;  %v2359_v47 = vpop.permute.xlu0 %2358 }
 0x597   : > { %2502 = vst.msk [vmem:[#allocation3 + $0x3d0] sm:$0xff] %vm1715_vm0, %v2359_v47  ;;  %2734 = vbcast.lane.b32.xlu1 %v8963_v26, 296 }
 0x598   : > { %2730 = vbcast.lane.b32.xlu0 %v8963_v26, 288 }
 0x599   : > { %v2371_v15 = vpop.permute.xlu1 %2370 }
 0x59a   : > { %2505 = vst.msk [vmem:[#allocation3 + $0x3e8] sm:$0xff] %vm1715_vm0, %v2371_v15  ;;  %v2367_v48 = vpop.permute.xlu0 %2366 }
 0x59b   : > { %2504 = vst.msk [vmem:[#allocation3 + $0x3e0] sm:$0xff] %vm1715_vm0, %v2367_v48  ;;  %2742 = vbcast.lane.b32.xlu1 %v8963_v26, 312 }
 0x59c   : > { %2738 = vbcast.lane.b32.xlu0 %v8963_v26, 304 }
 0x59d   : > { %v2379_v49 = vpop.permute.xlu1 %2378 }
 0x59e   : > { %2507 = vst.msk [vmem:[#allocation3 + $0x3f8] sm:$0xff] %vm1715_vm0, %v2379_v49  ;;  %v2375_v50 = vpop.permute.xlu0 %2374 }
 0x59f   : > { %2506 = vst.msk [vmem:[#allocation3 + $0x3f0] sm:$0xff] %vm1715_vm0, %v2375_v50  ;;  %2750 = vbcast.lane.b32.xlu1 %v8963_v26, 328 }
 0x5a0   : > { %2746 = vbcast.lane.b32.xlu0 %v8963_v26, 320 }
 0x5a1   : > { %v2518_v51 = vpop.permute.xlu1 %2517 }
 0x5a2   : > { %3045 = vst.msk [vmem:[#allocation4 + $0x8] sm:$0xff] %vm1715_vm0, %v2518_v51  ;;  %v2514_v52 = vpop.permute.xlu0 %2513 }
 0x5a3   : > { %3044 = vst.msk [vmem:[#allocation4] sm:$0xff] %vm1715_vm0, %v2514_v52  ;;  %2758 = vbcast.lane.b32.xlu1 %v8963_v26, 344 }
 0x5a4   : > { %2754 = vbcast.lane.b32.xlu0 %v8963_v26, 336 }
 0x5a5   : > { %v2526_v43 = vpop.permute.xlu1 %2525 }
 0x5a6   : > { %3047 = vst.msk [vmem:[#allocation4 + $0x18] sm:$0xff] %vm1715_vm0, %v2526_v43  ;;  %v2522_v41 = vpop.permute.xlu0 %2521 }
 0x5a7   : > { %3046 = vst.msk [vmem:[#allocation4 + $0x10] sm:$0xff] %vm1715_vm0, %v2522_v41  ;;  %2766 = vbcast.lane.b32.xlu1 %v8963_v26, 360 }
 0x5a8   : > { %2762 = vbcast.lane.b32.xlu0 %v8963_v26, 352 }
 0x5a9   : > { %v2534_v53 = vpop.permute.xlu1 %2533 }
 0x5aa   : > { %3049 = vst.msk [vmem:[#allocation4 + $0x28] sm:$0xff] %vm1715_vm0, %v2534_v53  ;;  %v2530_v21 = vpop.permute.xlu0 %2529 }
 0x5ab   : > { %3048 = vst.msk [vmem:[#allocation4 + $0x20] sm:$0xff] %vm1715_vm0, %v2530_v21  ;;  %2774 = vbcast.lane.b32.xlu1 %v8963_v26, 376 }
 0x5ac   : > { %2770 = vbcast.lane.b32.xlu0 %v8963_v26, 368 }
 0x5ad   : > { %v2542_v54 = vpop.permute.xlu1 %2541 }
 0x5ae   : > { %3051 = vst.msk [vmem:[#allocation4 + $0x38] sm:$0xff] %vm1715_vm0, %v2542_v54  ;;  %v2538_v55 = vpop.permute.xlu0 %2537 }
 0x5af   : > { %3050 = vst.msk [vmem:[#allocation4 + $0x30] sm:$0xff] %vm1715_vm0, %v2538_v55  ;;  %2785 = vbcast.lane.b32.xlu1 %v8965_v27, 264 }
 0x5b0   : > { %2781 = vbcast.lane.b32.xlu0 %v8965_v27, 256 }
 0x5b1   : > { %v2550_v56 = vpop.permute.xlu1 %2549 }
 0x5b2   : > { %3053 = vst.msk [vmem:[#allocation4 + $0x48] sm:$0xff] %vm1715_vm0, %v2550_v56  ;;  %v2546_v57 = vpop.permute.xlu0 %2545 }
 0x5b3   : > { %3052 = vst.msk [vmem:[#allocation4 + $0x40] sm:$0xff] %vm1715_vm0, %v2546_v57  ;;  %2793 = vbcast.lane.b32.xlu1 %v8965_v27, 280 }
 0x5b4   : > { %2789 = vbcast.lane.b32.xlu0 %v8965_v27, 272 }
 0x5b5   : > { %v2558_v26 = vpop.permute.xlu1 %2557 }
 0x5b6   : > { %3055 = vst.msk [vmem:[#allocation4 + $0x58] sm:$0xff] %vm1715_vm0, %v2558_v26  ;;  %v2554_v58 = vpop.permute.xlu0 %2553 }
 0x5b7   : > { %3054 = vst.msk [vmem:[#allocation4 + $0x50] sm:$0xff] %vm1715_vm0, %v2554_v58  ;;  %2801 = vbcast.lane.b32.xlu1 %v8965_v27, 296 }
 0x5b8   : > { %2797 = vbcast.lane.b32.xlu0 %v8965_v27, 288 }
 0x5b9   : > { %v2566_v59 = vpop.permute.xlu1 %2565 }
 0x5ba   : > { %3057 = vst.msk [vmem:[#allocation4 + $0x68] sm:$0xff] %vm1715_vm0, %v2566_v59  ;;  %v2562_v60 = vpop.permute.xlu0 %2561 }
 0x5bb   : > { %3056 = vst.msk [vmem:[#allocation4 + $0x60] sm:$0xff] %vm1715_vm0, %v2562_v60  ;;  %2809 = vbcast.lane.b32.xlu1 %v8965_v27, 312 }
 0x5bc   : > { %2805 = vbcast.lane.b32.xlu0 %v8965_v27, 304 }
 0x5bd   : > { %v2574_v16 = vpop.permute.xlu1 %2573 }
 0x5be   : > { %3059 = vst.msk [vmem:[#allocation4 + $0x78] sm:$0xff] %vm1715_vm0, %v2574_v16  ;;  %v2570_v61 = vpop.permute.xlu0 %2569 }
 0x5bf   : > { %3058 = vst.msk [vmem:[#allocation4 + $0x70] sm:$0xff] %vm1715_vm0, %v2570_v61  ;;  %2817 = vbcast.lane.b32.xlu1 %v8965_v27, 328 }
 0x5c0   : > { %2813 = vbcast.lane.b32.xlu0 %v8965_v27, 320 }
 0x5c1   : > { %v2585_v62 = vpop.permute.xlu1 %2584 }
 0x5c2   : > { %3061 = vst.msk [vmem:[#allocation4 + $0x88] sm:$0xff] %vm1715_vm0, %v2585_v62  ;;  %v2581_v63 = vpop.permute.xlu0 %2580 }
 0x5c3   : > { %3060 = vst.msk [vmem:[#allocation4 + $0x80] sm:$0xff] %vm1715_vm0, %v2581_v63  ;;  %2825 = vbcast.lane.b32.xlu1 %v8965_v27, 344 }
 0x5c4   : > { %2821 = vbcast.lane.b32.xlu0 %v8965_v27, 336 }
 0x5c5   : > { %v2593_v0 = vpop.permute.xlu1 %2592 }
 0x5c6   : > { %3063 = vst.msk [vmem:[#allocation4 + $0x98] sm:$0xff] %vm1715_vm0, %v2593_v0  ;;  %v2589_v1 = vpop.permute.xlu0 %2588 }
 0x5c7   : > { %3062 = vst.msk [vmem:[#allocation4 + $0x90] sm:$0xff] %vm1715_vm0, %v2589_v1  ;;  %2833 = vbcast.lane.b32.xlu1 %v8965_v27, 360 }
 0x5c8   : > { %2829 = vbcast.lane.b32.xlu0 %v8965_v27, 352 }
 0x5c9   : > { %v2601_v2 = vpop.permute.xlu1 %2600 }
 0x5ca   : > { %3065 = vst.msk [vmem:[#allocation4 + $0xa8] sm:$0xff] %vm1715_vm0, %v2601_v2  ;;  %v2597_v44 = vpop.permute.xlu0 %2596 }
 0x5cb   : > { %3064 = vst.msk [vmem:[#allocation4 + $0xa0] sm:$0xff] %vm1715_vm0, %v2597_v44  ;;  %2841 = vbcast.lane.b32.xlu1 %v8965_v27, 376 }
 0x5cc   : > { %2837 = vbcast.lane.b32.xlu0 %v8965_v27, 368 }
 0x5cd   : > { %v2609_v22 = vpop.permute.xlu1 %2608 }
 0x5ce   : > { %3067 = vst.msk [vmem:[#allocation4 + $0xb8] sm:$0xff] %vm1715_vm0, %v2609_v22  ;;  %v2605_v3 = vpop.permute.xlu0 %2604 }
 0x5cf   : > { %3066 = vst.msk [vmem:[#allocation4 + $0xb0] sm:$0xff] %vm1715_vm0, %v2605_v3  ;;  %2852 = vbcast.lane.b32.xlu1 %v8967_v28, 264 }
 0x5d0   : > { %2848 = vbcast.lane.b32.xlu0 %v8967_v28, 256 }
 0x5d1   : > { %v2617_v42 = vpop.permute.xlu1 %2616 }
 0x5d2   : > { %3069 = vst.msk [vmem:[#allocation4 + $0xc8] sm:$0xff] %vm1715_vm0, %v2617_v42  ;;  %v2613_v4 = vpop.permute.xlu0 %2612 }
 0x5d3   : > { %3068 = vst.msk [vmem:[#allocation4 + $0xc0] sm:$0xff] %vm1715_vm0, %v2613_v4  ;;  %2860 = vbcast.lane.b32.xlu1 %v8967_v28, 280 }
 0x5d4   : > { %2856 = vbcast.lane.b32.xlu0 %v8967_v28, 272 }
 0x5d5   : > { %v2625_v27 = vpop.permute.xlu1 %2624 }
 0x5d6   : > { %3071 = vst.msk [vmem:[#allocation4 + $0xd8] sm:$0xff] %vm1715_vm0, %v2625_v27  ;;  %v2621_v5 = vpop.permute.xlu0 %2620 }
 0x5d7   : > { %3070 = vst.msk [vmem:[#allocation4 + $0xd0] sm:$0xff] %vm1715_vm0, %v2621_v5  ;;  %2868 = vbcast.lane.b32.xlu1 %v8967_v28, 296 }
 0x5d8   : > { %2864 = vbcast.lane.b32.xlu0 %v8967_v28, 288 }
 0x5d9   : > { %v2633_v6 = vpop.permute.xlu1 %2632 }
 0x5da   : > { %3073 = vst.msk [vmem:[#allocation4 + $0xe8] sm:$0xff] %vm1715_vm0, %v2633_v6  ;;  %v2629_v7 = vpop.permute.xlu0 %2628 }
 0x5db   : > { %3072 = vst.msk [vmem:[#allocation4 + $0xe0] sm:$0xff] %vm1715_vm0, %v2629_v7  ;;  %2876 = vbcast.lane.b32.xlu1 %v8967_v28, 312 }
 0x5dc   : > { %2872 = vbcast.lane.b32.xlu0 %v8967_v28, 304 }
 0x5dd   : > { %v2641_v8 = vpop.permute.xlu1 %2640 }
 0x5de   : > { %3075 = vst.msk [vmem:[#allocation4 + $0xf8] sm:$0xff] %vm1715_vm0, %v2641_v8  ;;  %v2637_v9 = vpop.permute.xlu0 %2636 }
 0x5df   : > { %3074 = vst.msk [vmem:[#allocation4 + $0xf0] sm:$0xff] %vm1715_vm0, %v2637_v9  ;;  %2884 = vbcast.lane.b32.xlu1 %v8967_v28, 328 }
 0x5e0   : > { %2880 = vbcast.lane.b32.xlu0 %v8967_v28, 320 }
 0x5e1   : > { %v2652_v19 = vpop.permute.xlu1 %2651 }
 0x5e2   : > { %3077 = vst.msk [vmem:[#allocation4 + $0x108] sm:$0xff] %vm1715_vm0, %v2652_v19  ;;  %v2648_v10 = vpop.permute.xlu0 %2647 }
 0x5e3   : > { %3076 = vst.msk [vmem:[#allocation4 + $0x100] sm:$0xff] %vm1715_vm0, %v2648_v10  ;;  %2892 = vbcast.lane.b32.xlu1 %v8967_v28, 344 }
 0x5e4   : > { %2888 = vbcast.lane.b32.xlu0 %v8967_v28, 336 }
 0x5e5   : > { %v2660_v11 = vpop.permute.xlu1 %2659 }
 0x5e6   : > { %3079 = vst.msk [vmem:[#allocation4 + $0x118] sm:$0xff] %vm1715_vm0, %v2660_v11  ;;  %v2656_v12 = vpop.permute.xlu0 %2655 }
 0x5e7   : > { %3078 = vst.msk [vmem:[#allocation4 + $0x110] sm:$0xff] %vm1715_vm0, %v2656_v12  ;;  %2900 = vbcast.lane.b32.xlu1 %v8967_v28, 360 }
 0x5e8   : > { %2896 = vbcast.lane.b32.xlu0 %v8967_v28, 352 }
 0x5e9   : > { %v2668_v13 = vpop.permute.xlu1 %2667 }
 0x5ea   : > { %3081 = vst.msk [vmem:[#allocation4 + $0x128] sm:$0xff] %vm1715_vm0, %v2668_v13  ;;  %v2664_v17 = vpop.permute.xlu0 %2663 }
 0x5eb   : > { %3080 = vst.msk [vmem:[#allocation4 + $0x120] sm:$0xff] %vm1715_vm0, %v2664_v17  ;;  %2908 = vbcast.lane.b32.xlu1 %v8967_v28, 376 }
 0x5ec   : > { %2904 = vbcast.lane.b32.xlu0 %v8967_v28, 368 }
 0x5ed   : > { %v2676_v14 = vpop.permute.xlu1 %2675 }
 0x5ee   : > { %3083 = vst.msk [vmem:[#allocation4 + $0x138] sm:$0xff] %vm1715_vm0, %v2676_v14  ;;  %v2672_v23 = vpop.permute.xlu0 %2671 }
 0x5ef   : > { %3082 = vst.msk [vmem:[#allocation4 + $0x130] sm:$0xff] %vm1715_vm0, %v2672_v23  ;;  %2919 = vbcast.lane.b32.xlu1 %v8971_v30, 264 }
 0x5f0   : > { %2915 = vbcast.lane.b32.xlu0 %v8971_v30, 256 }
 0x5f1   : > { %v2684_v18 = vpop.permute.xlu1 %2683 }
 0x5f2   : > { %3085 = vst.msk [vmem:[#allocation4 + $0x148] sm:$0xff] %vm1715_vm0, %v2684_v18  ;;  %v2680_v25 = vpop.permute.xlu0 %2679 }
 0x5f3   : > { %3084 = vst.msk [vmem:[#allocation4 + $0x140] sm:$0xff] %vm1715_vm0, %v2680_v25  ;;  %2927 = vbcast.lane.b32.xlu1 %v8971_v30, 280 }
 0x5f4   : > { %2923 = vbcast.lane.b32.xlu0 %v8971_v30, 272 }
 0x5f5   : > { %v2692_v28 = vpop.permute.xlu1 %2691 }
 0x5f6   : > { %3087 = vst.msk [vmem:[#allocation4 + $0x158] sm:$0xff] %vm1715_vm0, %v2692_v28  ;;  %v2688_v29 = vpop.permute.xlu0 %2687 }
 0x5f7   : > { %3086 = vst.msk [vmem:[#allocation4 + $0x150] sm:$0xff] %vm1715_vm0, %v2688_v29  ;;  %2935 = vbcast.lane.b32.xlu1 %v8971_v30, 296 }
 0x5f8   : > { %2931 = vbcast.lane.b32.xlu0 %v8971_v30, 288 }
 0x5f9   : > { %v2700_v32 = vpop.permute.xlu1 %2699 }
 0x5fa   : > { %3089 = vst.msk [vmem:[#allocation4 + $0x168] sm:$0xff] %vm1715_vm0, %v2700_v32  ;;  %v2696_v36 = vpop.permute.xlu0 %2695 }
 0x5fb   : > { %3088 = vst.msk [vmem:[#allocation4 + $0x160] sm:$0xff] %vm1715_vm0, %v2696_v36  ;;  %2943 = vbcast.lane.b32.xlu1 %v8971_v30, 312 }
 0x5fc   : > { %2939 = vbcast.lane.b32.xlu0 %v8971_v30, 304 }
 0x5fd   : > { %v2708_v33 = vpop.permute.xlu1 %2707 }
 0x5fe   : > { %3091 = vst.msk [vmem:[#allocation4 + $0x178] sm:$0xff] %vm1715_vm0, %v2708_v33  ;;  %v2704_v34 = vpop.permute.xlu0 %2703 }
 0x5ff   : > { %3090 = vst.msk [vmem:[#allocation4 + $0x170] sm:$0xff] %vm1715_vm0, %v2704_v34  ;;  %2951 = vbcast.lane.b32.xlu1 %v8971_v30, 328 }
 0x600   : > { %2947 = vbcast.lane.b32.xlu0 %v8971_v30, 320 }
 0x601   : > { %v2719_v35 = vpop.permute.xlu1 %2718 }
 0x602   : > { %3093 = vst.msk [vmem:[#allocation4 + $0x188] sm:$0xff] %vm1715_vm0, %v2719_v35  ;;  %v2715_v37 = vpop.permute.xlu0 %2714 }
 0x603   : > { %3092 = vst.msk [vmem:[#allocation4 + $0x180] sm:$0xff] %vm1715_vm0, %v2715_v37  ;;  %2959 = vbcast.lane.b32.xlu1 %v8971_v30, 344 }
 0x604   : > { %2955 = vbcast.lane.b32.xlu0 %v8971_v30, 336 }
 0x605   : > { %v2727_v20 = vpop.permute.xlu1 %2726 }
 0x606   : > { %3095 = vst.msk [vmem:[#allocation4 + $0x198] sm:$0xff] %vm1715_vm0, %v2727_v20  ;;  %v2723_v38 = vpop.permute.xlu0 %2722 }
 0x607   : > { %3094 = vst.msk [vmem:[#allocation4 + $0x190] sm:$0xff] %vm1715_vm0, %v2723_v38  ;;  %2967 = vbcast.lane.b32.xlu1 %v8971_v30, 360 }
 0x608   : > { %2963 = vbcast.lane.b32.xlu0 %v8971_v30, 352 }
 0x609   : > { %v2735_v39 = vpop.permute.xlu1 %2734 }
 0x60a   : > { %3097 = vst.msk [vmem:[#allocation4 + $0x1a8] sm:$0xff] %vm1715_vm0, %v2735_v39  ;;  %v2731_v40 = vpop.permute.xlu0 %2730 }
 0x60b   : > { %3096 = vst.msk [vmem:[#allocation4 + $0x1a0] sm:$0xff] %vm1715_vm0, %v2731_v40  ;;  %2975 = vbcast.lane.b32.xlu1 %v8971_v30, 376 }
 0x60c   : > { %2971 = vbcast.lane.b32.xlu0 %v8971_v30, 368 }
 0x60d   : > { %v2743_v45 = vpop.permute.xlu1 %2742 }
 0x60e   : > { %3099 = vst.msk [vmem:[#allocation4 + $0x1b8] sm:$0xff] %vm1715_vm0, %v2743_v45  ;;  %v2739_v46 = vpop.permute.xlu0 %2738 }
 0x60f   : > { %3098 = vst.msk [vmem:[#allocation4 + $0x1b0] sm:$0xff] %vm1715_vm0, %v2739_v46  ;;  %2986 = vbcast.lane.b32.xlu1 %v8973_v31, 264 }
 0x610   : > { %2982 = vbcast.lane.b32.xlu0 %v8973_v31, 256 }
 0x611   : > { %v2751_v24 = vpop.permute.xlu1 %2750 }
 0x612   : > { %3101 = vst.msk [vmem:[#allocation4 + $0x1c8] sm:$0xff] %vm1715_vm0, %v2751_v24  ;;  %v2747_v47 = vpop.permute.xlu0 %2746 }
 0x613   : > { %3100 = vst.msk [vmem:[#allocation4 + $0x1c0] sm:$0xff] %vm1715_vm0, %v2747_v47  ;;  %2994 = vbcast.lane.b32.xlu1 %v8973_v31, 280 }
 0x614   : > { %2990 = vbcast.lane.b32.xlu0 %v8973_v31, 272 }
 0x615   : > { %v2759_v30 = vpop.permute.xlu1 %2758 }
 0x616   : > { %3103 = vst.msk [vmem:[#allocation4 + $0x1d8] sm:$0xff] %vm1715_vm0, %v2759_v30  ;;  %v2755_v15 = vpop.permute.xlu0 %2754 }
 0x617   : > { %3102 = vst.msk [vmem:[#allocation4 + $0x1d0] sm:$0xff] %vm1715_vm0, %v2755_v15  ;;  %3002 = vbcast.lane.b32.xlu1 %v8973_v31, 296 }
 0x618   : > { %2998 = vbcast.lane.b32.xlu0 %v8973_v31, 288 }
 0x619   : > { %v2767_v48 = vpop.permute.xlu1 %2766 }
 0x61a   : > { %3105 = vst.msk [vmem:[#allocation4 + $0x1e8] sm:$0xff] %vm1715_vm0, %v2767_v48  ;;  %v2763_v49 = vpop.permute.xlu0 %2762 }
 0x61b   : > { %3104 = vst.msk [vmem:[#allocation4 + $0x1e0] sm:$0xff] %vm1715_vm0, %v2763_v49  ;;  %3010 = vbcast.lane.b32.xlu1 %v8973_v31, 312 }
 0x61c   : > { %3006 = vbcast.lane.b32.xlu0 %v8973_v31, 304 }
 0x61d   : > { %v2775_v50 = vpop.permute.xlu1 %2774 }
 0x61e   : > { %3107 = vst.msk [vmem:[#allocation4 + $0x1f8] sm:$0xff] %vm1715_vm0, %v2775_v50  ;;  %v2771_v51 = vpop.permute.xlu0 %2770 }
 0x61f   : > { %3106 = vst.msk [vmem:[#allocation4 + $0x1f0] sm:$0xff] %vm1715_vm0, %v2771_v51  ;;  %3018 = vbcast.lane.b32.xlu1 %v8973_v31, 328 }
 0x620   : > { %3014 = vbcast.lane.b32.xlu0 %v8973_v31, 320 }
 0x621   : > { %v2786_v52 = vpop.permute.xlu1 %2785 }
 0x622   : > { %3109 = vst.msk [vmem:[#allocation4 + $0x208] sm:$0xff] %vm1715_vm0, %v2786_v52  ;;  %v2782_v43 = vpop.permute.xlu0 %2781 }
 0x623   : > { %3108 = vst.msk [vmem:[#allocation4 + $0x200] sm:$0xff] %vm1715_vm0, %v2782_v43  ;;  %3026 = vbcast.lane.b32.xlu1 %v8973_v31, 344 }
 0x624   : > { %3022 = vbcast.lane.b32.xlu0 %v8973_v31, 336 }
 0x625   : > { %v2794_v41 = vpop.permute.xlu1 %2793 }
 0x626   : > { %3111 = vst.msk [vmem:[#allocation4 + $0x218] sm:$0xff] %vm1715_vm0, %v2794_v41  ;;  %v2790_v53 = vpop.permute.xlu0 %2789 }
 0x627   : > { %3110 = vst.msk [vmem:[#allocation4 + $0x210] sm:$0xff] %vm1715_vm0, %v2790_v53  ;;  %3034 = vbcast.lane.b32.xlu1 %v8973_v31, 360 }
 0x628   : > { %3030 = vbcast.lane.b32.xlu0 %v8973_v31, 352 }
 0x629   : > { %v2802_v21 = vpop.permute.xlu1 %2801 }
 0x62a   : > { %3113 = vst.msk [vmem:[#allocation4 + $0x228] sm:$0xff] %vm1715_vm0, %v2802_v21  ;;  %v2798_v54 = vpop.permute.xlu0 %2797 }
 0x62b   : > { %3112 = vst.msk [vmem:[#allocation4 + $0x220] sm:$0xff] %vm1715_vm0, %v2798_v54  ;;  %3042 = vbcast.lane.b32.xlu1 %v8973_v31, 376 }
 0x62c   : > { %3038 = vbcast.lane.b32.xlu0 %v8973_v31, 368 }
 0x62d   : > { %v2810_v55 = vpop.permute.xlu1 %2809 }
 0x62e   : > { %3115 = vst.msk [vmem:[#allocation4 + $0x238] sm:$0xff] %vm1715_vm0, %v2810_v55  ;;  %v2806_v56 = vpop.permute.xlu0 %2805 }
 0x62f   : > { %3114 = vst.msk [vmem:[#allocation4 + $0x230] sm:$0xff] %vm1715_vm0, %v2806_v56 }
 0x631   : > { %v2818_v57 = vpop.permute.xlu1 %2817 }
 0x632   : > { %3117 = vst.msk [vmem:[#allocation4 + $0x248] sm:$0xff] %vm1715_vm0, %v2818_v57  ;;  %v2814_v26 = vpop.permute.xlu0 %2813 }
 0x633   : > { %3116 = vst.msk [vmem:[#allocation4 + $0x240] sm:$0xff] %vm1715_vm0, %v2814_v26 }
 0x635   : > { %v2826_v58 = vpop.permute.xlu1 %2825 }
 0x636   : > { %3119 = vst.msk [vmem:[#allocation4 + $0x258] sm:$0xff] %vm1715_vm0, %v2826_v58  ;;  %v2822_v59 = vpop.permute.xlu0 %2821 }
 0x637   : > { %3118 = vst.msk [vmem:[#allocation4 + $0x250] sm:$0xff] %vm1715_vm0, %v2822_v59 }
 0x639   : > { %v2834_v60 = vpop.permute.xlu1 %2833 }
 0x63a   : > { %3121 = vst.msk [vmem:[#allocation4 + $0x268] sm:$0xff] %vm1715_vm0, %v2834_v60  ;;  %v2830_v31 = vpop.permute.xlu0 %2829 }
 0x63b   : > { %3120 = vst.msk [vmem:[#allocation4 + $0x260] sm:$0xff] %vm1715_vm0, %v2830_v31 }
 0x63d   : > { %v2842_v16 = vpop.permute.xlu1 %2841 }
 0x63e   : > { %3123 = vst.msk [vmem:[#allocation4 + $0x278] sm:$0xff] %vm1715_vm0, %v2842_v16  ;;  %v2838_v61 = vpop.permute.xlu0 %2837 }
 0x63f   : > { %3122 = vst.msk [vmem:[#allocation4 + $0x270] sm:$0xff] %vm1715_vm0, %v2838_v61 }
 0x641   : > { %v2853_v62 = vpop.permute.xlu1 %2852 }
 0x642   : > { %3125 = vst.msk [vmem:[#allocation4 + $0x288] sm:$0xff] %vm1715_vm0, %v2853_v62  ;;  %v2849_v63 = vpop.permute.xlu0 %2848 }
 0x643   : > { %3124 = vst.msk [vmem:[#allocation4 + $0x280] sm:$0xff] %vm1715_vm0, %v2849_v63 }
 0x645   : > { %v2861_v0 = vpop.permute.xlu1 %2860 }
 0x646   : > { %3127 = vst.msk [vmem:[#allocation4 + $0x298] sm:$0xff] %vm1715_vm0, %v2861_v0  ;;  %v2857_v1 = vpop.permute.xlu0 %2856 }
 0x647   : > { %3126 = vst.msk [vmem:[#allocation4 + $0x290] sm:$0xff] %vm1715_vm0, %v2857_v1 }
 0x649   : > { %v2869_v2 = vpop.permute.xlu1 %2868 }
 0x64a   : > { %3129 = vst.msk [vmem:[#allocation4 + $0x2a8] sm:$0xff] %vm1715_vm0, %v2869_v2  ;;  %v2865_v44 = vpop.permute.xlu0 %2864 }
 0x64b   : > { %3128 = vst.msk [vmem:[#allocation4 + $0x2a0] sm:$0xff] %vm1715_vm0, %v2865_v44 }
 0x64d   : > { %v2877_v22 = vpop.permute.xlu1 %2876 }
 0x64e   : > { %3131 = vst.msk [vmem:[#allocation4 + $0x2b8] sm:$0xff] %vm1715_vm0, %v2877_v22  ;;  %v2873_v3 = vpop.permute.xlu0 %2872 }
 0x64f   : > { %3130 = vst.msk [vmem:[#allocation4 + $0x2b0] sm:$0xff] %vm1715_vm0, %v2873_v3 }
 0x651   : > { %v2885_v42 = vpop.permute.xlu1 %2884 }
 0x652   : > { %3133 = vst.msk [vmem:[#allocation4 + $0x2c8] sm:$0xff] %vm1715_vm0, %v2885_v42  ;;  %v2881_v4 = vpop.permute.xlu0 %2880 }
 0x653   : > { %3132 = vst.msk [vmem:[#allocation4 + $0x2c0] sm:$0xff] %vm1715_vm0, %v2881_v4 }
 0x655   : > { %v2893_v27 = vpop.permute.xlu1 %2892 }
 0x656   : > { %3135 = vst.msk [vmem:[#allocation4 + $0x2d8] sm:$0xff] %vm1715_vm0, %v2893_v27  ;;  %v2889_v5 = vpop.permute.xlu0 %2888 }
 0x657   : > { %3134 = vst.msk [vmem:[#allocation4 + $0x2d0] sm:$0xff] %vm1715_vm0, %v2889_v5 }
 0x659   : > { %v2901_v6 = vpop.permute.xlu1 %2900 }
 0x65a   : > { %3137 = vst.msk [vmem:[#allocation4 + $0x2e8] sm:$0xff] %vm1715_vm0, %v2901_v6  ;;  %v2897_v7 = vpop.permute.xlu0 %2896 }
 0x65b   : > { %3136 = vst.msk [vmem:[#allocation4 + $0x2e0] sm:$0xff] %vm1715_vm0, %v2897_v7 }
 0x65d   : > { %v2909_v8 = vpop.permute.xlu1 %2908 }
 0x65e   : > { %3139 = vst.msk [vmem:[#allocation4 + $0x2f8] sm:$0xff] %vm1715_vm0, %v2909_v8  ;;  %v2905_v9 = vpop.permute.xlu0 %2904 }
 0x65f   : > { %3138 = vst.msk [vmem:[#allocation4 + $0x2f0] sm:$0xff] %vm1715_vm0, %v2905_v9 }
 0x661   : > { %v2920_v19 = vpop.permute.xlu1 %2919 }
 0x662   : > { %3141 = vst.msk [vmem:[#allocation4 + $0x308] sm:$0xff] %vm1715_vm0, %v2920_v19  ;;  %v2916_v10 = vpop.permute.xlu0 %2915 }
 0x663   : > { %3140 = vst.msk [vmem:[#allocation4 + $0x300] sm:$0xff] %vm1715_vm0, %v2916_v10 }
 0x665   : > { %v2928_v11 = vpop.permute.xlu1 %2927 }
 0x666   : > { %3143 = vst.msk [vmem:[#allocation4 + $0x318] sm:$0xff] %vm1715_vm0, %v2928_v11  ;;  %v2924_v12 = vpop.permute.xlu0 %2923 }
 0x667   : > { %3142 = vst.msk [vmem:[#allocation4 + $0x310] sm:$0xff] %vm1715_vm0, %v2924_v12 }
 0x669   : > { %v2936_v13 = vpop.permute.xlu1 %2935 }
 0x66a   : > { %3145 = vst.msk [vmem:[#allocation4 + $0x328] sm:$0xff] %vm1715_vm0, %v2936_v13  ;;  %v2932_v17 = vpop.permute.xlu0 %2931 }
 0x66b   : > { %3144 = vst.msk [vmem:[#allocation4 + $0x320] sm:$0xff] %vm1715_vm0, %v2932_v17 }
 0x66d   : > { %v2944_v14 = vpop.permute.xlu1 %2943 }
 0x66e   : > { %3147 = vst.msk [vmem:[#allocation4 + $0x338] sm:$0xff] %vm1715_vm0, %v2944_v14  ;;  %v2940_v23 = vpop.permute.xlu0 %2939 }
 0x66f   : > { %3146 = vst.msk [vmem:[#allocation4 + $0x330] sm:$0xff] %vm1715_vm0, %v2940_v23 }
 0x671   : > { %v2952_v18 = vpop.permute.xlu1 %2951 }
 0x672   : > { %3149 = vst.msk [vmem:[#allocation4 + $0x348] sm:$0xff] %vm1715_vm0, %v2952_v18  ;;  %v2948_v25 = vpop.permute.xlu0 %2947 }
 0x673   : > { %3148 = vst.msk [vmem:[#allocation4 + $0x340] sm:$0xff] %vm1715_vm0, %v2948_v25 }
 0x675   : > { %v2960_v28 = vpop.permute.xlu1 %2959 }
 0x676   : > { %3151 = vst.msk [vmem:[#allocation4 + $0x358] sm:$0xff] %vm1715_vm0, %v2960_v28  ;;  %v2956_v29 = vpop.permute.xlu0 %2955 }
 0x677   : > { %3150 = vst.msk [vmem:[#allocation4 + $0x350] sm:$0xff] %vm1715_vm0, %v2956_v29 }
 0x679   : > { %v2968_v32 = vpop.permute.xlu1 %2967 }
 0x67a   : > { %3153 = vst.msk [vmem:[#allocation4 + $0x368] sm:$0xff] %vm1715_vm0, %v2968_v32  ;;  %v2964_v36 = vpop.permute.xlu0 %2963 }
 0x67b   : > { %3152 = vst.msk [vmem:[#allocation4 + $0x360] sm:$0xff] %vm1715_vm0, %v2964_v36 }
 0x67d   : > { %v2976_v33 = vpop.permute.xlu1 %2975 }
 0x67e   : > { %3155 = vst.msk [vmem:[#allocation4 + $0x378] sm:$0xff] %vm1715_vm0, %v2976_v33  ;;  %v2972_v34 = vpop.permute.xlu0 %2971 }
 0x67f   : > { %3154 = vst.msk [vmem:[#allocation4 + $0x370] sm:$0xff] %vm1715_vm0, %v2972_v34 }
 0x681   : > { %v2987_v35 = vpop.permute.xlu1 %2986 }
 0x682   : > { %3157 = vst.msk [vmem:[#allocation4 + $0x388] sm:$0xff] %vm1715_vm0, %v2987_v35  ;;  %v2983_v37 = vpop.permute.xlu0 %2982 }
 0x683   : > { %3156 = vst.msk [vmem:[#allocation4 + $0x380] sm:$0xff] %vm1715_vm0, %v2983_v37 }
 0x685   : > { %v2995_v20 = vpop.permute.xlu1 %2994 }
 0x686   : > { %3159 = vst.msk [vmem:[#allocation4 + $0x398] sm:$0xff] %vm1715_vm0, %v2995_v20  ;;  %v2991_v38 = vpop.permute.xlu0 %2990 }
 0x687   : > { %3158 = vst.msk [vmem:[#allocation4 + $0x390] sm:$0xff] %vm1715_vm0, %v2991_v38 }
 0x689   : > { %v3003_v39 = vpop.permute.xlu1 %3002 }
 0x68a   : > { %3161 = vst.msk [vmem:[#allocation4 + $0x3a8] sm:$0xff] %vm1715_vm0, %v3003_v39  ;;  %v2999_v40 = vpop.permute.xlu0 %2998 }
 0x68b   : > { %3160 = vst.msk [vmem:[#allocation4 + $0x3a0] sm:$0xff] %vm1715_vm0, %v2999_v40 }
 0x68d   : > { %v3011_v45 = vpop.permute.xlu1 %3010 }
 0x68e   : > { %3163 = vst.msk [vmem:[#allocation4 + $0x3b8] sm:$0xff] %vm1715_vm0, %v3011_v45  ;;  %v3007_v46 = vpop.permute.xlu0 %3006 }
 0x68f   : > { %3162 = vst.msk [vmem:[#allocation4 + $0x3b0] sm:$0xff] %vm1715_vm0, %v3007_v46 }
 0x691   : > { %v3019_v24 = vpop.permute.xlu1 %3018 }
 0x692   : > { %3165 = vst.msk [vmem:[#allocation4 + $0x3c8] sm:$0xff] %vm1715_vm0, %v3019_v24  ;;  %v3015_v47 = vpop.permute.xlu0 %3014 }
 0x693   : > { %3164 = vst.msk [vmem:[#allocation4 + $0x3c0] sm:$0xff] %vm1715_vm0, %v3015_v47 }
 0x695   : > { %v3027_v30 = vpop.permute.xlu1 %3026 }
 0x696   : > { %3167 = vst.msk [vmem:[#allocation4 + $0x3d8] sm:$0xff] %vm1715_vm0, %v3027_v30  ;;  %v3023_v15 = vpop.permute.xlu0 %3022 }
 0x697   : > { %3166 = vst.msk [vmem:[#allocation4 + $0x3d0] sm:$0xff] %vm1715_vm0, %v3023_v15 }
 0x699   : > { %v3035_v48 = vpop.permute.xlu1 %3034 }
 0x69a   : > { %3169 = vst.msk [vmem:[#allocation4 + $0x3e8] sm:$0xff] %vm1715_vm0, %v3035_v48  ;;  %v3031_v49 = vpop.permute.xlu0 %3030 }
 0x69b   : > { %3168 = vst.msk [vmem:[#allocation4 + $0x3e0] sm:$0xff] %vm1715_vm0, %v3031_v49 }
 0x69d   : > { %v3043_v50 = vpop.permute.xlu1 %3042 }
 0x69e   : > { %3171 = vst.msk [vmem:[#allocation4 + $0x3f8] sm:$0xff] %vm1715_vm0, %v3043_v50  ;;  %v3039_v51 = vpop.permute.xlu0 %3038 }
 0x69f   : > { %3170 = vst.msk [vmem:[#allocation4 + $0x3f0] sm:$0xff] %vm1715_vm0, %v3039_v51 }
 0x6a0 PF: > { %v3249_v52 = vld [vmem:[#allocation2 + $0x10] sm:$0xff]  ;;  %v3247_v43 = vld [vmem:[#allocation2] sm:$0xff]  ;;  %v8217_v41 = vmov 0   ;;  %v3250_v53 = vld [vmem:[#allocation2 + $0x18] sm:$0xff]  ;;  %s11560_s7 = sld [smem:[#allocation45_spill]]  ;;  %s6897_s10 = sshll.u32 %s8918_s13, 4  ;;  %s10858_s10 = int_to_ptr.vmem [resolvable:$true] %s6897_s10 }
 0x6a1   : > { %7627 = vset.pattern.permute.xlu1 %v8217_v41  ;;  %7626 = vset.pattern.permute.xlu0 %v8217_v41  ;;  %v3248_v21 = vld [vmem:[#allocation2 + $0x8] sm:$0xff]  ;;  %v3251_v55 = vld [vmem:[#allocation2 + $0x20] sm:$0xff]  ;;  %v3254_v56 = vld [vmem:[#allocation2 + $0x38] sm:$0xff]  ;;  %s11697_s18 = sld [smem:[#allocation54_spill]]  ;;  %s11698_s14 = sld [smem:[#allocation165_spill]] }
 0x6a2   : > { %3771 = vperm.xlu1 %7627, %v3249_v52   ;;  %3761 = vperm.xlu0 %7626, %v3247_v43   ;;  %v3252_v54 = vld [vmem:[#allocation2 + $0x28] sm:$0xff]  ;;  %v3253_v57 = vld [vmem:[#allocation2 + $0x30] sm:$0xff]  ;;  %v3255_v58 = vld [vmem:[#allocation2 + $0x40] sm:$0xff]  ;;  %s6872_s12 = scalar_lea.sflag [#allocation7], %s8863_s9  ;;  %s8009_s21 = scalar_lea.vmem %s10858_s10, 16384 }
 0x6a3   : > { %v3256_v26 = vld [vmem:[#allocation2 + $0x48] sm:$0xff]  ;;  %v3258_v59 = vld [vmem:[#allocation2 + $0x58] sm:$0xff]  ;;  %v3257_v60 = vld [vmem:[#allocation2 + $0x50] sm:$0xff]  ;;  %p8010_p9 = scmp.ne.s32.totalorder %s10858_s10, %s8009_s21  ;;  %s8219_s11 = smov [#allocation26]  }
 0x6a4   : > { %v3260_v31 = vld [vmem:[#allocation2 + $0x68] sm:$0xff]  ;;  %v3259_v16 = vld [vmem:[#allocation2 + $0x60] sm:$0xff]  ;;  %v3262_v61 = vld [vmem:[#allocation2 + $0x78] sm:$0xff] }
 0x6a5   : > { %v3261_v62 = vld [vmem:[#allocation2 + $0x70] sm:$0xff]  ;;  %v3264_v63 = vld [vmem:[#allocation2 + $0x88] sm:$0xff]  ;;  %v3263_v0 = vld [vmem:[#allocation2 + $0x80] sm:$0xff] }
 0x6a6   : > { %3776 = vperm.xlu1 %7627, %v3250_v53   ;;  %3766 = vperm.xlu0 %7626, %v3248_v21   ;;  %v3266_v1 = vld [vmem:[#allocation2 + $0x98] sm:$0xff]  ;;  %v3265_v2 = vld [vmem:[#allocation2 + $0x90] sm:$0xff]  ;;  %v3268_v44 = vld [vmem:[#allocation2 + $0xa8] sm:$0xff]  ;;  %s7353_s1 = sshll.u32 %s11560_s7, 7 }
 0x6a7   : > { %v3267_v22 = vld [vmem:[#allocation2 + $0xa0] sm:$0xff]  ;;  %v3270_v3 = vld [vmem:[#allocation2 + $0xb8] sm:$0xff]  ;;  %v3269_v42 = vld [vmem:[#allocation2 + $0xb0] sm:$0xff]  ;;  %s3192_s3 = sshra.s32 %s7353_s1, 7  ;;  %p11700_p4 = scmp.ne.s32.totalorder %s11697_s18, 0 }
 0x6a8   : > { %v3272_v4 = vld [vmem:[#allocation2 + $0xc8] sm:$0xff]  ;;  %v3271_v27 = vld [vmem:[#allocation2 + $0xc0] sm:$0xff]  ;;  %v3274_v5 = vld [vmem:[#allocation2 + $0xd8] sm:$0xff]  ;;  %s7354_s29 = sshll.u32 %s3192_s3, 3 }
 0x6a9   : > { %v3273_v6 = vld [vmem:[#allocation2 + $0xd0] sm:$0xff]  ;;  %v3276_v7 = vld [vmem:[#allocation2 + $0xe8] sm:$0xff]  ;;  %v3275_v8 = vld [vmem:[#allocation2 + $0xe0] sm:$0xff]  ;;  %s3195_s15 = scalar_lea.vmem %s8848_s17, %s7354_s29 [#allocation5]  ;;  %s11692_s17 = sld [smem:[#allocation46_spill]] }
 0x6aa   : > { %3786 = vperm.xlu1 %7627, %v3252_v54   ;;  %3781 = vperm.xlu0 %7626, %v3251_v55   ;;  %v3278_v9 = vld [vmem:[#allocation2 + $0xf8] sm:$0xff]  ;;  %v3277_v19 = vld [vmem:[#allocation2 + $0xf0] sm:$0xff]  ;;  %v3280_v10 = vld [vmem:[#allocation2 + $0x108] sm:$0xff]  ;;  %p8011_p6 = pnand %p8010_p9, %p11700_p4 }
 0x6ab   : > { %v3279_v11 = vld [vmem:[#allocation2 + $0x100] sm:$0xff]  ;;  %v3282_v12 = vld [vmem:[#allocation2 + $0x118] sm:$0xff]  ;;  %v3281_v13 = vld [vmem:[#allocation2 + $0x110] sm:$0xff] }
 0x6ac   : > { %v3284_v17 = vld [vmem:[#allocation2 + $0x128] sm:$0xff]  ;;  %v3283_v14 = vld [vmem:[#allocation2 + $0x120] sm:$0xff]  ;;  %v3286_v23 = vld [vmem:[#allocation2 + $0x138] sm:$0xff]  ;;  %p8012_p5 = pneg %p8011_p6 }
 0x6ad   : > { %v3285_v18 = vld [vmem:[#allocation2 + $0x130] sm:$0xff]  ;;  %v3288_v25 = vld [vmem:[#allocation2 + $0x148] sm:$0xff]  ;;  %v3287_v28 = vld [vmem:[#allocation2 + $0x140] sm:$0xff] }
 0x6ae   : > { %3796 = vperm.xlu1 %7627, %v3254_v56   ;;  %3791 = vperm.xlu0 %7626, %v3253_v57   ;;  %v3290_v29 = vld [vmem:[#allocation2 + $0x158] sm:$0xff]  ;;  %v3289_v32 = vld [vmem:[#allocation2 + $0x150] sm:$0xff]  ;;  %v3292_v36 = vld [vmem:[#allocation2 + $0x168] sm:$0xff] }
 0x6af   : > { %v3291_v33 = vld [vmem:[#allocation2 + $0x160] sm:$0xff]  ;;  %v3294_v34 = vld [vmem:[#allocation2 + $0x178] sm:$0xff]  ;;  %v3293_v35 = vld [vmem:[#allocation2 + $0x170] sm:$0xff] }
 0x6b0   : > { %v3296_v37 = vld [vmem:[#allocation2 + $0x188] sm:$0xff]  ;;  %v3295_v20 = vld [vmem:[#allocation2 + $0x180] sm:$0xff]  ;;  %v3298_v38 = vld [vmem:[#allocation2 + $0x198] sm:$0xff] }
 0x6b1   : > { %v3297_v39 = vld [vmem:[#allocation2 + $0x190] sm:$0xff]  ;;  %v3300_v40 = vld [vmem:[#allocation2 + $0x1a8] sm:$0xff]  ;;  %v3299_v45 = vld [vmem:[#allocation2 + $0x1a0] sm:$0xff] }
 0x6b2   : > { %3806 = vperm.xlu1 %7627, %v3256_v26   ;;  %3801 = vperm.xlu0 %7626, %v3255_v58   ;;  %v3302_v46 = vld [vmem:[#allocation2 + $0x1b8] sm:$0xff]  ;;  %v3301_v24 = vld [vmem:[#allocation2 + $0x1b0] sm:$0xff]  ;;  %v3304_v47 = vld [vmem:[#allocation2 + $0x1c8] sm:$0xff] }
 0x6b3   : > { %v3303_v30 = vld [vmem:[#allocation2 + $0x1c0] sm:$0xff]  ;;  %v3306_v15 = vld [vmem:[#allocation2 + $0x1d8] sm:$0xff]  ;;  %v3305_v48 = vld [vmem:[#allocation2 + $0x1d0] sm:$0xff] }
 0x6b4   : > { %v3308_v49 = vld [vmem:[#allocation2 + $0x1e8] sm:$0xff]  ;;  %v3307_v50 = vld [vmem:[#allocation2 + $0x1e0] sm:$0xff]  ;;  %v3310_v51 = vld [vmem:[#allocation2 + $0x1f8] sm:$0xff] }
 0x6b5   : > { %v3309_v52 = vld [vmem:[#allocation2 + $0x1f0] sm:$0xff]  ;;  %v3312_v43 = vld [vmem:[#allocation2 + $0x208] sm:$0xff]  ;;  %v3311_v41 = vld [vmem:[#allocation2 + $0x200] sm:$0xff] }
 0x6b6   : > { %3816 = vperm.xlu1 %7627, %v3258_v59   ;;  %3811 = vperm.xlu0 %7626, %v3257_v60   ;;  %v3314_v54 = vld [vmem:[#allocation2 + $0x218] sm:$0xff]  ;;  %v3313_v55 = vld [vmem:[#allocation2 + $0x210] sm:$0xff]  ;;  %v3316_v26 = vld [vmem:[#allocation2 + $0x228] sm:$0xff] }
 0x6b7   : > { %v3315_v58 = vld [vmem:[#allocation2 + $0x220] sm:$0xff] }
 0x6ba   : > { %3826 = vperm.xlu1 %7627, %v3260_v31   ;;  %3821 = vperm.xlu0 %7626, %v3259_v16   ;;  %v3318_v31 = vld [vmem:[#allocation2 + $0x238] sm:$0xff]  ;;  %v3317_v16 = vld [vmem:[#allocation2 + $0x230] sm:$0xff] }
 0x6be   : > { %3836 = vperm.xlu1 %7627, %v3262_v61   ;;  %3831 = vperm.xlu0 %7626, %v3261_v62  }
 0x6c2   : > { %3846 = vperm.xlu1 %7627, %v3264_v63   ;;  %3841 = vperm.xlu0 %7626, %v3263_v0   ;;  %v3320_v63 = vld [vmem:[#allocation2 + $0x248] sm:$0xff]  ;;  %v3319_v0 = vld [vmem:[#allocation2 + $0x240] sm:$0xff] }
 0x6c6   : > { %3856 = vperm.xlu1 %7627, %v3266_v1   ;;  %3851 = vperm.xlu0 %7626, %v3265_v2  }
 0x6ca   : > { %3866 = vperm.xlu1 %7627, %v3268_v44   ;;  %3861 = vperm.xlu0 %7626, %v3267_v22   ;;  %v3322_v44 = vld [vmem:[#allocation2 + $0x258] sm:$0xff]  ;;  %v3321_v22 = vld [vmem:[#allocation2 + $0x250] sm:$0xff] }
 0x6ce   : > { %3876 = vperm.xlu1 %7627, %v3270_v3   ;;  %3871 = vperm.xlu0 %7626, %v3269_v42  }
 0x6d2   : > { %3886 = vperm.xlu1 %7627, %v3272_v4   ;;  %3881 = vperm.xlu0 %7626, %v3271_v27   ;;  %v3324_v4 = vld [vmem:[#allocation2 + $0x268] sm:$0xff]  ;;  %v3323_v27 = vld [vmem:[#allocation2 + $0x260] sm:$0xff] }
 0x6d6   : > { %3896 = vperm.xlu1 %7627, %v3274_v5   ;;  %3891 = vperm.xlu0 %7626, %v3273_v6  }
 0x6da   : > { %3906 = vperm.xlu1 %7627, %v3276_v7   ;;  %3901 = vperm.xlu0 %7626, %v3275_v8   ;;  %v3326_v7 = vld [vmem:[#allocation2 + $0x278] sm:$0xff]  ;;  %v3325_v8 = vld [vmem:[#allocation2 + $0x270] sm:$0xff] }
 0x6de   : > { %3916 = vperm.xlu1 %7627, %v3278_v9   ;;  %3911 = vperm.xlu0 %7626, %v3277_v19  }
 0x6e2   : > { %3926 = vperm.xlu1 %7627, %v3280_v10   ;;  %3921 = vperm.xlu0 %7626, %v3279_v11   ;;  %v3328_v10 = vld [vmem:[#allocation2 + $0x288] sm:$0xff]  ;;  %v3327_v11 = vld [vmem:[#allocation2 + $0x280] sm:$0xff] }
 0x6e6   : > { %3936 = vperm.xlu1 %7627, %v3282_v12   ;;  %3931 = vperm.xlu0 %7626, %v3281_v13  }
 0x6ea   : > { %3946 = vperm.xlu1 %7627, %v3284_v17   ;;  %3941 = vperm.xlu0 %7626, %v3283_v14   ;;  %v3330_v17 = vld [vmem:[#allocation2 + $0x298] sm:$0xff]  ;;  %v3329_v14 = vld [vmem:[#allocation2 + $0x290] sm:$0xff] }
 0x6ee   : > { %3956 = vperm.xlu1 %7627, %v3286_v23   ;;  %3951 = vperm.xlu0 %7626, %v3285_v18  }
 0x6f2   : > { %3966 = vperm.xlu1 %7627, %v3288_v25   ;;  %3961 = vperm.xlu0 %7626, %v3287_v28   ;;  %v3332_v25 = vld [vmem:[#allocation2 + $0x2a8] sm:$0xff]  ;;  %v3331_v28 = vld [vmem:[#allocation2 + $0x2a0] sm:$0xff] }
 0x6f6   : > { %3976 = vperm.xlu1 %7627, %v3290_v29   ;;  %3971 = vperm.xlu0 %7626, %v3289_v32  }
 0x6fa   : > { %3986 = vperm.xlu1 %7627, %v3292_v36   ;;  %3981 = vperm.xlu0 %7626, %v3291_v33   ;;  %v3334_v36 = vld [vmem:[#allocation2 + $0x2b8] sm:$0xff]  ;;  %v3333_v33 = vld [vmem:[#allocation2 + $0x2b0] sm:$0xff] }
 0x6fe   : > { %3996 = vperm.xlu1 %7627, %v3294_v34   ;;  %3991 = vperm.xlu0 %7626, %v3293_v35  }
 0x702   : > { %4006 = vperm.xlu1 %7627, %v3296_v37   ;;  %4001 = vperm.xlu0 %7626, %v3295_v20   ;;  %v3336_v37 = vld [vmem:[#allocation2 + $0x2c8] sm:$0xff]  ;;  %v3335_v20 = vld [vmem:[#allocation2 + $0x2c0] sm:$0xff] }
 0x706   : > { %4016 = vperm.xlu1 %7627, %v3298_v38   ;;  %4011 = vperm.xlu0 %7626, %v3297_v39  }
 0x70a   : > { %4026 = vperm.xlu1 %7627, %v3300_v40   ;;  %4021 = vperm.xlu0 %7626, %v3299_v45   ;;  %v3338_v40 = vld [vmem:[#allocation2 + $0x2d8] sm:$0xff]  ;;  %v3337_v45 = vld [vmem:[#allocation2 + $0x2d0] sm:$0xff] }
 0x70e   : > { %4036 = vperm.xlu1 %7627, %v3302_v46   ;;  %4031 = vperm.xlu0 %7626, %v3301_v24  }
 0x712   : > { %4046 = vperm.xlu1 %7627, %v3304_v47   ;;  %4041 = vperm.xlu0 %7626, %v3303_v30   ;;  %v3340_v47 = vld [vmem:[#allocation2 + $0x2e8] sm:$0xff]  ;;  %v3339_v30 = vld [vmem:[#allocation2 + $0x2e0] sm:$0xff] }
 0x716   : > { %4056 = vperm.xlu1 %7627, %v3306_v15   ;;  %4051 = vperm.xlu0 %7626, %v3305_v48  }
 0x71a   : > { %4066 = vperm.xlu1 %7627, %v3308_v49   ;;  %4061 = vperm.xlu0 %7626, %v3307_v50   ;;  %v3342_v49 = vld [vmem:[#allocation2 + $0x2f8] sm:$0xff]  ;;  %v3341_v50 = vld [vmem:[#allocation2 + $0x2f0] sm:$0xff] }
 0x71e   : > { %4076 = vperm.xlu1 %7627, %v3310_v51   ;;  %4071 = vperm.xlu0 %7626, %v3309_v52  }
 0x721   : > { %v9742_v53 = vpop.permute.xlu1 %3771  ;;  %v9744_v21 = vpop.permute.xlu0 %3761 }
 0x722   : > { %11483 = vst [vmem:[#allocation59_spill] sm:$0xff] %v9744_v21  ;;  %4086 = vperm.xlu1 %7627, %v3312_v43   ;;  %4081 = vperm.xlu0 %7626, %v3311_v41   ;;  %v3344_v43 = vld [vmem:[#allocation2 + $0x308] sm:$0xff]  ;;  %v3343_v41 = vld [vmem:[#allocation2 + $0x300] sm:$0xff] }
 0x725   : > { %v9746_v56 = vpop.permute.xlu1 %3776  ;;  %v9748_v57 = vpop.permute.xlu0 %3766 }
 0x726   : > { %4096 = vperm.xlu1 %7627, %v3314_v54   ;;  %4091 = vperm.xlu0 %7626, %v3313_v55  }
 0x729   : > { %v9750_v59 = vpop.permute.xlu1 %3786  ;;  %v9752_v60 = vpop.permute.xlu0 %3781 }
 0x72a   : > { %4106 = vperm.xlu1 %7627, %v3316_v26   ;;  %4101 = vperm.xlu0 %7626, %v3315_v58   ;;  %v3346_v26 = vld [vmem:[#allocation2 + $0x318] sm:$0xff]  ;;  %v3345_v58 = vld [vmem:[#allocation2 + $0x310] sm:$0xff] }
 0x72d   : > { %v9754_v61 = vpop.permute.xlu1 %3796  ;;  %v9756_v62 = vpop.permute.xlu0 %3791 }
 0x72e   : > { %4116 = vperm.xlu1 %7627, %v3318_v31   ;;  %4111 = vperm.xlu0 %7626, %v3317_v16  }
 0x731   : > { %v9758_v1 = vpop.permute.xlu1 %3806  ;;  %v9760_v2 = vpop.permute.xlu0 %3801 }
 0x732   : > { %4126 = vperm.xlu1 %7627, %v3320_v63   ;;  %4121 = vperm.xlu0 %7626, %v3319_v0   ;;  %v3348_v63 = vld [vmem:[#allocation2 + $0x328] sm:$0xff]  ;;  %v3347_v0 = vld [vmem:[#allocation2 + $0x320] sm:$0xff] }
 0x735   : > { %v9762_v3 = vpop.permute.xlu1 %3816  ;;  %v9764_v42 = vpop.permute.xlu0 %3811 }
 0x736   : > { %4136 = vperm.xlu1 %7627, %v3322_v44   ;;  %4131 = vperm.xlu0 %7626, %v3321_v22  }
 0x739   : > { %v9766_v5 = vpop.permute.xlu1 %3826  ;;  %v9768_v6 = vpop.permute.xlu0 %3821 }
 0x73a   : > { %4146 = vperm.xlu1 %7627, %v3324_v4   ;;  %4141 = vperm.xlu0 %7626, %v3323_v27   ;;  %v3350_v4 = vld [vmem:[#allocation2 + $0x338] sm:$0xff]  ;;  %v3349_v27 = vld [vmem:[#allocation2 + $0x330] sm:$0xff] }
 0x73d   : > { %v9770_v9 = vpop.permute.xlu1 %3836  ;;  %v9772_v19 = vpop.permute.xlu0 %3831 }
 0x73e   : > { %11484 = vst [vmem:[#allocation60_spill] sm:$0xff] %v9772_v19  ;;  %4156 = vperm.xlu1 %7627, %v3326_v7   ;;  %4151 = vperm.xlu0 %7626, %v3325_v8  }
 0x741   : > { %v9774_v12 = vpop.permute.xlu1 %3846  ;;  %v9776_v13 = vpop.permute.xlu0 %3841 }
 0x742   : > { %4166 = vperm.xlu1 %7627, %v3328_v10   ;;  %4161 = vperm.xlu0 %7626, %v3327_v11   ;;  %v3352_v10 = vld [vmem:[#allocation2 + $0x348] sm:$0xff]  ;;  %v3351_v11 = vld [vmem:[#allocation2 + $0x340] sm:$0xff] }
 0x745   : > { %v9778_v23 = vpop.permute.xlu1 %3856  ;;  %v9780_v18 = vpop.permute.xlu0 %3851 }
 0x746   : > { %4176 = vperm.xlu1 %7627, %v3330_v17   ;;  %4171 = vperm.xlu0 %7626, %v3329_v14  }
 0x749   : > { %v9782_v29 = vpop.permute.xlu1 %3866  ;;  %v9784_v32 = vpop.permute.xlu0 %3861 }
 0x74a   : > { %4186 = vperm.xlu1 %7627, %v3332_v25   ;;  %4181 = vperm.xlu0 %7626, %v3331_v28   ;;  %v3354_v25 = vld [vmem:[#allocation2 + $0x358] sm:$0xff]  ;;  %v3353_v28 = vld [vmem:[#allocation2 + $0x350] sm:$0xff] }
 0x74d   : > { %v9786_v34 = vpop.permute.xlu1 %3876  ;;  %v9788_v35 = vpop.permute.xlu0 %3871 }
 0x74e   : > { %4196 = vperm.xlu1 %7627, %v3334_v36   ;;  %4191 = vperm.xlu0 %7626, %v3333_v33  }
 0x751   : > { %v9790_v38 = vpop.permute.xlu1 %3886  ;;  %v9792_v39 = vpop.permute.xlu0 %3881 }
 0x752   : > { %4206 = vperm.xlu1 %7627, %v3336_v37   ;;  %4201 = vperm.xlu0 %7626, %v3335_v20   ;;  %v3356_v37 = vld [vmem:[#allocation2 + $0x368] sm:$0xff]  ;;  %v3355_v20 = vld [vmem:[#allocation2 + $0x360] sm:$0xff] }
 0x755   : > { %v9794_v46 = vpop.permute.xlu1 %3896  ;;  %v9796_v24 = vpop.permute.xlu0 %3891 }
 0x756   : > { %4216 = vperm.xlu1 %7627, %v3338_v40   ;;  %4211 = vperm.xlu0 %7626, %v3337_v45  }
 0x759   : > { %v9798_v15 = vpop.permute.xlu1 %3906  ;;  %v9800_v48 = vpop.permute.xlu0 %3901 }
 0x75a   : > { %4226 = vperm.xlu1 %7627, %v3340_v47   ;;  %4221 = vperm.xlu0 %7626, %v3339_v30   ;;  %v3358_v47 = vld [vmem:[#allocation2 + $0x378] sm:$0xff]  ;;  %v3357_v30 = vld [vmem:[#allocation2 + $0x370] sm:$0xff] }
 0x75d   : > { %v9802_v51 = vpop.permute.xlu1 %3916  ;;  %v9804_v52 = vpop.permute.xlu0 %3911 }
 0x75e   : > { %4236 = vperm.xlu1 %7627, %v3342_v49   ;;  %4231 = vperm.xlu0 %7626, %v3341_v50  }
 0x761   : > { %v9806_v54 = vpop.permute.xlu1 %3926  ;;  %v9808_v55 = vpop.permute.xlu0 %3921 }
 0x762   : > { %4246 = vperm.xlu1 %7627, %v3344_v43   ;;  %4241 = vperm.xlu0 %7626, %v3343_v41   ;;  %v3360_v43 = vld [vmem:[#allocation2 + $0x388] sm:$0xff]  ;;  %v3359_v41 = vld [vmem:[#allocation2 + $0x380] sm:$0xff] }
 0x765   : > { %v9810_v31 = vpop.permute.xlu1 %3936  ;;  %v9812_v16 = vpop.permute.xlu0 %3931 }
 0x766   : > { %4256 = vperm.xlu1 %7627, %v3346_v26   ;;  %4251 = vperm.xlu0 %7626, %v3345_v58  }
 0x769   : > { %v9814_v44 = vpop.permute.xlu1 %3946  ;;  %v9816_v22 = vpop.permute.xlu0 %3941 }
 0x76a   : > { %11485 = vst [vmem:[#allocation61_spill] sm:$0xff] %v9816_v22  ;;  %4266 = vperm.xlu1 %7627, %v3348_v63   ;;  %4261 = vperm.xlu0 %7626, %v3347_v0   ;;  %v3362_v63 = vld [vmem:[#allocation2 + $0x398] sm:$0xff]  ;;  %v3361_v0 = vld [vmem:[#allocation2 + $0x390] sm:$0xff] }
 0x76d   : > { %v9818_v7 = vpop.permute.xlu1 %3956  ;;  %v9820_v8 = vpop.permute.xlu0 %3951 }
 0x76e   : > { %11486 = vst [vmem:[#allocation62_spill] sm:$0xff] %v9818_v7  ;;  %11487 = vst [vmem:[#allocation63_spill] sm:$0xff] %v9820_v8  ;;  %4276 = vperm.xlu1 %7627, %v3350_v4   ;;  %4271 = vperm.xlu0 %7626, %v3349_v27  }
 0x771   : > { %v9822_v17 = vpop.permute.xlu1 %3966  ;;  %v9824_v14 = vpop.permute.xlu0 %3961 }
 0x772   : > { %11488 = vst [vmem:[#allocation64_spill] sm:$0xff] %v9822_v17  ;;  %11489 = vst [vmem:[#allocation65_spill] sm:$0xff] %v9824_v14  ;;  %4286 = vperm.xlu1 %7627, %v3352_v10   ;;  %4281 = vperm.xlu0 %7626, %v3351_v11   ;;  %v3364_v10 = vld [vmem:[#allocation2 + $0x3a8] sm:$0xff]  ;;  %v3363_v11 = vld [vmem:[#allocation2 + $0x3a0] sm:$0xff] }
 0x775   : > { %v9826_v36 = vpop.permute.xlu1 %3976  ;;  %v9828_v33 = vpop.permute.xlu0 %3971 }
 0x776   : > { %11490 = vst [vmem:[#allocation66_spill] sm:$0xff] %v9826_v36  ;;  %11491 = vst [vmem:[#allocation67_spill] sm:$0xff] %v9828_v33  ;;  %4296 = vperm.xlu1 %7627, %v3354_v25   ;;  %4291 = vperm.xlu0 %7626, %v3353_v28  }
 0x779   : > { %v9830_v40 = vpop.permute.xlu1 %3986  ;;  %v9832_v45 = vpop.permute.xlu0 %3981 }
 0x77a   : > { %11492 = vst [vmem:[#allocation68_spill] sm:$0xff] %v9830_v40  ;;  %11493 = vst [vmem:[#allocation69_spill] sm:$0xff] %v9832_v45  ;;  %4306 = vperm.xlu1 %7627, %v3356_v37   ;;  %4301 = vperm.xlu0 %7626, %v3355_v20   ;;  %v3366_v37 = vld [vmem:[#allocation2 + $0x3b8] sm:$0xff]  ;;  %v3365_v20 = vld [vmem:[#allocation2 + $0x3b0] sm:$0xff] }
 0x77b   : > { %v3441_v40 = vld [vmem:[#allocation3 + $0x210] sm:$0xff] }
 0x77d   : > { %v9834_v49 = vpop.permute.xlu1 %3996  ;;  %v9836_v50 = vpop.permute.xlu0 %3991 }
 0x77e   : > { %11494 = vst [vmem:[#allocation70_spill] sm:$0xff] %v9834_v49  ;;  %11495 = vst [vmem:[#allocation71_spill] sm:$0xff] %v9836_v50  ;;  %4316 = vperm.xlu1 %7627, %v3358_v47   ;;  %4311 = vperm.xlu0 %7626, %v3357_v30   ;;  %v3633_v49 = vld [vmem:[%s8869_s24 + $0x10] sm:$0xff] }
 0x781   : > { %v9838_v26 = vpop.permute.xlu1 %4006  ;;  %v9840_v58 = vpop.permute.xlu0 %4001 }
 0x782   : > { %11496 = vst [vmem:[#allocation72_spill] sm:$0xff] %v9838_v26  ;;  %11497 = vst [vmem:[#allocation73_spill] sm:$0xff] %v9840_v58  ;;  %4326 = vperm.xlu1 %7627, %v3360_v43   ;;  %4321 = vperm.xlu0 %7626, %v3359_v41   ;;  %v3368_v43 = vld [vmem:[#allocation2 + $0x3c8] sm:$0xff]  ;;  %v3367_v41 = vld [vmem:[#allocation2 + $0x3c0] sm:$0xff] }
 0x783   : > { %v3433_v58 = vld [vmem:[#allocation3 + $0x1d0] sm:$0xff] }
 0x785   : > { %v9842_v4 = vpop.permute.xlu1 %4016  ;;  %v9844_v27 = vpop.permute.xlu0 %4011 }
 0x786   : > { %11498 = vst [vmem:[#allocation74_spill] sm:$0xff] %v9842_v4  ;;  %11499 = vst [vmem:[#allocation75_spill] sm:$0xff] %v9844_v27  ;;  %4336 = vperm.xlu1 %7627, %v3362_v63   ;;  %4331 = vperm.xlu0 %7626, %v3361_v0  }
 0x789   : > { %v9846_v25 = vpop.permute.xlu1 %4026  ;;  %v9848_v28 = vpop.permute.xlu0 %4021 }
 0x78a   : > { %11500 = vst [vmem:[#allocation76_spill] sm:$0xff] %v9846_v25  ;;  %11501 = vst [vmem:[#allocation77_spill] sm:$0xff] %v9848_v28  ;;  %4346 = vperm.xlu1 %7627, %v3364_v10   ;;  %4341 = vperm.xlu0 %7626, %v3363_v11   ;;  %v3370_v25 = vld [vmem:[#allocation2 + $0x3d8] sm:$0xff]  ;;  %v3369_v28 = vld [vmem:[#allocation2 + $0x3d0] sm:$0xff] }
 0x78d   : > { %v9850_v47 = vpop.permute.xlu1 %4036  ;;  %v9852_v30 = vpop.permute.xlu0 %4031 }
 0x78e   : > { %11502 = vst [vmem:[#allocation78_spill] sm:$0xff] %v9850_v47  ;;  %11503 = vst [vmem:[#allocation79_spill] sm:$0xff] %v9852_v30  ;;  %4356 = vperm.xlu1 %7627, %v3366_v37   ;;  %4351 = vperm.xlu0 %7626, %v3365_v20   ;;  %v3372_v47 = vld [vmem:[#allocation2 + $0x3e8] sm:$0xff]  ;;  %v3371_v30 = vld [vmem:[#allocation2 + $0x3e0] sm:$0xff] }
 0x791   : > { %v9854_v63 = vpop.permute.xlu1 %4046  ;;  %v9856_v0 = vpop.permute.xlu0 %4041 }
 0x792   : > { %11504 = vst [vmem:[#allocation80_spill] sm:$0xff] %v9854_v63  ;;  %11505 = vst [vmem:[#allocation81_spill] sm:$0xff] %v9856_v0  ;;  %4366 = vperm.xlu1 %7627, %v3368_v43   ;;  %4361 = vperm.xlu0 %7626, %v3367_v41   ;;  %v3374_v63 = vld [vmem:[#allocation2 + $0x3f8] sm:$0xff]  ;;  %v3373_v0 = vld [vmem:[#allocation2 + $0x3f0] sm:$0xff] }
 0x795   : > { %v9858_v10 = vpop.permute.xlu1 %4056  ;;  %v9860_v11 = vpop.permute.xlu0 %4051 }
 0x796   : > { %11506 = vst [vmem:[#allocation82_spill] sm:$0xff] %v9858_v10  ;;  %11507 = vst [vmem:[#allocation83_spill] sm:$0xff] %v9860_v11  ;;  %4376 = vperm.xlu1 %7627, %v3370_v25   ;;  %4371 = vperm.xlu0 %7626, %v3369_v28   ;;  %v3376_v10 = vld [vmem:[#allocation3 + $0x8] sm:$0xff]  ;;  %v3375_v11 = vld [vmem:[#allocation3] sm:$0xff] }
 0x799   : > { %v9862_v37 = vpop.permute.xlu1 %4066  ;;  %v9864_v20 = vpop.permute.xlu0 %4061 }
 0x79a   : > { %11508 = vst [vmem:[#allocation84_spill] sm:$0xff] %v9862_v37  ;;  %11509 = vst [vmem:[#allocation85_spill] sm:$0xff] %v9864_v20  ;;  %4386 = vperm.xlu1 %7627, %v3372_v47   ;;  %4381 = vperm.xlu0 %7626, %v3371_v30   ;;  %v3378_v37 = vld [vmem:[#allocation3 + $0x18] sm:$0xff]  ;;  %v3377_v20 = vld [vmem:[#allocation3 + $0x10] sm:$0xff] }
 0x79d   : > { %v9866_v43 = vpop.permute.xlu1 %4076  ;;  %v9868_v41 = vpop.permute.xlu0 %4071 }
 0x79e   : > { %11510 = vst [vmem:[#allocation86_spill] sm:$0xff] %v9866_v43  ;;  %11511 = vst [vmem:[#allocation87_spill] sm:$0xff] %v9868_v41  ;;  %4396 = vperm.xlu1 %7627, %v3374_v63   ;;  %4391 = vperm.xlu0 %7626, %v3373_v0   ;;  %v3380_v43 = vld [vmem:[#allocation3 + $0x28] sm:$0xff]  ;;  %v3379_v41 = vld [vmem:[#allocation3 + $0x20] sm:$0xff] }
 0x7a1   : > { %v9870_v25 = vpop.permute.xlu1 %4086  ;;  %v9872_v28 = vpop.permute.xlu0 %4081 }
 0x7a2   : > { %11512 = vst [vmem:[#allocation88_spill] sm:$0xff] %v9870_v25  ;;  %11513 = vst [vmem:[#allocation89_spill] sm:$0xff] %v9872_v28  ;;  %4534 = vperm.xlu1 %7627, %v3376_v10   ;;  %4529 = vperm.xlu0 %7626, %v3375_v11   ;;  %v3382_v25 = vld [vmem:[#allocation3 + $0x38] sm:$0xff]  ;;  %v3381_v28 = vld [vmem:[#allocation3 + $0x30] sm:$0xff] }
 0x7a5   : > { %v9874_v47 = vpop.permute.xlu1 %4096  ;;  %v9876_v30 = vpop.permute.xlu0 %4091 }
 0x7a6   : > { %11514 = vst [vmem:[#allocation90_spill] sm:$0xff] %v9874_v47  ;;  %11515 = vst [vmem:[#allocation91_spill] sm:$0xff] %v9876_v30  ;;  %4544 = vperm.xlu1 %7627, %v3378_v37   ;;  %4539 = vperm.xlu0 %7626, %v3377_v20   ;;  %v3384_v47 = vld [vmem:[#allocation3 + $0x48] sm:$0xff]  ;;  %v3383_v30 = vld [vmem:[#allocation3 + $0x40] sm:$0xff] }
 0x7a9   : > { %v9878_v63 = vpop.permute.xlu1 %4106  ;;  %v9880_v0 = vpop.permute.xlu0 %4101 }
 0x7aa   : > { %11516 = vst [vmem:[#allocation92_spill] sm:$0xff] %v9878_v63  ;;  %11517 = vst [vmem:[#allocation93_spill] sm:$0xff] %v9880_v0  ;;  %4554 = vperm.xlu1 %7627, %v3380_v43   ;;  %4549 = vperm.xlu0 %7626, %v3379_v41   ;;  %v3386_v63 = vld [vmem:[#allocation3 + $0x58] sm:$0xff]  ;;  %v3385_v0 = vld [vmem:[#allocation3 + $0x50] sm:$0xff] }
 0x7ad   : > { %v9882_v10 = vpop.permute.xlu1 %4116  ;;  %v9884_v11 = vpop.permute.xlu0 %4111 }
 0x7ae   : > { %11518 = vst [vmem:[#allocation94_spill] sm:$0xff] %v9882_v10  ;;  %11519 = vst [vmem:[#allocation95_spill] sm:$0xff] %v9884_v11  ;;  %4564 = vperm.xlu1 %7627, %v3382_v25   ;;  %4559 = vperm.xlu0 %7626, %v3381_v28   ;;  %v3388_v10 = vld [vmem:[#allocation3 + $0x68] sm:$0xff]  ;;  %v3387_v11 = vld [vmem:[#allocation3 + $0x60] sm:$0xff] }
 0x7b1   : > { %v9886_v37 = vpop.permute.xlu1 %4126  ;;  %v9888_v20 = vpop.permute.xlu0 %4121 }
 0x7b2   : > { %11520 = vst [vmem:[#allocation96_spill] sm:$0xff] %v9886_v37  ;;  %11521 = vst [vmem:[#allocation97_spill] sm:$0xff] %v9888_v20  ;;  %4574 = vperm.xlu1 %7627, %v3384_v47   ;;  %4569 = vperm.xlu0 %7626, %v3383_v30   ;;  %v3390_v37 = vld [vmem:[#allocation3 + $0x78] sm:$0xff]  ;;  %v3389_v20 = vld [vmem:[#allocation3 + $0x70] sm:$0xff] }
 0x7b5   : > { %v9890_v43 = vpop.permute.xlu1 %4136  ;;  %v9892_v41 = vpop.permute.xlu0 %4131 }
 0x7b6   : > { %11522 = vst [vmem:[#allocation98_spill] sm:$0xff] %v9890_v43  ;;  %11523 = vst [vmem:[#allocation99_spill] sm:$0xff] %v9892_v41  ;;  %4584 = vperm.xlu1 %7627, %v3386_v63   ;;  %4579 = vperm.xlu0 %7626, %v3385_v0   ;;  %v3392_v43 = vld [vmem:[#allocation3 + $0x88] sm:$0xff]  ;;  %v3391_v41 = vld [vmem:[#allocation3 + $0x80] sm:$0xff] }
 0x7b9   : > { %v9894_v25 = vpop.permute.xlu1 %4146  ;;  %v9896_v28 = vpop.permute.xlu0 %4141 }
 0x7ba   : > { %11524 = vst [vmem:[#allocation100_spill] sm:$0xff] %v9894_v25  ;;  %11525 = vst [vmem:[#allocation101_spill] sm:$0xff] %v9896_v28  ;;  %4594 = vperm.xlu1 %7627, %v3388_v10   ;;  %4589 = vperm.xlu0 %7626, %v3387_v11   ;;  %v3394_v25 = vld [vmem:[#allocation3 + $0x98] sm:$0xff]  ;;  %v3393_v28 = vld [vmem:[#allocation3 + $0x90] sm:$0xff] }
 0x7bd   : > { %v9898_v47 = vpop.permute.xlu1 %4156  ;;  %v9900_v30 = vpop.permute.xlu0 %4151 }
 0x7be   : > { %11526 = vst [vmem:[#allocation102_spill] sm:$0xff] %v9898_v47  ;;  %11527 = vst [vmem:[#allocation103_spill] sm:$0xff] %v9900_v30  ;;  %4604 = vperm.xlu1 %7627, %v3390_v37   ;;  %4599 = vperm.xlu0 %7626, %v3389_v20   ;;  %v3396_v47 = vld [vmem:[#allocation3 + $0xa8] sm:$0xff]  ;;  %v3395_v30 = vld [vmem:[#allocation3 + $0xa0] sm:$0xff] }
 0x7c1   : > { %v9902_v63 = vpop.permute.xlu1 %4166  ;;  %v9904_v0 = vpop.permute.xlu0 %4161 }
 0x7c2   : > { %11528 = vst [vmem:[#allocation104_spill] sm:$0xff] %v9902_v63  ;;  %11529 = vst [vmem:[#allocation105_spill] sm:$0xff] %v9904_v0  ;;  %4614 = vperm.xlu1 %7627, %v3392_v43   ;;  %4609 = vperm.xlu0 %7626, %v3391_v41   ;;  %v3398_v63 = vld [vmem:[#allocation3 + $0xb8] sm:$0xff]  ;;  %v3397_v0 = vld [vmem:[#allocation3 + $0xb0] sm:$0xff] }
 0x7c5   : > { %v9906_v10 = vpop.permute.xlu1 %4176  ;;  %v9908_v11 = vpop.permute.xlu0 %4171 }
 0x7c6   : > { %11530 = vst [vmem:[#allocation106_spill] sm:$0xff] %v9906_v10  ;;  %11531 = vst [vmem:[#allocation107_spill] sm:$0xff] %v9908_v11  ;;  %4624 = vperm.xlu1 %7627, %v3394_v25   ;;  %4619 = vperm.xlu0 %7626, %v3393_v28   ;;  %v3400_v10 = vld [vmem:[#allocation3 + $0xc8] sm:$0xff]  ;;  %v3399_v11 = vld [vmem:[#allocation3 + $0xc0] sm:$0xff] }
 0x7c9   : > { %v9910_v37 = vpop.permute.xlu1 %4186  ;;  %v9912_v20 = vpop.permute.xlu0 %4181 }
 0x7ca   : > { %11532 = vst [vmem:[#allocation108_spill] sm:$0xff] %v9910_v37  ;;  %11533 = vst [vmem:[#allocation109_spill] sm:$0xff] %v9912_v20  ;;  %4634 = vperm.xlu1 %7627, %v3396_v47   ;;  %4629 = vperm.xlu0 %7626, %v3395_v30   ;;  %v3402_v37 = vld [vmem:[#allocation3 + $0xd8] sm:$0xff]  ;;  %v3401_v20 = vld [vmem:[#allocation3 + $0xd0] sm:$0xff] }
 0x7cd   : > { %v9914_v43 = vpop.permute.xlu1 %4196  ;;  %v9916_v41 = vpop.permute.xlu0 %4191 }
 0x7ce   : > { %11534 = vst [vmem:[#allocation110_spill] sm:$0xff] %v9914_v43  ;;  %11535 = vst [vmem:[#allocation111_spill] sm:$0xff] %v9916_v41  ;;  %4644 = vperm.xlu1 %7627, %v3398_v63   ;;  %4639 = vperm.xlu0 %7626, %v3397_v0   ;;  %v3404_v43 = vld [vmem:[#allocation3 + $0xe8] sm:$0xff]  ;;  %v3403_v41 = vld [vmem:[#allocation3 + $0xe0] sm:$0xff] }
 0x7d1   : > { %v9918_v25 = vpop.permute.xlu1 %4206  ;;  %v9920_v28 = vpop.permute.xlu0 %4201 }
 0x7d2   : > { %11536 = vst [vmem:[#allocation112_spill] sm:$0xff] %v9918_v25  ;;  %11537 = vst [vmem:[#allocation113_spill] sm:$0xff] %v9920_v28  ;;  %4654 = vperm.xlu1 %7627, %v3400_v10   ;;  %4649 = vperm.xlu0 %7626, %v3399_v11   ;;  %v3406_v25 = vld [vmem:[#allocation3 + $0xf8] sm:$0xff]  ;;  %v3405_v28 = vld [vmem:[#allocation3 + $0xf0] sm:$0xff] }
 0x7d5   : > { %v9922_v47 = vpop.permute.xlu1 %4216  ;;  %v9924_v30 = vpop.permute.xlu0 %4211 }
 0x7d6   : > { %11538 = vst [vmem:[#allocation114_spill] sm:$0xff] %v9922_v47  ;;  %11539 = vst [vmem:[#allocation115_spill] sm:$0xff] %v9924_v30  ;;  %4664 = vperm.xlu1 %7627, %v3402_v37   ;;  %4659 = vperm.xlu0 %7626, %v3401_v20   ;;  %v3408_v47 = vld [vmem:[#allocation3 + $0x108] sm:$0xff]  ;;  %v3407_v30 = vld [vmem:[#allocation3 + $0x100] sm:$0xff] }
 0x7d9   : > { %v9926_v63 = vpop.permute.xlu1 %4226  ;;  %v9928_v0 = vpop.permute.xlu0 %4221 }
 0x7da   : > { %11540 = vst [vmem:[#allocation116_spill] sm:$0xff] %v9926_v63  ;;  %11541 = vst [vmem:[#allocation117_spill] sm:$0xff] %v9928_v0  ;;  %4674 = vperm.xlu1 %7627, %v3404_v43   ;;  %4669 = vperm.xlu0 %7626, %v3403_v41   ;;  %v3410_v63 = vld [vmem:[#allocation3 + $0x118] sm:$0xff]  ;;  %v3409_v0 = vld [vmem:[#allocation3 + $0x110] sm:$0xff] }
 0x7dd   : > { %v9930_v10 = vpop.permute.xlu1 %4236  ;;  %v9932_v11 = vpop.permute.xlu0 %4231 }
 0x7de   : > { %11542 = vst [vmem:[#allocation118_spill] sm:$0xff] %v9930_v10  ;;  %11543 = vst [vmem:[#allocation119_spill] sm:$0xff] %v9932_v11  ;;  %4684 = vperm.xlu1 %7627, %v3406_v25   ;;  %4679 = vperm.xlu0 %7626, %v3405_v28   ;;  %v3412_v10 = vld [vmem:[#allocation3 + $0x128] sm:$0xff]  ;;  %v3411_v11 = vld [vmem:[#allocation3 + $0x120] sm:$0xff] }
 0x7e1   : > { %v9934_v37 = vpop.permute.xlu1 %4246  ;;  %v9936_v20 = vpop.permute.xlu0 %4241 }
 0x7e2   : > { %11544 = vst [vmem:[#allocation120_spill] sm:$0xff] %v9934_v37  ;;  %11545 = vst [vmem:[#allocation121_spill] sm:$0xff] %v9936_v20  ;;  %4694 = vperm.xlu1 %7627, %v3408_v47   ;;  %4689 = vperm.xlu0 %7626, %v3407_v30   ;;  %v3414_v37 = vld [vmem:[#allocation3 + $0x138] sm:$0xff]  ;;  %v3413_v20 = vld [vmem:[#allocation3 + $0x130] sm:$0xff] }
 0x7e5   : > { %v9938_v43 = vpop.permute.xlu1 %4256  ;;  %v9940_v41 = vpop.permute.xlu0 %4251 }
 0x7e6   : > { %11546 = vst [vmem:[#allocation122_spill] sm:$0xff] %v9938_v43  ;;  %11547 = vst [vmem:[#allocation123_spill] sm:$0xff] %v9940_v41  ;;  %4704 = vperm.xlu1 %7627, %v3410_v63   ;;  %4699 = vperm.xlu0 %7626, %v3409_v0   ;;  %v3416_v43 = vld [vmem:[#allocation3 + $0x148] sm:$0xff]  ;;  %v3415_v41 = vld [vmem:[#allocation3 + $0x140] sm:$0xff] }
 0x7e9   : > { %v9942_v25 = vpop.permute.xlu1 %4266  ;;  %v9944_v28 = vpop.permute.xlu0 %4261 }
 0x7ea   : > { %11548 = vst [vmem:[#allocation124_spill] sm:$0xff] %v9942_v25  ;;  %11549 = vst [vmem:[#allocation125_spill] sm:$0xff] %v9944_v28  ;;  %4714 = vperm.xlu1 %7627, %v3412_v10   ;;  %4709 = vperm.xlu0 %7626, %v3411_v11   ;;  %v3418_v25 = vld [vmem:[#allocation3 + $0x158] sm:$0xff]  ;;  %v3417_v28 = vld [vmem:[#allocation3 + $0x150] sm:$0xff] }
 0x7ed   : > { %v9946_v47 = vpop.permute.xlu1 %4276  ;;  %v9948_v30 = vpop.permute.xlu0 %4271 }
 0x7ee   : > { %11550 = vst [vmem:[#allocation126_spill] sm:$0xff] %v9946_v47  ;;  %11551 = vst [vmem:[#allocation127_spill] sm:$0xff] %v9948_v30  ;;  %4724 = vperm.xlu1 %7627, %v3414_v37   ;;  %4719 = vperm.xlu0 %7626, %v3413_v20   ;;  %v3420_v47 = vld [vmem:[#allocation3 + $0x168] sm:$0xff]  ;;  %v3419_v30 = vld [vmem:[#allocation3 + $0x160] sm:$0xff] }
 0x7f1   : > { %v9950_v63 = vpop.permute.xlu1 %4286  ;;  %v9952_v0 = vpop.permute.xlu0 %4281 }
 0x7f2   : > { %11552 = vst [vmem:[#allocation128_spill] sm:$0xff] %v9950_v63  ;;  %11553 = vst [vmem:[#allocation129_spill] sm:$0xff] %v9952_v0  ;;  %4734 = vperm.xlu1 %7627, %v3416_v43   ;;  %4729 = vperm.xlu0 %7626, %v3415_v41   ;;  %v3422_v63 = vld [vmem:[#allocation3 + $0x178] sm:$0xff]  ;;  %v3421_v0 = vld [vmem:[#allocation3 + $0x170] sm:$0xff] }
 0x7f5   : > { %v9954_v10 = vpop.permute.xlu1 %4296  ;;  %v9956_v11 = vpop.permute.xlu0 %4291 }
 0x7f6   : > { %11554 = vst [vmem:[#allocation130_spill] sm:$0xff] %v9954_v10  ;;  %11555 = vst [vmem:[#allocation131_spill] sm:$0xff] %v9956_v11  ;;  %4744 = vperm.xlu1 %7627, %v3418_v25   ;;  %4739 = vperm.xlu0 %7626, %v3417_v28   ;;  %v3424_v11 = vld [vmem:[#allocation3 + $0x188] sm:$0xff]  ;;  %v3423_v25 = vld [vmem:[#allocation3 + $0x180] sm:$0xff] }
 0x7f9   : > { %v9958_v37 = vpop.permute.xlu1 %4306  ;;  %v9960_v20 = vpop.permute.xlu0 %4301 }
 0x7fa   : > { %11556 = vst [vmem:[#allocation132_spill] sm:$0xff] %v9958_v37  ;;  %11557 = vst [vmem:[#allocation133_spill] sm:$0xff] %v9960_v20  ;;  %4754 = vperm.xlu1 %7627, %v3420_v47   ;;  %4749 = vperm.xlu0 %7626, %v3419_v30   ;;  %v3426_v20 = vld [vmem:[#allocation3 + $0x198] sm:$0xff]  ;;  %v3425_v47 = vld [vmem:[#allocation3 + $0x190] sm:$0xff] }
 0x7fd   : > { %v9962_v43 = vpop.permute.xlu1 %4316  ;;  %v9964_v41 = vpop.permute.xlu0 %4311 }
 0x7fe   : > { %11558 = vst [vmem:[#allocation134_spill] sm:$0xff] %v9962_v43  ;;  %11559 = vst [vmem:[#allocation135_spill] sm:$0xff] %v9964_v41  ;;  %4764 = vperm.xlu1 %7627, %v3422_v63   ;;  %4759 = vperm.xlu0 %7626, %v3421_v0   ;;  %v3428_v41 = vld [vmem:[#allocation3 + $0x1a8] sm:$0xff]  ;;  %v3427_v63 = vld [vmem:[#allocation3 + $0x1a0] sm:$0xff] }
 0x801   : > { %v9966_v28 = vpop.permute.xlu1 %4326  ;;  %v9968_v10 = vpop.permute.xlu0 %4321 }
 0x802   : > { %11561 = vst [vmem:[#allocation136_spill] sm:$0xff] %v9966_v28  ;;  %11562 = vst [vmem:[#allocation137_spill] sm:$0xff] %v9968_v10  ;;  %4774 = vperm.xlu1 %7627, %v3424_v11   ;;  %4769 = vperm.xlu0 %7626, %v3423_v25   ;;  %v8218_v11 = vmov 1966171168   ;;  %v3202_v10 = vlaneseq  ;;  %v3430_v28 = vld [vmem:[#allocation3 + $0x1b8] sm:$0xff] }
 0x803   : > { %v3200_v25 = vunpack.c.l.s4 %v8218_v11  ;;  %v3434_v11 = vld [vmem:[#allocation3 + $0x1d8] sm:$0xff] }
 0x805   : > { %v9970_v30 = vpop.permute.xlu1 %4336  ;;  %v9972_v37 = vpop.permute.xlu0 %4331 }
 0x806   : > { %11563 = vst [vmem:[#allocation138_spill] sm:$0xff] %v9970_v30  ;;  %11564 = vst [vmem:[#allocation139_spill] sm:$0xff] %v9972_v37  ;;  %4784 = vperm.xlu1 %7627, %v3426_v20   ;;  %4779 = vperm.xlu0 %7626, %v3425_v47   ;;  %v3429_v30 = vld [vmem:[#allocation3 + $0x1b0] sm:$0xff]  ;;  %v3201_v47 = vunpack.c.0.s8 %v3200_v25  ;;  %v3203_v37 = vshrl.u32 %v3202_v10, 7 }
 0x809   : > { %v9975_v0 = vpop.permute.xlu1 %4346  ;;  %v9977_v43 = vpop.permute.xlu0 %4341 }
 0x80a   : > { %11565 = vst [vmem:[#allocation140_spill] sm:$0xff] %v9975_v0  ;;  %11566 = vst [vmem:[#allocation141_spill] sm:$0xff] %v9977_v43  ;;  %4794 = vperm.xlu1 %7627, %v3428_v41   ;;  %4789 = vperm.xlu0 %7626, %v3427_v63   ;;  %v3432_v0 = vld [vmem:[#allocation3 + $0x1c8] sm:$0xff]  ;;  %v3431_v43 = vld [vmem:[#allocation3 + $0x1c0] sm:$0xff]  ;;  %v9988_v63 = vsub.s32 %v3201_v47, %v3203_v37 }
 0x80d   : > { %v9979_v27 = vpop.permute.xlu1 %4356  ;;  %v9981_v20 = vpop.permute.xlu0 %4351 }
 0x80e   : > { %11567 = vst [vmem:[#allocation142_spill] sm:$0xff] %v9979_v27  ;;  %11568 = vst [vmem:[#allocation143_spill] sm:$0xff] %v9981_v20  ;;  %4804 = vperm.xlu1 %7627, %v3430_v28   ;;  %4799 = vperm.xlu0 %7626, %v3429_v30   ;;  %v9990_v27 = vld [vmem:[%s3195_s15] sm:$0xff]  ;;  %v3436_v30 = vld [vmem:[#allocation3 + $0x1e8] sm:$0xff] }
 0x80f   : > { %11571 = vst [vmem:[#allocation146_spill] sm:$0xff] %v9990_v27  ;;  %v9998_v10 = vrot.slane %v9990_v27, %v9988_v63 }
 0x811   : > { %v9984_v41 = vpop.permute.xlu1 %4366  ;;  %v9986_v4 = vpop.permute.xlu0 %4361  ;;  %v10006_v47 = vrot.slane %v9998_v10, %v9988_v63 }
 0x812   : > { %11569 = vst [vmem:[#allocation144_spill] sm:$0xff] %v9984_v41  ;;  %11570 = vst [vmem:[#allocation145_spill] sm:$0xff] %v9986_v4  ;;  %4814 = vperm.xlu1 %7627, %v3432_v0   ;;  %4809 = vperm.xlu0 %7626, %v3431_v43   ;;  %v3435_v0 = vld [vmem:[#allocation3 + $0x1e0] sm:$0xff]  ;;  %v3631_v41 = vld [vmem:[%s8869_s24] sm:$0xff] }
 0x815   : > { %v9992_v20 = vpop.permute.xlu1 %4376  ;;  %v9994_v28 = vpop.permute.xlu0 %4371 }
 0x816   : > { %11572 = vst [vmem:[#allocation147_spill] sm:$0xff] %v9992_v20  ;;  %11573 = vst [vmem:[#allocation148_spill] sm:$0xff] %v9994_v28  ;;  %4824 = vperm.xlu1 %7627, %v3434_v11   ;;  %4819 = vperm.xlu0 %7626, %v3433_v58   ;;  %v10008_v28 = vsub.s32 0, %v3203_v37  ;;  %v3438_v11 = vld [vmem:[#allocation3 + $0x1f8] sm:$0xff]  ;;  %v3437_v20 = vld [vmem:[#allocation3 + $0x1f0] sm:$0xff] }
 0x817   : > { %v3439_v37 = vld [vmem:[#allocation3 + $0x200] sm:$0xff] }
 0x819   : > { %v10000_v25 = vpop.permute.xlu1 %4386  ;;  %v10002_v43 = vpop.permute.xlu0 %4381 }
 0x81a   : > { %11574 = vst [vmem:[#allocation149_spill] sm:$0xff] %v10000_v25  ;;  %11575 = vst [vmem:[#allocation150_spill] sm:$0xff] %v10002_v43  ;;  %4834 = vperm.xlu1 %7627, %v3436_v30   ;;  %4829 = vperm.xlu0 %7626, %v3435_v0   ;;  %v10016_v25 = vrot.slane %v10006_v47, %v10008_v28  ;;  %v3632_v30 = vld [vmem:[%s8869_s24 + $0x8] sm:$0xff]  ;;  %v3440_v43 = vld [vmem:[#allocation3 + $0x208] sm:$0xff] }
 0x81b   : > { %v4400_v0 = vmul.f32 %v9748_v57, %v3632_v30 }
 0x81d   : > { %v10010_v4 = vpop.permute.xlu1 %4396  ;;  %v10012_v58 = vpop.permute.xlu0 %4391 }
 0x81e   : > { %11576 = vst [vmem:[#allocation151_spill] sm:$0xff] %v10010_v4  ;;  %11577 = vst [vmem:[#allocation152_spill] sm:$0xff] %v10012_v58  ;;  %4844 = vperm.xlu1 %7627, %v3438_v11   ;;  %4839 = vperm.xlu0 %7626, %v3437_v20   ;;  %v4399_v11 = vmul.f32 %v9744_v21, %v3631_v41  ;;  %v3634_v58 = vld [vmem:[%s8869_s24 + $0x18] sm:$0xff]  ;;  %v3442_v20 = vld [vmem:[#allocation3 + $0x218] sm:$0xff] }
 0x81f   : > { %v4402_v30 = vmul.f32 %v9746_v56, %v3634_v58  ;;  %v3636_v21 = vld [vmem:[%s8869_s24 + $0x28] sm:$0xff]  ;;  %v3443_v58 = vld [vmem:[#allocation3 + $0x220] sm:$0xff] }
 0x821   : > { %v4535_v27 = vpop.permute.xlu1 %4534  ;;  %v4530_v4 = vpop.permute.xlu0 %4529 }
 0x822   : > { %v5208_v26 = vmul.f32 %v10016_v25, %v4535_v27  ;;  %4854 = vperm.xlu1 %7627, %v3440_v43   ;;  %v5207_v50 = vmul.f32 %v10016_v25, %v4530_v4  ;;  %4849 = vperm.xlu0 %7626, %v3439_v37   ;;  %v4401_v43 = vmul.f32 %v9742_v53, %v3633_v49 }
 0x824   : > { %v5336_v45 = vadd.f32 %v5208_v26, %v4400_v0  ;;  %v5335_v33 = vadd.f32 %v5207_v50, %v4399_v11  ;;  %v3444_v26 = vld [vmem:[#allocation3 + $0x228] sm:$0xff]  ;;  %v3635_v50 = vld [vmem:[%s8869_s24 + $0x20] sm:$0xff] }
 0x825   : > { %v4545_v36 = vpop.permute.xlu1 %4544  ;;  %v4540_v41 = vpop.permute.xlu0 %4539 }
 0x826   : > { %5464 = vst [vmem:[%s8918_s13 + $0x8] sm:$0xff] %v5336_v45  ;;  %v5210_v27 = vmul.f32 %v10016_v25, %v4545_v36  ;;  %4864 = vperm.xlu1 %7627, %v3442_v20   ;;  %5463 = vst [vmem:[%s8918_s13] sm:$0xff] %v5335_v33  ;;  %v5209_v4 = vmul.f32 %v10016_v25, %v4540_v41  ;;  %4859 = vperm.xlu0 %7626, %v3441_v40   ;;  %v3638_v20 = vld [vmem:[%s8869_s24 + $0x38] sm:$0xff] }
 0x827   : > { %v4404_v36 = vmul.f32 %v9750_v59, %v3636_v21  ;;  %v4403_v33 = vmul.f32 %v9752_v60, %v3635_v50  ;;  %v3445_v21 = vld [vmem:[#allocation3 + $0x230] sm:$0xff] }
 0x828   : > { %v5338_v37 = vadd.f32 %v5210_v27, %v4402_v30  ;;  %v5337_v45 = vadd.f32 %v5209_v4, %v4401_v43  ;;  %v3446_v30 = vld [vmem:[#allocation3 + $0x238] sm:$0xff]  ;;  %v3637_v27 = vld [vmem:[%s8869_s24 + $0x30] sm:$0xff] }
 0x829   : > { %v4555_v0 = vpop.permute.xlu1 %4554  ;;  %v4550_v11 = vpop.permute.xlu0 %4549 }
 0x82a   : > { %5466 = vst [vmem:[%s8918_s13 + $0x18] sm:$0xff] %v5338_v37  ;;  %v5212_v49 = vmul.f32 %v10016_v25, %v4555_v0  ;;  %4874 = vperm.xlu1 %7627, %v3444_v26   ;;  %5465 = vst [vmem:[%s8918_s13 + $0x10] sm:$0xff] %v5337_v45  ;;  %v5211_v40 = vmul.f32 %v10016_v25, %v4550_v11  ;;  %4869 = vperm.xlu0 %7626, %v3443_v58   ;;  %v3640_v0 = vld [vmem:[%s8869_s24 + $0x48] sm:$0xff] }
 0x82b   : > { %v4406_v37 = vmul.f32 %v9754_v61, %v3638_v20  ;;  %v4405_v45 = vmul.f32 %v9756_v62, %v3637_v27 }
 0x82c   : > { %v5340_v41 = vadd.f32 %v5212_v49, %v4404_v36  ;;  %v5339_v43 = vadd.f32 %v5211_v40, %v4403_v33  ;;  %v3448_v36 = vld [vmem:[#allocation3 + $0x248] sm:$0xff]  ;;  %v3639_v49 = vld [vmem:[%s8869_s24 + $0x40] sm:$0xff]  ;;  %v3447_v33 = vld [vmem:[#allocation3 + $0x240] sm:$0xff] }
 0x82d   : > { %v4565_v4 = vpop.permute.xlu1 %4564  ;;  %v4560_v50 = vpop.permute.xlu0 %4559 }
 0x82e   : > { %5468 = vst [vmem:[%s8918_s13 + $0x28] sm:$0xff] %v5340_v41  ;;  %v5214_v26 = vmul.f32 %v10016_v25, %v4565_v4  ;;  %4884 = vperm.xlu1 %7627, %v3446_v30   ;;  %5467 = vst [vmem:[%s8918_s13 + $0x20] sm:$0xff] %v5339_v43  ;;  %v5213_v58 = vmul.f32 %v10016_v25, %v4560_v50  ;;  %4879 = vperm.xlu0 %7626, %v3445_v21   ;;  %v3642_v4 = vld [vmem:[%s8869_s24 + $0x58] sm:$0xff] }
 0x82f   : > { %v4408_v41 = vmul.f32 %v9758_v1, %v3640_v0  ;;  %v4407_v43 = vmul.f32 %v9760_v2, %v3639_v49 }
 0x830   : > { %v5342_v11 = vadd.f32 %v5214_v26, %v4406_v37  ;;  %v5341_v20 = vadd.f32 %v5213_v58, %v4405_v45  ;;  %v3450_v37 = vld [vmem:[#allocation3 + $0x258] sm:$0xff]  ;;  %v3641_v26 = vld [vmem:[%s8869_s24 + $0x50] sm:$0xff]  ;;  %v3449_v45 = vld [vmem:[#allocation3 + $0x250] sm:$0xff] }
 0x831   : > { %v4575_v40 = vpop.permute.xlu1 %4574  ;;  %v4570_v27 = vpop.permute.xlu0 %4569 }
 0x832   : > { %5470 = vst [vmem:[%s8918_s13 + $0x38] sm:$0xff] %v5342_v11  ;;  %v5216_v30 = vmul.f32 %v10016_v25, %v4575_v40  ;;  %4894 = vperm.xlu1 %7627, %v3448_v36   ;;  %5469 = vst [vmem:[%s8918_s13 + $0x30] sm:$0xff] %v5341_v20  ;;  %v5215_v21 = vmul.f32 %v10016_v25, %v4570_v27  ;;  %4889 = vperm.xlu0 %7626, %v3447_v33   ;;  %v3644_v40 = vld [vmem:[%s8869_s24 + $0x68] sm:$0xff]  ;;  %v3643_v27 = vld [vmem:[%s8869_s24 + $0x60] sm:$0xff] }
 0x833   : > { %v4410_v11 = vmul.f32 %v9762_v3, %v3642_v4  ;;  %v3213_v20 = vcombine.high %v9998_v10, %v9998_v10  ;;  %v4409_v33 = vmul.f32 %v9764_v42, %v3641_v26  ;;  %v3451_v4 = vld [vmem:[#allocation3 + $0x260] sm:$0xff] }
 0x834   : > { %v5344_v50 = vadd.f32 %v5216_v30, %v4408_v41  ;;  %v5343_v0 = vadd.f32 %v5215_v21, %v4407_v43  ;;  %v3452_v30 = vld [vmem:[#allocation3 + $0x268] sm:$0xff] }
 0x835   : > { %v4585_v58 = vpop.permute.xlu1 %4584  ;;  %v4580_v49 = vpop.permute.xlu0 %4579 }
 0x836   : > { %5472 = vst [vmem:[%s8918_s13 + $0x48] sm:$0xff] %v5344_v50  ;;  %v5218_v36 = vmul.f32 %v10016_v25, %v4585_v58  ;;  %4904 = vperm.xlu1 %7627, %v3450_v37   ;;  %5471 = vst [vmem:[%s8918_s13 + $0x40] sm:$0xff] %v5343_v0  ;;  %v5217_v41 = vmul.f32 %v10016_v25, %v4580_v49  ;;  %4899 = vperm.xlu0 %7626, %v3449_v45   ;;  %v3646_v58 = vld [vmem:[%s8869_s24 + $0x78] sm:$0xff]  ;;  %v3645_v49 = vld [vmem:[%s8869_s24 + $0x70] sm:$0xff] }
 0x837   : > { %v4412_v37 = vmul.f32 %v9766_v5, %v3644_v40  ;;  %v10072_v0 = vrot.slane %v3213_v20, %v9988_v63  ;;  %v4411_v45 = vmul.f32 %v9768_v6, %v3643_v27  ;;  %v3453_v40 = vld [vmem:[#allocation3 + $0x270] sm:$0xff] }
 0x838   : > { %v5346_v43 = vadd.f32 %v5218_v36, %v4410_v11  ;;  %v5345_v21 = vadd.f32 %v5217_v41, %v4409_v33  ;;  %v3454_v36 = vld [vmem:[#allocation3 + $0x278] sm:$0xff] }
 0x839   : > { %v4595_v50 = vpop.permute.xlu1 %4594  ;;  %v4590_v26 = vpop.permute.xlu0 %4589 }
 0x83a   : > { %5474 = vst [vmem:[%s8918_s13 + $0x58] sm:$0xff] %v5346_v43  ;;  %v5220_v10 = vmul.f32 %v10016_v25, %v4595_v50  ;;  %4914 = vperm.xlu1 %7627, %v3452_v30   ;;  %5473 = vst [vmem:[%s8918_s13 + $0x50] sm:$0xff] %v5345_v21  ;;  %v5219_v11 = vmul.f32 %v10016_v25, %v4590_v26  ;;  %4909 = vperm.xlu0 %7626, %v3451_v4   ;;  %v3648_v50 = vld [vmem:[%s8869_s24 + $0x88] sm:$0xff]  ;;  %v3647_v26 = vld [vmem:[%s8869_s24 + $0x80] sm:$0xff] }
 0x83b   : > { %v4414_v30 = vmul.f32 %v9770_v9, %v3646_v58  ;;  %v10084_v21 = vrot.slane %v10072_v0, %v10008_v28  ;;  %v4413_v4 = vmul.f32 %v9772_v19, %v3645_v49  ;;  %v3455_v58 = vld [vmem:[#allocation3 + $0x280] sm:$0xff]  ;;  %v3650_v19 = vld [vmem:[%s8869_s24 + $0x98] sm:$0xff] }
 0x83c   : > { %v5348_v33 = vadd.f32 %v5220_v10, %v4412_v37  ;;  %v5347_v41 = vadd.f32 %v5219_v11, %v4411_v45  ;;  %v3456_v10 = vld [vmem:[#allocation3 + $0x288] sm:$0xff] }
 0x83d   : > { %v4605_v43 = vpop.permute.xlu1 %4604  ;;  %v4600_v27 = vpop.permute.xlu0 %4599 }
 0x83e   : > { %5476 = vst [vmem:[%s8918_s13 + $0x68] sm:$0xff] %v5348_v33  ;;  %v5222_v20 = vmul.f32 %v10016_v25, %v4605_v43  ;;  %4924 = vperm.xlu1 %7627, %v3454_v36   ;;  %5475 = vst [vmem:[%s8918_s13 + $0x60] sm:$0xff] %v5347_v41  ;;  %v5221_v37 = vmul.f32 %v10016_v25, %v4600_v27  ;;  %4919 = vperm.xlu0 %7626, %v3453_v40  }
 0x83f   : > { %v4416_v33 = vmul.f32 %v9774_v12, %v3648_v50  ;;  %v4415_v41 = vmul.f32 %v9776_v13, %v3647_v26 }
 0x840   : > { %v5350_v45 = vadd.f32 %v5222_v20, %v4414_v30  ;;  %v5349_v11 = vadd.f32 %v5221_v37, %v4413_v4  ;;  %v3458_v30 = vld [vmem:[#allocation3 + $0x298] sm:$0xff]  ;;  %v3649_v20 = vld [vmem:[%s8869_s24 + $0x90] sm:$0xff]  ;;  %v3457_v4 = vld [vmem:[#allocation3 + $0x290] sm:$0xff] }
 0x841   : > { %v4615_v36 = vpop.permute.xlu1 %4614  ;;  %v4610_v43 = vpop.permute.xlu0 %4609 }
 0x842   : > { %5478 = vst [vmem:[%s8918_s13 + $0x78] sm:$0xff] %v5350_v45  ;;  %v5224_v49 = vmul.f32 %v10084_v21, %v4615_v36  ;;  %4934 = vperm.xlu1 %7627, %v3456_v10   ;;  %5477 = vst [vmem:[%s8918_s13 + $0x70] sm:$0xff] %v5349_v11  ;;  %v5223_v40 = vmul.f32 %v10084_v21, %v4610_v43  ;;  %4929 = vperm.xlu0 %7626, %v3455_v58   ;;  %v3652_v36 = vld [vmem:[%s8869_s24 + $0xa8] sm:$0xff] }
 0x843   : > { %v4418_v45 = vmul.f32 %v9778_v23, %v3650_v19  ;;  %v4417_v11 = vmul.f32 %v9780_v18, %v3649_v20  ;;  %v3459_v19 = vld [vmem:[#allocation3 + $0x2a0] sm:$0xff] }
 0x844   : > { %v5352_v27 = vadd.f32 %v5224_v49, %v4416_v33  ;;  %v5351_v50 = vadd.f32 %v5223_v40, %v4415_v41  ;;  %v3460_v33 = vld [vmem:[#allocation3 + $0x2a8] sm:$0xff]  ;;  %v3651_v49 = vld [vmem:[%s8869_s24 + $0xa0] sm:$0xff] }
 0x845   : > { %v4625_v37 = vpop.permute.xlu1 %4624  ;;  %v4620_v26 = vpop.permute.xlu0 %4619 }
 0x846   : > { %5480 = vst [vmem:[%s8918_s13 + $0x88] sm:$0xff] %v5352_v27  ;;  %v5226_v10 = vmul.f32 %v10084_v21, %v4625_v37  ;;  %4944 = vperm.xlu1 %7627, %v3458_v30   ;;  %5479 = vst [vmem:[%s8918_s13 + $0x80] sm:$0xff] %v5351_v50  ;;  %v5225_v58 = vmul.f32 %v10084_v21, %v4620_v26  ;;  %4939 = vperm.xlu0 %7626, %v3457_v4   ;;  %v3654_v37 = vld [vmem:[%s8869_s24 + $0xb8] sm:$0xff] }
 0x847   : > { %v4420_v27 = vmul.f32 %v9782_v29, %v3652_v36  ;;  %v4419_v50 = vmul.f32 %v9784_v32, %v3651_v49 }
 0x848   : > { %v5354_v43 = vadd.f32 %v5226_v10, %v4418_v45  ;;  %v5353_v41 = vadd.f32 %v5225_v58, %v4417_v11  ;;  %v3462_v45 = vld [vmem:[#allocation3 + $0x2b8] sm:$0xff]  ;;  %v3653_v10 = vld [vmem:[%s8869_s24 + $0xb0] sm:$0xff]  ;;  %v3461_v11 = vld [vmem:[#allocation3 + $0x2b0] sm:$0xff] }
 0x849   : > { %v4635_v40 = vpop.permute.xlu1 %4634  ;;  %v4630_v20 = vpop.permute.xlu0 %4629 }
 0x84a   : > { %5482 = vst [vmem:[%s8918_s13 + $0x98] sm:$0xff] %v5354_v43  ;;  %v5228_v30 = vmul.f32 %v10084_v21, %v4635_v40  ;;  %4954 = vperm.xlu1 %7627, %v3460_v33   ;;  %5481 = vst [vmem:[%s8918_s13 + $0x90] sm:$0xff] %v5353_v41  ;;  %v5227_v4 = vmul.f32 %v10084_v21, %v4630_v20  ;;  %4949 = vperm.xlu0 %7626, %v3459_v19   ;;  %v3656_v40 = vld [vmem:[%s8869_s24 + $0xc8] sm:$0xff] }
 0x84b   : > { %v4422_v43 = vmul.f32 %v9786_v34, %v3654_v37  ;;  %v4421_v41 = vmul.f32 %v9788_v35, %v3653_v10 }
 0x84c   : > { %v5356_v26 = vadd.f32 %v5228_v30, %v4420_v27  ;;  %v5355_v36 = vadd.f32 %v5227_v4, %v4419_v50  ;;  %v3464_v27 = vld [vmem:[#allocation3 + $0x2c8] sm:$0xff]  ;;  %v3655_v30 = vld [vmem:[%s8869_s24 + $0xc0] sm:$0xff]  ;;  %v3463_v50 = vld [vmem:[#allocation3 + $0x2c0] sm:$0xff] }
 0x84d   : > { %v4645_v58 = vpop.permute.xlu1 %4644  ;;  %v4640_v49 = vpop.permute.xlu0 %4639 }
 0x84e   : > { %5484 = vst [vmem:[%s8918_s13 + $0xa8] sm:$0xff] %v5356_v26  ;;  %v5230_v33 = vmul.f32 %v10084_v21, %v4645_v58  ;;  %4964 = vperm.xlu1 %7627, %v3462_v45   ;;  %5483 = vst [vmem:[%s8918_s13 + $0xa0] sm:$0xff] %v5355_v36  ;;  %v5229_v19 = vmul.f32 %v10084_v21, %v4640_v49  ;;  %4959 = vperm.xlu0 %7626, %v3461_v11   ;;  %v3658_v58 = vld [vmem:[%s8869_s24 + $0xd8] sm:$0xff] }
 0x84f   : > { %v4424_v26 = vmul.f32 %v9790_v38, %v3656_v40  ;;  %v4423_v36 = vmul.f32 %v9792_v39, %v3655_v30 }
 0x850   : > { %v5358_v20 = vadd.f32 %v5230_v33, %v4422_v43  ;;  %v5357_v37 = vadd.f32 %v5229_v19, %v4421_v41  ;;  %v3466_v43 = vld [vmem:[#allocation3 + $0x2d8] sm:$0xff]  ;;  %v3657_v33 = vld [vmem:[%s8869_s24 + $0xd0] sm:$0xff]  ;;  %v3465_v41 = vld [vmem:[#allocation3 + $0x2d0] sm:$0xff] }
 0x851   : > { %v4655_v4 = vpop.permute.xlu1 %4654  ;;  %v4650_v10 = vpop.permute.xlu0 %4649 }
 0x852   : > { %5486 = vst [vmem:[%s8918_s13 + $0xb8] sm:$0xff] %v5358_v20  ;;  %v5232_v45 = vmul.f32 %v10084_v21, %v4655_v4  ;;  %4974 = vperm.xlu1 %7627, %v3464_v27   ;;  %5485 = vst [vmem:[%s8918_s13 + $0xb0] sm:$0xff] %v5357_v37  ;;  %v5231_v11 = vmul.f32 %v10084_v21, %v4650_v10  ;;  %4969 = vperm.xlu0 %7626, %v3463_v50   ;;  %v3660_v4 = vld [vmem:[%s8869_s24 + $0xe8] sm:$0xff] }
 0x853   : > { %v4426_v20 = vmul.f32 %v9794_v46, %v3658_v58  ;;  %v4425_v37 = vmul.f32 %v9796_v24, %v3657_v33 }
 0x854   : > { %v5360_v49 = vadd.f32 %v5232_v45, %v4424_v26  ;;  %v5359_v40 = vadd.f32 %v5231_v11, %v4423_v36  ;;  %v3468_v26 = vld [vmem:[#allocation3 + $0x2e8] sm:$0xff]  ;;  %v3659_v45 = vld [vmem:[%s8869_s24 + $0xe0] sm:$0xff]  ;;  %v3467_v36 = vld [vmem:[#allocation3 + $0x2e0] sm:$0xff] }
 0x855   : > { %v4665_v19 = vpop.permute.xlu1 %4664  ;;  %v4660_v30 = vpop.permute.xlu0 %4659 }
 0x856   : > { %5488 = vst [vmem:[%s8918_s13 + $0xc8] sm:$0xff] %v5360_v49  ;;  %v5234_v27 = vmul.f32 %v10084_v21, %v4665_v19  ;;  %4984 = vperm.xlu1 %7627, %v3466_v43   ;;  %5487 = vst [vmem:[%s8918_s13 + $0xc0] sm:$0xff] %v5359_v40  ;;  %v5233_v50 = vmul.f32 %v10084_v21, %v4660_v30  ;;  %4979 = vperm.xlu0 %7626, %v3465_v41   ;;  %v3662_v19 = vld [vmem:[%s8869_s24 + $0xf8] sm:$0xff]  ;;  %v3661_v30 = vld [vmem:[%s8869_s24 + $0xf0] sm:$0xff] }
 0x857   : > { %v4428_v49 = vmul.f32 %v9798_v15, %v3660_v4  ;;  %v3243_v40 = vcombine.high %v10006_v47, %v10006_v47  ;;  %v4427_v41 = vmul.f32 %v9800_v48, %v3659_v45  ;;  %v3469_v4 = vld [vmem:[#allocation3 + $0x2f0] sm:$0xff] }
 0x858   : > { %v5362_v10 = vadd.f32 %v5234_v27, %v4426_v20  ;;  %v5361_v58 = vadd.f32 %v5233_v50, %v4425_v37  ;;  %v3470_v27 = vld [vmem:[#allocation3 + $0x2f8] sm:$0xff] }
 0x859   : > { %v4675_v11 = vpop.permute.xlu1 %4674  ;;  %v4670_v33 = vpop.permute.xlu0 %4669 }
 0x85a   : > { %5490 = vst [vmem:[%s8918_s13 + $0xd8] sm:$0xff] %v5362_v10  ;;  %v5236_v43 = vmul.f32 %v10084_v21, %v4675_v11  ;;  %4994 = vperm.xlu1 %7627, %v3468_v26   ;;  %5489 = vst [vmem:[%s8918_s13 + $0xd0] sm:$0xff] %v5361_v58  ;;  %v5235_v20 = vmul.f32 %v10084_v21, %v4670_v33  ;;  %4989 = vperm.xlu0 %7626, %v3467_v36   ;;  %v3664_v11 = vld [vmem:[%s8869_s24 + $0x108] sm:$0xff]  ;;  %v3663_v33 = vld [vmem:[%s8869_s24 + $0x100] sm:$0xff] }
 0x85b   : > { %v4430_v26 = vmul.f32 %v9802_v51, %v3662_v19  ;;  %v10153_v58 = vrot.slane %v3243_v40, %v10008_v28  ;;  %v4429_v36 = vmul.f32 %v9804_v52, %v3661_v30  ;;  %v3471_v19 = vld [vmem:[#allocation3 + $0x300] sm:$0xff] }
 0x85c   : > { %v5364_v37 = vadd.f32 %v5236_v43, %v4428_v49  ;;  %v5363_v50 = vadd.f32 %v5235_v20, %v4427_v41  ;;  %v3472_v43 = vld [vmem:[#allocation3 + $0x308] sm:$0xff] }
 0x85d   : > { %v4685_v10 = vpop.permute.xlu1 %4684  ;;  %v4680_v45 = vpop.permute.xlu0 %4679 }
 0x85e   : > { %5492 = vst [vmem:[%s8918_s13 + $0xe8] sm:$0xff] %v5364_v37  ;;  %v5238_v47 = vmul.f32 %v10084_v21, %v4685_v10  ;;  %5004 = vperm.xlu1 %7627, %v3470_v27   ;;  %5491 = vst [vmem:[%s8918_s13 + $0xe0] sm:$0xff] %v5363_v50  ;;  %v5237_v49 = vmul.f32 %v10084_v21, %v4680_v45  ;;  %4999 = vperm.xlu0 %7626, %v3469_v4   ;;  %v3666_v10 = vld [vmem:[%s8869_s24 + $0x118] sm:$0xff] }
 0x85f   : > { %v4432_v27 = vmul.f32 %v9806_v54, %v3664_v11  ;;  %v4431_v50 = vmul.f32 %v9808_v55, %v3663_v33 }
 0x860   : > { %v5366_v41 = vadd.f32 %v5238_v47, %v4430_v26  ;;  %v5365_v20 = vadd.f32 %v5237_v49, %v4429_v36  ;;  %v3474_v26 = vld [vmem:[#allocation3 + $0x318] sm:$0xff]  ;;  %v3665_v47 = vld [vmem:[%s8869_s24 + $0x110] sm:$0xff]  ;;  %v3473_v36 = vld [vmem:[#allocation3 + $0x310] sm:$0xff] }
 0x861   : > { %v4695_v37 = vpop.permute.xlu1 %4694  ;;  %v4690_v30 = vpop.permute.xlu0 %4689 }
 0x862   : > { %5494 = vst [vmem:[%s8918_s13 + $0xf8] sm:$0xff] %v5366_v41  ;;  %v5240_v40 = vmul.f32 %v10153_v58, %v4695_v37  ;;  %5014 = vperm.xlu1 %7627, %v3472_v43   ;;  %5493 = vst [vmem:[%s8918_s13 + $0xf0] sm:$0xff] %v5365_v20  ;;  %v5239_v4 = vmul.f32 %v10153_v58, %v4690_v30  ;;  %5009 = vperm.xlu0 %7626, %v3471_v19   ;;  %v3668_v37 = vld [vmem:[%s8869_s24 + $0x128] sm:$0xff] }
 0x863   : > { %v4434_v41 = vmul.f32 %v9810_v31, %v3666_v10  ;;  %v4433_v20 = vmul.f32 %v9812_v16, %v3665_v47 }
 0x864   : > { %v5368_v45 = vadd.f32 %v5240_v40, %v4432_v27  ;;  %v5367_v11 = vadd.f32 %v5239_v4, %v4431_v50  ;;  %v3476_v27 = vld [vmem:[#allocation3 + $0x328] sm:$0xff]  ;;  %v3667_v40 = vld [vmem:[%s8869_s24 + $0x120] sm:$0xff]  ;;  %v3475_v50 = vld [vmem:[#allocation3 + $0x320] sm:$0xff] }
 0x865   : > { %v4705_v49 = vpop.permute.xlu1 %4704  ;;  %v4700_v33 = vpop.permute.xlu0 %4699 }
 0x866   : > { %5496 = vst [vmem:[%s8918_s13 + $0x108] sm:$0xff] %v5368_v45  ;;  %v5242_v43 = vmul.f32 %v10153_v58, %v4705_v49  ;;  %5024 = vperm.xlu1 %7627, %v3474_v26   ;;  %5495 = vst [vmem:[%s8918_s13 + $0x100] sm:$0xff] %v5367_v11  ;;  %v5241_v19 = vmul.f32 %v10153_v58, %v4700_v33  ;;  %5019 = vperm.xlu0 %7626, %v3473_v36   ;;  %v3670_v49 = vld [vmem:[%s8869_s24 + $0x138] sm:$0xff] }
 0x867   : > { %v4436_v45 = vmul.f32 %v9814_v44, %v3668_v37  ;;  %v4435_v11 = vmul.f32 %v9816_v22, %v3667_v40  ;;  %v3698_v22 = vld [vmem:[%s8869_s24 + $0x218] sm:$0xff] }
 0x868   : > { %v5370_v30 = vadd.f32 %v5242_v43, %v4434_v41  ;;  %v5369_v10 = vadd.f32 %v5241_v19, %v4433_v20  ;;  %v3478_v41 = vld [vmem:[#allocation3 + $0x338] sm:$0xff]  ;;  %v3669_v43 = vld [vmem:[%s8869_s24 + $0x130] sm:$0xff]  ;;  %v3477_v20 = vld [vmem:[#allocation3 + $0x330] sm:$0xff] }
 0x869   : > { %v4715_v4 = vpop.permute.xlu1 %4714  ;;  %v4710_v47 = vpop.permute.xlu0 %4709 }
 0x86a   : > { %5498 = vst [vmem:[%s8918_s13 + $0x118] sm:$0xff] %v5370_v30  ;;  %v5244_v26 = vmul.f32 %v10153_v58, %v4715_v4  ;;  %5034 = vperm.xlu1 %7627, %v3476_v27   ;;  %5497 = vst [vmem:[%s8918_s13 + $0x110] sm:$0xff] %v5369_v10  ;;  %v5243_v36 = vmul.f32 %v10153_v58, %v4710_v47  ;;  %5029 = vperm.xlu0 %7626, %v3475_v50   ;;  %v3672_v4 = vld [vmem:[%s8869_s24 + $0x148] sm:$0xff] }
 0x86b   : > { %v4438_v30 = vmul.f32 %v9818_v7, %v3670_v49  ;;  %v4437_v10 = vmul.f32 %v9820_v8, %v3669_v43 }
 0x86c   : > { %v5372_v33 = vadd.f32 %v5244_v26, %v4436_v45  ;;  %v5371_v37 = vadd.f32 %v5243_v36, %v4435_v11  ;;  %v3480_v45 = vld [vmem:[#allocation3 + $0x348] sm:$0xff]  ;;  %v3671_v26 = vld [vmem:[%s8869_s24 + $0x140] sm:$0xff]  ;;  %v3479_v11 = vld [vmem:[#allocation3 + $0x340] sm:$0xff] }
 0x86d   : > { %v4725_v19 = vpop.permute.xlu1 %4724  ;;  %v4720_v40 = vpop.permute.xlu0 %4719 }
 0x86e   : > { %5500 = vst [vmem:[%s8918_s13 + $0x128] sm:$0xff] %v5372_v33  ;;  %v5246_v27 = vmul.f32 %v10153_v58, %v4725_v19  ;;  %5044 = vperm.xlu1 %7627, %v3478_v41   ;;  %5499 = vst [vmem:[%s8918_s13 + $0x120] sm:$0xff] %v5371_v37  ;;  %v5245_v50 = vmul.f32 %v10153_v58, %v4720_v40  ;;  %5039 = vperm.xlu0 %7626, %v3477_v20   ;;  %v3674_v19 = vld [vmem:[%s8869_s24 + $0x158] sm:$0xff] }
 0x86f   : > { %v4440_v33 = vmul.f32 %v9822_v17, %v3672_v4  ;;  %v4439_v37 = vmul.f32 %v9824_v14, %v3671_v26  ;;  %v3676_v17 = vld [vmem:[%s8869_s24 + $0x168] sm:$0xff] }
 0x870   : > { %v5374_v47 = vadd.f32 %v5246_v27, %v4438_v30  ;;  %v5373_v49 = vadd.f32 %v5245_v50, %v4437_v10  ;;  %v3482_v30 = vld [vmem:[#allocation3 + $0x358] sm:$0xff]  ;;  %v3673_v27 = vld [vmem:[%s8869_s24 + $0x150] sm:$0xff]  ;;  %v3481_v10 = vld [vmem:[#allocation3 + $0x350] sm:$0xff] }
 0x871   : > { %v4735_v36 = vpop.permute.xlu1 %4734  ;;  %v4730_v43 = vpop.permute.xlu0 %4729 }
 0x872   : > { %5502 = vst [vmem:[%s8918_s13 + $0x138] sm:$0xff] %v5374_v47  ;;  %v5248_v41 = vmul.f32 %v10153_v58, %v4735_v36  ;;  %5054 = vperm.xlu1 %7627, %v3480_v45   ;;  %5501 = vst [vmem:[%s8918_s13 + $0x130] sm:$0xff] %v5373_v49  ;;  %v5247_v20 = vmul.f32 %v10153_v58, %v4730_v43  ;;  %5049 = vperm.xlu0 %7626, %v3479_v11   ;;  %v11578_v47 = vld [vmem:[#allocation66_spill] sm:$0xff]  ;;  %v11579_v49 = vld [vmem:[#allocation67_spill] sm:$0xff] }
 0x873   : > { %v4442_v36 = vmul.f32 %v11578_v47, %v3674_v19  ;;  %v4441_v14 = vmul.f32 %v11579_v49, %v3673_v27  ;;  %v3678_v49 = vld [vmem:[%s8869_s24 + $0x178] sm:$0xff] }
 0x874   : > { %v5376_v40 = vadd.f32 %v5248_v41, %v4440_v33  ;;  %v5375_v4 = vadd.f32 %v5247_v20, %v4439_v37  ;;  %v3484_v33 = vld [vmem:[#allocation3 + $0x368] sm:$0xff]  ;;  %v3675_v41 = vld [vmem:[%s8869_s24 + $0x160] sm:$0xff]  ;;  %v3483_v37 = vld [vmem:[#allocation3 + $0x360] sm:$0xff] }
 0x875   : > { %v4745_v50 = vpop.permute.xlu1 %4744  ;;  %v4740_v26 = vpop.permute.xlu0 %4739  ;;  %v3682_v47 = vld [vmem:[%s8869_s24 + $0x198] sm:$0xff] }
 0x876   : > { %5504 = vst [vmem:[%s8918_s13 + $0x148] sm:$0xff] %v5376_v40  ;;  %v5250_v45 = vmul.f32 %v10153_v58, %v4745_v50  ;;  %5064 = vperm.xlu1 %7627, %v3482_v30   ;;  %5503 = vst [vmem:[%s8918_s13 + $0x140] sm:$0xff] %v5375_v4  ;;  %v5249_v11 = vmul.f32 %v10153_v58, %v4740_v26  ;;  %5059 = vperm.xlu0 %7626, %v3481_v10   ;;  %v11580_v40 = vld [vmem:[#allocation68_spill] sm:$0xff]  ;;  %v11581_v26 = vld [vmem:[#allocation69_spill] sm:$0xff] }
 0x877   : > { %v4444_v50 = vmul.f32 %v11580_v40, %v3676_v17  ;;  %v3245_v4 = vcombine.high %v10072_v0, %v10072_v0  ;;  %v4443_v10 = vmul.f32 %v11581_v26, %v3675_v41  ;;  %v3677_v17 = vld [vmem:[%s8869_s24 + $0x170] sm:$0xff]  ;;  %v3680_v26 = vld [vmem:[%s8869_s24 + $0x188] sm:$0xff] }
 0x878   : > { %v5378_v43 = vadd.f32 %v5250_v45, %v4442_v36  ;;  %v5377_v19 = vadd.f32 %v5249_v11, %v4441_v14  ;;  %v3486_v14 = vld [vmem:[#allocation3 + $0x378] sm:$0xff]  ;;  %v3485_v11 = vld [vmem:[#allocation3 + $0x370] sm:$0xff] }
 0x879   : > { %v4755_v20 = vpop.permute.xlu1 %4754  ;;  %v4750_v27 = vpop.permute.xlu0 %4749 }
 0x87a   : > { %5506 = vst [vmem:[%s8918_s13 + $0x158] sm:$0xff] %v5378_v43  ;;  %v5252_v30 = vmul.f32 %v10153_v58, %v4755_v20  ;;  %5074 = vperm.xlu1 %7627, %v3484_v33   ;;  %5505 = vst [vmem:[%s8918_s13 + $0x150] sm:$0xff] %v5377_v19  ;;  %v5251_v36 = vmul.f32 %v10153_v58, %v4750_v27  ;;  %5069 = vperm.xlu0 %7626, %v3483_v37   ;;  %v11582_v33 = vld [vmem:[#allocation70_spill] sm:$0xff]  ;;  %v11583_v27 = vld [vmem:[#allocation71_spill] sm:$0xff] }
 0x87b   : > { %v4446_v40 = vmul.f32 %v11582_v33, %v3678_v49  ;;  %v10222_v19 = vrot.slane %v3245_v4, %v10008_v28  ;;  %v4445_v37 = vmul.f32 %v11583_v27, %v3677_v17  ;;  %v3679_v49 = vld [vmem:[%s8869_s24 + $0x180] sm:$0xff] }
 0x87c   : > { %v5380_v45 = vadd.f32 %v5252_v30, %v4444_v50  ;;  %v5379_v43 = vadd.f32 %v5251_v36, %v4443_v10  ;;  %v3488_v30 = vld [vmem:[#allocation3 + $0x388] sm:$0xff]  ;;  %v3487_v36 = vld [vmem:[#allocation3 + $0x380] sm:$0xff] }
 0x87d   : > { %v4765_v20 = vpop.permute.xlu1 %4764  ;;  %v4760_v41 = vpop.permute.xlu0 %4759 }
 0x87e   : > { %5508 = vst [vmem:[%s8918_s13 + $0x168] sm:$0xff] %v5380_v45  ;;  %v5254_v0 = vmul.f32 %v10153_v58, %v4765_v20  ;;  %5084 = vperm.xlu1 %7627, %v3486_v14   ;;  %5507 = vst [vmem:[%s8918_s13 + $0x160] sm:$0xff] %v5379_v43  ;;  %v5253_v50 = vmul.f32 %v10153_v58, %v4760_v41  ;;  %5079 = vperm.xlu0 %7626, %v3485_v11   ;;  %v11584_v14 = vld [vmem:[#allocation72_spill] sm:$0xff]  ;;  %v11585_v43 = vld [vmem:[#allocation73_spill] sm:$0xff] }
 0x87f   : > { %v4448_v33 = vmul.f32 %v11584_v14, %v3680_v26  ;;  %v4447_v27 = vmul.f32 %v11585_v43, %v3679_v49  ;;  %v3489_v26 = vld [vmem:[#allocation3 + $0x390] sm:$0xff]  ;;  %v3684_v14 = vld [vmem:[%s8869_s24 + $0x1a8] sm:$0xff] }
 0x880   : > { %v5382_v10 = vadd.f32 %v5254_v0, %v4446_v40  ;;  %v5381_v45 = vadd.f32 %v5253_v50, %v4445_v37  ;;  %v3490_v40 = vld [vmem:[#allocation3 + $0x398] sm:$0xff]  ;;  %v3681_v0 = vld [vmem:[%s8869_s24 + $0x190] sm:$0xff] }
 0x881   : > { %v4775_v20 = vpop.permute.xlu1 %4774  ;;  %v4770_v17 = vpop.permute.xlu0 %4769 }
 0x882   : > { %5510 = vst [vmem:[%s8918_s13 + $0x178] sm:$0xff] %v5382_v10  ;;  %v5256_v4 = vmul.f32 %v10222_v19, %v4775_v20  ;;  %5094 = vperm.xlu1 %7627, %v3488_v30   ;;  %5509 = vst [vmem:[%s8918_s13 + $0x170] sm:$0xff] %v5381_v45  ;;  %v5255_v11 = vmul.f32 %v10222_v19, %v4770_v17  ;;  %5089 = vperm.xlu0 %7626, %v3487_v36   ;;  %v11586_v10 = vld [vmem:[#allocation74_spill] sm:$0xff]  ;;  %v11587_v45 = vld [vmem:[#allocation75_spill] sm:$0xff] }
 0x883   : > { %v4450_v20 = vmul.f32 %v11586_v10, %v3682_v47  ;;  %v4449_v43 = vmul.f32 %v11587_v45, %v3681_v0  ;;  %v3491_v47 = vld [vmem:[#allocation3 + $0x3a0] sm:$0xff]  ;;  %v3686_v10 = vld [vmem:[%s8869_s24 + $0x1b8] sm:$0xff] }
 0x884   : > { %v5384_v41 = vadd.f32 %v5256_v4, %v4448_v33  ;;  %v5383_v37 = vadd.f32 %v5255_v11, %v4447_v27  ;;  %v3492_v33 = vld [vmem:[#allocation3 + $0x3a8] sm:$0xff]  ;;  %v3683_v27 = vld [vmem:[%s8869_s24 + $0x1a0] sm:$0xff] }
 0x885   : > { %v4785_v50 = vpop.permute.xlu1 %4784  ;;  %v4780_v49 = vpop.permute.xlu0 %4779 }
 0x886   : > { %5512 = vst [vmem:[%s8918_s13 + $0x188] sm:$0xff] %v5384_v41  ;;  %v5258_v30 = vmul.f32 %v10222_v19, %v4785_v50  ;;  %5104 = vperm.xlu1 %7627, %v3490_v40   ;;  %5511 = vst [vmem:[%s8918_s13 + $0x180] sm:$0xff] %v5383_v37  ;;  %v5257_v36 = vmul.f32 %v10222_v19, %v4780_v49  ;;  %5099 = vperm.xlu0 %7626, %v3489_v26   ;;  %v11588_v41 = vld [vmem:[#allocation76_spill] sm:$0xff]  ;;  %v11589_v37 = vld [vmem:[#allocation77_spill] sm:$0xff] }
 0x887   : > { %v4452_v50 = vmul.f32 %v11588_v41, %v3684_v14  ;;  %v4451_v45 = vmul.f32 %v11589_v37, %v3683_v27  ;;  %v3493_v14 = vld [vmem:[#allocation3 + $0x3b0] sm:$0xff]  ;;  %v3688_v41 = vld [vmem:[%s8869_s24 + $0x1c8] sm:$0xff] }
 0x888   : > { %v5386_v4 = vadd.f32 %v5258_v30, %v4450_v20  ;;  %v5385_v17 = vadd.f32 %v5257_v36, %v4449_v43  ;;  %v3494_v20 = vld [vmem:[#allocation3 + $0x3b8] sm:$0xff]  ;;  %v3685_v43 = vld [vmem:[%s8869_s24 + $0x1b0] sm:$0xff] }
 0x889   : > { %v4795_v11 = vpop.permute.xlu1 %4794  ;;  %v4790_v0 = vpop.permute.xlu0 %4789 }
 0x88a   : > { %5514 = vst [vmem:[%s8918_s13 + $0x198] sm:$0xff] %v5386_v4  ;;  %v5260_v40 = vmul.f32 %v10222_v19, %v4795_v11  ;;  %5114 = vperm.xlu1 %7627, %v3492_v33   ;;  %5513 = vst [vmem:[%s8918_s13 + $0x190] sm:$0xff] %v5385_v17  ;;  %v5259_v26 = vmul.f32 %v10222_v19, %v4790_v0  ;;  %5109 = vperm.xlu0 %7626, %v3491_v47   ;;  %v11590_v4 = vld [vmem:[#allocation78_spill] sm:$0xff]  ;;  %v11591_v17 = vld [vmem:[#allocation79_spill] sm:$0xff] }
 0x88b   : > { %v4454_v11 = vmul.f32 %v11590_v4, %v3686_v10  ;;  %v4453_v37 = vmul.f32 %v11591_v17, %v3685_v43  ;;  %v3495_v10 = vld [vmem:[#allocation3 + $0x3c0] sm:$0xff]  ;;  %v11594_v17 = vld [vmem:[#allocation81_spill] sm:$0xff] }
 0x88c   : > { %v5388_v30 = vadd.f32 %v5260_v40, %v4452_v50  ;;  %v5387_v49 = vadd.f32 %v5259_v26, %v4451_v45  ;;  %v3496_v50 = vld [vmem:[#allocation3 + $0x3c8] sm:$0xff]  ;;  %v3687_v45 = vld [vmem:[%s8869_s24 + $0x1c0] sm:$0xff] }
 0x88d   : > { %v4805_v36 = vpop.permute.xlu1 %4804  ;;  %v4800_v27 = vpop.permute.xlu0 %4799  ;;  %v3690_v4 = vld [vmem:[%s8869_s24 + $0x1d8] sm:$0xff] }
 0x88e   : > { %5516 = vst [vmem:[%s8918_s13 + $0x1a8] sm:$0xff] %v5388_v30  ;;  %v5262_v33 = vmul.f32 %v10222_v19, %v4805_v36  ;;  %5124 = vperm.xlu1 %7627, %v3494_v20   ;;  %5515 = vst [vmem:[%s8918_s13 + $0x1a0] sm:$0xff] %v5387_v49  ;;  %v5261_v47 = vmul.f32 %v10222_v19, %v4800_v27  ;;  %5119 = vperm.xlu0 %7626, %v3493_v14   ;;  %v11592_v30 = vld [vmem:[#allocation80_spill] sm:$0xff]  ;;  %v11593_v49 = vld [vmem:[#allocation146_spill] sm:$0xff] }
 0x88f   : > { %v4456_v36 = vmul.f32 %v11592_v30, %v3688_v41  ;;  %v3198_v27 = vcombine.high %v11593_v49, %v11593_v49  ;;  %v4455_v14 = vmul.f32 %v11594_v17, %v3687_v45  ;;  %v3689_v41 = vld [vmem:[%s8869_s24 + $0x1d0] sm:$0xff]  ;;  %v3692_v17 = vld [vmem:[%s8869_s24 + $0x1e8] sm:$0xff] }
 0x890   : > { %v5390_v40 = vadd.f32 %v5262_v33, %v4454_v11  ;;  %v5389_v0 = vadd.f32 %v5261_v47, %v4453_v37  ;;  %v3498_v37 = vld [vmem:[#allocation3 + $0x3d8] sm:$0xff]  ;;  %v3497_v47 = vld [vmem:[#allocation3 + $0x3d0] sm:$0xff] }
 0x891   : > { %v4815_v26 = vpop.permute.xlu1 %4814  ;;  %v4810_v43 = vpop.permute.xlu0 %4809 }
 0x892   : > { %5518 = vst [vmem:[%s8918_s13 + $0x1b8] sm:$0xff] %v5390_v40  ;;  %v5264_v20 = vmul.f32 %v10222_v19, %v4815_v26  ;;  %5134 = vperm.xlu1 %7627, %v3496_v50   ;;  %5517 = vst [vmem:[%s8918_s13 + $0x1b0] sm:$0xff] %v5389_v0  ;;  %v5263_v11 = vmul.f32 %v10222_v19, %v4810_v43  ;;  %5129 = vperm.xlu0 %7626, %v3495_v10   ;;  %v11595_v50 = vld [vmem:[#allocation82_spill] sm:$0xff]  ;;  %v11596_v43 = vld [vmem:[#allocation83_spill] sm:$0xff] }
 0x893   : > { %v4458_v30 = vmul.f32 %v11595_v50, %v3690_v4  ;;  %v10275_v0 = vrot.slane %v3198_v27, %v9988_v63  ;;  %v4457_v10 = vmul.f32 %v11596_v43, %v3689_v41  ;;  %v3691_v4 = vld [vmem:[%s8869_s24 + $0x1e0] sm:$0xff]  ;;  %v3694_v43 = vld [vmem:[%s8869_s24 + $0x1f8] sm:$0xff] }
 0x894   : > { %v5392_v33 = vadd.f32 %v5264_v20, %v4456_v36  ;;  %v5391_v40 = vadd.f32 %v5263_v11, %v4455_v14  ;;  %v3500_v20 = vld [vmem:[#allocation3 + $0x3e8] sm:$0xff]  ;;  %v3499_v11 = vld [vmem:[#allocation3 + $0x3e0] sm:$0xff] }
 0x895   : > { %v4825_v26 = vpop.permute.xlu1 %4824  ;;  %v4820_v45 = vpop.permute.xlu0 %4819 }
 0x896   : > { %5520 = vst [vmem:[%s8918_s13 + $0x1c8] sm:$0xff] %v5392_v33  ;;  %v5266_v49 = vmul.f32 %v10222_v19, %v4825_v26  ;;  %5144 = vperm.xlu1 %7627, %v3498_v37   ;;  %5519 = vst [vmem:[%s8918_s13 + $0x1c0] sm:$0xff] %v5391_v40  ;;  %v5265_v36 = vmul.f32 %v10222_v19, %v4820_v45  ;;  %5139 = vperm.xlu0 %7626, %v3497_v47   ;;  %v11597_v37 = vld [vmem:[#allocation84_spill] sm:$0xff]  ;;  %v11598_v47 = vld [vmem:[#allocation85_spill] sm:$0xff] }
 0x897   : > { %v4460_v50 = vmul.f32 %v11597_v37, %v3692_v17  ;;  %v10287_v40 = vrot.slane %v10275_v0, %v9988_v63  ;;  %v4459_v45 = vmul.f32 %v11598_v47, %v3691_v4  ;;  %v3502_v17 = vld [vmem:[#allocation3 + $0x3f8] sm:$0xff] }
 0x898   : > { %v5394_v14 = vadd.f32 %v5266_v49, %v4458_v30  ;;  %v5393_v33 = vadd.f32 %v5265_v36, %v4457_v10  ;;  %v3693_v49 = vld [vmem:[%s8869_s24 + $0x1f0] sm:$0xff]  ;;  %v3501_v36 = vld [vmem:[#allocation3 + $0x3f0] sm:$0xff]  ;;  %v3696_v47 = vld [vmem:[%s8869_s24 + $0x208] sm:$0xff] }
 0x899   : > { %v4835_v26 = vpop.permute.xlu1 %4834  ;;  %v4830_v41 = vpop.permute.xlu0 %4829 }
 0x89a   : > { %5522 = vst [vmem:[%s8918_s13 + $0x1d8] sm:$0xff] %v5394_v14  ;;  %v5268_v27 = vmul.f32 %v10222_v19, %v4835_v26  ;;  %5154 = vperm.xlu1 %7627, %v3500_v20   ;;  %5521 = vst [vmem:[%s8918_s13 + $0x1d0] sm:$0xff] %v5393_v33  ;;  %v5267_v30 = vmul.f32 %v10222_v19, %v4830_v41  ;;  %5149 = vperm.xlu0 %7626, %v3499_v11   ;;  %v11599_v26 = vld [vmem:[#allocation86_spill] sm:$0xff]  ;;  %v11600_v11 = vld [vmem:[#allocation87_spill] sm:$0xff] }
 0x89b   : > { %v4462_v37 = vmul.f32 %v11599_v26, %v3694_v43  ;;  %v10299_v33 = vrot.slane %v10287_v40, %v10008_v28  ;;  %v4461_v41 = vmul.f32 %v11600_v11, %v3693_v49  ;;  %v3504_v43 = vld [vmem:[#allocation4 + $0x8] sm:$0xff] }
 0x89c   : > { %v5396_v10 = vadd.f32 %v5268_v27, %v4460_v50  ;;  %v5395_v14 = vadd.f32 %v5267_v30, %v4459_v45  ;;  %v3695_v27 = vld [vmem:[%s8869_s24 + $0x200] sm:$0xff]  ;;  %v3503_v30 = vld [vmem:[#allocation4] sm:$0xff] }
 0x89d   : > { %v4845_v20 = vpop.permute.xlu1 %4844  ;;  %v4840_v4 = vpop.permute.xlu0 %4839 }
 0x89e   : > { %5524 = vst [vmem:[%s8918_s13 + $0x1e8] sm:$0xff] %v5396_v10  ;;  %v5270_v8 = vmul.f32 %v10222_v19, %v4845_v20  ;;  %5164 = vperm.xlu1 %7627, %v3502_v17   ;;  %5523 = vst [vmem:[%s8918_s13 + $0x1e0] sm:$0xff] %v5395_v14  ;;  %v5269_v50 = vmul.f32 %v10222_v19, %v4840_v4  ;;  %5159 = vperm.xlu0 %7626, %v3501_v36   ;;  %v11601_v20 = vld [vmem:[#allocation88_spill] sm:$0xff]  ;;  %v11602_v14 = vld [vmem:[#allocation89_spill] sm:$0xff] }
 0x89f   : > { %v4464_v26 = vmul.f32 %v11601_v20, %v3696_v47  ;;  %v4463_v7 = vmul.f32 %v11602_v14, %v3695_v27  ;;  %v3505_v47 = vld [vmem:[#allocation4 + $0x10] sm:$0xff]  ;;  %v3700_v20 = vld [vmem:[%s8869_s24 + $0x228] sm:$0xff] }
 0x8a0   : > { %v5398_v45 = vadd.f32 %v5270_v8, %v4462_v37  ;;  %v5397_v10 = vadd.f32 %v5269_v50, %v4461_v41  ;;  %v3506_v8 = vld [vmem:[#allocation4 + $0x18] sm:$0xff]  ;;  %v3697_v37 = vld [vmem:[%s8869_s24 + $0x210] sm:$0xff] }
 0x8a1   : > { %v4855_v17 = vpop.permute.xlu1 %4854  ;;  %v4850_v11 = vpop.permute.xlu0 %4849 }
 0x8a2   : > { %5526 = vst [vmem:[%s8918_s13 + $0x1f8] sm:$0xff] %v5398_v45  ;;  %v5272_v49 = vmul.f32 %v10299_v33, %v4855_v17  ;;  %5854 = vperm.xlu1 %7627, %v3504_v43   ;;  %5525 = vst [vmem:[%s8918_s13 + $0x1f0] sm:$0xff] %v5397_v10  ;;  %v5271_v36 = vmul.f32 %v10299_v33, %v4850_v11  ;;  %5849 = vperm.xlu0 %7626, %v3503_v30   ;;  %v11603_v45 = vld [vmem:[#allocation90_spill] sm:$0xff]  ;;  %v11604_v10 = vld [vmem:[#allocation91_spill] sm:$0xff] }
 0x8a3   : > { %v4466_v17 = vmul.f32 %v11603_v45, %v3698_v22  ;;  %v4465_v14 = vmul.f32 %v11604_v10, %v3697_v37  ;;  %v3507_v22 = vld [vmem:[#allocation4 + $0x20] sm:$0xff]  ;;  %v3702_v45 = vld [vmem:[%s8869_s24 + $0x238] sm:$0xff] }
 0x8a4   : > { %v5400_v4 = vadd.f32 %v5272_v49, %v4464_v26  ;;  %v5399_v41 = vadd.f32 %v5271_v36, %v4463_v7  ;;  %v3508_v26 = vld [vmem:[#allocation4 + $0x28] sm:$0xff]  ;;  %v3699_v7 = vld [vmem:[%s8869_s24 + $0x220] sm:$0xff] }
 0x8a5   : > { %v4865_v50 = vpop.permute.xlu1 %4864  ;;  %v4860_v27 = vpop.permute.xlu0 %4859 }
 0x8a6   : > { %5528 = vst [vmem:[%s8918_s13 + $0x208] sm:$0xff] %v5400_v4  ;;  %v5274_v43 = vmul.f32 %v10299_v33, %v4865_v50  ;;  %5864 = vperm.xlu1 %7627, %v3506_v8   ;;  %5527 = vst [vmem:[%s8918_s13 + $0x200] sm:$0xff] %v5399_v41  ;;  %v5273_v11 = vmul.f32 %v10299_v33, %v4860_v27  ;;  %5859 = vperm.xlu0 %7626, %v3505_v47   ;;  %v11605_v4 = vld [vmem:[#allocation92_spill] sm:$0xff]  ;;  %v11606_v41 = vld [vmem:[#allocation93_spill] sm:$0xff] }
 0x8a7   : > { %v4468_v50 = vmul.f32 %v11605_v4, %v3700_v20  ;;  %v4467_v10 = vmul.f32 %v11606_v41, %v3699_v7  ;;  %v3509_v20 = vld [vmem:[#allocation4 + $0x30] sm:$0xff]  ;;  %v3704_v4 = vld [vmem:[%s8869_s24 + $0x248] sm:$0xff] }
 0x8a8   : > { %v5402_v30 = vadd.f32 %v5274_v43, %v4466_v17  ;;  %v5401_v49 = vadd.f32 %v5273_v11, %v4465_v14  ;;  %v3510_v17 = vld [vmem:[#allocation4 + $0x38] sm:$0xff]  ;;  %v3701_v14 = vld [vmem:[%s8869_s24 + $0x230] sm:$0xff] }
 0x8a9   : > { %v4875_v36 = vpop.permute.xlu1 %4874  ;;  %v4870_v37 = vpop.permute.xlu0 %4869 }
 0x8aa   : > { %5530 = vst [vmem:[%s8918_s13 + $0x218] sm:$0xff] %v5402_v30  ;;  %v5276_v8 = vmul.f32 %v10299_v33, %v4875_v36  ;;  %5874 = vperm.xlu1 %7627, %v3508_v26   ;;  %5529 = vst [vmem:[%s8918_s13 + $0x210] sm:$0xff] %v5401_v49  ;;  %v5275_v47 = vmul.f32 %v10299_v33, %v4870_v37  ;;  %5869 = vperm.xlu0 %7626, %v3507_v22   ;;  %v11607_v30 = vld [vmem:[#allocation94_spill] sm:$0xff]  ;;  %v11608_v49 = vld [vmem:[#allocation95_spill] sm:$0xff] }
 0x8ab   : > { %v4470_v36 = vmul.f32 %v11607_v30, %v3702_v45  ;;  %v4469_v41 = vmul.f32 %v11608_v49, %v3701_v14  ;;  %v3511_v45 = vld [vmem:[#allocation4 + $0x40] sm:$0xff]  ;;  %v3706_v30 = vld [vmem:[%s8869_s24 + $0x258] sm:$0xff] }
 0x8ac   : > { %v5404_v43 = vadd.f32 %v5276_v8, %v4468_v50  ;;  %v5403_v27 = vadd.f32 %v5275_v47, %v4467_v10  ;;  %v3512_v50 = vld [vmem:[#allocation4 + $0x48] sm:$0xff]  ;;  %v3703_v10 = vld [vmem:[%s8869_s24 + $0x240] sm:$0xff] }
 0x8ad   : > { %v4885_v11 = vpop.permute.xlu1 %4884  ;;  %v4880_v7 = vpop.permute.xlu0 %4879 }
 0x8ae   : > { %5532 = vst [vmem:[%s8918_s13 + $0x228] sm:$0xff] %v5404_v43  ;;  %v5278_v26 = vmul.f32 %v10299_v33, %v4885_v11  ;;  %5884 = vperm.xlu1 %7627, %v3510_v17   ;;  %5531 = vst [vmem:[%s8918_s13 + $0x220] sm:$0xff] %v5403_v27  ;;  %v5277_v22 = vmul.f32 %v10299_v33, %v4880_v7  ;;  %5879 = vperm.xlu0 %7626, %v3509_v20   ;;  %v11609_v43 = vld [vmem:[#allocation96_spill] sm:$0xff]  ;;  %v11610_v27 = vld [vmem:[#allocation97_spill] sm:$0xff] }
 0x8af   : > { %v4472_v11 = vmul.f32 %v11609_v43, %v3704_v4  ;;  %v4471_v49 = vmul.f32 %v11610_v27, %v3703_v10  ;;  %v3513_v4 = vld [vmem:[#allocation4 + $0x50] sm:$0xff]  ;;  %v3708_v27 = vld [vmem:[%s8869_s24 + $0x268] sm:$0xff]  ;;  %v3714_v43 = vld [vmem:[%s8869_s24 + $0x298] sm:$0xff] }
 0x8b0   : > { %v5406_v8 = vadd.f32 %v5278_v26, %v4470_v36  ;;  %v5405_v37 = vadd.f32 %v5277_v22, %v4469_v41  ;;  %v3514_v36 = vld [vmem:[#allocation4 + $0x58] sm:$0xff]  ;;  %v3705_v41 = vld [vmem:[%s8869_s24 + $0x250] sm:$0xff] }
 0x8b1   : > { %v4895_v47 = vpop.permute.xlu1 %4894  ;;  %v4890_v14 = vpop.permute.xlu0 %4889 }
 0x8b2   : > { %5534 = vst [vmem:[%s8918_s13 + $0x238] sm:$0xff] %v5406_v8  ;;  %v5280_v17 = vmul.f32 %v10299_v33, %v4895_v47  ;;  %5894 = vperm.xlu1 %7627, %v3512_v50   ;;  %5533 = vst [vmem:[%s8918_s13 + $0x230] sm:$0xff] %v5405_v37  ;;  %v5279_v20 = vmul.f32 %v10299_v33, %v4890_v14  ;;  %5889 = vperm.xlu0 %7626, %v3511_v45   ;;  %v11611_v8 = vld [vmem:[#allocation98_spill] sm:$0xff]  ;;  %v11612_v14 = vld [vmem:[#allocation99_spill] sm:$0xff] }
 0x8b3   : > { %v4474_v47 = vmul.f32 %v11611_v8, %v3706_v30  ;;  %v3214_v37 = vcombine.high %v10275_v0, %v10275_v0  ;;  %v4473_v45 = vmul.f32 %v11612_v14, %v3705_v41  ;;  %v3707_v30 = vld [vmem:[%s8869_s24 + $0x260] sm:$0xff]  ;;  %v3710_v14 = vld [vmem:[%s8869_s24 + $0x278] sm:$0xff] }
 0x8b4   : > { %v5408_v26 = vadd.f32 %v5280_v17, %v4472_v11  ;;  %v5407_v7 = vadd.f32 %v5279_v20, %v4471_v49  ;;  %v3516_v49 = vld [vmem:[#allocation4 + $0x68] sm:$0xff]  ;;  %v3515_v20 = vld [vmem:[#allocation4 + $0x60] sm:$0xff] }
 0x8b5   : > { %v4905_v22 = vpop.permute.xlu1 %4904  ;;  %v4900_v10 = vpop.permute.xlu0 %4899 }
 0x8b6   : > { %5536 = vst [vmem:[%s8918_s13 + $0x248] sm:$0xff] %v5408_v26  ;;  %v5282_v50 = vmul.f32 %v10299_v33, %v4905_v22  ;;  %5904 = vperm.xlu1 %7627, %v3514_v36   ;;  %5535 = vst [vmem:[%s8918_s13 + $0x240] sm:$0xff] %v5407_v7  ;;  %v5281_v11 = vmul.f32 %v10299_v33, %v4900_v10  ;;  %5899 = vperm.xlu0 %7626, %v3513_v4   ;;  %v11613_v36 = vld [vmem:[#allocation100_spill] sm:$0xff]  ;;  %v11614_v10 = vld [vmem:[#allocation101_spill] sm:$0xff] }
 0x8b7   : > { %v4476_v8 = vmul.f32 %v11613_v36, %v3708_v27  ;;  %v10360_v7 = vrot.slane %v3214_v37, %v9988_v63  ;;  %v4475_v4 = vmul.f32 %v11614_v10, %v3707_v30  ;;  %v3709_v27 = vld [vmem:[%s8869_s24 + $0x270] sm:$0xff] }
 0x8b8   : > { %v5410_v17 = vadd.f32 %v5282_v50, %v4474_v47  ;;  %v5409_v26 = vadd.f32 %v5281_v11, %v4473_v45  ;;  %v3518_v50 = vld [vmem:[#allocation4 + $0x78] sm:$0xff]  ;;  %v3517_v11 = vld [vmem:[#allocation4 + $0x70] sm:$0xff] }
 0x8b9   : > { %v4915_v22 = vpop.permute.xlu1 %4914  ;;  %v4910_v41 = vpop.permute.xlu0 %4909  ;;  %v10372_v30 = vrot.slane %v10360_v7, %v10008_v28 }
 0x8ba   : > { %5538 = vst [vmem:[%s8918_s13 + $0x258] sm:$0xff] %v5410_v17  ;;  %v5284_v0 = vmul.f32 %v10299_v33, %v4915_v22  ;;  %5914 = vperm.xlu1 %7627, %v3516_v49   ;;  %5537 = vst [vmem:[%s8918_s13 + $0x250] sm:$0xff] %v5409_v26  ;;  %v5283_v47 = vmul.f32 %v10299_v33, %v4910_v41  ;;  %5909 = vperm.xlu0 %7626, %v3515_v20   ;;  %v11615_v49 = vld [vmem:[#allocation102_spill] sm:$0xff]  ;;  %v11616_v20 = vld [vmem:[#allocation103_spill] sm:$0xff] }
 0x8bb   : > { %v4478_v36 = vmul.f32 %v11615_v49, %v3710_v14  ;;  %v4477_v26 = vmul.f32 %v11616_v20, %v3709_v27  ;;  %v3712_v41 = vld [vmem:[%s8869_s24 + $0x288] sm:$0xff]  ;;  %v3520_v14 = vld [vmem:[#allocation4 + $0x88] sm:$0xff] }
 0x8bc   : > { %v5412_v45 = vadd.f32 %v5284_v0, %v4476_v8  ;;  %v5411_v17 = vadd.f32 %v5283_v47, %v4475_v4  ;;  %v3711_v0 = vld [vmem:[%s8869_s24 + $0x280] sm:$0xff]  ;;  %v3519_v47 = vld [vmem:[#allocation4 + $0x80] sm:$0xff] }
 0x8bd   : > { %v4925_v22 = vpop.permute.xlu1 %4924  ;;  %v4920_v37 = vpop.permute.xlu0 %4919 }
 0x8be   : > { %5540 = vst [vmem:[%s8918_s13 + $0x268] sm:$0xff] %v5412_v45  ;;  %v5286_v63 = vmul.f32 %v10299_v33, %v4925_v22  ;;  %5924 = vperm.xlu1 %7627, %v3518_v50   ;;  %5539 = vst [vmem:[%s8918_s13 + $0x260] sm:$0xff] %v5411_v17  ;;  %v5285_v8 = vmul.f32 %v10299_v33, %v4920_v37  ;;  %5919 = vperm.xlu0 %7626, %v3517_v11   ;;  %v11617_v22 = vld [vmem:[#allocation104_spill] sm:$0xff]  ;;  %v11618_v17 = vld [vmem:[#allocation105_spill] sm:$0xff] }
 0x8bf   : > { %v4480_v49 = vmul.f32 %v11617_v22, %v3712_v41  ;;  %v4479_v10 = vmul.f32 %v11618_v17, %v3711_v0  ;;  %v3716_v22 = vld [vmem:[%s8869_s24 + $0x2a8] sm:$0xff] }
 0x8c0   : > { %v5414_v4 = vadd.f32 %v5286_v63, %v4478_v36  ;;  %v5413_v45 = vadd.f32 %v5285_v8, %v4477_v26  ;;  %v3522_v36 = vld [vmem:[#allocation4 + $0x98] sm:$0xff]  ;;  %v3713_v63 = vld [vmem:[%s8869_s24 + $0x290] sm:$0xff]  ;;  %v3521_v26 = vld [vmem:[#allocation4 + $0x90] sm:$0xff] }
 0x8c1   : > { %v4935_v50 = vpop.permute.xlu1 %4934  ;;  %v4930_v20 = vpop.permute.xlu0 %4929 }
 0x8c2   : > { %5542 = vst [vmem:[%s8918_s13 + $0x278] sm:$0xff] %v5414_v4  ;;  %v5288_v27 = vmul.f32 %v10372_v30, %v4935_v50  ;;  %5934 = vperm.xlu1 %7627, %v3520_v14   ;;  %5541 = vst [vmem:[%s8918_s13 + $0x270] sm:$0xff] %v5413_v45  ;;  %v5287_v11 = vmul.f32 %v10372_v30, %v4930_v20  ;;  %5929 = vperm.xlu0 %7626, %v3519_v47   ;;  %v11619_v4 = vld [vmem:[#allocation106_spill] sm:$0xff]  ;;  %v11620_v45 = vld [vmem:[#allocation107_spill] sm:$0xff] }
 0x8c3   : > { %v4482_v50 = vmul.f32 %v11619_v4, %v3714_v43  ;;  %v4481_v17 = vmul.f32 %v11620_v45, %v3713_v63  ;;  %v3523_v43 = vld [vmem:[#allocation4 + $0xa0] sm:$0xff]  ;;  %v3718_v4 = vld [vmem:[%s8869_s24 + $0x2b8] sm:$0xff] }
 0x8c4   : > { %v5416_v37 = vadd.f32 %v5288_v27, %v4480_v49  ;;  %v5415_v41 = vadd.f32 %v5287_v11, %v4479_v10  ;;  %v3524_v49 = vld [vmem:[#allocation4 + $0xa8] sm:$0xff]  ;;  %v3715_v10 = vld [vmem:[%s8869_s24 + $0x2a0] sm:$0xff] }
 0x8c5   : > { %v4945_v8 = vpop.permute.xlu1 %4944  ;;  %v4940_v0 = vpop.permute.xlu0 %4939 }
 0x8c6   : > { %5544 = vst [vmem:[%s8918_s13 + $0x288] sm:$0xff] %v5416_v37  ;;  %v5290_v14 = vmul.f32 %v10372_v30, %v4945_v8  ;;  %5944 = vperm.xlu1 %7627, %v3522_v36   ;;  %5543 = vst [vmem:[%s8918_s13 + $0x280] sm:$0xff] %v5415_v41  ;;  %v5289_v20 = vmul.f32 %v10372_v30, %v4940_v0  ;;  %5939 = vperm.xlu0 %7626, %v3521_v26   ;;  %v11621_v37 = vld [vmem:[#allocation108_spill] sm:$0xff]  ;;  %v11622_v41 = vld [vmem:[#allocation109_spill] sm:$0xff] }
 0x8c7   : > { %v4484_v8 = vmul.f32 %v11621_v37, %v3716_v22  ;;  %v4483_v45 = vmul.f32 %v11622_v41, %v3715_v10  ;;  %v3525_v22 = vld [vmem:[#allocation4 + $0xb0] sm:$0xff]  ;;  %v3720_v37 = vld [vmem:[%s8869_s24 + $0x2c8] sm:$0xff] }
 0x8c8   : > { %v5418_v47 = vadd.f32 %v5290_v14, %v4482_v50  ;;  %v5417_v27 = vadd.f32 %v5289_v20, %v4481_v17  ;;  %v3526_v50 = vld [vmem:[#allocation4 + $0xb8] sm:$0xff]  ;;  %v3717_v17 = vld [vmem:[%s8869_s24 + $0x2b0] sm:$0xff] }
 0x8c9   : > { %v4955_v11 = vpop.permute.xlu1 %4954  ;;  %v4950_v63 = vpop.permute.xlu0 %4949 }
 0x8ca   : > { %5546 = vst [vmem:[%s8918_s13 + $0x298] sm:$0xff] %v5418_v47  ;;  %v5292_v36 = vmul.f32 %v10372_v30, %v4955_v11  ;;  %5954 = vperm.xlu1 %7627, %v3524_v49   ;;  %5545 = vst [vmem:[%s8918_s13 + $0x290] sm:$0xff] %v5417_v27  ;;  %v5291_v26 = vmul.f32 %v10372_v30, %v4950_v63  ;;  %5949 = vperm.xlu0 %7626, %v3523_v43   ;;  %v11623_v47 = vld [vmem:[#allocation110_spill] sm:$0xff]  ;;  %v11624_v27 = vld [vmem:[#allocation111_spill] sm:$0xff] }
 0x8cb   : > { %v4486_v11 = vmul.f32 %v11623_v47, %v3718_v4  ;;  %v4485_v41 = vmul.f32 %v11624_v27, %v3717_v17  ;;  %v3527_v4 = vld [vmem:[#allocation4 + $0xc0] sm:$0xff]  ;;  %v3722_v47 = vld [vmem:[%s8869_s24 + $0x2d8] sm:$0xff] }
 0x8cc   : > { %v5420_v14 = vadd.f32 %v5292_v36, %v4484_v8  ;;  %v5419_v0 = vadd.f32 %v5291_v26, %v4483_v45  ;;  %v3528_v8 = vld [vmem:[#allocation4 + $0xc8] sm:$0xff]  ;;  %v3719_v45 = vld [vmem:[%s8869_s24 + $0x2c0] sm:$0xff] }
 0x8cd   : > { %v4965_v20 = vpop.permute.xlu1 %4964  ;;  %v4960_v10 = vpop.permute.xlu0 %4959 }
 0x8ce   : > { %5548 = vst [vmem:[%s8918_s13 + $0x2a8] sm:$0xff] %v5420_v14  ;;  %v5294_v49 = vmul.f32 %v10372_v30, %v4965_v20  ;;  %5964 = vperm.xlu1 %7627, %v3526_v50   ;;  %5547 = vst [vmem:[%s8918_s13 + $0x2a0] sm:$0xff] %v5419_v0  ;;  %v5293_v43 = vmul.f32 %v10372_v30, %v4960_v10  ;;  %5959 = vperm.xlu0 %7626, %v3525_v22   ;;  %v11625_v14 = vld [vmem:[#allocation112_spill] sm:$0xff]  ;;  %v11626_v0 = vld [vmem:[#allocation113_spill] sm:$0xff] }
 0x8cf   : > { %v4488_v20 = vmul.f32 %v11625_v14, %v3720_v37  ;;  %v4487_v27 = vmul.f32 %v11626_v0, %v3719_v45  ;;  %v3529_v37 = vld [vmem:[#allocation4 + $0xd0] sm:$0xff]  ;;  %v3724_v14 = vld [vmem:[%s8869_s24 + $0x2e8] sm:$0xff] }
 0x8d0   : > { %v5422_v36 = vadd.f32 %v5294_v49, %v4486_v11  ;;  %v5421_v63 = vadd.f32 %v5293_v43, %v4485_v41  ;;  %v3530_v11 = vld [vmem:[#allocation4 + $0xd8] sm:$0xff]  ;;  %v3721_v41 = vld [vmem:[%s8869_s24 + $0x2d0] sm:$0xff] }
 0x8d1   : > { %v4975_v26 = vpop.permute.xlu1 %4974  ;;  %v4970_v17 = vpop.permute.xlu0 %4969 }
 0x8d2   : > { %5550 = vst [vmem:[%s8918_s13 + $0x2b8] sm:$0xff] %v5422_v36  ;;  %v5296_v50 = vmul.f32 %v10372_v30, %v4975_v26  ;;  %5974 = vperm.xlu1 %7627, %v3528_v8   ;;  %5549 = vst [vmem:[%s8918_s13 + $0x2b0] sm:$0xff] %v5421_v63  ;;  %v5295_v22 = vmul.f32 %v10372_v30, %v4970_v17  ;;  %5969 = vperm.xlu0 %7626, %v3527_v4   ;;  %v11627_v36 = vld [vmem:[#allocation114_spill] sm:$0xff]  ;;  %v11628_v63 = vld [vmem:[#allocation115_spill] sm:$0xff] }
 0x8d3   : > { %v4490_v26 = vmul.f32 %v11627_v36, %v3722_v47  ;;  %v4489_v0 = vmul.f32 %v11628_v63, %v3721_v41  ;;  %v3531_v47 = vld [vmem:[#allocation4 + $0xe0] sm:$0xff]  ;;  %v3726_v63 = vld [vmem:[%s8869_s24 + $0x2f8] sm:$0xff] }
 0x8d4   : > { %v5424_v49 = vadd.f32 %v5296_v50, %v4488_v20  ;;  %v5423_v10 = vadd.f32 %v5295_v22, %v4487_v27  ;;  %v3532_v20 = vld [vmem:[#allocation4 + $0xe8] sm:$0xff]  ;;  %v3723_v27 = vld [vmem:[%s8869_s24 + $0x2e0] sm:$0xff] }
 0x8d5   : > { %v4985_v43 = vpop.permute.xlu1 %4984  ;;  %v4980_v45 = vpop.permute.xlu0 %4979  ;;  %v3730_v36 = vld [vmem:[%s8869_s24 + $0x318] sm:$0xff] }
 0x8d6   : > { %5552 = vst [vmem:[%s8918_s13 + $0x2c8] sm:$0xff] %v5424_v49  ;;  %v5298_v8 = vmul.f32 %v10372_v30, %v4985_v43  ;;  %5984 = vperm.xlu1 %7627, %v3530_v11   ;;  %5551 = vst [vmem:[%s8918_s13 + $0x2c0] sm:$0xff] %v5423_v10  ;;  %v5297_v4 = vmul.f32 %v10372_v30, %v4980_v45  ;;  %5979 = vperm.xlu0 %7626, %v3529_v37   ;;  %v11629_v49 = vld [vmem:[#allocation116_spill] sm:$0xff]  ;;  %v11630_v45 = vld [vmem:[#allocation117_spill] sm:$0xff] }
 0x8d7   : > { %v4492_v43 = vmul.f32 %v11629_v49, %v3724_v14  ;;  %v3244_v10 = vcombine.high %v10287_v40, %v10287_v40  ;;  %v4491_v37 = vmul.f32 %v11630_v45, %v3723_v27  ;;  %v3725_v14 = vld [vmem:[%s8869_s24 + $0x2f0] sm:$0xff]  ;;  %v3728_v45 = vld [vmem:[%s8869_s24 + $0x308] sm:$0xff] }
 0x8d8   : > { %v5426_v50 = vadd.f32 %v5298_v8, %v4490_v26  ;;  %v5425_v17 = vadd.f32 %v5297_v4, %v4489_v0  ;;  %v3534_v0 = vld [vmem:[#allocation4 + $0xf8] sm:$0xff]  ;;  %v3533_v4 = vld [vmem:[#allocation4 + $0xf0] sm:$0xff] }
 0x8d9   : > { %v4995_v22 = vpop.permute.xlu1 %4994  ;;  %v4990_v41 = vpop.permute.xlu0 %4989 }
 0x8da   : > { %5554 = vst [vmem:[%s8918_s13 + $0x2d8] sm:$0xff] %v5426_v50  ;;  %v5300_v11 = vmul.f32 %v10372_v30, %v4995_v22  ;;  %5994 = vperm.xlu1 %7627, %v3532_v20   ;;  %5553 = vst [vmem:[%s8918_s13 + $0x2d0] sm:$0xff] %v5425_v17  ;;  %v5299_v26 = vmul.f32 %v10372_v30, %v4990_v41  ;;  %5989 = vperm.xlu0 %7626, %v3531_v47   ;;  %v11631_v20 = vld [vmem:[#allocation118_spill] sm:$0xff]  ;;  %v11632_v41 = vld [vmem:[#allocation119_spill] sm:$0xff] }
 0x8db   : > { %v4494_v49 = vmul.f32 %v11631_v20, %v3726_v63  ;;  %v10441_v17 = vrot.slane %v3244_v10, %v10008_v28  ;;  %v4493_v47 = vmul.f32 %v11632_v41, %v3725_v14  ;;  %v3727_v63 = vld [vmem:[%s8869_s24 + $0x300] sm:$0xff] }
 0x8dc   : > { %v5428_v8 = vadd.f32 %v5300_v11, %v4492_v43  ;;  %v5427_v50 = vadd.f32 %v5299_v26, %v4491_v37  ;;  %v3536_v11 = vld [vmem:[#allocation4 + $0x108] sm:$0xff]  ;;  %v3535_v26 = vld [vmem:[#allocation4 + $0x100] sm:$0xff] }
 0x8dd   : > { %v5005_v22 = vpop.permute.xlu1 %5004  ;;  %v5000_v27 = vpop.permute.xlu0 %4999 }
 0x8de   : > { %5556 = vst [vmem:[%s8918_s13 + $0x2e8] sm:$0xff] %v5428_v8  ;;  %v5302_v40 = vmul.f32 %v10372_v30, %v5005_v22  ;;  %6004 = vperm.xlu1 %7627, %v3534_v0   ;;  %5555 = vst [vmem:[%s8918_s13 + $0x2e0] sm:$0xff] %v5427_v50  ;;  %v5301_v43 = vmul.f32 %v10372_v30, %v5000_v27  ;;  %5999 = vperm.xlu0 %7626, %v3533_v4   ;;  %v11633_v0 = vld [vmem:[#allocation120_spill] sm:$0xff]  ;;  %v11634_v50 = vld [vmem:[#allocation121_spill] sm:$0xff] }
 0x8df   : > { %v4496_v20 = vmul.f32 %v11633_v0, %v3728_v45  ;;  %v4495_v41 = vmul.f32 %v11634_v50, %v3727_v63  ;;  %v3537_v45 = vld [vmem:[#allocation4 + $0x110] sm:$0xff]  ;;  %v3732_v0 = vld [vmem:[%s8869_s24 + $0x328] sm:$0xff] }
 0x8e0   : > { %v5430_v37 = vadd.f32 %v5302_v40, %v4494_v49  ;;  %v5429_v8 = vadd.f32 %v5301_v43, %v4493_v47  ;;  %v3538_v49 = vld [vmem:[#allocation4 + $0x118] sm:$0xff]  ;;  %v3729_v40 = vld [vmem:[%s8869_s24 + $0x310] sm:$0xff] }
 0x8e1   : > { %v5015_v22 = vpop.permute.xlu1 %5014  ;;  %v5010_v14 = vpop.permute.xlu0 %5009 }
 0x8e2   : > { %5558 = vst [vmem:[%s8918_s13 + $0x2f8] sm:$0xff] %v5430_v37  ;;  %v5304_v10 = vmul.f32 %v10441_v17, %v5015_v22  ;;  %6014 = vperm.xlu1 %7627, %v3536_v11   ;;  %5557 = vst [vmem:[%s8918_s13 + $0x2f0] sm:$0xff] %v5429_v8  ;;  %v5303_v4 = vmul.f32 %v10441_v17, %v5010_v14  ;;  %6009 = vperm.xlu0 %7626, %v3535_v26   ;;  %v11635_v37 = vld [vmem:[#allocation122_spill] sm:$0xff]  ;;  %v11636_v8 = vld [vmem:[#allocation123_spill] sm:$0xff] }
 0x8e3   : > { %v4498_v22 = vmul.f32 %v11635_v37, %v3730_v36  ;;  %v4497_v50 = vmul.f32 %v11636_v8, %v3729_v40  ;;  %v3539_v36 = vld [vmem:[#allocation4 + $0x120] sm:$0xff]  ;;  %v3734_v37 = vld [vmem:[%s8869_s24 + $0x338] sm:$0xff] }
 0x8e4   : > { %v5432_v27 = vadd.f32 %v5304_v10, %v4496_v20  ;;  %v5431_v47 = vadd.f32 %v5303_v4, %v4495_v41  ;;  %v3540_v20 = vld [vmem:[#allocation4 + $0x128] sm:$0xff]  ;;  %v3731_v41 = vld [vmem:[%s8869_s24 + $0x320] sm:$0xff] }
 0x8e5   : > { %v5025_v43 = vpop.permute.xlu1 %5024  ;;  %v5020_v63 = vpop.permute.xlu0 %5019 }
 0x8e6   : > { %5560 = vst [vmem:[%s8918_s13 + $0x308] sm:$0xff] %v5432_v27  ;;  %v5306_v11 = vmul.f32 %v10441_v17, %v5025_v43  ;;  %6024 = vperm.xlu1 %7627, %v3538_v49   ;;  %5559 = vst [vmem:[%s8918_s13 + $0x300] sm:$0xff] %v5431_v47  ;;  %v5305_v26 = vmul.f32 %v10441_v17, %v5020_v63  ;;  %6019 = vperm.xlu0 %7626, %v3537_v45   ;;  %v11637_v27 = vld [vmem:[#allocation124_spill] sm:$0xff]  ;;  %v11638_v47 = vld [vmem:[#allocation125_spill] sm:$0xff] }
 0x8e7   : > { %v4500_v43 = vmul.f32 %v11637_v27, %v3732_v0  ;;  %v4499_v8 = vmul.f32 %v11638_v47, %v3731_v41  ;;  %v3541_v0 = vld [vmem:[#allocation4 + $0x130] sm:$0xff]  ;;  %v3736_v27 = vld [vmem:[%s8869_s24 + $0x348] sm:$0xff] }
 0x8e8   : > { %v5434_v10 = vadd.f32 %v5306_v11, %v4498_v22  ;;  %v5433_v14 = vadd.f32 %v5305_v26, %v4497_v50  ;;  %v3542_v22 = vld [vmem:[#allocation4 + $0x138] sm:$0xff]  ;;  %v3733_v50 = vld [vmem:[%s8869_s24 + $0x330] sm:$0xff] }
 0x8e9   : > { %v5035_v4 = vpop.permute.xlu1 %5034  ;;  %v5030_v40 = vpop.permute.xlu0 %5029 }
 0x8ea   : > { %5562 = vst [vmem:[%s8918_s13 + $0x318] sm:$0xff] %v5434_v10  ;;  %v5308_v49 = vmul.f32 %v10441_v17, %v5035_v4  ;;  %6034 = vperm.xlu1 %7627, %v3540_v20   ;;  %5561 = vst [vmem:[%s8918_s13 + $0x310] sm:$0xff] %v5433_v14  ;;  %v5307_v45 = vmul.f32 %v10441_v17, %v5030_v40  ;;  %6029 = vperm.xlu0 %7626, %v3539_v36   ;;  %v11639_v10 = vld [vmem:[#allocation126_spill] sm:$0xff]  ;;  %v11640_v14 = vld [vmem:[#allocation127_spill] sm:$0xff] }
 0x8eb   : > { %v4502_v4 = vmul.f32 %v11639_v10, %v3734_v37  ;;  %v4501_v47 = vmul.f32 %v11640_v14, %v3733_v50  ;;  %v3543_v37 = vld [vmem:[#allocation4 + $0x140] sm:$0xff]  ;;  %v3738_v10 = vld [vmem:[%s8869_s24 + $0x358] sm:$0xff] }
 0x8ec   : > { %v5436_v11 = vadd.f32 %v5308_v49, %v4500_v43  ;;  %v5435_v63 = vadd.f32 %v5307_v45, %v4499_v8  ;;  %v3544_v43 = vld [vmem:[#allocation4 + $0x148] sm:$0xff]  ;;  %v3735_v8 = vld [vmem:[%s8869_s24 + $0x340] sm:$0xff] }
 0x8ed   : > { %v5045_v26 = vpop.permute.xlu1 %5044  ;;  %v5040_v41 = vpop.permute.xlu0 %5039 }
 0x8ee   : > { %5564 = vst [vmem:[%s8918_s13 + $0x328] sm:$0xff] %v5436_v11  ;;  %v5310_v20 = vmul.f32 %v10441_v17, %v5045_v26  ;;  %6044 = vperm.xlu1 %7627, %v3542_v22   ;;  %5563 = vst [vmem:[%s8918_s13 + $0x320] sm:$0xff] %v5435_v63  ;;  %v5309_v36 = vmul.f32 %v10441_v17, %v5040_v41  ;;  %6039 = vperm.xlu0 %7626, %v3541_v0   ;;  %v11641_v11 = vld [vmem:[#allocation128_spill] sm:$0xff]  ;;  %v11642_v63 = vld [vmem:[#allocation129_spill] sm:$0xff] }
 0x8ef   : > { %v4504_v26 = vmul.f32 %v11641_v11, %v3736_v27  ;;  %v4503_v14 = vmul.f32 %v11642_v63, %v3735_v8  ;;  %v3545_v27 = vld [vmem:[#allocation4 + $0x150] sm:$0xff]  ;;  %v3740_v11 = vld [vmem:[%s8869_s24 + $0x368] sm:$0xff] }
 0x8f0   : > { %v5438_v49 = vadd.f32 %v5310_v20, %v4502_v4  ;;  %v5437_v40 = vadd.f32 %v5309_v36, %v4501_v47  ;;  %v3546_v4 = vld [vmem:[#allocation4 + $0x158] sm:$0xff]  ;;  %v3737_v47 = vld [vmem:[%s8869_s24 + $0x350] sm:$0xff] }
 0x8f1   : > { %v5055_v45 = vpop.permute.xlu1 %5054  ;;  %v5050_v50 = vpop.permute.xlu0 %5049 }
 0x8f2   : > { %5566 = vst [vmem:[%s8918_s13 + $0x338] sm:$0xff] %v5438_v49  ;;  %v5312_v22 = vmul.f32 %v10441_v17, %v5055_v45  ;;  %6054 = vperm.xlu1 %7627, %v3544_v43   ;;  %5565 = vst [vmem:[%s8918_s13 + $0x330] sm:$0xff] %v5437_v40  ;;  %v5311_v0 = vmul.f32 %v10441_v17, %v5050_v50  ;;  %6049 = vperm.xlu0 %7626, %v3543_v37   ;;  %v11643_v49 = vld [vmem:[#allocation130_spill] sm:$0xff]  ;;  %v11644_v40 = vld [vmem:[#allocation131_spill] sm:$0xff] }
 0x8f3   : > { %v4506_v45 = vmul.f32 %v11643_v49, %v3738_v10  ;;  %v4505_v63 = vmul.f32 %v11644_v40, %v3737_v47  ;;  %v3547_v10 = vld [vmem:[#allocation4 + $0x160] sm:$0xff]  ;;  %v3742_v40 = vld [vmem:[%s8869_s24 + $0x378] sm:$0xff] }
 0x8f4   : > { %v5440_v20 = vadd.f32 %v5312_v22, %v4504_v26  ;;  %v5439_v41 = vadd.f32 %v5311_v0, %v4503_v14  ;;  %v3548_v26 = vld [vmem:[#allocation4 + $0x168] sm:$0xff]  ;;  %v3739_v14 = vld [vmem:[%s8869_s24 + $0x360] sm:$0xff] }
 0x8f5   : > { %v5065_v36 = vpop.permute.xlu1 %5064  ;;  %v5060_v8 = vpop.permute.xlu0 %5059 }
 0x8f6   : > { %5568 = vst [vmem:[%s8918_s13 + $0x348] sm:$0xff] %v5440_v20  ;;  %v5314_v43 = vmul.f32 %v10441_v17, %v5065_v36  ;;  %6064 = vperm.xlu1 %7627, %v3546_v4   ;;  %5567 = vst [vmem:[%s8918_s13 + $0x340] sm:$0xff] %v5439_v41  ;;  %v5313_v37 = vmul.f32 %v10441_v17, %v5060_v8  ;;  %6059 = vperm.xlu0 %7626, %v3545_v27   ;;  %v11645_v20 = vld [vmem:[#allocation132_spill] sm:$0xff]  ;;  %v11646_v8 = vld [vmem:[#allocation133_spill] sm:$0xff] }
 0x8f7   : > { %v4508_v36 = vmul.f32 %v11645_v20, %v3740_v11  ;;  %v3246_v41 = vcombine.high %v10360_v7, %v10360_v7  ;;  %v4507_v27 = vmul.f32 %v11646_v8, %v3739_v14  ;;  %v3741_v11 = vld [vmem:[%s8869_s24 + $0x370] sm:$0xff]  ;;  %v3744_v8 = vld [vmem:[%s8869_s24 + $0x388] sm:$0xff] }
 0x8f8   : > { %v5442_v22 = vadd.f32 %v5314_v43, %v4506_v45  ;;  %v5441_v50 = vadd.f32 %v5313_v37, %v4505_v63  ;;  %v3550_v63 = vld [vmem:[#allocation4 + $0x178] sm:$0xff]  ;;  %v3549_v37 = vld [vmem:[#allocation4 + $0x170] sm:$0xff] }
 0x8f9   : > { %v5075_v0 = vpop.permute.xlu1 %5074  ;;  %v5070_v47 = vpop.permute.xlu0 %5069 }
 0x8fa   : > { %5570 = vst [vmem:[%s8918_s13 + $0x358] sm:$0xff] %v5442_v22  ;;  %v5316_v4 = vmul.f32 %v10441_v17, %v5075_v0  ;;  %6074 = vperm.xlu1 %7627, %v3548_v26   ;;  %5569 = vst [vmem:[%s8918_s13 + $0x350] sm:$0xff] %v5441_v50  ;;  %v5315_v45 = vmul.f32 %v10441_v17, %v5070_v47  ;;  %6069 = vperm.xlu0 %7626, %v3547_v10   ;;  %v11647_v26 = vld [vmem:[#allocation134_spill] sm:$0xff]  ;;  %v11648_v47 = vld [vmem:[#allocation135_spill] sm:$0xff] }
 0x8fb   : > { %v4510_v20 = vmul.f32 %v11647_v26, %v3742_v40  ;;  %v10510_v50 = vrot.slane %v3246_v41, %v10008_v28  ;;  %v4509_v10 = vmul.f32 %v11648_v47, %v3741_v11  ;;  %v3743_v40 = vld [vmem:[%s8869_s24 + $0x380] sm:$0xff]  ;;  %v11650_v11 = vld [vmem:[#allocation137_spill] sm:$0xff] }
 0x8fc   : > { %v5444_v43 = vadd.f32 %v5316_v4, %v4508_v36  ;;  %v5443_v22 = vadd.f32 %v5315_v45, %v4507_v27  ;;  %v3552_v4 = vld [vmem:[#allocation4 + $0x188] sm:$0xff]  ;;  %v3551_v45 = vld [vmem:[#allocation4 + $0x180] sm:$0xff] }
 0x8fd   : > { %v5085_v0 = vpop.permute.xlu1 %5084  ;;  %v5080_v14 = vpop.permute.xlu0 %5079  ;;  %v3746_v47 = vld [vmem:[%s8869_s24 + $0x398] sm:$0xff] }
 0x8fe   : > { %5572 = vst [vmem:[%s8918_s13 + $0x368] sm:$0xff] %v5444_v43  ;;  %v5318_v7 = vmul.f32 %v10441_v17, %v5085_v0  ;;  %6084 = vperm.xlu1 %7627, %v3550_v63   ;;  %5571 = vst [vmem:[%s8918_s13 + $0x360] sm:$0xff] %v5443_v22  ;;  %v5317_v36 = vmul.f32 %v10441_v17, %v5080_v14  ;;  %6079 = vperm.xlu0 %7626, %v3549_v37   ;;  %v11649_v63 = vld [vmem:[#allocation136_spill] sm:$0xff] }
 0x8ff   : > { %v4512_v26 = vmul.f32 %v11649_v63, %v3744_v8  ;;  %v4511_v22 = vmul.f32 %v11650_v11, %v3743_v40  ;;  %v3553_v8 = vld [vmem:[#allocation4 + $0x190] sm:$0xff]  ;;  %v3748_v63 = vld [vmem:[%s8869_s24 + $0x3a8] sm:$0xff] }
 0x900   : > { %v5446_v27 = vadd.f32 %v5318_v7, %v4510_v20  ;;  %v5445_v43 = vadd.f32 %v5317_v36, %v4509_v10  ;;  %v3554_v20 = vld [vmem:[#allocation4 + $0x198] sm:$0xff]  ;;  %v3745_v7 = vld [vmem:[%s8869_s24 + $0x390] sm:$0xff] }
 0x901   : > { %v5095_v0 = vpop.permute.xlu1 %5094  ;;  %v5090_v41 = vpop.permute.xlu0 %5089 }
 0x902   : > { %5574 = vst [vmem:[%s8918_s13 + $0x378] sm:$0xff] %v5446_v27  ;;  %v5320_v28 = vmul.f32 %v10510_v50, %v5095_v0  ;;  %6094 = vperm.xlu1 %7627, %v3552_v4   ;;  %5573 = vst [vmem:[%s8918_s13 + $0x370] sm:$0xff] %v5445_v43  ;;  %v5319_v37 = vmul.f32 %v10510_v50, %v5090_v41  ;;  %6089 = vperm.xlu0 %7626, %v3551_v45   ;;  %v11651_v27 = vld [vmem:[#allocation138_spill] sm:$0xff]  ;;  %v11652_v43 = vld [vmem:[#allocation139_spill] sm:$0xff] }
 0x903   : > { %v4514_v0 = vmul.f32 %v11651_v27, %v3746_v47  ;;  %v4513_v11 = vmul.f32 %v11652_v43, %v3745_v7  ;;  %v3555_v47 = vld [vmem:[#allocation4 + $0x1a0] sm:$0xff]  ;;  %v3750_v27 = vld [vmem:[%s8869_s24 + $0x3b8] sm:$0xff] }
 0x904   : > { %v5448_v14 = vadd.f32 %v5320_v28, %v4512_v26  ;;  %v5447_v10 = vadd.f32 %v5319_v37, %v4511_v22  ;;  %v3556_v26 = vld [vmem:[#allocation4 + $0x1a8] sm:$0xff]  ;;  %v3747_v28 = vld [vmem:[%s8869_s24 + $0x3a0] sm:$0xff] }
 0x905   : > { %v5105_v36 = vpop.permute.xlu1 %5104  ;;  %v5100_v40 = vpop.permute.xlu0 %5099 }
 0x906   : > { %5576 = vst [vmem:[%s8918_s13 + $0x388] sm:$0xff] %v5448_v14  ;;  %v5322_v4 = vmul.f32 %v10510_v50, %v5105_v36  ;;  %6104 = vperm.xlu1 %7627, %v3554_v20   ;;  %5575 = vst [vmem:[%s8918_s13 + $0x380] sm:$0xff] %v5447_v10  ;;  %v5321_v45 = vmul.f32 %v10510_v50, %v5100_v40  ;;  %6099 = vperm.xlu0 %7626, %v3553_v8   ;;  %v11653_v14 = vld [vmem:[#allocation140_spill] sm:$0xff]  ;;  %v11654_v10 = vld [vmem:[#allocation141_spill] sm:$0xff] }
 0x907   : > { %v4516_v36 = vmul.f32 %v11653_v14, %v3748_v63  ;;  %v4515_v43 = vmul.f32 %v11654_v10, %v3747_v28  ;;  %v3557_v63 = vld [vmem:[#allocation4 + $0x1b0] sm:$0xff]  ;;  %v3752_v14 = vld [vmem:[%s8869_s24 + $0x3c8] sm:$0xff] }
 0x908   : > { %v5450_v41 = vadd.f32 %v5322_v4, %v4514_v0  ;;  %v5449_v22 = vadd.f32 %v5321_v45, %v4513_v11  ;;  %v3558_v0 = vld [vmem:[#allocation4 + $0x1b8] sm:$0xff]  ;;  %v3749_v11 = vld [vmem:[%s8869_s24 + $0x3b0] sm:$0xff] }
 0x909   : > { %v5115_v37 = vpop.permute.xlu1 %5114  ;;  %v5110_v7 = vpop.permute.xlu0 %5109 }
 0x90a   : > { %5578 = vst [vmem:[%s8918_s13 + $0x398] sm:$0xff] %v5450_v41  ;;  %v5324_v20 = vmul.f32 %v10510_v50, %v5115_v37  ;;  %6114 = vperm.xlu1 %7627, %v3556_v26   ;;  %5577 = vst [vmem:[%s8918_s13 + $0x390] sm:$0xff] %v5449_v22  ;;  %v5323_v8 = vmul.f32 %v10510_v50, %v5110_v7  ;;  %6109 = vperm.xlu0 %7626, %v3555_v47   ;;  %v11655_v41 = vld [vmem:[#allocation142_spill] sm:$0xff]  ;;  %v11656_v22 = vld [vmem:[#allocation143_spill] sm:$0xff] }
 0x90b   : > { %v4518_v37 = vmul.f32 %v11655_v41, %v3750_v27  ;;  %v4517_v10 = vmul.f32 %v11656_v22, %v3749_v11  ;;  %v3559_v27 = vld [vmem:[#allocation4 + $0x1c0] sm:$0xff]  ;;  %v3754_v41 = vld [vmem:[%s8869_s24 + $0x3d8] sm:$0xff] }
 0x90c   : > { %v5452_v4 = vadd.f32 %v5324_v20, %v4516_v36  ;;  %v5451_v40 = vadd.f32 %v5323_v8, %v4515_v43  ;;  %v3560_v36 = vld [vmem:[#allocation4 + $0x1c8] sm:$0xff]  ;;  %v3751_v43 = vld [vmem:[%s8869_s24 + $0x3c0] sm:$0xff] }
 0x90d   : > { %v5125_v45 = vpop.permute.xlu1 %5124  ;;  %v5120_v28 = vpop.permute.xlu0 %5119 }
 0x90e   : > { %5580 = vst [vmem:[%s8918_s13 + $0x3a8] sm:$0xff] %v5452_v4  ;;  %v5326_v26 = vmul.f32 %v10510_v50, %v5125_v45  ;;  %6124 = vperm.xlu1 %7627, %v3558_v0   ;;  %5579 = vst [vmem:[%s8918_s13 + $0x3a0] sm:$0xff] %v5451_v40  ;;  %v5325_v47 = vmul.f32 %v10510_v50, %v5120_v28  ;;  %6119 = vperm.xlu0 %7626, %v3557_v63   ;;  %v11657_v4 = vld [vmem:[#allocation144_spill] sm:$0xff]  ;;  %v11658_v40 = vld [vmem:[#allocation145_spill] sm:$0xff] }
 0x90f   : > { %v4520_v45 = vmul.f32 %v11657_v4, %v3752_v14  ;;  %v4519_v22 = vmul.f32 %v11658_v40, %v3751_v43  ;;  %v3561_v14 = vld [vmem:[#allocation4 + $0x1d0] sm:$0xff]  ;;  %v3756_v4 = vld [vmem:[%s8869_s24 + $0x3e8] sm:$0xff] }
 0x910   : > { %v5454_v20 = vadd.f32 %v5326_v26, %v4518_v37  ;;  %v5453_v7 = vadd.f32 %v5325_v47, %v4517_v10  ;;  %v3562_v37 = vld [vmem:[#allocation4 + $0x1d8] sm:$0xff]  ;;  %v3753_v10 = vld [vmem:[%s8869_s24 + $0x3d0] sm:$0xff] }
 0x911   : > { %v5135_v8 = vpop.permute.xlu1 %5134  ;;  %v5130_v11 = vpop.permute.xlu0 %5129 }
 0x912   : > { %5582 = vst [vmem:[%s8918_s13 + $0x3b8] sm:$0xff] %v5454_v20  ;;  %v5328_v0 = vmul.f32 %v10510_v50, %v5135_v8  ;;  %6134 = vperm.xlu1 %7627, %v3560_v36   ;;  %5581 = vst [vmem:[%s8918_s13 + $0x3b0] sm:$0xff] %v5453_v7  ;;  %v5327_v63 = vmul.f32 %v10510_v50, %v5130_v11  ;;  %6129 = vperm.xlu0 %7626, %v3559_v27   ;;  %v11659_v20 = vld [vmem:[#allocation147_spill] sm:$0xff]  ;;  %v11660_v7 = vld [vmem:[#allocation148_spill] sm:$0xff] }
 0x913   : > { %v4522_v8 = vmul.f32 %v11659_v20, %v3754_v41  ;;  %v4521_v40 = vmul.f32 %v11660_v7, %v3753_v10  ;;  %v3563_v41 = vld [vmem:[#allocation4 + $0x1e0] sm:$0xff] }
 0x914   : > { %v5456_v26 = vadd.f32 %v5328_v0, %v4520_v45  ;;  %v5455_v28 = vadd.f32 %v5327_v63, %v4519_v22  ;;  %v3564_v45 = vld [vmem:[#allocation4 + $0x1e8] sm:$0xff]  ;;  %v3755_v22 = vld [vmem:[%s8869_s24 + $0x3e0] sm:$0xff] }
 0x915   : > { %v5145_v47 = vpop.permute.xlu1 %5144  ;;  %v5140_v43 = vpop.permute.xlu0 %5139 }
 0x916   : > { %5584 = vst [vmem:[%s8918_s13 + $0x3c8] sm:$0xff] %v5456_v26  ;;  %v5330_v36 = vmul.f32 %v10510_v50, %v5145_v47  ;;  %6144 = vperm.xlu1 %7627, %v3562_v37   ;;  %5583 = vst [vmem:[%s8918_s13 + $0x3c0] sm:$0xff] %v5455_v28  ;;  %v5329_v27 = vmul.f32 %v10510_v50, %v5140_v43  ;;  %6139 = vperm.xlu0 %7626, %v3561_v14   ;;  %v11661_v26 = vld [vmem:[#allocation149_spill] sm:$0xff]  ;;  %v11662_v28 = vld [vmem:[#allocation150_spill] sm:$0xff] }
 0x917   : > { %v4524_v47 = vmul.f32 %v11661_v26, %v3756_v4  ;;  %v4523_v7 = vmul.f32 %v11662_v28, %v3755_v22  ;;  %v3758_v43 = vld [vmem:[%s8869_s24 + $0x3f8] sm:$0xff]  ;;  %v3565_v4 = vld [vmem:[#allocation4 + $0x1f0] sm:$0xff]  ;;  %v11663_v26 = vld [vmem:[#allocation151_spill] sm:$0xff] }
 0x918   : > { %v5458_v0 = vadd.f32 %v5330_v36, %v4522_v8  ;;  %v5457_v11 = vadd.f32 %v5329_v27, %v4521_v40  ;;  %v3566_v8 = vld [vmem:[#allocation4 + $0x1f8] sm:$0xff]  ;;  %v3757_v40 = vld [vmem:[%s8869_s24 + $0x3f0] sm:$0xff]  ;;  %s7368_s24 = sshll.u32 %s11692_s17, 8 }
 0x919   : > { %v5155_v63 = vpop.permute.xlu1 %5154  ;;  %v5150_v10 = vpop.permute.xlu0 %5149  ;;  %v11664_v28 = vld [vmem:[#allocation152_spill] sm:$0xff]  ;;  %s10839_s25 = sadd.s32 %s11560_s7, %s7368_s24 }
 0x91a   : > { %5586 = vst [vmem:[%s8918_s13 + $0x3d8] sm:$0xff] %v5458_v0  ;;  %v5332_v37 = vmul.f32 %v10510_v50, %v5155_v63  ;;  %6154 = vperm.xlu1 %7627, %v3564_v45   ;;  %5585 = vst [vmem:[%s8918_s13 + $0x3d0] sm:$0xff] %v5457_v11  ;;  %v5331_v14 = vmul.f32 %v10510_v50, %v5150_v10  ;;  %6149 = vperm.xlu0 %7626, %v3563_v41   ;;  %v5592_v11 = vld [vmem:[%s8876_s4 + $0x8] sm:$0xff]  ;;  %v3567_v10 = vld [vmem:[#allocation4 + $0x200] sm:$0xff]  ;;  %s7359_s26 = sshll.u32 %s10839_s25, 7 }
 0x91b   : > { %v4526_v63 = vmul.f32 %v11663_v26, %v3758_v43  ;;  %v4525_v20 = vmul.f32 %v11664_v28, %v3757_v40  ;;  %v5594_v28 = vld [vmem:[%s8876_s4 + $0x18] sm:$0xff]  ;;  %s10855_s22 = scalar_lea.hbm %s11698_s14, %s7359_s26 }
 0x91c   : > { %v5460_v36 = vadd.f32 %v5332_v37, %v4524_v47  ;;  %v5459_v27 = vadd.f32 %v5331_v14, %v4523_v7  ;;  %v3568_v47 = vld [vmem:[#allocation4 + $0x208] sm:$0xff]  ;;  %v5591_v7 = vld [vmem:[%s8876_s4] sm:$0xff] }
 0x91d   : > { %v5165_v0 = vpop.permute.xlu1 %5164  ;;  %v5160_v22 = vpop.permute.xlu0 %5159 }
 0x91e   : > { %5588 = vst [vmem:[%s8918_s13 + $0x3e8] sm:$0xff] %v5460_v36  ;;  %v5334_v45 = vmul.f32 %v10510_v50, %v5165_v0  ;;  %6164 = vperm.xlu1 %7627, %v3566_v8   ;;  %5587 = vst [vmem:[%s8918_s13 + $0x3e0] sm:$0xff] %v5459_v27  ;;  %v5333_v41 = vmul.f32 %v10510_v50, %v5160_v22  ;;  %6159 = vperm.xlu0 %7626, %v3565_v4   ;;  %v11665_v27 = vld [vmem:[#allocation59_spill] sm:$0xff] }
 0x91f   : > { %v5720_v36 = vmul.f32 %v5592_v11, %v9748_v57  ;;  %v5719_v0 = vmul.f32 %v5591_v7, %v11665_v27  ;;  %v3569_v57 = vld [vmem:[#allocation4 + $0x210] sm:$0xff] }
 0x920   : > { %v5462_v37 = vadd.f32 %v5334_v45, %v4526_v63  ;;  %v5461_v43 = vadd.f32 %v5333_v41, %v4525_v20  ;;  %v3570_v63 = vld [vmem:[#allocation4 + $0x218] sm:$0xff]  ;;  %v5593_v20 = vld [vmem:[%s8876_s4 + $0x10] sm:$0xff]  ;;  %v5722_v41 = vmul.f32 %v5594_v28, %v9746_v56 }
 0x921   : > { %v5855_v14 = vpop.permute.xlu1 %5854  ;;  %v5850_v40 = vpop.permute.xlu0 %5849  ;;  %v3571_v56 = vld [vmem:[#allocation4 + $0x220] sm:$0xff] }
 0x922   : > { %5590 = vst [vmem:[%s8918_s13 + $0x3f8] sm:$0xff] %v5462_v37  ;;  %v6488_v8 = vmul.f32 %v5855_v14, %v10016_v25  ;;  %6174 = vperm.xlu1 %7627, %v3568_v47   ;;  %5589 = vst [vmem:[%s8918_s13 + $0x3f0] sm:$0xff] %v5461_v43  ;;  %v6487_v4 = vmul.f32 %v5850_v40, %v10016_v25  ;;  %6169 = vperm.xlu0 %7626, %v3567_v10   ;;  %v5596_v43 = vld [vmem:[%s8876_s4 + $0x28] sm:$0xff]  ;;  %v3572_v14 = vld [vmem:[#allocation4 + $0x228] sm:$0xff]  ;;  %s8013_s13 = sshll.u32 %s8219_s11, 4  ;;  %s8014_s13 = int_to_ptr.vmem [resolvable:$false] %s8013_s13 }
 0x923   : > { %v5721_v37 = vmul.f32 %v5593_v20, %v9742_v53  ;;  %v5724_v27 = vmul.f32 %v5596_v43, %v9750_v59  ;;  %v3573_v59 = vld [vmem:[#allocation4 + $0x230] sm:$0xff]  ;;  %v5600_v43 = vld [vmem:[%s8876_s4 + $0x48] sm:$0xff]  ;;  %s8015_s23 = scalar_lea.vmem %s8014_s13, 32768  ;;  %p8016_p3 = scmp.lt.s32.totalorder %s10858_s10, %s8014_s13 }
 0x924   : > { %v6616_v45 = vadd.f32 %v6488_v8, %v5720_v36  ;;  %v6615_v22 = vadd.f32 %v6487_v4, %v5719_v0  ;;  %v5595_v36 = vld [vmem:[%s8876_s4 + $0x20] sm:$0xff]  ;;  %p8017_p2 = scmp.lt.s32.totalorder %s8015_s23, %s8009_s21 }
 0x925   : > { %v5865_v11 = vpop.permute.xlu1 %5864  ;;  %v5860_v7 = vpop.permute.xlu0 %5859  ;;  %v5723_v4 = vmul.f32 %v5595_v36, %v9752_v60  ;;  %v5599_v36 = vld [vmem:[%s8876_s4 + $0x40] sm:$0xff] }
 0x926   : > { %6744 = vst [vmem:[%s8921_s19 + $0x8] sm:$0xff] %v6616_v45  ;;  %v6490_v47 = vmul.f32 %v5865_v11, %v10016_v25  ;;  %6184 = vperm.xlu1 %7627, %v3570_v63   ;;  %6743 = vst [vmem:[%s8921_s19] sm:$0xff] %v6615_v22  ;;  %v6489_v10 = vmul.f32 %v5860_v7, %v10016_v25  ;;  %6179 = vperm.xlu0 %7626, %v3569_v57   ;;  %v5598_v63 = vld [vmem:[%s8876_s4 + $0x38] sm:$0xff]  ;;  %v3574_v45 = vld [vmem:[#allocation4 + $0x238] sm:$0xff]  ;;  %p8018_p11 = por %p8017_p2, %p8016_p3 }
 0x927   : > { %v5597_v57 = vld [vmem:[%s8876_s4 + $0x30] sm:$0xff] }
 0x928   : > { %v6618_v8 = vadd.f32 %v6490_v47, %v5722_v41  ;;  %v6617_v28 = vadd.f32 %v6489_v10, %v5721_v37  ;;  %v5726_v47 = vmul.f32 %v5598_v63, %v9754_v61  ;;  %v5725_v37 = vmul.f32 %v5597_v57, %v9756_v62  ;;  %v3575_v61 = vld [vmem:[#allocation4 + $0x240] sm:$0xff]  ;;  %v3578_v63 = vld [vmem:[#allocation4 + $0x258] sm:$0xff]  ;;  %p8019_p12 = pnand %p8018_p11, %p8012_p5 }
 0x929   : > { %v5875_v40 = vpop.permute.xlu1 %5874  ;;  %v5870_v0 = vpop.permute.xlu0 %5869 }
 0x92a   : > { %6746 = vst [vmem:[%s8921_s19 + $0x18] sm:$0xff] %v6618_v8  ;;  %v6492_v53 = vmul.f32 %v5875_v40, %v10016_v25  ;;  %6194 = vperm.xlu1 %7627, %v3572_v14   ;;  %6745 = vst [vmem:[%s8921_s19 + $0x10] sm:$0xff] %v6617_v28  ;;  %v6491_v20 = vmul.f32 %v5870_v0, %v10016_v25  ;;  %6189 = vperm.xlu0 %7626, %v3571_v56   ;;  %v3576_v14 = vld [vmem:[#allocation4 + $0x248] sm:$0xff] }
 0x92b   : > { %v5728_v40 = vmul.f32 %v5600_v43, %v9758_v1  ;;  %v5602_v0 = vld [vmem:[%s8876_s4 + $0x58] sm:$0xff]  ;;  %v3577_v1 = vld [vmem:[#allocation4 + $0x250] sm:$0xff] }
 0x92c   : > { %v6620_v22 = vadd.f32 %v6492_v53, %v5724_v27  ;;  %v6619_v11 = vadd.f32 %v6491_v20, %v5723_v4  ;;  %v5727_v53 = vmul.f32 %v5599_v36, %v9760_v2  ;;  %v5601_v20 = vld [vmem:[%s8876_s4 + $0x50] sm:$0xff] }
 0x92d   : > { %v5885_v41 = vpop.permute.xlu1 %5884  ;;  %v5880_v7 = vpop.permute.xlu0 %5879 }
 0x92e   : > { %6748 = vst [vmem:[%s8921_s19 + $0x28] sm:$0xff] %v6620_v22  ;;  %v6494_v60 = vmul.f32 %v5885_v41, %v10016_v25  ;;  %6204 = vperm.xlu1 %7627, %v3574_v45   ;;  %6747 = vst [vmem:[%s8921_s19 + $0x20] sm:$0xff] %v6619_v11  ;;  %v6493_v10 = vmul.f32 %v5880_v7, %v10016_v25  ;;  %6199 = vperm.xlu0 %7626, %v3573_v59   ;;  %v3580_v7 = vld [vmem:[#allocation4 + $0x268] sm:$0xff] }
 0x92f   : > { %v5730_v59 = vmul.f32 %v5602_v0, %v9762_v3  ;;  %v5729_v41 = vmul.f32 %v5601_v20, %v9764_v42  ;;  %v3579_v3 = vld [vmem:[#allocation4 + $0x260] sm:$0xff] }
 0x930   : > { %v6622_v8 = vadd.f32 %v6494_v60, %v5726_v47  ;;  %v6621_v56 = vadd.f32 %v6493_v10, %v5725_v37  ;;  %v5604_v47 = vld [vmem:[%s8876_s4 + $0x68] sm:$0xff]  ;;  %v5603_v37 = vld [vmem:[%s8876_s4 + $0x60] sm:$0xff]  ;;  %v11666_v20 = vld [vmem:[#allocation60_spill] sm:$0xff] }
 0x931   : > { %v5895_v28 = vpop.permute.xlu1 %5894  ;;  %v5890_v27 = vpop.permute.xlu0 %5889  ;;  %v5732_v36 = vmul.f32 %v5604_v47, %v9766_v5  ;;  %v3581_v5 = vld [vmem:[#allocation4 + $0x270] sm:$0xff] }
 0x932   : > { %6750 = vst [vmem:[%s8921_s19 + $0x38] sm:$0xff] %v6622_v8  ;;  %v6496_v62 = vmul.f32 %v5895_v28, %v10016_v25  ;;  %6214 = vperm.xlu1 %7627, %v3576_v14   ;;  %6749 = vst [vmem:[%s8921_s19 + $0x30] sm:$0xff] %v6621_v56  ;;  %v6495_v4 = vmul.f32 %v5890_v27, %v10016_v25  ;;  %6209 = vperm.xlu0 %7626, %v3575_v61   ;;  %v5606_v56 = vld [vmem:[%s8876_s4 + $0x78] sm:$0xff] }
 0x933   : > { %v5731_v61 = vmul.f32 %v5603_v37, %v9768_v6 }
 0x934   : > { %v6624_v45 = vadd.f32 %v6496_v62, %v5728_v40  ;;  %v6623_v57 = vadd.f32 %v6495_v4, %v5727_v53  ;;  %v3582_v40 = vld [vmem:[#allocation4 + $0x278] sm:$0xff]  ;;  %v5605_v62 = vld [vmem:[%s8876_s4 + $0x70] sm:$0xff]  ;;  %v5734_v4 = vmul.f32 %v5606_v56, %v9770_v9 }
 0x935   : > { %v5905_v22 = vpop.permute.xlu1 %5904  ;;  %v5900_v11 = vpop.permute.xlu0 %5899  ;;  %v3583_v9 = vld [vmem:[#allocation4 + $0x280] sm:$0xff] }
 0x936   : > { %6752 = vst [vmem:[%s8921_s19 + $0x48] sm:$0xff] %v6624_v45  ;;  %v6498_v2 = vmul.f32 %v5905_v22, %v10016_v25  ;;  %6224 = vperm.xlu1 %7627, %v3578_v63   ;;  %6751 = vst [vmem:[%s8921_s19 + $0x40] sm:$0xff] %v6623_v57  ;;  %v6497_v60 = vmul.f32 %v5900_v11, %v10016_v25  ;;  %6219 = vperm.xlu0 %7626, %v3577_v1   ;;  %v5608_v1 = vld [vmem:[%s8876_s4 + $0x88] sm:$0xff]  ;;  %v3584_v22 = vld [vmem:[#allocation4 + $0x288] sm:$0xff] }
 0x937   : > { %v5733_v45 = vmul.f32 %v5605_v62, %v11666_v20  ;;  %v5736_v47 = vmul.f32 %v5608_v1, %v9774_v12  ;;  %v3585_v12 = vld [vmem:[#allocation4 + $0x290] sm:$0xff]  ;;  %v3588_v62 = vld [vmem:[#allocation4 + $0x2a8] sm:$0xff]  ;;  %v3590_v1 = vld [vmem:[#allocation4 + $0x2b8] sm:$0xff] }
 0x938   : > { %v6626_v43 = vadd.f32 %v6498_v2, %v5730_v59  ;;  %v6625_v10 = vadd.f32 %v6497_v60, %v5729_v41  ;;  %v5607_v59 = vld [vmem:[%s8876_s4 + $0x80] sm:$0xff]  ;;  %v5614_v20 = vld [vmem:[%s8876_s4 + $0xb8] sm:$0xff] }
 0x939   : > { %v5915_v14 = vpop.permute.xlu1 %5914  ;;  %v5910_v8 = vpop.permute.xlu0 %5909  ;;  %v5735_v37 = vmul.f32 %v5607_v59, %v9776_v13 }
 0x93a   : > { %6754 = vst [vmem:[%s8921_s19 + $0x58] sm:$0xff] %v6626_v43  ;;  %v6500_v42 = vmul.f32 %v5915_v14, %v10016_v25  ;;  %6234 = vperm.xlu1 %7627, %v3580_v7   ;;  %6753 = vst [vmem:[%s8921_s19 + $0x50] sm:$0xff] %v6625_v10  ;;  %v6499_v28 = vmul.f32 %v5910_v8, %v10016_v25  ;;  %6229 = vperm.xlu0 %7626, %v3579_v3   ;;  %v5610_v43 = vld [vmem:[%s8876_s4 + $0x98] sm:$0xff]  ;;  %v3586_v3 = vld [vmem:[#allocation4 + $0x298] sm:$0xff] }
 0x93b   : > { %v5609_v10 = vld [vmem:[%s8876_s4 + $0x90] sm:$0xff]  ;;  %v5738_v8 = vmul.f32 %v5610_v43, %v9778_v23 }
 0x93c   : > { %v6628_v27 = vadd.f32 %v6500_v42, %v5732_v36  ;;  %v6627_v53 = vadd.f32 %v6499_v28, %v5731_v61  ;;  %v5737_v56 = vmul.f32 %v5609_v10, %v9780_v18  ;;  %v5612_v28 = vld [vmem:[%s8876_s4 + $0xa8] sm:$0xff]  ;;  %v3587_v23 = vld [vmem:[#allocation4 + $0x2a0] sm:$0xff] }
 0x93d   : > { %v5925_v0 = vpop.permute.xlu1 %5924  ;;  %v5920_v63 = vpop.permute.xlu0 %5919 }
 0x93e   : > { %6756 = vst [vmem:[%s8921_s19 + $0x68] sm:$0xff] %v6628_v27  ;;  %v6502_v6 = vmul.f32 %v5925_v0, %v10016_v25  ;;  %6244 = vperm.xlu1 %7627, %v3582_v40   ;;  %6755 = vst [vmem:[%s8921_s19 + $0x60] sm:$0xff] %v6627_v53  ;;  %v6501_v57 = vmul.f32 %v5920_v63, %v10016_v25  ;;  %6239 = vperm.xlu0 %7626, %v3581_v5   ;;  %v5611_v27 = vld [vmem:[%s8876_s4 + $0xa0] sm:$0xff] }
 0x93f   : > { %v5739_v63 = vmul.f32 %v5611_v27, %v9784_v32 }
 0x940   : > { %v6630_v2 = vadd.f32 %v6502_v6, %v5734_v4  ;;  %v6629_v11 = vadd.f32 %v6501_v57, %v5733_v45  ;;  %v5740_v4 = vmul.f32 %v5612_v28, %v9782_v29  ;;  %v5613_v57 = vld [vmem:[%s8876_s4 + $0xb0] sm:$0xff]  ;;  %v3589_v29 = vld [vmem:[#allocation4 + $0x2b0] sm:$0xff] }
 0x941   : > { %v5935_v41 = vpop.permute.xlu1 %5934  ;;  %v5930_v7 = vpop.permute.xlu0 %5929 }
 0x942   : > { %6758 = vst [vmem:[%s8921_s19 + $0x78] sm:$0xff] %v6630_v2  ;;  %v6504_v60 = vmul.f32 %v5935_v41, %v10084_v21  ;;  %6254 = vperm.xlu1 %7627, %v3584_v22   ;;  %6757 = vst [vmem:[%s8921_s19 + $0x70] sm:$0xff] %v6629_v11  ;;  %v6503_v25 = vmul.f32 %v5930_v7, %v10084_v21  ;;  %6249 = vperm.xlu0 %7626, %v3583_v9   ;;  %v3592_v7 = vld [vmem:[#allocation4 + $0x2c8] sm:$0xff] }
 0x943   : > { %v5742_v9 = vmul.f32 %v5614_v20, %v9786_v34  ;;  %v5741_v41 = vmul.f32 %v5613_v57, %v9788_v35  ;;  %v3591_v34 = vld [vmem:[#allocation4 + $0x2c0] sm:$0xff] }
 0x944   : > { %v6632_v14 = vadd.f32 %v6504_v60, %v5736_v47  ;;  %v6631_v36 = vadd.f32 %v6503_v25, %v5735_v37  ;;  %v5616_v47 = vld [vmem:[%s8876_s4 + $0xc8] sm:$0xff]  ;;  %v5615_v37 = vld [vmem:[%s8876_s4 + $0xc0] sm:$0xff] }
 0x945   : > { %v5945_v42 = vpop.permute.xlu1 %5944  ;;  %v5940_v61 = vpop.permute.xlu0 %5939  ;;  %v5744_v10 = vmul.f32 %v5616_v47, %v9790_v38  ;;  %v3593_v38 = vld [vmem:[#allocation4 + $0x2d0] sm:$0xff]  ;;  %v5624_v47 = vld [vmem:[%s8876_s4 + $0x108] sm:$0xff] }
 0x946   : > { %6760 = vst [vmem:[%s8921_s19 + $0x88] sm:$0xff] %v6632_v14  ;;  %v6506_v13 = vmul.f32 %v5945_v42, %v10084_v21  ;;  %6264 = vperm.xlu1 %7627, %v3586_v3   ;;  %6759 = vst [vmem:[%s8921_s19 + $0x80] sm:$0xff] %v6631_v36  ;;  %v6505_v40 = vmul.f32 %v5940_v61, %v10084_v21  ;;  %6259 = vperm.xlu0 %7626, %v3585_v12   ;;  %v5618_v36 = vld [vmem:[%s8876_s4 + $0xd8] sm:$0xff] }
 0x947   : > { %v5743_v12 = vmul.f32 %v5615_v37, %v9792_v39  ;;  %v5623_v37 = vld [vmem:[%s8876_s4 + $0x100] sm:$0xff] }
 0x948   : > { %v6634_v5 = vadd.f32 %v6506_v13, %v5738_v8  ;;  %v6633_v53 = vadd.f32 %v6505_v40, %v5737_v56  ;;  %v3594_v8 = vld [vmem:[#allocation4 + $0x2d8] sm:$0xff]  ;;  %v5617_v13 = vld [vmem:[%s8876_s4 + $0xd0] sm:$0xff]  ;;  %v5746_v40 = vmul.f32 %v5618_v36, %v9794_v46 }
 0x949   : > { %v5955_v0 = vpop.permute.xlu1 %5954  ;;  %v5950_v6 = vpop.permute.xlu0 %5949  ;;  %v5745_v27 = vmul.f32 %v5617_v13, %v9796_v24  ;;  %v3595_v46 = vld [vmem:[#allocation4 + $0x2e0] sm:$0xff] }
 0x94a   : > { %6762 = vst [vmem:[%s8921_s19 + $0x98] sm:$0xff] %v6634_v5  ;;  %v6508_v18 = vmul.f32 %v5955_v0, %v10084_v21  ;;  %6274 = vperm.xlu1 %7627, %v3588_v62   ;;  %6761 = vst [vmem:[%s8921_s19 + $0x90] sm:$0xff] %v6633_v53  ;;  %v6507_v45 = vmul.f32 %v5950_v6, %v10084_v21  ;;  %6269 = vperm.xlu0 %7626, %v3587_v23   ;;  %v5620_v5 = vld [vmem:[%s8876_s4 + $0xe8] sm:$0xff]  ;;  %v3596_v53 = vld [vmem:[#allocation4 + $0x2e8] sm:$0xff] }
 0x94b   : > { %v5619_v0 = vld [vmem:[%s8876_s4 + $0xe0] sm:$0xff]  ;;  %v5625_v36 = vld [vmem:[%s8876_s4 + $0x110] sm:$0xff] }
 0x94c   : > { %v6636_v22 = vadd.f32 %v6508_v18, %v5740_v4  ;;  %v6635_v59 = vadd.f32 %v6507_v45, %v5739_v63  ;;  %v5748_v63 = vmul.f32 %v5620_v5, %v9798_v15  ;;  %v5747_v45 = vmul.f32 %v5619_v0, %v9800_v48  ;;  %v3597_v15 = vld [vmem:[#allocation4 + $0x2f0] sm:$0xff] }
 0x94d   : > { %v5965_v2 = vpop.permute.xlu1 %5964  ;;  %v5960_v11 = vpop.permute.xlu0 %5959 }
 0x94e   : > { %6764 = vst [vmem:[%s8921_s19 + $0xa8] sm:$0xff] %v6636_v22  ;;  %v6510_v32 = vmul.f32 %v5965_v2, %v10084_v21  ;;  %6284 = vperm.xlu1 %7627, %v3590_v1   ;;  %6763 = vst [vmem:[%s8921_s19 + $0xa0] sm:$0xff] %v6635_v59  ;;  %v6509_v60 = vmul.f32 %v5960_v11, %v10084_v21  ;;  %6279 = vperm.xlu0 %7626, %v3589_v29   ;;  %v5622_v1 = vld [vmem:[%s8876_s4 + $0xf8] sm:$0xff]  ;;  %v3598_v22 = vld [vmem:[#allocation4 + $0x2f8] sm:$0xff] }
 0x94f   : > { %v5621_v29 = vld [vmem:[%s8876_s4 + $0xf0] sm:$0xff] }
 0x950   : > { %v6638_v43 = vadd.f32 %v6510_v32, %v5742_v9  ;;  %v6637_v25 = vadd.f32 %v6509_v60, %v5741_v41  ;;  %v5750_v32 = vmul.f32 %v5622_v1, %v9802_v51  ;;  %v5749_v41 = vmul.f32 %v5621_v29, %v9804_v52  ;;  %v3599_v51 = vld [vmem:[#allocation4 + $0x300] sm:$0xff] }
 0x951   : > { %v5975_v3 = vpop.permute.xlu1 %5974  ;;  %v5970_v14 = vpop.permute.xlu0 %5969 }
 0x952   : > { %6766 = vst [vmem:[%s8921_s19 + $0xb8] sm:$0xff] %v6638_v43  ;;  %v6512_v35 = vmul.f32 %v5975_v3, %v10084_v21  ;;  %6294 = vperm.xlu1 %7627, %v3592_v7   ;;  %6765 = vst [vmem:[%s8921_s19 + $0xb0] sm:$0xff] %v6637_v25  ;;  %v6511_v42 = vmul.f32 %v5970_v14, %v10084_v21  ;;  %6289 = vperm.xlu0 %7626, %v3591_v34   ;;  %v3600_v7 = vld [vmem:[#allocation4 + $0x308] sm:$0xff] }
 0x953   : > { %v5752_v3 = vmul.f32 %v5624_v47, %v9806_v54  ;;  %v5626_v14 = vld [vmem:[%s8876_s4 + $0x118] sm:$0xff]  ;;  %v3601_v54 = vld [vmem:[#allocation4 + $0x310] sm:$0xff]  ;;  %v3607_v47 = vld [vmem:[#allocation4 + $0x340] sm:$0xff] }
 0x954   : > { %v6640_v61 = vadd.f32 %v6512_v35, %v5744_v10  ;;  %v6639_v56 = vadd.f32 %v6511_v42, %v5743_v12  ;;  %v5751_v35 = vmul.f32 %v5623_v37, %v9808_v55  ;;  %v3602_v12 = vld [vmem:[#allocation4 + $0x318] sm:$0xff]  ;;  %v11670_v37 = vld [vmem:[#allocation64_spill] sm:$0xff] }
 0x955   : > { %v5985_v28 = vpop.permute.xlu1 %5984  ;;  %v5980_v62 = vpop.permute.xlu0 %5979 }
 0x956   : > { %6768 = vst [vmem:[%s8921_s19 + $0xc8] sm:$0xff] %v6640_v61  ;;  %v6514_v39 = vmul.f32 %v5985_v28, %v10084_v21  ;;  %6304 = vperm.xlu1 %7627, %v3594_v8   ;;  %6767 = vst [vmem:[%s8921_s19 + $0xc0] sm:$0xff] %v6639_v56  ;;  %v6513_v23 = vmul.f32 %v5980_v62, %v10084_v21  ;;  %6299 = vperm.xlu0 %7626, %v3593_v38   ;;  %v5628_v28 = vld [vmem:[%s8876_s4 + $0x128] sm:$0xff]  ;;  %v5627_v62 = vld [vmem:[%s8876_s4 + $0x120] sm:$0xff] }
 0x957   : > { %v5754_v61 = vmul.f32 %v5626_v14, %v9810_v31  ;;  %v5753_v56 = vmul.f32 %v5625_v36, %v9812_v16  ;;  %v3603_v31 = vld [vmem:[#allocation4 + $0x320] sm:$0xff] }
 0x958   : > { %v6642_v4 = vadd.f32 %v6514_v39, %v5746_v40  ;;  %v6641_v18 = vadd.f32 %v6513_v23, %v5745_v27  ;;  %v3604_v39 = vld [vmem:[#allocation4 + $0x328] sm:$0xff]  ;;  %v5633_v14 = vld [vmem:[%s8876_s4 + $0x150] sm:$0xff] }
 0x959   : > { %v5995_v6 = vpop.permute.xlu1 %5994  ;;  %v5990_v20 = vpop.permute.xlu0 %5989 }
 0x95a   : > { %6770 = vst [vmem:[%s8921_s19 + $0xd8] sm:$0xff] %v6642_v4  ;;  %v6516_v24 = vmul.f32 %v5995_v6, %v10084_v21  ;;  %6314 = vperm.xlu1 %7627, %v3596_v53   ;;  %6769 = vst [vmem:[%s8921_s19 + $0xd0] sm:$0xff] %v6641_v18  ;;  %v6515_v57 = vmul.f32 %v5990_v20, %v10084_v21  ;;  %6309 = vperm.xlu0 %7626, %v3595_v46   ;;  %v11667_v4 = vld [vmem:[#allocation61_spill] sm:$0xff] }
 0x95b   : > { %v5756_v53 = vmul.f32 %v5628_v28, %v9814_v44  ;;  %v5755_v46 = vmul.f32 %v5627_v62, %v11667_v4  ;;  %v5630_v18 = vld [vmem:[%s8876_s4 + $0x138] sm:$0xff]  ;;  %v3605_v44 = vld [vmem:[#allocation4 + $0x330] sm:$0xff] }
 0x95c   : > { %v6644_v59 = vadd.f32 %v6516_v24, %v5748_v63  ;;  %v6643_v2 = vadd.f32 %v6515_v57, %v5747_v45  ;;  %v3606_v63 = vld [vmem:[#allocation4 + $0x338] sm:$0xff]  ;;  %v5629_v24 = vld [vmem:[%s8876_s4 + $0x130] sm:$0xff]  ;;  %v11668_v57 = vld [vmem:[#allocation62_spill] sm:$0xff] }
 0x95d   : > { %v6005_v9 = vpop.permute.xlu1 %6004  ;;  %v6000_v11 = vpop.permute.xlu0 %5999  ;;  %v11675_v4 = vld [vmem:[#allocation69_spill] sm:$0xff] }
 0x95e   : > { %6772 = vst [vmem:[%s8921_s19 + $0xe8] sm:$0xff] %v6644_v59  ;;  %v6518_v48 = vmul.f32 %v6005_v9, %v10084_v21  ;;  %6324 = vperm.xlu1 %7627, %v3598_v22   ;;  %6771 = vst [vmem:[%s8921_s19 + $0xe0] sm:$0xff] %v6643_v2  ;;  %v6517_v60 = vmul.f32 %v6000_v11, %v10084_v21  ;;  %6319 = vperm.xlu0 %7626, %v3597_v15   ;;  %v11669_v15 = vld [vmem:[#allocation63_spill] sm:$0xff]  ;;  %v5631_v11 = vld [vmem:[%s8876_s4 + $0x140] sm:$0xff] }
 0x95f   : > { %v5758_v22 = vmul.f32 %v5630_v18, %v11668_v57  ;;  %v5757_v2 = vmul.f32 %v5629_v24, %v11669_v15  ;;  %v5632_v9 = vld [vmem:[%s8876_s4 + $0x148] sm:$0xff]  ;;  %v5638_v18 = vld [vmem:[%s8876_s4 + $0x178] sm:$0xff]  ;;  %v5637_v24 = vld [vmem:[%s8876_s4 + $0x170] sm:$0xff] }
 0x960   : > { %v6646_v43 = vadd.f32 %v6518_v48, %v5750_v32  ;;  %v6645_v34 = vadd.f32 %v6517_v60, %v5749_v41  ;;  %v3608_v48 = vld [vmem:[#allocation4 + $0x348] sm:$0xff]  ;;  %v11676_v57 = vld [vmem:[#allocation70_spill] sm:$0xff]  ;;  %v11677_v15 = vld [vmem:[#allocation71_spill] sm:$0xff] }
 0x961   : > { %v6015_v25 = vpop.permute.xlu1 %6014  ;;  %v6010_v10 = vpop.permute.xlu0 %6009 }
 0x962   : > { %6774 = vst [vmem:[%s8921_s19 + $0xf8] sm:$0xff] %v6646_v43  ;;  %v6520_v52 = vmul.f32 %v6015_v25, %v10153_v58  ;;  %6334 = vperm.xlu1 %7627, %v3600_v7   ;;  %6773 = vst [vmem:[%s8921_s19 + $0xf0] sm:$0xff] %v6645_v34  ;;  %v6519_v21 = vmul.f32 %v6010_v10, %v10153_v58  ;;  %6329 = vperm.xlu0 %7626, %v3599_v51   ;;  %v11671_v25 = vld [vmem:[#allocation65_spill] sm:$0xff] }
 0x963   : > { %v5760_v43 = vmul.f32 %v5632_v9, %v11670_v37  ;;  %v5640_v9 = vld [vmem:[%s8876_s4 + $0x188] sm:$0xff]  ;;  %v11678_v37 = vld [vmem:[#allocation72_spill] sm:$0xff] }
 0x964   : > { %v6648_v42 = vadd.f32 %v6520_v52, %v5752_v3  ;;  %v6647_v8 = vadd.f32 %v6519_v21, %v5751_v35  ;;  %v5759_v3 = vmul.f32 %v5631_v11, %v11671_v25  ;;  %v5634_v52 = vld [vmem:[%s8876_s4 + $0x158] sm:$0xff]  ;;  %v3610_v35 = vld [vmem:[#allocation4 + $0x358] sm:$0xff]  ;;  %v5639_v11 = vld [vmem:[%s8876_s4 + $0x180] sm:$0xff] }
 0x965   : > { %v6025_v13 = vpop.permute.xlu1 %6024  ;;  %v6020_v38 = vpop.permute.xlu0 %6019  ;;  %v11679_v25 = vld [vmem:[#allocation73_spill] sm:$0xff] }
 0x966   : > { %6776 = vst [vmem:[%s8921_s19 + $0x108] sm:$0xff] %v6648_v42  ;;  %v6522_v55 = vmul.f32 %v6025_v13, %v10153_v58  ;;  %6344 = vperm.xlu1 %7627, %v3602_v12   ;;  %6775 = vst [vmem:[%s8921_s19 + $0x100] sm:$0xff] %v6647_v8  ;;  %v6521_v40 = vmul.f32 %v6020_v38, %v10153_v58  ;;  %6339 = vperm.xlu0 %7626, %v3601_v54   ;;  %v3609_v12 = vld [vmem:[#allocation4 + $0x350] sm:$0xff] }
 0x967   : > { %v11672_v54 = vld [vmem:[#allocation66_spill] sm:$0xff] }
 0x968   : > { %v6650_v27 = vadd.f32 %v6522_v55, %v5754_v61  ;;  %v6649_v5 = vadd.f32 %v6521_v40, %v5753_v56  ;;  %v5762_v8 = vmul.f32 %v5634_v52, %v11672_v54  ;;  %v11673_v55 = vld [vmem:[#allocation67_spill] sm:$0xff]  ;;  %v3612_v40 = vld [vmem:[#allocation4 + $0x368] sm:$0xff] }
 0x969   : > { %v6035_v23 = vpop.permute.xlu1 %6034  ;;  %v6030_v0 = vpop.permute.xlu0 %6029  ;;  %v5761_v38 = vmul.f32 %v5633_v14, %v11673_v55  ;;  %v5636_v56 = vld [vmem:[%s8876_s4 + $0x168] sm:$0xff]  ;;  %v5642_v52 = vld [vmem:[%s8876_s4 + $0x198] sm:$0xff] }
 0x96a   : > { %6778 = vst [vmem:[%s8921_s19 + $0x118] sm:$0xff] %v6650_v27  ;;  %v6524_v16 = vmul.f32 %v6035_v23, %v10153_v58  ;;  %6354 = vperm.xlu1 %7627, %v3604_v39   ;;  %6777 = vst [vmem:[%s8921_s19 + $0x110] sm:$0xff] %v6649_v5  ;;  %v6523_v6 = vmul.f32 %v6030_v0, %v10153_v58  ;;  %6349 = vperm.xlu0 %7626, %v3603_v31   ;;  %v5635_v39 = vld [vmem:[%s8876_s4 + $0x160] sm:$0xff]  ;;  %v3611_v27 = vld [vmem:[#allocation4 + $0x360] sm:$0xff] }
 0x96b   : > { %v11674_v23 = vld [vmem:[#allocation68_spill] sm:$0xff] }
 0x96c   : > { %v6652_v20 = vadd.f32 %v6524_v16, %v5756_v53  ;;  %v6651_v45 = vadd.f32 %v6523_v6, %v5755_v46  ;;  %v5764_v53 = vmul.f32 %v5636_v56, %v11674_v23  ;;  %v5763_v46 = vmul.f32 %v5635_v39, %v11675_v4 }
 0x96d   : > { %v6045_v1 = vpop.permute.xlu1 %6044  ;;  %v6040_v59 = vpop.permute.xlu0 %6039 }
 0x96e   : > { %6780 = vst [vmem:[%s8921_s19 + $0x128] sm:$0xff] %v6652_v20  ;;  %v6526_v29 = vmul.f32 %v6045_v1, %v10153_v58  ;;  %6364 = vperm.xlu1 %7627, %v3606_v63   ;;  %6779 = vst [vmem:[%s8921_s19 + $0x120] sm:$0xff] %v6651_v45  ;;  %v6525_v32 = vmul.f32 %v6040_v59, %v10153_v58  ;;  %6359 = vperm.xlu0 %7626, %v3605_v44   ;;  %v3614_v63 = vld [vmem:[#allocation4 + $0x378] sm:$0xff]  ;;  %v3613_v44 = vld [vmem:[#allocation4 + $0x370] sm:$0xff] }
 0x970   : > { %v6654_v41 = vadd.f32 %v6526_v29, %v5758_v22  ;;  %v6653_v60 = vadd.f32 %v6525_v32, %v5757_v2  ;;  %v5766_v22 = vmul.f32 %v5638_v18, %v11676_v57  ;;  %v5765_v2 = vmul.f32 %v5637_v24, %v11677_v15 }
 0x971   : > { %v6055_v7 = vpop.permute.xlu1 %6054  ;;  %v6050_v34 = vpop.permute.xlu0 %6049 }
 0x972   : > { %6782 = vst [vmem:[%s8921_s19 + $0x138] sm:$0xff] %v6654_v41  ;;  %v6528_v51 = vmul.f32 %v6055_v7, %v10153_v58  ;;  %6374 = vperm.xlu1 %7627, %v3608_v48   ;;  %6781 = vst [vmem:[%s8921_s19 + $0x130] sm:$0xff] %v6653_v60  ;;  %v6527_v10 = vmul.f32 %v6050_v34, %v10153_v58  ;;  %6369 = vperm.xlu0 %7626, %v3607_v47   ;;  %v3616_v48 = vld [vmem:[#allocation4 + $0x388] sm:$0xff]  ;;  %v3615_v47 = vld [vmem:[#allocation4 + $0x380] sm:$0xff] }
 0x974   : > { %v6656_v21 = vadd.f32 %v6528_v51, %v5760_v43  ;;  %v6655_v36 = vadd.f32 %v6527_v10, %v5759_v3  ;;  %v5768_v43 = vmul.f32 %v5640_v9, %v11678_v37  ;;  %v5767_v3 = vmul.f32 %v5639_v11, %v11679_v25  ;;  %v3618_v10 = vld [vmem:[#allocation4 + $0x398] sm:$0xff] }
 0x975   : > { %v6065_v42 = vpop.permute.xlu1 %6064  ;;  %v6060_v61 = vpop.permute.xlu0 %6059 }
 0x976   : > { %6784 = vst [vmem:[%s8921_s19 + $0x148] sm:$0xff] %v6656_v21  ;;  %v6530_v13 = vmul.f32 %v6065_v42, %v10153_v58  ;;  %6384 = vperm.xlu1 %7627, %v3610_v35   ;;  %6783 = vst [vmem:[%s8921_s19 + $0x140] sm:$0xff] %v6655_v36  ;;  %v6529_v28 = vmul.f32 %v6060_v61, %v10153_v58  ;;  %6379 = vperm.xlu0 %7626, %v3609_v12   ;;  %v5641_v35 = vld [vmem:[%s8876_s4 + $0x190] sm:$0xff]  ;;  %v3617_v21 = vld [vmem:[#allocation4 + $0x390] sm:$0xff] }
 0x977   : > { %v11680_v42 = vld [vmem:[#allocation74_spill] sm:$0xff]  ;;  %v11681_v61 = vld [vmem:[#allocation75_spill] sm:$0xff] }
 0x978   : > { %v6658_v62 = vadd.f32 %v6530_v13, %v5762_v8  ;;  %v6657_v31 = vadd.f32 %v6529_v28, %v5761_v38  ;;  %v5770_v54 = vmul.f32 %v5642_v52, %v11680_v42  ;;  %v5769_v55 = vmul.f32 %v5641_v35, %v11681_v61  ;;  %v5644_v38 = vld [vmem:[%s8876_s4 + $0x1a8] sm:$0xff]  ;;  %v3620_v28 = vld [vmem:[#allocation4 + $0x3a8] sm:$0xff] }
 0x979   : > { %v6075_v5 = vpop.permute.xlu1 %6074  ;;  %v6070_v0 = vpop.permute.xlu0 %6069 }
 0x97a   : > { %6786 = vst [vmem:[%s8921_s19 + $0x158] sm:$0xff] %v6658_v62  ;;  %v6532_v16 = vmul.f32 %v6075_v5, %v10153_v58  ;;  %6394 = vperm.xlu1 %7627, %v3612_v40   ;;  %6785 = vst [vmem:[%s8921_s19 + $0x150] sm:$0xff] %v6657_v31  ;;  %v6531_v6 = vmul.f32 %v6070_v0, %v10153_v58  ;;  %6389 = vperm.xlu0 %7626, %v3611_v27   ;;  %v5643_v40 = vld [vmem:[%s8876_s4 + $0x1a0] sm:$0xff]  ;;  %v3619_v62 = vld [vmem:[#allocation4 + $0x3a0] sm:$0xff] }
 0x97b   : > { %v11682_v5 = vld [vmem:[#allocation76_spill] sm:$0xff]  ;;  %v11683_v0 = vld [vmem:[#allocation77_spill] sm:$0xff] }
 0x97c   : > { %v6660_v20 = vadd.f32 %v6532_v16, %v5764_v53  ;;  %v6659_v45 = vadd.f32 %v6531_v6, %v5763_v46  ;;  %v5772_v23 = vmul.f32 %v5644_v38, %v11682_v5  ;;  %v5771_v4 = vmul.f32 %v5643_v40, %v11683_v0  ;;  %v5646_v46 = vld [vmem:[%s8876_s4 + $0x1b8] sm:$0xff]  ;;  %v3622_v6 = vld [vmem:[#allocation4 + $0x3b8] sm:$0xff] }
 0x97d   : > { %v6085_v1 = vpop.permute.xlu1 %6084  ;;  %v6080_v59 = vpop.permute.xlu0 %6079 }
 0x97e   : > { %6788 = vst [vmem:[%s8921_s19 + $0x168] sm:$0xff] %v6660_v20  ;;  %v6534_v29 = vmul.f32 %v6085_v1, %v10153_v58  ;;  %6404 = vperm.xlu1 %7627, %v3614_v63   ;;  %6787 = vst [vmem:[%s8921_s19 + $0x160] sm:$0xff] %v6659_v45  ;;  %v6533_v32 = vmul.f32 %v6080_v59, %v10153_v58  ;;  %6399 = vperm.xlu0 %7626, %v3613_v44   ;;  %v5645_v63 = vld [vmem:[%s8876_s4 + $0x1b0] sm:$0xff]  ;;  %v3621_v20 = vld [vmem:[#allocation4 + $0x3b0] sm:$0xff] }
 0x97f   : > { %v11684_v1 = vld [vmem:[#allocation78_spill] sm:$0xff]  ;;  %v11685_v59 = vld [vmem:[#allocation79_spill] sm:$0xff] }
 0x980   : > { %v6662_v41 = vadd.f32 %v6534_v29, %v5766_v22  ;;  %v6661_v60 = vadd.f32 %v6533_v32, %v5765_v2  ;;  %v5774_v57 = vmul.f32 %v5646_v46, %v11684_v1  ;;  %v5773_v15 = vmul.f32 %v5645_v63, %v11685_v59  ;;  %v5648_v2 = vld [vmem:[%s8876_s4 + $0x1c8] sm:$0xff]  ;;  %v3624_v32 = vld [vmem:[#allocation4 + $0x3c8] sm:$0xff] }
 0x981   : > { %v6095_v7 = vpop.permute.xlu1 %6094  ;;  %v6090_v34 = vpop.permute.xlu0 %6089 }
 0x982   : > { %6790 = vst [vmem:[%s8921_s19 + $0x178] sm:$0xff] %v6662_v41  ;;  %v6536_v51 = vmul.f32 %v6095_v7, %v10222_v19  ;;  %6414 = vperm.xlu1 %7627, %v3616_v48   ;;  %6789 = vst [vmem:[%s8921_s19 + $0x170] sm:$0xff] %v6661_v60  ;;  %v6535_v58 = vmul.f32 %v6090_v34, %v10222_v19  ;;  %6409 = vperm.xlu0 %7626, %v3615_v47   ;;  %v5647_v48 = vld [vmem:[%s8876_s4 + $0x1c0] sm:$0xff]  ;;  %v3623_v41 = vld [vmem:[#allocation4 + $0x3c0] sm:$0xff] }
 0x983   : > { %v11686_v7 = vld [vmem:[#allocation80_spill] sm:$0xff]  ;;  %v11687_v34 = vld [vmem:[#allocation81_spill] sm:$0xff] }
 0x984   : > { %v6664_v14 = vadd.f32 %v6536_v51, %v5768_v43  ;;  %v6663_v12 = vadd.f32 %v6535_v58, %v5767_v3  ;;  %v5776_v37 = vmul.f32 %v5648_v2, %v11686_v7  ;;  %v5775_v25 = vmul.f32 %v5647_v48, %v11687_v34  ;;  %v5650_v3 = vld [vmem:[%s8876_s4 + $0x1d8] sm:$0xff]  ;;  %v3626_v58 = vld [vmem:[#allocation4 + $0x3d8] sm:$0xff]  ;;  %v5657_v34 = vld [vmem:[%s8876_s4 + $0x210] sm:$0xff] }
 0x985   : > { %v6105_v36 = vpop.permute.xlu1 %6104  ;;  %v6100_v13 = vpop.permute.xlu0 %6099 }
 0x986   : > { %6792 = vst [vmem:[%s8921_s19 + $0x188] sm:$0xff] %v6664_v14  ;;  %v6538_v8 = vmul.f32 %v6105_v36, %v10222_v19  ;;  %6424 = vperm.xlu1 %7627, %v3618_v10   ;;  %6791 = vst [vmem:[%s8921_s19 + $0x180] sm:$0xff] %v6663_v12  ;;  %v6537_v56 = vmul.f32 %v6100_v13, %v10222_v19  ;;  %6419 = vperm.xlu0 %7626, %v3617_v21   ;;  %v5649_v10 = vld [vmem:[%s8876_s4 + $0x1d0] sm:$0xff]  ;;  %v3625_v14 = vld [vmem:[#allocation4 + $0x3d0] sm:$0xff] }
 0x987   : > { %v11688_v36 = vld [vmem:[#allocation82_spill] sm:$0xff]  ;;  %v11689_v13 = vld [vmem:[#allocation83_spill] sm:$0xff] }
 0x988   : > { %v6666_v39 = vadd.f32 %v6538_v8, %v5770_v54  ;;  %v6665_v27 = vadd.f32 %v6537_v56, %v5769_v55  ;;  %v5778_v42 = vmul.f32 %v5650_v3, %v11688_v36  ;;  %v5777_v61 = vmul.f32 %v5649_v10, %v11689_v13  ;;  %v5652_v55 = vld [vmem:[%s8876_s4 + $0x1e8] sm:$0xff]  ;;  %v3628_v56 = vld [vmem:[#allocation4 + $0x3e8] sm:$0xff] }
 0x989   : > { %v6115_v31 = vpop.permute.xlu1 %6114  ;;  %v6110_v16 = vpop.permute.xlu0 %6109 }
 0x98a   : > { %6794 = vst [vmem:[%s8921_s19 + $0x198] sm:$0xff] %v6666_v39  ;;  %v6540_v53 = vmul.f32 %v6115_v31, %v10222_v19  ;;  %6434 = vperm.xlu1 %7627, %v3620_v28   ;;  %6793 = vst [vmem:[%s8921_s19 + $0x190] sm:$0xff] %v6665_v27  ;;  %v6539_v18 = vmul.f32 %v6110_v16, %v10222_v19  ;;  %6429 = vperm.xlu0 %7626, %v3619_v62   ;;  %v5651_v28 = vld [vmem:[%s8876_s4 + $0x1e0] sm:$0xff]  ;;  %v3627_v39 = vld [vmem:[#allocation4 + $0x3e0] sm:$0xff] }
 0x98b   : > { %v11690_v31 = vld [vmem:[#allocation84_spill] sm:$0xff]  ;;  %v11691_v16 = vld [vmem:[#allocation85_spill] sm:$0xff] }
 0x98c   : > { %v6668_v24 = vadd.f32 %v6540_v53, %v5772_v23  ;;  %v6667_v44 = vadd.f32 %v6539_v18, %v5771_v4  ;;  %v5780_v5 = vmul.f32 %v5652_v55, %v11690_v31  ;;  %v5779_v0 = vmul.f32 %v5651_v28, %v11691_v16  ;;  %v5654_v4 = vld [vmem:[%s8876_s4 + $0x1f8] sm:$0xff]  ;;  %v3630_v18 = vld [vmem:[#allocation4 + $0x3f8] sm:$0xff] }
 0x98d   : > { %v6125_v45 = vpop.permute.xlu1 %6124  ;;  %v6120_v29 = vpop.permute.xlu0 %6119 }
 0x98e   : > { %6796 = vst [vmem:[%s8921_s19 + $0x1a8] sm:$0xff] %v6668_v24  ;;  %v6542_v22 = vmul.f32 %v6125_v45, %v10222_v19  ;;  %6444 = vperm.xlu1 %7627, %v3622_v6   ;;  %6795 = vst [vmem:[%s8921_s19 + $0x1a0] sm:$0xff] %v6667_v44  ;;  %v6541_v9 = vmul.f32 %v6120_v29, %v10222_v19  ;;  %6439 = vperm.xlu0 %7626, %v3621_v20   ;;  %v5653_v6 = vld [vmem:[%s8876_s4 + $0x1f0] sm:$0xff]  ;;  %v3629_v24 = vld [vmem:[#allocation4 + $0x3f0] sm:$0xff] }
 0x98f   : > { %v11693_v45 = vld [vmem:[#allocation86_spill] sm:$0xff]  ;;  %v11694_v29 = vld [vmem:[#allocation87_spill] sm:$0xff] }
 0x990   : > { %v6670_v11 = vadd.f32 %v6542_v22, %v5774_v57  ;;  %v6669_v47 = vadd.f32 %v6541_v9, %v5773_v15  ;;  %v5782_v1 = vmul.f32 %v5654_v4, %v11693_v45  ;;  %v5781_v59 = vmul.f32 %v5653_v6, %v11694_v29  ;;  %v5656_v15 = vld [vmem:[%s8876_s4 + $0x208] sm:$0xff]  ;;  %v5655_v9 = vld [vmem:[%s8876_s4 + $0x200] sm:$0xff] }
 0x991   : > { %v6135_v60 = vpop.permute.xlu1 %6134  ;;  %v6130_v51 = vpop.permute.xlu0 %6129 }
 0x992   : > { %6798 = vst [vmem:[%s8921_s19 + $0x1b8] sm:$0xff] %v6670_v11  ;;  %v6544_v43 = vmul.f32 %v6135_v60, %v10222_v19  ;;  %6454 = vperm.xlu1 %7627, %v3624_v32   ;;  %6797 = vst [vmem:[%s8921_s19 + $0x1b0] sm:$0xff] %v6669_v47  ;;  %v6543_v52 = vmul.f32 %v6130_v51, %v10222_v19  ;;  %6449 = vperm.xlu0 %7626, %v3623_v41   ;;  %v11695_v41 = vld [vmem:[#allocation88_spill] sm:$0xff] }
 0x993   : > { %v5784_v47 = vmul.f32 %v5656_v15, %v11695_v41 }
 0x994   : > { %v6672_v35 = vadd.f32 %v6544_v43, %v5776_v37  ;;  %v6671_v21 = vadd.f32 %v6543_v52, %v5775_v25  ;;  %v5658_v43 = vld [vmem:[%s8876_s4 + $0x218] sm:$0xff] }
 0x995   : > { %v6145_v12 = vpop.permute.xlu1 %6144  ;;  %v6140_v8 = vpop.permute.xlu0 %6139 }
 0x996   : > { %6800 = vst [vmem:[%s8921_s19 + $0x1c8] sm:$0xff] %v6672_v35  ;;  %v6546_v54 = vmul.f32 %v6145_v12, %v10222_v19  ;;  %6464 = vperm.xlu1 %7627, %v3626_v58   ;;  %6799 = vst [vmem:[%s8921_s19 + $0x1c0] sm:$0xff] %v6671_v21  ;;  %v6545_v38 = vmul.f32 %v6140_v8, %v10222_v19  ;;  %6459 = vperm.xlu0 %7626, %v3625_v14   ;;  %v11699_v58 = vld [vmem:[#allocation90_spill] sm:$0xff] }
 0x997   : > { %v5786_v10 = vmul.f32 %v5658_v43, %v11699_v58 }
 0x998   : > { %v6674_v40 = vadd.f32 %v6546_v54, %v5778_v42  ;;  %v6673_v62 = vadd.f32 %v6545_v38, %v5777_v61 }
 0x999   : > { %v6155_v27 = vpop.permute.xlu1 %6154  ;;  %v6150_v53 = vpop.permute.xlu0 %6149 }
 0x99a   : > { %6802 = vst [vmem:[%s8921_s19 + $0x1d8] sm:$0xff] %v6674_v40  ;;  %v6548_v23 = vmul.f32 %v6155_v27, %v10222_v19  ;;  %6474 = vperm.xlu1 %7627, %v3628_v56   ;;  %6801 = vst [vmem:[%s8921_s19 + $0x1d0] sm:$0xff] %v6673_v62  ;;  %v6547_v46 = vmul.f32 %v6150_v53, %v10222_v19  ;;  %6469 = vperm.xlu0 %7626, %v3627_v39  }
 0x99c   : > { %v6676_v63 = vadd.f32 %v6548_v23, %v5780_v5  ;;  %v6675_v20 = vadd.f32 %v6547_v46, %v5779_v0 }
 0x99d   : > { %v6165_v44 = vpop.permute.xlu1 %6164  ;;  %v6160_v22 = vpop.permute.xlu0 %6159 }
 0x99e   : > { %6804 = vst [vmem:[%s8921_s19 + $0x1e8] sm:$0xff] %v6676_v63  ;;  %v6550_v57 = vmul.f32 %v6165_v44, %v10222_v19  ;;  %6484 = vperm.xlu1 %7627, %v3630_v18   ;;  %6803 = vst [vmem:[%s8921_s19 + $0x1e0] sm:$0xff] %v6675_v20  ;;  %v6549_v2 = vmul.f32 %v6160_v22, %v10222_v19  ;;  %6479 = vperm.xlu0 %7626, %v3629_v24   ;;  %v11696_v19 = vld [vmem:[#allocation89_spill] sm:$0xff] }
 0x99f   : > { %v5783_v37 = vmul.f32 %v5655_v9, %v11696_v19 }
 0x9a0   : > { %v6678_v32 = vadd.f32 %v6550_v57, %v5782_v1  ;;  %v6677_v48 = vadd.f32 %v6549_v2, %v5781_v59 }
 0x9a1   : > { %v6175_v11 = vpop.permute.xlu1 %6174  ;;  %v6170_v7 = vpop.permute.xlu0 %6169 }
 0x9a2   : > { %6806 = vst [vmem:[%s8921_s19 + $0x1f8] sm:$0xff] %v6678_v32  ;;  %v6552_v60 = vmul.f32 %v6175_v11, %v10299_v33  ;;  %6805 = vst [vmem:[%s8921_s19 + $0x1f0] sm:$0xff] %v6677_v48  ;;  %v6551_v51 = vmul.f32 %v6170_v7, %v10299_v33 }
 0x9a4   : > { %v6680_v25 = vadd.f32 %v6552_v60, %v5784_v47  ;;  %v6679_v3 = vadd.f32 %v6551_v51, %v5783_v37 }
 0x9a5   : > { %v6185_v52 = vpop.permute.xlu1 %6184  ;;  %v6180_v14 = vpop.permute.xlu0 %6179 }
 0x9a6   : > { %6808 = vst [vmem:[%s8921_s19 + $0x208] sm:$0xff] %v6680_v25  ;;  %v6554_v35 = vmul.f32 %v6185_v52, %v10299_v33 }
 0x9a7   : > { %8022 = shalt.err (!%p8019_p12)
}
 0x9a8   : > { %s8023_s7 = scalar_lea.hbm %s10855_s22, 16384  ;;  %s8027_s29 = scalar_lea.hbm %s11698_s14, 131072 }
 0x9a9   : > { %p8024_p7 = scmp.ne.s32.totalorder %s10855_s22, %s8023_s7  ;;  %p8028_p10 = scmp.lt.u32.totalorder %s10855_s22, %s11698_s14 }
 0x9aa   : > { %p8029_p1 = scmp.lt.u32.totalorder %s8027_s29, %s8023_s7  ;;  %p8031_p9 = scmp.lt.u32.totalorder %s8023_s7, %s10855_s22 }
 0x9ab   : > { %p8025_p8 = pnand %p8024_p7, %p11700_p4 }
 0x9ac   : > { %p8030_p13 = por %p8029_p1, %p8028_p10 }
 0x9ad   : > { %p8026_p0 = pneg %p8025_p8 }
 0x9ae   : > { %p8032_p6 = por %p8031_p9, %p8030_p13 }
 0x9b0   : > { %p8033_p5 = pnand %p8032_p6, %p8026_p0 }
 0x9b2   : > { %8036 = shalt.err (!%p8033_p5)
}
 0x9b3   : > { %s8220_s24 = smov 128   ;;  %s8221_s8 = smov 256   ;;  %v11701_v21 = vld [vmem:[#allocation91_spill] sm:$0xff]  ;;  %6807 = vst [vmem:[%s8921_s19 + $0x200] sm:$0xff] %v6679_v3  ;;  %v6553_v42 = vmul.f32 %v6180_v14, %v10299_v33  ;;  %v5659_v54 = vld [vmem:[%s8876_s4 + $0x220] sm:$0xff]  ;;  %v6682_v8 = vadd.f32 %v6554_v35, %v5786_v10  ;;  %v6195_v61 = vpop.permute.xlu1 %6194  ;;  %v11702_v55 = vld [vmem:[#allocation92_spill] sm:$0xff]  ;;  %v6190_v28 = vpop.permute.xlu0 %6189 }
 0x9b4   : > { %s8222_s30 = smov 8   ;;  %v5785_v12 = vmul.f32 %v5657_v34, %v11701_v21  ;;  %v5660_v36 = vld [vmem:[%s8876_s4 + $0x228] sm:$0xff]  ;;  %v6556_v56 = vmul.f32 %v6195_v61, %v10299_v33  ;;  %v11703_v40 = vld [vmem:[#allocation93_spill] sm:$0xff]  ;;  %v6555_v27 = vmul.f32 %v6190_v28, %v10299_v33  ;;  %v5661_v31 = vld [vmem:[%s8876_s4 + $0x230] sm:$0xff]  ;;  %s6877_s11 = scalar_lea.sflag [#allocation28], %s8863_s9 }
 0x9b5   : > { %7407 = dma.vmem_to_hbm [thread:$0]  (%p11700_p4), %s10858_s10, 16384, %s10855_s22, %s6872_s12, %s8220_s24, %s8221_s8, %s8222_s30   ;;  %v5788_v38 = vmul.f32 %v5660_v36, %v11702_v55  ;;  %v5787_v39 = vmul.f32 %v5659_v54, %v11703_v40  ;;  %v11704_v16 = vld [vmem:[#allocation94_spill] sm:$0xff]  ;;  %v11705_v18 = vld [vmem:[#allocation95_spill] sm:$0xff]  ;;  %v11706_v57 = vld [vmem:[#allocation96_spill] sm:$0xff] }
 0x9b6   : > { %v6681_v13 = vadd.f32 %v6553_v42, %v5785_v12  ;;  %6810 = vst [vmem:[%s8921_s19 + $0x218] sm:$0xff] %v6682_v8  ;;  %v5662_v62 = vld [vmem:[%s8876_s4 + $0x238] sm:$0xff]  ;;  %v5789_v6 = vmul.f32 %v5661_v31, %v11705_v18  ;;  %v5664_v63 = vld [vmem:[%s8876_s4 + $0x248] sm:$0xff]  ;;  %v5663_v20 = vld [vmem:[%s8876_s4 + $0x240] sm:$0xff]  ;;  %s6915_s10 = sshll.u32 %s8921_s19, 4  ;;  %s11760_s12 = sld [smem:[#allocation166_spill]]  ;;  %s11141_s10 = int_to_ptr.vmem [resolvable:$true] %s6915_s10 }
 0x9b7   : > { %v6684_v5 = vadd.f32 %v6556_v56, %v5788_v38  ;;  %v6683_v23 = vadd.f32 %v6555_v27, %v5787_v39  ;;  %v6205_v53 = vpop.permute.xlu1 %6204  ;;  %v5790_v0 = vmul.f32 %v5662_v62, %v11704_v16  ;;  %v6200_v46 = vpop.permute.xlu0 %6199  ;;  %v5792_v22 = vmul.f32 %v5664_v63, %v11706_v57  ;;  %v11707_v15 = vld [vmem:[#allocation97_spill] sm:$0xff]  ;;  %v5665_v48 = vld [vmem:[%s8876_s4 + $0x250] sm:$0xff]  ;;  %v11708_v60 = vld [vmem:[#allocation98_spill] sm:$0xff]  ;;  %s8037_s13 = scalar_lea.vmem %s11141_s10, 16384  ;;  %s8223_s23 = smov [#allocation27]  }
 0x9b8   : > { %6809 = vst [vmem:[%s8921_s19 + $0x210] sm:$0xff] %v6681_v13  ;;  %v6558_v4 = vmul.f32 %v6205_v53, %v10299_v33  ;;  %v6557_v24 = vmul.f32 %v6200_v46, %v10299_v33  ;;  %v5791_v2 = vmul.f32 %v5663_v20, %v11707_v15  ;;  %v5666_v9 = vld [vmem:[%s8876_s4 + $0x258] sm:$0xff]  ;;  %v11709_v43 = vld [vmem:[#allocation99_spill] sm:$0xff]  ;;  %v5667_v3 = vld [vmem:[%s8876_s4 + $0x260] sm:$0xff]  ;;  %p8038_p3 = scmp.ne.s32.totalorder %s11141_s10, %s8037_s13  ;;  %s8041_s25 = sshll.u32 %s8223_s23, 4  ;;  %s8042_s25 = int_to_ptr.vmem [resolvable:$false] %s8041_s25 }
 0x9b9   : > { %6812 = vst [vmem:[%s8921_s19 + $0x228] sm:$0xff] %v6684_v5  ;;  %6811 = vst [vmem:[%s8921_s19 + $0x220] sm:$0xff] %v6683_v23  ;;  %v5794_v7 = vmul.f32 %v5666_v9, %v11708_v60  ;;  %v5793_v51 = vmul.f32 %v5665_v48, %v11709_v43  ;;  %v5668_v34 = vld [vmem:[%s8876_s4 + $0x268] sm:$0xff]  ;;  %v11710_v35 = vld [vmem:[#allocation100_spill] sm:$0xff]  ;;  %s8043_s7 = scalar_lea.vmem %s8042_s25, 32768  ;;  %p8044_p12 = scmp.lt.s32.totalorder %s11141_s10, %s8042_s25 }
 0x9ba   : > { %v6686_v44 = vadd.f32 %v6558_v4, %v5790_v0  ;;  %v6685_v45 = vadd.f32 %v6557_v24, %v5789_v6  ;;  %v5796_v14 = vmul.f32 %v5668_v34, %v11710_v35  ;;  %v11711_v36 = vld [vmem:[#allocation101_spill] sm:$0xff]  ;;  %v5669_v13 = vld [vmem:[%s8876_s4 + $0x270] sm:$0xff]  ;;  %v11712_v56 = vld [vmem:[#allocation102_spill] sm:$0xff]  ;;  %p8039_p2 = pnand %p8038_p3, %p11700_p4  ;;  %p8045_p7 = scmp.lt.s32.totalorder %s8043_s7, %s8037_s13 }
 0x9bb   : > { %v6215_v1 = vpop.permute.xlu1 %6214  ;;  %v6210_v59 = vpop.permute.xlu0 %6209  ;;  %v5795_v42 = vmul.f32 %v5667_v3, %v11711_v36  ;;  %v5670_v54 = vld [vmem:[%s8876_s4 + $0x278] sm:$0xff]  ;;  %v11713_v62 = vld [vmem:[#allocation103_spill] sm:$0xff]  ;;  %v5671_v23 = vld [vmem:[%s8876_s4 + $0x280] sm:$0xff] }
 0x9bc   : > { %6814 = vst [vmem:[%s8921_s19 + $0x238] sm:$0xff] %v6686_v44  ;;  %v6560_v29 = vmul.f32 %v6215_v1, %v10299_v33  ;;  %6813 = vst [vmem:[%s8921_s19 + $0x230] sm:$0xff] %v6685_v45  ;;  %v6559_v32 = vmul.f32 %v6210_v59, %v10299_v33  ;;  %v5798_v28 = vmul.f32 %v5670_v54, %v11712_v56  ;;  %v5672_v31 = vld [vmem:[%s8876_s4 + $0x288] sm:$0xff]  ;;  %v11714_v4 = vld [vmem:[#allocation104_spill] sm:$0xff]  ;;  %s11139_s21 = scalar_lea.hbm %s11760_s12, %s7359_s26  ;;  %p8040_p11 = pneg %p8039_p2 }
 0x9bd   : > { %v5797_v27 = vmul.f32 %v5669_v13, %v11713_v62  ;;  %v5800_v46 = vmul.f32 %v5672_v31, %v11714_v4  ;;  %v11715_v63 = vld [vmem:[#allocation105_spill] sm:$0xff]  ;;  %v5673_v44 = vld [vmem:[%s8876_s4 + $0x290] sm:$0xff]  ;;  %p8046_p8 = por %p8045_p7, %p8044_p12 }
 0x9be   : > { %v6688_v11 = vadd.f32 %v6560_v29, %v5792_v22  ;;  %v6687_v41 = vadd.f32 %v6559_v32, %v5791_v2  ;;  %v5799_v24 = vmul.f32 %v5671_v23, %v11715_v63  ;;  %v5674_v20 = vld [vmem:[%s8876_s4 + $0x298] sm:$0xff]  ;;  %v11716_v22 = vld [vmem:[#allocation106_spill] sm:$0xff]  ;;  %v11717_v2 = vld [vmem:[#allocation107_spill] sm:$0xff] }
 0x9bf   : > { %v6225_v47 = vpop.permute.xlu1 %6224  ;;  %v6220_v37 = vpop.permute.xlu0 %6219  ;;  %v5802_v29 = vmul.f32 %v5674_v20, %v11716_v22  ;;  %v5801_v9 = vmul.f32 %v5673_v44, %v11717_v2  ;;  %v5676_v32 = vld [vmem:[%s8876_s4 + $0x2a8] sm:$0xff]  ;;  %p8047_p0 = pnand %p8046_p8, %p8040_p11 }
 0x9c0   : > { %6816 = vst [vmem:[%s8921_s19 + $0x248] sm:$0xff] %v6688_v11  ;;  %v6562_v19 = vmul.f32 %v6225_v47, %v10299_v33  ;;  %6815 = vst [vmem:[%s8921_s19 + $0x240] sm:$0xff] %v6687_v41  ;;  %v6561_v25 = vmul.f32 %v6220_v37, %v10299_v33  ;;  %v5675_v11 = vld [vmem:[%s8876_s4 + $0x2a0] sm:$0xff] }
 0x9c2   : > { %v6690_v52 = vadd.f32 %v6562_v19, %v5794_v7  ;;  %v6689_v58 = vadd.f32 %v6561_v25, %v5793_v51  ;;  %v11718_v7 = vld [vmem:[#allocation108_spill] sm:$0xff]  ;;  %v11719_v51 = vld [vmem:[#allocation109_spill] sm:$0xff] }
 0x9c3   : > { %v6235_v10 = vpop.permute.xlu1 %6234  ;;  %v6230_v12 = vpop.permute.xlu0 %6229  ;;  %v5804_v19 = vmul.f32 %v5676_v32, %v11718_v7  ;;  %v5803_v34 = vmul.f32 %v5675_v11, %v11719_v51  ;;  %v5678_v25 = vld [vmem:[%s8876_s4 + $0x2b8] sm:$0xff] }
 0x9c4   : > { %6818 = vst [vmem:[%s8921_s19 + $0x258] sm:$0xff] %v6690_v52  ;;  %v6564_v21 = vmul.f32 %v6235_v10, %v10299_v33  ;;  %6817 = vst [vmem:[%s8921_s19 + $0x250] sm:$0xff] %v6689_v58  ;;  %v6563_v8 = vmul.f32 %v6230_v12, %v10299_v33  ;;  %v5677_v52 = vld [vmem:[%s8876_s4 + $0x2b0] sm:$0xff] }
 0x9c6   : > { %v6692_v61 = vadd.f32 %v6564_v21, %v5796_v14  ;;  %v6691_v55 = vadd.f32 %v6563_v8, %v5795_v42  ;;  %v11720_v14 = vld [vmem:[#allocation110_spill] sm:$0xff]  ;;  %v11721_v42 = vld [vmem:[#allocation111_spill] sm:$0xff] }
 0x9c7   : > { %v6245_v38 = vpop.permute.xlu1 %6244  ;;  %v6240_v39 = vpop.permute.xlu0 %6239  ;;  %v5806_v21 = vmul.f32 %v5678_v25, %v11720_v14  ;;  %v5805_v54 = vmul.f32 %v5677_v52, %v11721_v42  ;;  %v5680_v8 = vld [vmem:[%s8876_s4 + $0x2c8] sm:$0xff] }
 0x9c8   : > { %6820 = vst [vmem:[%s8921_s19 + $0x268] sm:$0xff] %v6692_v61  ;;  %v6566_v40 = vmul.f32 %v6245_v38, %v10299_v33  ;;  %6819 = vst [vmem:[%s8921_s19 + $0x260] sm:$0xff] %v6691_v55  ;;  %v6565_v5 = vmul.f32 %v6240_v39, %v10299_v33  ;;  %v5679_v61 = vld [vmem:[%s8876_s4 + $0x2c0] sm:$0xff] }
 0x9ca   : > { %v6694_v53 = vadd.f32 %v6566_v40, %v5798_v28  ;;  %v6693_v16 = vadd.f32 %v6565_v5, %v5797_v27  ;;  %v11722_v28 = vld [vmem:[#allocation112_spill] sm:$0xff]  ;;  %v11723_v27 = vld [vmem:[#allocation113_spill] sm:$0xff] }
 0x9cb   : > { %v6255_v0 = vpop.permute.xlu1 %6254  ;;  %v6250_v6 = vpop.permute.xlu0 %6249  ;;  %v5808_v40 = vmul.f32 %v5680_v8, %v11722_v28  ;;  %v5807_v31 = vmul.f32 %v5679_v61, %v11723_v27  ;;  %v5682_v5 = vld [vmem:[%s8876_s4 + $0x2d8] sm:$0xff]  ;;  %v5689_v61 = vld [vmem:[%s8876_s4 + $0x310] sm:$0xff]  ;;  %v11732_v28 = vld [vmem:[#allocation122_spill] sm:$0xff] }
 0x9cc   : > { %6822 = vst [vmem:[%s8921_s19 + $0x278] sm:$0xff] %v6694_v53  ;;  %v6568_v18 = vmul.f32 %v6255_v0, %v10372_v30  ;;  %6821 = vst [vmem:[%s8921_s19 + $0x270] sm:$0xff] %v6693_v16  ;;  %v6567_v33 = vmul.f32 %v6250_v6, %v10372_v30  ;;  %v5681_v53 = vld [vmem:[%s8876_s4 + $0x2d0] sm:$0xff]  ;;  %v11733_v27 = vld [vmem:[#allocation123_spill] sm:$0xff] }
 0x9ce   : > { %v6696_v45 = vadd.f32 %v6568_v18, %v5800_v46  ;;  %v6695_v1 = vadd.f32 %v6567_v33, %v5799_v24  ;;  %v11724_v46 = vld [vmem:[#allocation114_spill] sm:$0xff]  ;;  %v11725_v24 = vld [vmem:[#allocation115_spill] sm:$0xff] }
 0x9cf   : > { %v6265_v57 = vpop.permute.xlu1 %6264  ;;  %v6260_v15 = vpop.permute.xlu0 %6259  ;;  %v5810_v18 = vmul.f32 %v5682_v5, %v11724_v46  ;;  %v5809_v20 = vmul.f32 %v5681_v53, %v11725_v24  ;;  %v5684_v33 = vld [vmem:[%s8876_s4 + $0x2e8] sm:$0xff]  ;;  %v5691_v53 = vld [vmem:[%s8876_s4 + $0x320] sm:$0xff]  ;;  %v11734_v46 = vld [vmem:[#allocation124_spill] sm:$0xff] }
 0x9d0   : > { %6824 = vst [vmem:[%s8921_s19 + $0x288] sm:$0xff] %v6696_v45  ;;  %v6570_v59 = vmul.f32 %v6265_v57, %v10372_v30  ;;  %6823 = vst [vmem:[%s8921_s19 + $0x280] sm:$0xff] %v6695_v1  ;;  %v6569_v48 = vmul.f32 %v6260_v15, %v10372_v30  ;;  %v5683_v45 = vld [vmem:[%s8876_s4 + $0x2e0] sm:$0xff]  ;;  %v5692_v5 = vld [vmem:[%s8876_s4 + $0x328] sm:$0xff] }
 0x9d1   : > { %v11735_v24 = vld [vmem:[#allocation125_spill] sm:$0xff] }
 0x9d2   : > { %v6698_v41 = vadd.f32 %v6570_v59, %v5802_v29  ;;  %v6697_v47 = vadd.f32 %v6569_v48, %v5801_v9  ;;  %v11726_v29 = vld [vmem:[#allocation116_spill] sm:$0xff]  ;;  %v11727_v9 = vld [vmem:[#allocation117_spill] sm:$0xff] }
 0x9d3   : > { %v6275_v60 = vpop.permute.xlu1 %6274  ;;  %v6270_v43 = vpop.permute.xlu0 %6269  ;;  %v5812_v59 = vmul.f32 %v5684_v33, %v11726_v29  ;;  %v5811_v32 = vmul.f32 %v5683_v45, %v11727_v9  ;;  %v5686_v48 = vld [vmem:[%s8876_s4 + $0x2f8] sm:$0xff]  ;;  %v5693_v45 = vld [vmem:[%s8876_s4 + $0x330] sm:$0xff]  ;;  %v11736_v29 = vld [vmem:[#allocation126_spill] sm:$0xff] }
 0x9d4   : > { %6826 = vst [vmem:[%s8921_s19 + $0x298] sm:$0xff] %v6698_v41  ;;  %v6572_v37 = vmul.f32 %v6275_v60, %v10372_v30  ;;  %6825 = vst [vmem:[%s8921_s19 + $0x290] sm:$0xff] %v6697_v47  ;;  %v6571_v3 = vmul.f32 %v6270_v43, %v10372_v30  ;;  %v5685_v41 = vld [vmem:[%s8876_s4 + $0x2f0] sm:$0xff]  ;;  %v5694_v33 = vld [vmem:[%s8876_s4 + $0x338] sm:$0xff] }
 0x9d5   : > { %v11737_v9 = vld [vmem:[#allocation127_spill] sm:$0xff] }
 0x9d6   : > { %v6700_v58 = vadd.f32 %v6572_v37, %v5804_v19  ;;  %v6699_v10 = vadd.f32 %v6571_v3, %v5803_v34  ;;  %v11728_v19 = vld [vmem:[#allocation118_spill] sm:$0xff]  ;;  %v11729_v34 = vld [vmem:[#allocation119_spill] sm:$0xff] }
 0x9d7   : > { %v6285_v35 = vpop.permute.xlu1 %6284  ;;  %v6280_v36 = vpop.permute.xlu0 %6279  ;;  %v5814_v37 = vmul.f32 %v5686_v48, %v11728_v19  ;;  %v5813_v25 = vmul.f32 %v5685_v41, %v11729_v34  ;;  %v5688_v3 = vld [vmem:[%s8876_s4 + $0x308] sm:$0xff]  ;;  %v5695_v41 = vld [vmem:[%s8876_s4 + $0x340] sm:$0xff]  ;;  %v11738_v19 = vld [vmem:[#allocation128_spill] sm:$0xff] }
 0x9d8   : > { %6828 = vst [vmem:[%s8921_s19 + $0x2a8] sm:$0xff] %v6700_v58  ;;  %v6574_v12 = vmul.f32 %v6285_v35, %v10372_v30  ;;  %6827 = vst [vmem:[%s8921_s19 + $0x2a0] sm:$0xff] %v6699_v10  ;;  %v6573_v13 = vmul.f32 %v6280_v36, %v10372_v30  ;;  %v5687_v58 = vld [vmem:[%s8876_s4 + $0x300] sm:$0xff]  ;;  %v5696_v48 = vld [vmem:[%s8876_s4 + $0x348] sm:$0xff] }
 0x9d9   : > { %v11739_v34 = vld [vmem:[#allocation129_spill] sm:$0xff] }
 0x9da   : > { %v6702_v55 = vadd.f32 %v6574_v12, %v5806_v21  ;;  %v6701_v38 = vadd.f32 %v6573_v13, %v5805_v54  ;;  %v11730_v21 = vld [vmem:[#allocation120_spill] sm:$0xff]  ;;  %v11731_v54 = vld [vmem:[#allocation121_spill] sm:$0xff] }
 0x9db   : > { %v6295_v56 = vpop.permute.xlu1 %6294  ;;  %v6290_v62 = vpop.permute.xlu0 %6289  ;;  %v5816_v12 = vmul.f32 %v5688_v3, %v11730_v21  ;;  %v5815_v8 = vmul.f32 %v5687_v58, %v11731_v54  ;;  %v5690_v13 = vld [vmem:[%s8876_s4 + $0x318] sm:$0xff]  ;;  %v5697_v58 = vld [vmem:[%s8876_s4 + $0x350] sm:$0xff] }
 0x9dc   : > { %6830 = vst [vmem:[%s8921_s19 + $0x2b8] sm:$0xff] %v6702_v55  ;;  %v6576_v39 = vmul.f32 %v6295_v56, %v10372_v30  ;;  %6829 = vst [vmem:[%s8921_s19 + $0x2b0] sm:$0xff] %v6701_v38  ;;  %v6575_v23 = vmul.f32 %v6290_v62, %v10372_v30  ;;  %v5698_v3 = vld [vmem:[%s8876_s4 + $0x358] sm:$0xff] }
 0x9dd   : > { %v5826_v21 = vmul.f32 %v5698_v3, %v11643_v49 }
 0x9de   : > { %v6704_v16 = vadd.f32 %v6576_v39, %v5808_v40  ;;  %v6703_v0 = vadd.f32 %v6575_v23, %v5807_v31  ;;  %v5818_v40 = vmul.f32 %v5690_v13, %v11732_v28  ;;  %v5817_v31 = vmul.f32 %v5689_v61, %v11733_v27  ;;  %v5702_v27 = vld [vmem:[%s8876_s4 + $0x378] sm:$0xff] }
 0x9df   : > { %v6305_v4 = vpop.permute.xlu1 %6304  ;;  %v6300_v63 = vpop.permute.xlu0 %6299 }
 0x9e0   : > { %6832 = vst [vmem:[%s8921_s19 + $0x2c8] sm:$0xff] %v6704_v16  ;;  %v6578_v6 = vmul.f32 %v6305_v4, %v10372_v30  ;;  %6831 = vst [vmem:[%s8921_s19 + $0x2c0] sm:$0xff] %v6703_v0  ;;  %v6577_v44 = vmul.f32 %v6300_v63, %v10372_v30 }
 0x9e2   : > { %v6706_v1 = vadd.f32 %v6578_v6, %v5810_v18  ;;  %v6705_v57 = vadd.f32 %v6577_v44, %v5809_v20  ;;  %v5820_v18 = vmul.f32 %v5692_v5, %v11734_v46  ;;  %v5819_v20 = vmul.f32 %v5691_v53, %v11735_v24  ;;  %v5701_v5 = vld [vmem:[%s8876_s4 + $0x370] sm:$0xff]  ;;  %v5704_v24 = vld [vmem:[%s8876_s4 + $0x388] sm:$0xff] }
 0x9e3   : > { %v6315_v22 = vpop.permute.xlu1 %6314  ;;  %v6310_v2 = vpop.permute.xlu0 %6309 }
 0x9e4   : > { %6834 = vst [vmem:[%s8921_s19 + $0x2d8] sm:$0xff] %v6706_v1  ;;  %v6580_v15 = vmul.f32 %v6315_v22, %v10372_v30  ;;  %6833 = vst [vmem:[%s8921_s19 + $0x2d0] sm:$0xff] %v6705_v57  ;;  %v6579_v11 = vmul.f32 %v6310_v2, %v10372_v30 }
 0x9e6   : > { %v6708_v47 = vadd.f32 %v6580_v15, %v5812_v59  ;;  %v6707_v60 = vadd.f32 %v6579_v11, %v5811_v32  ;;  %v5822_v59 = vmul.f32 %v5694_v33, %v11736_v29  ;;  %v5821_v32 = vmul.f32 %v5693_v45, %v11737_v9  ;;  %v5703_v33 = vld [vmem:[%s8876_s4 + $0x380] sm:$0xff]  ;;  %v5706_v9 = vld [vmem:[%s8876_s4 + $0x398] sm:$0xff] }
 0x9e7   : > { %v6325_v7 = vpop.permute.xlu1 %6324  ;;  %v6320_v51 = vpop.permute.xlu0 %6319 }
 0x9e8   : > { %6836 = vst [vmem:[%s8921_s19 + $0x2e8] sm:$0xff] %v6708_v47  ;;  %v6582_v43 = vmul.f32 %v6325_v7, %v10372_v30  ;;  %6835 = vst [vmem:[%s8921_s19 + $0x2e0] sm:$0xff] %v6707_v60  ;;  %v6581_v52 = vmul.f32 %v6320_v51, %v10372_v30 }
 0x9ea   : > { %v6710_v10 = vadd.f32 %v6582_v43, %v5814_v37  ;;  %v6709_v35 = vadd.f32 %v6581_v52, %v5813_v25  ;;  %v5824_v37 = vmul.f32 %v5696_v48, %v11738_v19  ;;  %v5823_v25 = vmul.f32 %v5695_v41, %v11739_v34 }
 0x9eb   : > { %v6335_v14 = vpop.permute.xlu1 %6334  ;;  %v6330_v42 = vpop.permute.xlu0 %6329 }
 0x9ec   : > { %6838 = vst [vmem:[%s8921_s19 + $0x2f8] sm:$0xff] %v6710_v10  ;;  %v6584_v36 = vmul.f32 %v6335_v14, %v10441_v17  ;;  %6837 = vst [vmem:[%s8921_s19 + $0x2f0] sm:$0xff] %v6709_v35  ;;  %v6583_v30 = vmul.f32 %v6330_v42, %v10441_v17  ;;  %v11740_v42 = vld [vmem:[#allocation131_spill] sm:$0xff] }
 0x9ed   : > { %v5825_v54 = vmul.f32 %v5697_v58, %v11740_v42  ;;  %v5710_v42 = vld [vmem:[%s8876_s4 + $0x3b8] sm:$0xff] }
 0x9ee   : > { %v6712_v55 = vadd.f32 %v6584_v36, %v5816_v12  ;;  %v6711_v38 = vadd.f32 %v6583_v30, %v5815_v8  ;;  %v5700_v8 = vld [vmem:[%s8876_s4 + $0x368] sm:$0xff]  ;;  %v5699_v30 = vld [vmem:[%s8876_s4 + $0x360] sm:$0xff] }
 0x9ef   : > { %v6345_v56 = vpop.permute.xlu1 %6344  ;;  %v6340_v62 = vpop.permute.xlu0 %6339 }
 0x9f0   : > { %6840 = vst [vmem:[%s8921_s19 + $0x308] sm:$0xff] %v6712_v55  ;;  %v6586_v39 = vmul.f32 %v6345_v56, %v10441_v17  ;;  %6839 = vst [vmem:[%s8921_s19 + $0x300] sm:$0xff] %v6711_v38  ;;  %v6585_v23 = vmul.f32 %v6340_v62, %v10441_v17  ;;  %v11741_v56 = vld [vmem:[#allocation132_spill] sm:$0xff] }
 0x9f1   : > { %v5828_v49 = vmul.f32 %v5700_v8, %v11741_v56  ;;  %v5709_v8 = vld [vmem:[%s8876_s4 + $0x3b0] sm:$0xff] }
 0x9f2   : > { %v6714_v16 = vadd.f32 %v6586_v39, %v5818_v40  ;;  %v6713_v0 = vadd.f32 %v6585_v23, %v5817_v31  ;;  %v11742_v39 = vld [vmem:[#allocation133_spill] sm:$0xff] }
 0x9f3   : > { %v6355_v4 = vpop.permute.xlu1 %6354  ;;  %v6350_v63 = vpop.permute.xlu0 %6349  ;;  %v5827_v62 = vmul.f32 %v5699_v30, %v11742_v39  ;;  %v5712_v39 = vld [vmem:[%s8876_s4 + $0x3c8] sm:$0xff] }
 0x9f4   : > { %6842 = vst [vmem:[%s8921_s19 + $0x318] sm:$0xff] %v6714_v16  ;;  %v6588_v6 = vmul.f32 %v6355_v4, %v10441_v17  ;;  %6841 = vst [vmem:[%s8921_s19 + $0x310] sm:$0xff] %v6713_v0  ;;  %v6587_v44 = vmul.f32 %v6350_v63, %v10441_v17  ;;  %v11743_v0 = vld [vmem:[#allocation134_spill] sm:$0xff] }
 0x9f5   : > { %v5830_v4 = vmul.f32 %v5702_v27, %v11743_v0  ;;  %v5711_v27 = vld [vmem:[%s8876_s4 + $0x3c0] sm:$0xff] }
 0x9f6   : > { %v6716_v1 = vadd.f32 %v6588_v6, %v5820_v18  ;;  %v6715_v57 = vadd.f32 %v6587_v44, %v5819_v20  ;;  %v11744_v6 = vld [vmem:[#allocation135_spill] sm:$0xff] }
 0x9f7   : > { %v6365_v22 = vpop.permute.xlu1 %6364  ;;  %v6360_v2 = vpop.permute.xlu0 %6359  ;;  %v5829_v63 = vmul.f32 %v5701_v5, %v11744_v6  ;;  %v5714_v6 = vld [vmem:[%s8876_s4 + $0x3d8] sm:$0xff] }
 0x9f8   : > { %6844 = vst [vmem:[%s8921_s19 + $0x328] sm:$0xff] %v6716_v1  ;;  %v6590_v15 = vmul.f32 %v6365_v22, %v10441_v17  ;;  %6843 = vst [vmem:[%s8921_s19 + $0x320] sm:$0xff] %v6715_v57  ;;  %v6589_v11 = vmul.f32 %v6360_v2, %v10441_v17  ;;  %v11745_v57 = vld [vmem:[#allocation136_spill] sm:$0xff] }
 0x9f9   : > { %v5832_v22 = vmul.f32 %v5704_v24, %v11745_v57  ;;  %v5713_v24 = vld [vmem:[%s8876_s4 + $0x3d0] sm:$0xff] }
 0x9fa   : > { %v6718_v47 = vadd.f32 %v6590_v15, %v5822_v59  ;;  %v6717_v60 = vadd.f32 %v6589_v11, %v5821_v32  ;;  %v11746_v15 = vld [vmem:[#allocation137_spill] sm:$0xff]  ;;  %v5705_v32 = vld [vmem:[%s8876_s4 + $0x390] sm:$0xff] }
 0x9fb   : > { %v6375_v7 = vpop.permute.xlu1 %6374  ;;  %v6370_v51 = vpop.permute.xlu0 %6369  ;;  %v5831_v2 = vmul.f32 %v5703_v33, %v11746_v15  ;;  %v5716_v15 = vld [vmem:[%s8876_s4 + $0x3e8] sm:$0xff] }
 0x9fc   : > { %6846 = vst [vmem:[%s8921_s19 + $0x338] sm:$0xff] %v6718_v47  ;;  %v6592_v43 = vmul.f32 %v6375_v7, %v10441_v17  ;;  %6845 = vst [vmem:[%s8921_s19 + $0x330] sm:$0xff] %v6717_v60  ;;  %v6591_v52 = vmul.f32 %v6370_v51, %v10441_v17  ;;  %v11747_v47 = vld [vmem:[#allocation138_spill] sm:$0xff]  ;;  %v5708_v51 = vld [vmem:[%s8876_s4 + $0x3a8] sm:$0xff] }
 0x9fd   : > { %v5834_v60 = vmul.f32 %v5706_v9, %v11747_v47  ;;  %v5715_v9 = vld [vmem:[%s8876_s4 + $0x3e0] sm:$0xff] }
 0x9fe   : > { %v6720_v10 = vadd.f32 %v6592_v43, %v5824_v37  ;;  %v6719_v35 = vadd.f32 %v6591_v52, %v5823_v25  ;;  %v11748_v37 = vld [vmem:[#allocation139_spill] sm:$0xff]  ;;  %v5707_v25 = vld [vmem:[%s8876_s4 + $0x3a0] sm:$0xff] }
 0x9ff   : > { %v6385_v14 = vpop.permute.xlu1 %6384  ;;  %v6380_v36 = vpop.permute.xlu0 %6379  ;;  %v5833_v43 = vmul.f32 %v5705_v32, %v11748_v37  ;;  %v5718_v37 = vld [vmem:[%s8876_s4 + $0x3f8] sm:$0xff] }
 0xa00   : > { %6848 = vst [vmem:[%s8921_s19 + $0x348] sm:$0xff] %v6720_v10  ;;  %v6594_v12 = vmul.f32 %v6385_v14, %v10441_v17  ;;  %6847 = vst [vmem:[%s8921_s19 + $0x340] sm:$0xff] %v6719_v35  ;;  %v6593_v13 = vmul.f32 %v6380_v36, %v10441_v17  ;;  %v11749_v10 = vld [vmem:[#allocation140_spill] sm:$0xff] }
 0xa01   : > { %v5836_v35 = vmul.f32 %v5708_v51, %v11749_v10  ;;  %v5717_v51 = vld [vmem:[%s8876_s4 + $0x3f0] sm:$0xff] }
 0xa02   : > { %v6722_v61 = vadd.f32 %v6594_v12, %v5826_v21  ;;  %v6721_v55 = vadd.f32 %v6593_v13, %v5825_v54  ;;  %v11750_v12 = vld [vmem:[#allocation141_spill] sm:$0xff] }
 0xa03   : > { %v6395_v38 = vpop.permute.xlu1 %6394  ;;  %v6390_v40 = vpop.permute.xlu0 %6389  ;;  %v5835_v36 = vmul.f32 %v5707_v25, %v11750_v12 }
 0xa04   : > { %6850 = vst [vmem:[%s8921_s19 + $0x358] sm:$0xff] %v6722_v61  ;;  %v6596_v28 = vmul.f32 %v6395_v38, %v10441_v17  ;;  %6849 = vst [vmem:[%s8921_s19 + $0x350] sm:$0xff] %v6721_v55  ;;  %v6595_v31 = vmul.f32 %v6390_v40, %v10441_v17  ;;  %v11751_v55 = vld [vmem:[#allocation142_spill] sm:$0xff] }
 0xa05   : > { %v5838_v38 = vmul.f32 %v5710_v42, %v11751_v55 }
 0xa06   : > { %v6724_v23 = vadd.f32 %v6596_v28, %v5828_v49  ;;  %v6723_v53 = vadd.f32 %v6595_v31, %v5827_v62  ;;  %v11752_v28 = vld [vmem:[#allocation143_spill] sm:$0xff] }
 0xa07   : > { %v6405_v16 = vpop.permute.xlu1 %6404  ;;  %v6400_v18 = vpop.permute.xlu0 %6399  ;;  %v5837_v40 = vmul.f32 %v5709_v8, %v11752_v28 }
 0xa08   : > { %6852 = vst [vmem:[%s8921_s19 + $0x368] sm:$0xff] %v6724_v23  ;;  %v6598_v46 = vmul.f32 %v6405_v16, %v10441_v17  ;;  %6851 = vst [vmem:[%s8921_s19 + $0x360] sm:$0xff] %v6723_v53  ;;  %v6597_v20 = vmul.f32 %v6400_v18, %v10441_v17  ;;  %v11753_v53 = vld [vmem:[#allocation144_spill] sm:$0xff] }
 0xa09   : > { %v5840_v16 = vmul.f32 %v5712_v39, %v11753_v53 }
 0xa0a   : > { %v6726_v44 = vadd.f32 %v6598_v46, %v5830_v4  ;;  %v6725_v45 = vadd.f32 %v6597_v20, %v5829_v63  ;;  %v11754_v46 = vld [vmem:[#allocation145_spill] sm:$0xff] }
 0xa0b   : > { %v6415_v1 = vpop.permute.xlu1 %6414  ;;  %v6410_v59 = vpop.permute.xlu0 %6409  ;;  %v5839_v18 = vmul.f32 %v5711_v27, %v11754_v46 }
 0xa0c   : > { %6854 = vst [vmem:[%s8921_s19 + $0x378] sm:$0xff] %v6726_v44  ;;  %v6600_v29 = vmul.f32 %v6415_v1, %v10510_v50  ;;  %6853 = vst [vmem:[%s8921_s19 + $0x370] sm:$0xff] %v6725_v45  ;;  %v6599_v17 = vmul.f32 %v6410_v59, %v10510_v50  ;;  %v11755_v45 = vld [vmem:[#allocation147_spill] sm:$0xff] }
 0xa0d   : > { %v5842_v1 = vmul.f32 %v5714_v6, %v11755_v45 }
 0xa0e   : > { %v6728_v48 = vadd.f32 %v6600_v29, %v5832_v22  ;;  %v6727_v11 = vadd.f32 %v6599_v17, %v5831_v2  ;;  %v11756_v29 = vld [vmem:[#allocation148_spill] sm:$0xff] }
 0xa0f   : > { %v6425_v41 = vpop.permute.xlu1 %6424  ;;  %v6420_v19 = vpop.permute.xlu0 %6419  ;;  %v5841_v59 = vmul.f32 %v5713_v24, %v11756_v29 }
 0xa10   : > { %6856 = vst [vmem:[%s8921_s19 + $0x388] sm:$0xff] %v6728_v48  ;;  %v6602_v7 = vmul.f32 %v6425_v41, %v10510_v50  ;;  %6855 = vst [vmem:[%s8921_s19 + $0x380] sm:$0xff] %v6727_v11  ;;  %v6601_v34 = vmul.f32 %v6420_v19, %v10510_v50  ;;  %v11757_v11 = vld [vmem:[#allocation149_spill] sm:$0xff] }
 0xa11   : > { %v5844_v41 = vmul.f32 %v5716_v15, %v11757_v11 }
 0xa12   : > { %v6730_v3 = vadd.f32 %v6602_v7, %v5834_v60  ;;  %v6729_v52 = vadd.f32 %v6601_v34, %v5833_v43  ;;  %v11758_v7 = vld [vmem:[#allocation150_spill] sm:$0xff] }
 0xa13   : > { %v6435_v58 = vpop.permute.xlu1 %6434  ;;  %v6430_v21 = vpop.permute.xlu0 %6429  ;;  %v5843_v19 = vmul.f32 %v5715_v9, %v11758_v7 }
 0xa14   : > { %6858 = vst [vmem:[%s8921_s19 + $0x398] sm:$0xff] %v6730_v3  ;;  %v6604_v14 = vmul.f32 %v6435_v58, %v10510_v50  ;;  %6857 = vst [vmem:[%s8921_s19 + $0x390] sm:$0xff] %v6729_v52  ;;  %v6603_v54 = vmul.f32 %v6430_v21, %v10510_v50  ;;  %v5846_v52 = vmul.f32 %v5718_v37, %v11663_v26 }
 0xa16   : > { %v6732_v13 = vadd.f32 %v6604_v14, %v5836_v35  ;;  %v6731_v30 = vadd.f32 %v6603_v54, %v5835_v36  ;;  %v11759_v35 = vld [vmem:[#allocation152_spill] sm:$0xff] }
 0xa17   : > { %v6445_v61 = vpop.permute.xlu1 %6444  ;;  %v6440_v49 = vpop.permute.xlu0 %6439  ;;  %v5845_v14 = vmul.f32 %v5717_v51, %v11759_v35 }
 0xa18   : > { %6860 = vst [vmem:[%s8921_s19 + $0x3a8] sm:$0xff] %v6732_v13  ;;  %v6606_v56 = vmul.f32 %v6445_v61, %v10510_v50  ;;  %6859 = vst [vmem:[%s8921_s19 + $0x3a0] sm:$0xff] %v6731_v30  ;;  %v6605_v62 = vmul.f32 %v6440_v49, %v10510_v50 }
 0xa1a   : > { %v6734_v31 = vadd.f32 %v6606_v56, %v5838_v38  ;;  %v6733_v5 = vadd.f32 %v6605_v62, %v5837_v40 }
 0xa1b   : > { %v6455_v23 = vpop.permute.xlu1 %6454  ;;  %v6450_v4 = vpop.permute.xlu0 %6449 }
 0xa1c   : > { %6862 = vst [vmem:[%s8921_s19 + $0x3b8] sm:$0xff] %v6734_v31  ;;  %v6608_v0 = vmul.f32 %v6455_v23, %v10510_v50  ;;  %6861 = vst [vmem:[%s8921_s19 + $0x3b0] sm:$0xff] %v6733_v5  ;;  %v6607_v63 = vmul.f32 %v6450_v4, %v10510_v50 }
 0xa1e   : > { %v6736_v20 = vadd.f32 %v6608_v0, %v5840_v16  ;;  %v6735_v33 = vadd.f32 %v6607_v63, %v5839_v18 }
 0xa1f   : > { %v6465_v44 = vpop.permute.xlu1 %6464  ;;  %v6460_v22 = vpop.permute.xlu0 %6459 }
 0xa20   : > { %6864 = vst [vmem:[%s8921_s19 + $0x3c8] sm:$0xff] %v6736_v20  ;;  %v6610_v57 = vmul.f32 %v6465_v44, %v10510_v50  ;;  %6863 = vst [vmem:[%s8921_s19 + $0x3c0] sm:$0xff] %v6735_v33  ;;  %v6609_v2 = vmul.f32 %v6460_v22, %v10510_v50 }
 0xa22   : > { %v6738_v17 = vadd.f32 %v6610_v57, %v5842_v1  ;;  %v6737_v32 = vadd.f32 %v6609_v2, %v5841_v59 }
 0xa23   : > { %v6475_v48 = vpop.permute.xlu1 %6474  ;;  %v6470_v60 = vpop.permute.xlu0 %6469 }
 0xa24   : > { %6866 = vst [vmem:[%s8921_s19 + $0x3d8] sm:$0xff] %v6738_v17  ;;  %v6612_v47 = vmul.f32 %v6475_v48, %v10510_v50  ;;  %6865 = vst [vmem:[%s8921_s19 + $0x3d0] sm:$0xff] %v6737_v32  ;;  %v6611_v43 = vmul.f32 %v6470_v60, %v10510_v50 }
 0xa26   : > { %v6740_v34 = vadd.f32 %v6612_v47, %v5844_v41  ;;  %v6739_v25 = vadd.f32 %v6611_v43, %v5843_v19 }
 0xa27   : > { %v6485_v3 = vpop.permute.xlu1 %6484  ;;  %v6480_v10 = vpop.permute.xlu0 %6479 }
 0xa28   : > { %6868 = vst [vmem:[%s8921_s19 + $0x3e8] sm:$0xff] %v6740_v34  ;;  %v6614_v58 = vmul.f32 %v6485_v3, %v10510_v50  ;;  %6867 = vst [vmem:[%s8921_s19 + $0x3e0] sm:$0xff] %v6739_v25  ;;  %v6613_v21 = vmul.f32 %v6480_v10, %v10510_v50 }
 0xa2a   : > { %v6742_v12 = vadd.f32 %v6614_v58, %v5846_v52  ;;  %v6741_v36 = vadd.f32 %v6613_v21, %v5845_v14 }
 0xa2c   : > { %6870 = vst [vmem:[%s8921_s19 + $0x3f8] sm:$0xff] %v6742_v12  ;;  %6869 = vst [vmem:[%s8921_s19 + $0x3f0] sm:$0xff] %v6741_v36 }
 0xa2d   : > { %8050 = shalt.err (!%p8047_p0)
}
 0xa2e   : > { %s8051_s19 = scalar_lea.hbm %s11139_s21, 16384  ;;  %s8055_s3 = scalar_lea.hbm %s11760_s12, 131072 }
 0xa2f   : > { %p8052_p10 = scmp.ne.s32.totalorder %s11139_s21, %s8051_s19  ;;  %p8056_p9 = scmp.lt.u32.totalorder %s11139_s21, %s11760_s12 }
 0xa30   : > { %p8057_p6 = scmp.lt.u32.totalorder %s8055_s3, %s8051_s19  ;;  %p8059_p3 = scmp.lt.u32.totalorder %s8051_s19, %s11139_s21 }
 0xa31   : > { %p8053_p1 = pnand %p8052_p10, %p11700_p4 }
 0xa32   : > { %p8058_p5 = por %p8057_p6, %p8056_p9 }
 0xa33   : > { %p8054_p13 = pneg %p8053_p1 }
 0xa34   : > { %p8060_p2 = por %p8059_p3, %p8058_p5 }
 0xa36   : > { %p8061_p11 = pnand %p8060_p2, %p8054_p13 }
 0xa38   : > { %8064 = shalt.err (!%p8061_p11)
}
 0xa39   : > { %7408 = dma.vmem_to_hbm [thread:$0]  (%p11700_p4), %s11141_s10, 16384, %s11139_s21, %s6877_s11, %s8220_s24, %s8221_s8, %s8222_s30  }
 0xa3a PF: > { %s11761_s17 = sld [smem:[#allocation41_spill]]  ;;  %s11762_s4 = sld [smem:[#allocation56_spill]] }
 0xa3b   : > { %p7470_p12 = scmp.ge.s32.totalorder %s8199_s28, 2 }
 0xa40   : > { %s6933_s22 = sand.u32 1, %s11761_s17   ;;  %p11763_p7 = scmp.ne.s32.totalorder %s11762_s4, 0 }
 0xa41   : > { %s6934_s13 = scalar_lea.sflag [#allocation7], %s6933_s22 }
 0xa42   : > { %p7453_p8 = pnand %p7470_p12, %p11763_p7 }
 0xa44   : > { %8150 = dma.done.wait (!%p7453_p8), %s6934_s13, 16384  }
 0xa45   : > { %8152 = vsyncadd (!%p7453_p8), %s6934_s13, 4294950912  ;;  %s6943_s18 = scalar_lea.sflag [#allocation28], %s6933_s22 }
 0xa46   : > { %8154 = dma.done.wait (!%p7453_p8), %s6943_s18, 16384  }
 0xa47   : > { %8156 = vsyncadd (!%p7453_p8), %s6943_s18, 4294950912  ;;  %s49_s28 = sadd.s32 1, %s8199_s28   ;;  %s11764_s18 = sld [smem:[#allocation42_spill]] }
 0xa48   : > { %p46_p0 = scmp.ge.s32.totalorder %s49_s28, 10   ;;  %s11765_s9 = sld [smem:[#allocation58_spill]] }
 0xa49   : > { %s11766_s21 = sld [smem:[#allocation43_spill]]  ;;  %s11767_s22 = sld [smem:[#allocation44_spill]] }
 0xa4a   : > { %s11768_s23 = sld [smem:[#allocation57_spill]]  ;;  %s11769_s24 = sld [smem:[#allocation47_spill]] }
 0xa4b   : > { %s11770_s26 = sld [smem:[#allocation52_spill]]  ;;  %s11771_s8 = sld [smem:[#allocation55_spill]] }
 0xa4c   : > { %s11772_s19 = smov %s8167_s20  ;;  %s11774_s25 = smov %s8195_s27 }
 0xa4d   :  { %48 = sbr.rel (!%p46_p0) target bundleno = 37 (0x25), region = 256 }
 0xa4e   : > { %s11773_s20 = smov %s11765_s9 }
 0xa51   : > { %s11775_s27 = smov %s11771_s8 }
 0xa54   :  { %6956 = vsyncpa [#allocation6], 1 }
 0xa55   :  { %6958 = vsyncpa [#allocation6 + $0x1], 1 }
 0xa56   :  { %6959 = vsyncpa [#allocation9], 1 }
 0xa57   :  { %6961 = vsyncpa [#allocation9 + $0x1], 1 }
 0xa58   :  { %6962 = vsyncpa [#allocation12], 1 }
 0xa59   :  { %6964 = vsyncpa [#allocation12 + $0x1], 1 }
 0xa5a   :  { %6965 = vsyncpa [#allocation15], 1 }
 0xa5b   :  { %6967 = vsyncpa [#allocation15 + $0x1], 1 }
 0xa5c   :  { %6968 = vsyncpa [#allocation18], 1 }
 0xa5d   :  { %6970 = vsyncpa [#allocation18 + $0x1], 1 }
 0xa5e   :  { %6971 = vsyncpa [#allocation21], 1 }
 0xa5f   :  { %6972 = vsyncpa [#allocation24], 1 }
 0xa60   :  { %6973 = vsyncpa [#allocation7], 1 }
 0xa61   :  { %6975 = vsyncpa [#allocation7 + $0x1], 1 }
 0xa62   :  { %6976 = vsyncpa [#allocation28], 1 }
 0xa63   :  { %6978 = vsyncpa [#allocation28 + $0x1], 1 }

</bundles_post_ra>
